<compile_context>
chip_gen: v5e
topology: v5e:2x2
jax: 0.10.0
libtpu: 0.0.40
codegen_flags: <defaults>
</compile_context>

<pallas_src>
import functools

import jax
import jax.numpy as jnp
from jax import lax
from jax.experimental import pallas as pl
from jax.experimental.pallas import tpu as pltpu


def _round_up(x, m):
    return (x + m - 1) // m * m


def _lstm_encoder_kernel(x_ref, w_ref, b_ref, len_ref, out_ref, xbuf,
                         *, n_layers, seq_len, gate_pad):
    """Fused multi-layer LSTM + length-indexed gather for one batch tile.

    x_ref  : (T, BT, P)   f32  padded embeddings (layer-0 input)
    w_ref  : (L, 2P, 4P)  f32  stacked [W_ih^T ; W_hh^T], zero padded
    b_ref  : (L, 1, 4P)   f32  stacked (b_ih + b_hh), zero padded
    len_ref: (BT, 1)      i32  sequence lengths
    out_ref: (BT, P)      f32  rec[len-1] of the last layer
    xbuf   : (T, BT, P)   f32  VMEM scratch: per-step outputs fed to next layer
    """
    P = gate_pad
    bt = out_ref.shape[0]
    lens = len_ref[...]                                   # (BT, 1) int32

    out_acc = jnp.zeros((bt, P), jnp.float32)

    for l in range(n_layers):                             # static unroll (L=2)
        w = w_ref[l]                                      # (2P, 4P)
        bias = b_ref[l]                                   # (1, 4P)
        src = x_ref if l == 0 else xbuf
        is_last = (l == n_layers - 1)

        h = jnp.zeros((bt, P), jnp.float32)               # zero init_hidden
        c = jnp.zeros((bt, P), jnp.float32)

        # TODO(synk): for long sequences replace this static unroll with a
        # lax.fori_loop / time-chunked pipeline; at T=8 full unroll is best.
        for t in range(seq_len):
            x = src[t]                                    # (BT, P)
            xh = jnp.concatenate([x, h], axis=-1)         # (BT, 2P)
            gates = jnp.dot(xh, w, preferred_element_type=jnp.float32) + bias
            i = jax.nn.sigmoid(gates[:, 0 * P:1 * P])
            f = jax.nn.sigmoid(gates[:, 1 * P:2 * P])
            g = jnp.tanh(gates[:, 2 * P:3 * P])
            o = jax.nn.sigmoid(gates[:, 3 * P:4 * P])
            c = f * c + i * g
            h = o * jnp.tanh(c)
            if not is_last:
                xbuf[t] = h                               # feed the next layer
            else:
                # out = rec[lengths - 1, b, :]  (capture at t == len-1)
                out_acc = jnp.where(lens == t + 1, h, out_acc)

    out_ref[...] = out_acc


def _pack_layer(w_ih, w_hh, b_ih, b_hh, in_sz, hid, P):
    """PyTorch (4H,in)/(4H,H) weights -> zero-padded fused (2P, 4P) weight."""
    W = jnp.zeros((2 * P, 4 * P), jnp.float32)
    b = jnp.zeros((1, 4 * P), jnp.float32)
    for g in range(4):                       # PyTorch gate order: i, f, g, o
        wi = jnp.transpose(w_ih[g * hid:(g + 1) * hid, :])    # (in_sz, H)
        wh = jnp.transpose(w_hh[g * hid:(g + 1) * hid, :])    # (H, H)
        W = W.at[:in_sz, g * P:g * P + hid].set(wi)
        W = W.at[P:P + hid, g * P:g * P + hid].set(wh)
        b = b.at[0, g * P:g * P + hid].set(
            b_ih[g * hid:(g + 1) * hid] + b_hh[g * hid:(g + 1) * hid])
    return W, b


def lstm_encoder_forward(params, inputs, lengths):
    """inputs: (T, B) int32 ids; lengths: (B,) int32. Returns (B, H) f32."""
    embed = params["embed"]
    layers = params["lstm"]
    T, B = inputs.shape
    E = embed.shape[1]
    H = layers[0]["w_hh"].shape[1]
    L = len(layers)

    P = _round_up(max(E, H), 128)            # lane-padded feature width
    BT = 8                                   # batch tile (sublane) width
    Bp = _round_up(B, BT)

    # Embedding lookup (glue); padding_idx row of `embed` is zero.
    emb = jnp.take(embed, inputs, axis=0)                     # (T, B, E)
    x = jnp.zeros((T, Bp, P), jnp.float32).at[:, :B, :E].set(emb)

    Ws, bs = [], []
    for l, layer in enumerate(layers):
        in_sz = E if l == 0 else H
        W, b = _pack_layer(layer["w_ih"], layer["w_hh"],
                           layer["b_ih"], layer["b_hh"], in_sz, H, P)
        Ws.append(W)
        bs.append(b)
    w_all = jnp.stack(Ws)                                     # (L, 2P, 4P)
    b_all = jnp.stack(bs)                                     # (L, 1, 4P)

    # NB: a length of 0 yields a zero output row here (PyTorch's
    # pack_padded_sequence would reject length 0 outright).
    lens = jnp.ones((Bp,), jnp.int32).at[:B].set(lengths.astype(jnp.int32))
    lens = lens.reshape(Bp, 1)

    kernel = functools.partial(_lstm_encoder_kernel,
                               n_layers=L, seq_len=T, gate_pad=P)

    out = pl.pallas_call(
        kernel,
        out_shape=jax.ShapeDtypeStruct((Bp, P), jnp.float32),
        grid_spec=pltpu.PrefetchScalarGridSpec(
            num_scalar_prefetch=0,
            grid=(Bp // BT,),                                 # batch tiles
            in_specs=[
                pl.BlockSpec((T, BT, P), lambda i: (0, i, 0)),
                pl.BlockSpec((L, 2 * P, 4 * P), lambda i: (0, 0, 0)),
                pl.BlockSpec((L, 1, 4 * P), lambda i: (0, 0, 0)),
                pl.BlockSpec((BT, 1), lambda i: (i, 0)),
            ],
            out_specs=pl.BlockSpec((BT, P), lambda i: (i, 0)),
            scratch_shapes=[pltpu.VMEM((T, BT, P), jnp.float32)],
        ),
        compiler_params=pltpu.CompilerParams(
            dimension_semantics=("parallel",),                # batch is parallel
        ),
    )(x, w_all, b_all, lens)

    return out[:B, :H]


def _reference_forward(params, inputs, lengths):
    """Pure-JAX reference of the PyTorch forward for correctness checking."""
    x = jnp.take(params["embed"], inputs, axis=0)             # (T, B, E)
    B = inputs.shape[1]
    for layer in params["lstm"]:
        w_ih, w_hh = layer["w_ih"], layer["w_hh"]
        bias = layer["b_ih"] + layer["b_hh"]
        H = w_hh.shape[1]

        def step(carry, xt, w_ih=w_ih, w_hh=w_hh, bias=bias):
            h, c = carry
            gates = xt @ w_ih.T + h @ w_hh.T + bias
            i, f, g, o = jnp.split(gates, 4, axis=-1)
            i, f = jax.nn.sigmoid(i), jax.nn.sigmoid(f)
            g, o = jnp.tanh(g), jax.nn.sigmoid(o)
            c = f * c + i * g
            h = o * jnp.tanh(c)
            return (h, c), h

        init = (jnp.zeros((B, H), jnp.float32), jnp.zeros((B, H), jnp.float32))
        _, x = lax.scan(step, init, x)
    return x[lengths - 1, jnp.arange(B), :]


def init_params(key, *, vocab_size, embed_dim, hid_dim, n_layers):
    """Deterministic synthetic parameters matching nn.Embedding / nn.LSTM shapes."""
    in_dim = vocab_size                        # len(vocab)
    k_embed, key = jax.random.split(key)
    embed = jax.random.normal(k_embed, (in_dim + 1, embed_dim), jnp.float32)
    embed = embed.at[in_dim].set(0.0)          # padding_idx = in_dim -> zero row

    bound = 1.0 / jnp.sqrt(jnp.asarray(hid_dim, jnp.float32))
    layers = []
    for l in range(n_layers):
        in_sz = embed_dim if l == 0 else hid_dim
        key, k1, k2, k3, k4 = jax.random.split(key, 5)
        layers.append({
            "w_ih": jax.random.uniform(k1, (4 * hid_dim, in_sz), jnp.float32, -bound, bound),
            "w_hh": jax.random.uniform(k2, (4 * hid_dim, hid_dim), jnp.float32, -bound, bound),
            "b_ih": jax.random.uniform(k3, (4 * hid_dim,), jnp.float32, -bound, bound),
            "b_hh": jax.random.uniform(k4, (4 * hid_dim,), jnp.float32, -bound, bound),
        })
    return {"embed": embed, "lstm": layers}


if __name__ == "__main__":
    # Small shapes consistent with the module: character-level name encoder.
    VOCAB = 26          # len(vocab) -> embedding has VOCAB + 1 rows (last = pad)
    EMBED_DIM = 32
    HID_DIM = 32
    N_LAYERS = 2
    T, B = 8, 4

    key = jax.random.PRNGKey(0)
    k_par, k_inp = jax.random.split(key)

    params = init_params(
        k_par, vocab_size=VOCAB, embed_dim=EMBED_DIM,
        hid_dim=HID_DIM, n_layers=N_LAYERS,
    )

    # Time-major token ids, lengths sorted descending (pack_padded_sequence).
    inputs = jax.random.randint(k_inp, (T, B), 0, VOCAB + 1, dtype=jnp.int32)
    lengths = jnp.array([8, 6, 5, 3], dtype=jnp.int32)

    out = jax.jit(lstm_encoder_forward)(params, inputs, lengths)
    jax.block_until_ready(out)
    assert out.shape == (B, HID_DIM) and out.dtype == jnp.float32

    ref = _reference_forward(params, inputs, lengths)
    jax.block_until_ready(ref)
    max_err = float(jnp.max(jnp.abs(out - ref)))
    assert max_err < 2e-3, f"mismatch vs reference: max abs err = {max_err}"

    print("KERNEL_OK")
</pallas_src>

<mosaic_0001>
module attributes {stable_mosaic.version = 11 : i64} {
  func.func @_lstm_encoder_kernel(%arg0: i32, %arg1: memref<8x8x128xf32, #tpu.memory_space<vmem>>, %arg2: memref<2x256x512xf32, #tpu.memory_space<vmem>>, %arg3: memref<2x1x512xf32, #tpu.memory_space<vmem>>, %arg4: memref<8x1xi32, #tpu.memory_space<vmem>>, %arg5: memref<8x128xf32, #tpu.memory_space<vmem>>, %arg6: memref<8x8x128xf32, #tpu.memory_space<vmem>>) attributes {dimension_semantics = [#tpu.dimension_semantics<parallel>], iteration_bounds = array<i64: 1>, scalar_prefetch = 0 : i64, scratch_operands = 1 : i64, tpu.core_type = #tpu.core_type<tc>, window_params = [{transform_indices = @transform_0, window_bounds = array<i64: 8, 8, 128>}, {pipeline_mode = #tpu.pipeline_mode<synchronous>, transform_indices = @transform_1, window_bounds = array<i64: 2, 256, 512>}, {pipeline_mode = #tpu.pipeline_mode<synchronous>, transform_indices = @transform_2, window_bounds = array<i64: 2, 1, 512>}, {transform_indices = @transform_3, window_bounds = array<i64: 8, 1>}, {transform_indices = @transform_4, window_bounds = array<i64: 8, 128>}]} {
    %c0 = arith.constant 0 : index
    %c0_0 = arith.constant 0 : index
    %0 = vector.load %arg4[%c0, %c0_0] : memref<8x1xi32, #tpu.memory_space<vmem>>, vector<8x1xi32>
    %cst = arith.constant 0.000000e+00 : f32
    %1 = vector.broadcast %cst : f32 to vector<8x128xf32>
    %c0_1 = arith.constant 0 : index
    %c0_2 = arith.constant 0 : index
    %c0_3 = arith.constant 0 : index
    %2 = vector.load %arg2[%c0_1, %c0_2, %c0_3] : memref<2x256x512xf32, #tpu.memory_space<vmem>>, vector<1x256x512xf32>
    %3 = vector.shape_cast %2 : vector<1x256x512xf32> to vector<256x512xf32>
    %c0_4 = arith.constant 0 : index
    %c0_5 = arith.constant 0 : index
    %c0_6 = arith.constant 0 : index
    %4 = vector.load %arg3[%c0_4, %c0_5, %c0_6] : memref<2x1x512xf32, #tpu.memory_space<vmem>>, vector<1x1x512xf32>
    %5 = vector.shape_cast %4 : vector<1x1x512xf32> to vector<1x512xf32>
    %cst_7 = arith.constant 0.000000e+00 : f32
    %6 = vector.broadcast %cst_7 : f32 to vector<8x128xf32>
    %cst_8 = arith.constant 0.000000e+00 : f32
    %7 = vector.broadcast %cst_8 : f32 to vector<8x128xf32>
    %c0_9 = arith.constant 0 : index
    %c0_10 = arith.constant 0 : index
    %c0_11 = arith.constant 0 : index
    %8 = vector.load %arg1[%c0_9, %c0_10, %c0_11] : memref<8x8x128xf32, #tpu.memory_space<vmem>>, vector<1x8x128xf32>
    %9 = vector.shape_cast %8 : vector<1x8x128xf32> to vector<8x128xf32>
    %10 = tpu.concatenate %9, %6 in 1 : vector<8x128xf32>, vector<8x128xf32> -> vector<8x256xf32>
    %cst_12 = arith.constant dense<0.000000e+00> : vector<8x512xf32>
    %11 = tpu.matmul %10, %3, %cst_12 {dimension_numbers = #tpu.dot_dimension_numbers<[1], [0], [0], [1], [0, 0, 1, 1], [], []>} : vector<8x256xf32>, vector<256x512xf32>, vector<8x512xf32> -> vector<8x512xf32>
    %12 = vector.broadcast %5 : vector<1x512xf32> to vector<8x512xf32>
    %13 = arith.addf %11, %12 : vector<8x512xf32>
    %14 = vector.extract_strided_slice %13 {offsets = [0, 0], sizes = [8, 128], strides = [1, 1]} : vector<8x512xf32> to vector<8x128xf32>
    %15 = arith.negf %14 : vector<8x128xf32>
    %16 = math.exp %15 : vector<8x128xf32>
    %cst_13 = arith.constant 1.000000e+00 : f32
    %17 = vector.broadcast %cst_13 : f32 to vector<8x128xf32>
    %18 = arith.addf %17, %16 : vector<8x128xf32>
    %19 = arith.divf %17, %18 : vector<8x128xf32>
    %20 = vector.extract_strided_slice %13 {offsets = [0, 128], sizes = [8, 128], strides = [1, 1]} : vector<8x512xf32> to vector<8x128xf32>
    %21 = arith.negf %20 : vector<8x128xf32>
    %22 = math.exp %21 : vector<8x128xf32>
    %cst_14 = arith.constant 1.000000e+00 : f32
    %23 = vector.broadcast %cst_14 : f32 to vector<8x128xf32>
    %24 = arith.addf %23, %22 : vector<8x128xf32>
    %25 = arith.divf %23, %24 : vector<8x128xf32>
    %26 = vector.extract_strided_slice %13 {offsets = [0, 256], sizes = [8, 128], strides = [1, 1]} : vector<8x512xf32> to vector<8x128xf32>
    %27 = math.tanh %26 : vector<8x128xf32>
    %28 = vector.extract_strided_slice %13 {offsets = [0, 384], sizes = [8, 128], strides = [1, 1]} : vector<8x512xf32> to vector<8x128xf32>
    %29 = arith.negf %28 : vector<8x128xf32>
    %30 = math.exp %29 : vector<8x128xf32>
    %cst_15 = arith.constant 1.000000e+00 : f32
    %31 = vector.broadcast %cst_15 : f32 to vector<8x128xf32>
    %32 = arith.addf %31, %30 : vector<8x128xf32>
    %33 = arith.divf %31, %32 : vector<8x128xf32>
    %34 = arith.mulf %25, %7 : vector<8x128xf32>
    %35 = arith.mulf %19, %27 : vector<8x128xf32>
    %36 = arith.addf %34, %35 : vector<8x128xf32>
    %37 = math.tanh %36 : vector<8x128xf32>
    %38 = arith.mulf %33, %37 : vector<8x128xf32>
    %c0_16 = arith.constant 0 : index
    %c0_17 = arith.constant 0 : index
    %c0_18 = arith.constant 0 : index
    %39 = vector.load %arg6[%c0_16, %c0_17, %c0_18] : memref<8x8x128xf32, #tpu.memory_space<vmem>>, vector<1x8x128xf32>
    %40 = vector.shape_cast %39 : vector<1x8x128xf32> to vector<8x128xf32>
    %41 = vector.shape_cast %38 : vector<8x128xf32> to vector<1x8x128xf32>
    tpu.vector_store %arg6[%c0_16, %c0_17, %c0_18], %41 {strides = array<i32>} : memref<8x8x128xf32, #tpu.memory_space<vmem>>, vector<1x8x128xf32>,
    %c1 = arith.constant 1 : index
    %c0_19 = arith.constant 0 : index
    %c0_20 = arith.constant 0 : index
    %42 = vector.load %arg1[%c1, %c0_19, %c0_20] : memref<8x8x128xf32, #tpu.memory_space<vmem>>, vector<1x8x128xf32>
    %43 = vector.shape_cast %42 : vector<1x8x128xf32> to vector<8x128xf32>
    %44 = tpu.concatenate %43, %38 in 1 : vector<8x128xf32>, vector<8x128xf32> -> vector<8x256xf32>
    %cst_21 = arith.constant dense<0.000000e+00> : vector<8x512xf32>
    %45 = tpu.matmul %44, %3, %cst_21 {dimension_numbers = #tpu.dot_dimension_numbers<[1], [0], [0], [1], [0, 0, 1, 1], [], []>} : vector<8x256xf32>, vector<256x512xf32>, vector<8x512xf32> -> vector<8x512xf32>
    %46 = vector.broadcast %5 : vector<1x512xf32> to vector<8x512xf32>
    %47 = arith.addf %45, %46 : vector<8x512xf32>
    %48 = vector.extract_strided_slice %47 {offsets = [0, 0], sizes = [8, 128], strides = [1, 1]} : vector<8x512xf32> to vector<8x128xf32>
    %49 = arith.negf %48 : vector<8x128xf32>
    %50 = math.exp %49 : vector<8x128xf32>
    %cst_22 = arith.constant 1.000000e+00 : f32
    %51 = vector.broadcast %cst_22 : f32 to vector<8x128xf32>
    %52 = arith.addf %51, %50 : vector<8x128xf32>
    %53 = arith.divf %51, %52 : vector<8x128xf32>
    %54 = vector.extract_strided_slice %47 {offsets = [0, 128], sizes = [8, 128], strides = [1, 1]} : vector<8x512xf32> to vector<8x128xf32>
    %55 = arith.negf %54 : vector<8x128xf32>
    %56 = math.exp %55 : vector<8x128xf32>
    %cst_23 = arith.constant 1.000000e+00 : f32
    %57 = vector.broadcast %cst_23 : f32 to vector<8x128xf32>
    %58 = arith.addf %57, %56 : vector<8x128xf32>
    %59 = arith.divf %57, %58 : vector<8x128xf32>
    %60 = vector.extract_strided_slice %47 {offsets = [0, 256], sizes = [8, 128], strides = [1, 1]} : vector<8x512xf32> to vector<8x128xf32>
    %61 = math.tanh %60 : vector<8x128xf32>
    %62 = vector.extract_strided_slice %47 {offsets = [0, 384], sizes = [8, 128], strides = [1, 1]} : vector<8x512xf32> to vector<8x128xf32>
    %63 = arith.negf %62 : vector<8x128xf32>
    %64 = math.exp %63 : vector<8x128xf32>
    %cst_24 = arith.constant 1.000000e+00 : f32
    %65 = vector.broadcast %cst_24 : f32 to vector<8x128xf32>
    %66 = arith.addf %65, %64 : vector<8x128xf32>
    %67 = arith.divf %65, %66 : vector<8x128xf32>
    %68 = arith.mulf %59, %36 : vector<8x128xf32>
    %69 = arith.mulf %53, %61 : vector<8x128xf32>
    %70 = arith.addf %68, %69 : vector<8x128xf32>
    %71 = math.tanh %70 : vector<8x128xf32>
    %72 = arith.mulf %67, %71 : vector<8x128xf32>
    %c1_25 = arith.constant 1 : index
    %c0_26 = arith.constant 0 : index
    %c0_27 = arith.constant 0 : index
    %73 = vector.load %arg6[%c1_25, %c0_26, %c0_27] : memref<8x8x128xf32, #tpu.memory_space<vmem>>, vector<1x8x128xf32>
    %74 = vector.shape_cast %73 : vector<1x8x128xf32> to vector<8x128xf32>
    %75 = vector.shape_cast %72 : vector<8x128xf32> to vector<1x8x128xf32>
    tpu.vector_store %arg6[%c1_25, %c0_26, %c0_27], %75 {strides = array<i32>} : memref<8x8x128xf32, #tpu.memory_space<vmem>>, vector<1x8x128xf32>,
    %c2 = arith.constant 2 : index
    %c0_28 = arith.constant 0 : index
    %c0_29 = arith.constant 0 : index
    %76 = vector.load %arg1[%c2, %c0_28, %c0_29] : memref<8x8x128xf32, #tpu.memory_space<vmem>>, vector<1x8x128xf32>
    %77 = vector.shape_cast %76 : vector<1x8x128xf32> to vector<8x128xf32>
    %78 = tpu.concatenate %77, %72 in 1 : vector<8x128xf32>, vector<8x128xf32> -> vector<8x256xf32>
    %cst_30 = arith.constant dense<0.000000e+00> : vector<8x512xf32>
    %79 = tpu.matmul %78, %3, %cst_30 {dimension_numbers = #tpu.dot_dimension_numbers<[1], [0], [0], [1], [0, 0, 1, 1], [], []>} : vector<8x256xf32>, vector<256x512xf32>, vector<8x512xf32> -> vector<8x512xf32>
    %80 = vector.broadcast %5 : vector<1x512xf32> to vector<8x512xf32>
    %81 = arith.addf %79, %80 : vector<8x512xf32>
    %82 = vector.extract_strided_slice %81 {offsets = [0, 0], sizes = [8, 128], strides = [1, 1]} : vector<8x512xf32> to vector<8x128xf32>
    %83 = arith.negf %82 : vector<8x128xf32>
    %84 = math.exp %83 : vector<8x128xf32>
    %cst_31 = arith.constant 1.000000e+00 : f32
    %85 = vector.broadcast %cst_31 : f32 to vector<8x128xf32>
    %86 = arith.addf %85, %84 : vector<8x128xf32>
    %87 = arith.divf %85, %86 : vector<8x128xf32>
    %88 = vector.extract_strided_slice %81 {offsets = [0, 128], sizes = [8, 128], strides = [1, 1]} : vector<8x512xf32> to vector<8x128xf32>
    %89 = arith.negf %88 : vector<8x128xf32>
    %90 = math.exp %89 : vector<8x128xf32>
    %cst_32 = arith.constant 1.000000e+00 : f32
    %91 = vector.broadcast %cst_32 : f32 to vector<8x128xf32>
    %92 = arith.addf %91, %90 : vector<8x128xf32>
    %93 = arith.divf %91, %92 : vector<8x128xf32>
    %94 = vector.extract_strided_slice %81 {offsets = [0, 256], sizes = [8, 128], strides = [1, 1]} : vector<8x512xf32> to vector<8x128xf32>
    %95 = math.tanh %94 : vector<8x128xf32>
    %96 = vector.extract_strided_slice %81 {offsets = [0, 384], sizes = [8, 128], strides = [1, 1]} : vector<8x512xf32> to vector<8x128xf32>
    %97 = arith.negf %96 : vector<8x128xf32>
    %98 = math.exp %97 : vector<8x128xf32>
    %cst_33 = arith.constant 1.000000e+00 : f32
    %99 = vector.broadcast %cst_33 : f32 to vector<8x128xf32>
    %100 = arith.addf %99, %98 : vector<8x128xf32>
    %101 = arith.divf %99, %100 : vector<8x128xf32>
    %102 = arith.mulf %93, %70 : vector<8x128xf32>
    %103 = arith.mulf %87, %95 : vector<8x128xf32>
    %104 = arith.addf %102, %103 : vector<8x128xf32>
    %105 = math.tanh %104 : vector<8x128xf32>
    %106 = arith.mulf %101, %105 : vector<8x128xf32>
    %c2_34 = arith.constant 2 : index
    %c0_35 = arith.constant 0 : index
    %c0_36 = arith.constant 0 : index
    %107 = vector.load %arg6[%c2_34, %c0_35, %c0_36] : memref<8x8x128xf32, #tpu.memory_space<vmem>>, vector<1x8x128xf32>
    %108 = vector.shape_cast %107 : vector<1x8x128xf32> to vector<8x128xf32>
    %109 = vector.shape_cast %106 : vector<8x128xf32> to vector<1x8x128xf32>
    tpu.vector_store %arg6[%c2_34, %c0_35, %c0_36], %109 {strides = array<i32>} : memref<8x8x128xf32, #tpu.memory_space<vmem>>, vector<1x8x128xf32>,
    %c3 = arith.constant 3 : index
    %c0_37 = arith.constant 0 : index
    %c0_38 = arith.constant 0 : index
    %110 = vector.load %arg1[%c3, %c0_37, %c0_38] : memref<8x8x128xf32, #tpu.memory_space<vmem>>, vector<1x8x128xf32>
    %111 = vector.shape_cast %110 : vector<1x8x128xf32> to vector<8x128xf32>
    %112 = tpu.concatenate %111, %106 in 1 : vector<8x128xf32>, vector<8x128xf32> -> vector<8x256xf32>
    %cst_39 = arith.constant dense<0.000000e+00> : vector<8x512xf32>
    %113 = tpu.matmul %112, %3, %cst_39 {dimension_numbers = #tpu.dot_dimension_numbers<[1], [0], [0], [1], [0, 0, 1, 1], [], []>} : vector<8x256xf32>, vector<256x512xf32>, vector<8x512xf32> -> vector<8x512xf32>
    %114 = vector.broadcast %5 : vector<1x512xf32> to vector<8x512xf32>
    %115 = arith.addf %113, %114 : vector<8x512xf32>
    %116 = vector.extract_strided_slice %115 {offsets = [0, 0], sizes = [8, 128], strides = [1, 1]} : vector<8x512xf32> to vector<8x128xf32>
    %117 = arith.negf %116 : vector<8x128xf32>
    %118 = math.exp %117 : vector<8x128xf32>
    %cst_40 = arith.constant 1.000000e+00 : f32
    %119 = vector.broadcast %cst_40 : f32 to vector<8x128xf32>
    %120 = arith.addf %119, %118 : vector<8x128xf32>
    %121 = arith.divf %119, %120 : vector<8x128xf32>
    %122 = vector.extract_strided_slice %115 {offsets = [0, 128], sizes = [8, 128], strides = [1, 1]} : vector<8x512xf32> to vector<8x128xf32>
    %123 = arith.negf %122 : vector<8x128xf32>
    %124 = math.exp %123 : vector<8x128xf32>
    %cst_41 = arith.constant 1.000000e+00 : f32
    %125 = vector.broadcast %cst_41 : f32 to vector<8x128xf32>
    %126 = arith.addf %125, %124 : vector<8x128xf32>
    %127 = arith.divf %125, %126 : vector<8x128xf32>
    %128 = vector.extract_strided_slice %115 {offsets = [0, 256], sizes = [8, 128], strides = [1, 1]} : vector<8x512xf32> to vector<8x128xf32>
    %129 = math.tanh %128 : vector<8x128xf32>
    %130 = vector.extract_strided_slice %115 {offsets = [0, 384], sizes = [8, 128], strides = [1, 1]} : vector<8x512xf32> to vector<8x128xf32>
    %131 = arith.negf %130 : vector<8x128xf32>
    %132 = math.exp %131 : vector<8x128xf32>
    %cst_42 = arith.constant 1.000000e+00 : f32
    %133 = vector.broadcast %cst_42 : f32 to vector<8x128xf32>
    %134 = arith.addf %133, %132 : vector<8x128xf32>
    %135 = arith.divf %133, %134 : vector<8x128xf32>
    %136 = arith.mulf %127, %104 : vector<8x128xf32>
    %137 = arith.mulf %121, %129 : vector<8x128xf32>
    %138 = arith.addf %136, %137 : vector<8x128xf32>
    %139 = math.tanh %138 : vector<8x128xf32>
    %140 = arith.mulf %135, %139 : vector<8x128xf32>
    %c3_43 = arith.constant 3 : index
    %c0_44 = arith.constant 0 : index
    %c0_45 = arith.constant 0 : index
    %141 = vector.load %arg6[%c3_43, %c0_44, %c0_45] : memref<8x8x128xf32, #tpu.memory_space<vmem>>, vector<1x8x128xf32>
    %142 = vector.shape_cast %141 : vector<1x8x128xf32> to vector<8x128xf32>
    %143 = vector.shape_cast %140 : vector<8x128xf32> to vector<1x8x128xf32>
    tpu.vector_store %arg6[%c3_43, %c0_44, %c0_45], %143 {strides = array<i32>} : memref<8x8x128xf32, #tpu.memory_space<vmem>>, vector<1x8x128xf32>,
    %c4 = arith.constant 4 : index
    %c0_46 = arith.constant 0 : index
    %c0_47 = arith.constant 0 : index
    %144 = vector.load %arg1[%c4, %c0_46, %c0_47] : memref<8x8x128xf32, #tpu.memory_space<vmem>>, vector<1x8x128xf32>
    %145 = vector.shape_cast %144 : vector<1x8x128xf32> to vector<8x128xf32>
    %146 = tpu.concatenate %145, %140 in 1 : vector<8x128xf32>, vector<8x128xf32> -> vector<8x256xf32>
    %cst_48 = arith.constant dense<0.000000e+00> : vector<8x512xf32>
    %147 = tpu.matmul %146, %3, %cst_48 {dimension_numbers = #tpu.dot_dimension_numbers<[1], [0], [0], [1], [0, 0, 1, 1], [], []>} : vector<8x256xf32>, vector<256x512xf32>, vector<8x512xf32> -> vector<8x512xf32>
    %148 = vector.broadcast %5 : vector<1x512xf32> to vector<8x512xf32>
    %149 = arith.addf %147, %148 : vector<8x512xf32>
    %150 = vector.extract_strided_slice %149 {offsets = [0, 0], sizes = [8, 128], strides = [1, 1]} : vector<8x512xf32> to vector<8x128xf32>
    %151 = arith.negf %150 : vector<8x128xf32>
    %152 = math.exp %151 : vector<8x128xf32>
    %cst_49 = arith.constant 1.000000e+00 : f32
    %153 = vector.broadcast %cst_49 : f32 to vector<8x128xf32>
    %154 = arith.addf %153, %152 : vector<8x128xf32>
    %155 = arith.divf %153, %154 : vector<8x128xf32>
    %156 = vector.extract_strided_slice %149 {offsets = [0, 128], sizes = [8, 128], strides = [1, 1]} : vector<8x512xf32> to vector<8x128xf32>
    %157 = arith.negf %156 : vector<8x128xf32>
    %158 = math.exp %157 : vector<8x128xf32>
    %cst_50 = arith.constant 1.000000e+00 : f32
    %159 = vector.broadcast %cst_50 : f32 to vector<8x128xf32>
    %160 = arith.addf %159, %158 : vector<8x128xf32>
    %161 = arith.divf %159, %160 : vector<8x128xf32>
    %162 = vector.extract_strided_slice %149 {offsets = [0, 256], sizes = [8, 128], strides = [1, 1]} : vector<8x512xf32> to vector<8x128xf32>
    %163 = math.tanh %162 : vector<8x128xf32>
    %164 = vector.extract_strided_slice %149 {offsets = [0, 384], sizes = [8, 128], strides = [1, 1]} : vector<8x512xf32> to vector<8x128xf32>
    %165 = arith.negf %164 : vector<8x128xf32>
    %166 = math.exp %165 : vector<8x128xf32>
    %cst_51 = arith.constant 1.000000e+00 : f32
    %167 = vector.broadcast %cst_51 : f32 to vector<8x128xf32>
    %168 = arith.addf %167, %166 : vector<8x128xf32>
    %169 = arith.divf %167, %168 : vector<8x128xf32>
    %170 = arith.mulf %161, %138 : vector<8x128xf32>
    %171 = arith.mulf %155, %163 : vector<8x128xf32>
    %172 = arith.addf %170, %171 : vector<8x128xf32>
    %173 = math.tanh %172 : vector<8x128xf32>
    %174 = arith.mulf %169, %173 : vector<8x128xf32>
    %c4_52 = arith.constant 4 : index
    %c0_53 = arith.constant 0 : index
    %c0_54 = arith.constant 0 : index
    %175 = vector.load %arg6[%c4_52, %c0_53, %c0_54] : memref<8x8x128xf32, #tpu.memory_space<vmem>>, vector<1x8x128xf32>
    %176 = vector.shape_cast %175 : vector<1x8x128xf32> to vector<8x128xf32>
    %177 = vector.shape_cast %174 : vector<8x128xf32> to vector<1x8x128xf32>
    tpu.vector_store %arg6[%c4_52, %c0_53, %c0_54], %177 {strides = array<i32>} : memref<8x8x128xf32, #tpu.memory_space<vmem>>, vector<1x8x128xf32>,
    %c5 = arith.constant 5 : index
    %c0_55 = arith.constant 0 : index
    %c0_56 = arith.constant 0 : index
    %178 = vector.load %arg1[%c5, %c0_55, %c0_56] : memref<8x8x128xf32, #tpu.memory_space<vmem>>, vector<1x8x128xf32>
    %179 = vector.shape_cast %178 : vector<1x8x128xf32> to vector<8x128xf32>
    %180 = tpu.concatenate %179, %174 in 1 : vector<8x128xf32>, vector<8x128xf32> -> vector<8x256xf32>
    %cst_57 = arith.constant dense<0.000000e+00> : vector<8x512xf32>
    %181 = tpu.matmul %180, %3, %cst_57 {dimension_numbers = #tpu.dot_dimension_numbers<[1], [0], [0], [1], [0, 0, 1, 1], [], []>} : vector<8x256xf32>, vector<256x512xf32>, vector<8x512xf32> -> vector<8x512xf32>
    %182 = vector.broadcast %5 : vector<1x512xf32> to vector<8x512xf32>
    %183 = arith.addf %181, %182 : vector<8x512xf32>
    %184 = vector.extract_strided_slice %183 {offsets = [0, 0], sizes = [8, 128], strides = [1, 1]} : vector<8x512xf32> to vector<8x128xf32>
    %185 = arith.negf %184 : vector<8x128xf32>
    %186 = math.exp %185 : vector<8x128xf32>
    %cst_58 = arith.constant 1.000000e+00 : f32
    %187 = vector.broadcast %cst_58 : f32 to vector<8x128xf32>
    %188 = arith.addf %187, %186 : vector<8x128xf32>
    %189 = arith.divf %187, %188 : vector<8x128xf32>
    %190 = vector.extract_strided_slice %183 {offsets = [0, 128], sizes = [8, 128], strides = [1, 1]} : vector<8x512xf32> to vector<8x128xf32>
    %191 = arith.negf %190 : vector<8x128xf32>
    %192 = math.exp %191 : vector<8x128xf32>
    %cst_59 = arith.constant 1.000000e+00 : f32
    %193 = vector.broadcast %cst_59 : f32 to vector<8x128xf32>
    %194 = arith.addf %193, %192 : vector<8x128xf32>
    %195 = arith.divf %193, %194 : vector<8x128xf32>
    %196 = vector.extract_strided_slice %183 {offsets = [0, 256], sizes = [8, 128], strides = [1, 1]} : vector<8x512xf32> to vector<8x128xf32>
    %197 = math.tanh %196 : vector<8x128xf32>
    %198 = vector.extract_strided_slice %183 {offsets = [0, 384], sizes = [8, 128], strides = [1, 1]} : vector<8x512xf32> to vector<8x128xf32>
    %199 = arith.negf %198 : vector<8x128xf32>
    %200 = math.exp %199 : vector<8x128xf32>
    %cst_60 = arith.constant 1.000000e+00 : f32
    %201 = vector.broadcast %cst_60 : f32 to vector<8x128xf32>
    %202 = arith.addf %201, %200 : vector<8x128xf32>
    %203 = arith.divf %201, %202 : vector<8x128xf32>
    %204 = arith.mulf %195, %172 : vector<8x128xf32>
    %205 = arith.mulf %189, %197 : vector<8x128xf32>
    %206 = arith.addf %204, %205 : vector<8x128xf32>
    %207 = math.tanh %206 : vector<8x128xf32>
    %208 = arith.mulf %203, %207 : vector<8x128xf32>
    %c5_61 = arith.constant 5 : index
    %c0_62 = arith.constant 0 : index
    %c0_63 = arith.constant 0 : index
    %209 = vector.load %arg6[%c5_61, %c0_62, %c0_63] : memref<8x8x128xf32, #tpu.memory_space<vmem>>, vector<1x8x128xf32>
    %210 = vector.shape_cast %209 : vector<1x8x128xf32> to vector<8x128xf32>
    %211 = vector.shape_cast %208 : vector<8x128xf32> to vector<1x8x128xf32>
    tpu.vector_store %arg6[%c5_61, %c0_62, %c0_63], %211 {strides = array<i32>} : memref<8x8x128xf32, #tpu.memory_space<vmem>>, vector<1x8x128xf32>,
    %c6 = arith.constant 6 : index
    %c0_64 = arith.constant 0 : index
    %c0_65 = arith.constant 0 : index
    %212 = vector.load %arg1[%c6, %c0_64, %c0_65] : memref<8x8x128xf32, #tpu.memory_space<vmem>>, vector<1x8x128xf32>
    %213 = vector.shape_cast %212 : vector<1x8x128xf32> to vector<8x128xf32>
    %214 = tpu.concatenate %213, %208 in 1 : vector<8x128xf32>, vector<8x128xf32> -> vector<8x256xf32>
    %cst_66 = arith.constant dense<0.000000e+00> : vector<8x512xf32>
    %215 = tpu.matmul %214, %3, %cst_66 {dimension_numbers = #tpu.dot_dimension_numbers<[1], [0], [0], [1], [0, 0, 1, 1], [], []>} : vector<8x256xf32>, vector<256x512xf32>, vector<8x512xf32> -> vector<8x512xf32>
    %216 = vector.broadcast %5 : vector<1x512xf32> to vector<8x512xf32>
    %217 = arith.addf %215, %216 : vector<8x512xf32>
    %218 = vector.extract_strided_slice %217 {offsets = [0, 0], sizes = [8, 128], strides = [1, 1]} : vector<8x512xf32> to vector<8x128xf32>
    %219 = arith.negf %218 : vector<8x128xf32>
    %220 = math.exp %219 : vector<8x128xf32>
    %cst_67 = arith.constant 1.000000e+00 : f32
    %221 = vector.broadcast %cst_67 : f32 to vector<8x128xf32>
    %222 = arith.addf %221, %220 : vector<8x128xf32>
    %223 = arith.divf %221, %222 : vector<8x128xf32>
    %224 = vector.extract_strided_slice %217 {offsets = [0, 128], sizes = [8, 128], strides = [1, 1]} : vector<8x512xf32> to vector<8x128xf32>
    %225 = arith.negf %224 : vector<8x128xf32>
    %226 = math.exp %225 : vector<8x128xf32>
    %cst_68 = arith.constant 1.000000e+00 : f32
    %227 = vector.broadcast %cst_68 : f32 to vector<8x128xf32>
    %228 = arith.addf %227, %226 : vector<8x128xf32>
    %229 = arith.divf %227, %228 : vector<8x128xf32>
    %230 = vector.extract_strided_slice %217 {offsets = [0, 256], sizes = [8, 128], strides = [1, 1]} : vector<8x512xf32> to vector<8x128xf32>
    %231 = math.tanh %230 : vector<8x128xf32>
    %232 = vector.extract_strided_slice %217 {offsets = [0, 384], sizes = [8, 128], strides = [1, 1]} : vector<8x512xf32> to vector<8x128xf32>
    %233 = arith.negf %232 : vector<8x128xf32>
    %234 = math.exp %233 : vector<8x128xf32>
    %cst_69 = arith.constant 1.000000e+00 : f32
    %235 = vector.broadcast %cst_69 : f32 to vector<8x128xf32>
    %236 = arith.addf %235, %234 : vector<8x128xf32>
    %237 = arith.divf %235, %236 : vector<8x128xf32>
    %238 = arith.mulf %229, %206 : vector<8x128xf32>
    %239 = arith.mulf %223, %231 : vector<8x128xf32>
    %240 = arith.addf %238, %239 : vector<8x128xf32>
    %241 = math.tanh %240 : vector<8x128xf32>
    %242 = arith.mulf %237, %241 : vector<8x128xf32>
    %c6_70 = arith.constant 6 : index
    %c0_71 = arith.constant 0 : index
    %c0_72 = arith.constant 0 : index
    %243 = vector.load %arg6[%c6_70, %c0_71, %c0_72] : memref<8x8x128xf32, #tpu.memory_space<vmem>>, vector<1x8x128xf32>
    %244 = vector.shape_cast %243 : vector<1x8x128xf32> to vector<8x128xf32>
    %245 = vector.shape_cast %242 : vector<8x128xf32> to vector<1x8x128xf32>
    tpu.vector_store %arg6[%c6_70, %c0_71, %c0_72], %245 {strides = array<i32>} : memref<8x8x128xf32, #tpu.memory_space<vmem>>, vector<1x8x128xf32>,
    %c7 = arith.constant 7 : index
    %c0_73 = arith.constant 0 : index
    %c0_74 = arith.constant 0 : index
    %246 = vector.load %arg1[%c7, %c0_73, %c0_74] : memref<8x8x128xf32, #tpu.memory_space<vmem>>, vector<1x8x128xf32>
    %247 = vector.shape_cast %246 : vector<1x8x128xf32> to vector<8x128xf32>
    %248 = tpu.concatenate %247, %242 in 1 : vector<8x128xf32>, vector<8x128xf32> -> vector<8x256xf32>
    %cst_75 = arith.constant dense<0.000000e+00> : vector<8x512xf32>
    %249 = tpu.matmul %248, %3, %cst_75 {dimension_numbers = #tpu.dot_dimension_numbers<[1], [0], [0], [1], [0, 0, 1, 1], [], []>} : vector<8x256xf32>, vector<256x512xf32>, vector<8x512xf32> -> vector<8x512xf32>
    %250 = vector.broadcast %5 : vector<1x512xf32> to vector<8x512xf32>
    %251 = arith.addf %249, %250 : vector<8x512xf32>
    %252 = vector.extract_strided_slice %251 {offsets = [0, 0], sizes = [8, 128], strides = [1, 1]} : vector<8x512xf32> to vector<8x128xf32>
    %253 = arith.negf %252 : vector<8x128xf32>
    %254 = math.exp %253 : vector<8x128xf32>
    %cst_76 = arith.constant 1.000000e+00 : f32
    %255 = vector.broadcast %cst_76 : f32 to vector<8x128xf32>
    %256 = arith.addf %255, %254 : vector<8x128xf32>
    %257 = arith.divf %255, %256 : vector<8x128xf32>
    %258 = vector.extract_strided_slice %251 {offsets = [0, 128], sizes = [8, 128], strides = [1, 1]} : vector<8x512xf32> to vector<8x128xf32>
    %259 = arith.negf %258 : vector<8x128xf32>
    %260 = math.exp %259 : vector<8x128xf32>
    %cst_77 = arith.constant 1.000000e+00 : f32
    %261 = vector.broadcast %cst_77 : f32 to vector<8x128xf32>
    %262 = arith.addf %261, %260 : vector<8x128xf32>
    %263 = arith.divf %261, %262 : vector<8x128xf32>
    %264 = vector.extract_strided_slice %251 {offsets = [0, 256], sizes = [8, 128], strides = [1, 1]} : vector<8x512xf32> to vector<8x128xf32>
    %265 = math.tanh %264 : vector<8x128xf32>
    %266 = vector.extract_strided_slice %251 {offsets = [0, 384], sizes = [8, 128], strides = [1, 1]} : vector<8x512xf32> to vector<8x128xf32>
    %267 = arith.negf %266 : vector<8x128xf32>
    %268 = math.exp %267 : vector<8x128xf32>
    %cst_78 = arith.constant 1.000000e+00 : f32
    %269 = vector.broadcast %cst_78 : f32 to vector<8x128xf32>
    %270 = arith.addf %269, %268 : vector<8x128xf32>
    %271 = arith.divf %269, %270 : vector<8x128xf32>
    %272 = arith.mulf %263, %240 : vector<8x128xf32>
    %273 = arith.mulf %257, %265 : vector<8x128xf32>
    %274 = arith.addf %272, %273 : vector<8x128xf32>
    %275 = math.tanh %274 : vector<8x128xf32>
    %276 = arith.mulf %271, %275 : vector<8x128xf32>
    %c7_79 = arith.constant 7 : index
    %c0_80 = arith.constant 0 : index
    %c0_81 = arith.constant 0 : index
    %277 = vector.load %arg6[%c7_79, %c0_80, %c0_81] : memref<8x8x128xf32, #tpu.memory_space<vmem>>, vector<1x8x128xf32>
    %278 = vector.shape_cast %277 : vector<1x8x128xf32> to vector<8x128xf32>
    %279 = vector.shape_cast %276 : vector<8x128xf32> to vector<1x8x128xf32>
    tpu.vector_store %arg6[%c7_79, %c0_80, %c0_81], %279 {strides = array<i32>} : memref<8x8x128xf32, #tpu.memory_space<vmem>>, vector<1x8x128xf32>,
    %c1_82 = arith.constant 1 : index
    %c0_83 = arith.constant 0 : index
    %c0_84 = arith.constant 0 : index
    %280 = vector.load %arg2[%c1_82, %c0_83, %c0_84] : memref<2x256x512xf32, #tpu.memory_space<vmem>>, vector<1x256x512xf32>
    %281 = vector.shape_cast %280 : vector<1x256x512xf32> to vector<256x512xf32>
    %c1_85 = arith.constant 1 : index
    %c0_86 = arith.constant 0 : index
    %c0_87 = arith.constant 0 : index
    %282 = vector.load %arg3[%c1_85, %c0_86, %c0_87] : memref<2x1x512xf32, #tpu.memory_space<vmem>>, vector<1x1x512xf32>
    %283 = vector.shape_cast %282 : vector<1x1x512xf32> to vector<1x512xf32>
    %cst_88 = arith.constant 0.000000e+00 : f32
    %284 = vector.broadcast %cst_88 : f32 to vector<8x128xf32>
    %cst_89 = arith.constant 0.000000e+00 : f32
    %285 = vector.broadcast %cst_89 : f32 to vector<8x128xf32>
    %c0_90 = arith.constant 0 : index
    %c0_91 = arith.constant 0 : index
    %c0_92 = arith.constant 0 : index
    %286 = vector.load %arg6[%c0_90, %c0_91, %c0_92] : memref<8x8x128xf32, #tpu.memory_space<vmem>>, vector<1x8x128xf32>
    %287 = vector.shape_cast %286 : vector<1x8x128xf32> to vector<8x128xf32>
    %288 = tpu.concatenate %287, %284 in 1 : vector<8x128xf32>, vector<8x128xf32> -> vector<8x256xf32>
    %cst_93 = arith.constant dense<0.000000e+00> : vector<8x512xf32>
    %289 = tpu.matmul %288, %281, %cst_93 {dimension_numbers = #tpu.dot_dimension_numbers<[1], [0], [0], [1], [0, 0, 1, 1], [], []>} : vector<8x256xf32>, vector<256x512xf32>, vector<8x512xf32> -> vector<8x512xf32>
    %290 = vector.broadcast %283 : vector<1x512xf32> to vector<8x512xf32>
    %291 = arith.addf %289, %290 : vector<8x512xf32>
    %292 = vector.extract_strided_slice %291 {offsets = [0, 0], sizes = [8, 128], strides = [1, 1]} : vector<8x512xf32> to vector<8x128xf32>
    %293 = arith.negf %292 : vector<8x128xf32>
    %294 = math.exp %293 : vector<8x128xf32>
    %cst_94 = arith.constant 1.000000e+00 : f32
    %295 = vector.broadcast %cst_94 : f32 to vector<8x128xf32>
    %296 = arith.addf %295, %294 : vector<8x128xf32>
    %297 = arith.divf %295, %296 : vector<8x128xf32>
    %298 = vector.extract_strided_slice %291 {offsets = [0, 128], sizes = [8, 128], strides = [1, 1]} : vector<8x512xf32> to vector<8x128xf32>
    %299 = arith.negf %298 : vector<8x128xf32>
    %300 = math.exp %299 : vector<8x128xf32>
    %cst_95 = arith.constant 1.000000e+00 : f32
    %301 = vector.broadcast %cst_95 : f32 to vector<8x128xf32>
    %302 = arith.addf %301, %300 : vector<8x128xf32>
    %303 = arith.divf %301, %302 : vector<8x128xf32>
    %304 = vector.extract_strided_slice %291 {offsets = [0, 256], sizes = [8, 128], strides = [1, 1]} : vector<8x512xf32> to vector<8x128xf32>
    %305 = math.tanh %304 : vector<8x128xf32>
    %306 = vector.extract_strided_slice %291 {offsets = [0, 384], sizes = [8, 128], strides = [1, 1]} : vector<8x512xf32> to vector<8x128xf32>
    %307 = arith.negf %306 : vector<8x128xf32>
    %308 = math.exp %307 : vector<8x128xf32>
    %cst_96 = arith.constant 1.000000e+00 : f32
    %309 = vector.broadcast %cst_96 : f32 to vector<8x128xf32>
    %310 = arith.addf %309, %308 : vector<8x128xf32>
    %311 = arith.divf %309, %310 : vector<8x128xf32>
    %312 = arith.mulf %303, %285 : vector<8x128xf32>
    %313 = arith.mulf %297, %305 : vector<8x128xf32>
    %314 = arith.addf %312, %313 : vector<8x128xf32>
    %315 = math.tanh %314 : vector<8x128xf32>
    %316 = arith.mulf %311, %315 : vector<8x128xf32>
    %c1_i32 = arith.constant 1 : i32
    %317 = vector.broadcast %c1_i32 : i32 to vector<8x1xi32>
    %318 = arith.cmpi eq, %0, %317 : vector<8x1xi32>
    %319 = vector.shape_cast %318 : vector<8x1xi1> to vector<8x1xi1>
    %320 = vector.broadcast %319 : vector<8x1xi1> to vector<8x128xi1>
    %321 = arith.select %320, %316, %1 : vector<8x128xi1>, vector<8x128xf32>
    %c1_97 = arith.constant 1 : index
    %c0_98 = arith.constant 0 : index
    %c0_99 = arith.constant 0 : index
    %322 = vector.load %arg6[%c1_97, %c0_98, %c0_99] : memref<8x8x128xf32, #tpu.memory_space<vmem>>, vector<1x8x128xf32>
    %323 = vector.shape_cast %322 : vector<1x8x128xf32> to vector<8x128xf32>
    %324 = tpu.concatenate %323, %316 in 1 : vector<8x128xf32>, vector<8x128xf32> -> vector<8x256xf32>
    %cst_100 = arith.constant dense<0.000000e+00> : vector<8x512xf32>
    %325 = tpu.matmul %324, %281, %cst_100 {dimension_numbers = #tpu.dot_dimension_numbers<[1], [0], [0], [1], [0, 0, 1, 1], [], []>} : vector<8x256xf32>, vector<256x512xf32>, vector<8x512xf32> -> vector<8x512xf32>
    %326 = vector.broadcast %283 : vector<1x512xf32> to vector<8x512xf32>
    %327 = arith.addf %325, %326 : vector<8x512xf32>
    %328 = vector.extract_strided_slice %327 {offsets = [0, 0], sizes = [8, 128], strides = [1, 1]} : vector<8x512xf32> to vector<8x128xf32>
    %329 = arith.negf %328 : vector<8x128xf32>
    %330 = math.exp %329 : vector<8x128xf32>
    %cst_101 = arith.constant 1.000000e+00 : f32
    %331 = vector.broadcast %cst_101 : f32 to vector<8x128xf32>
    %332 = arith.addf %331, %330 : vector<8x128xf32>
    %333 = arith.divf %331, %332 : vector<8x128xf32>
    %334 = vector.extract_strided_slice %327 {offsets = [0, 128], sizes = [8, 128], strides = [1, 1]} : vector<8x512xf32> to vector<8x128xf32>
    %335 = arith.negf %334 : vector<8x128xf32>
    %336 = math.exp %335 : vector<8x128xf32>
    %cst_102 = arith.constant 1.000000e+00 : f32
    %337 = vector.broadcast %cst_102 : f32 to vector<8x128xf32>
    %338 = arith.addf %337, %336 : vector<8x128xf32>
    %339 = arith.divf %337, %338 : vector<8x128xf32>
    %340 = vector.extract_strided_slice %327 {offsets = [0, 256], sizes = [8, 128], strides = [1, 1]} : vector<8x512xf32> to vector<8x128xf32>
    %341 = math.tanh %340 : vector<8x128xf32>
    %342 = vector.extract_strided_slice %327 {offsets = [0, 384], sizes = [8, 128], strides = [1, 1]} : vector<8x512xf32> to vector<8x128xf32>
    %343 = arith.negf %342 : vector<8x128xf32>
    %344 = math.exp %343 : vector<8x128xf32>
    %cst_103 = arith.constant 1.000000e+00 : f32
    %345 = vector.broadcast %cst_103 : f32 to vector<8x128xf32>
    %346 = arith.addf %345, %344 : vector<8x128xf32>
    %347 = arith.divf %345, %346 : vector<8x128xf32>
    %348 = arith.mulf %339, %314 : vector<8x128xf32>
    %349 = arith.mulf %333, %341 : vector<8x128xf32>
    %350 = arith.addf %348, %349 : vector<8x128xf32>
    %351 = math.tanh %350 : vector<8x128xf32>
    %352 = arith.mulf %347, %351 : vector<8x128xf32>
    %c2_i32 = arith.constant 2 : i32
    %353 = vector.broadcast %c2_i32 : i32 to vector<8x1xi32>
    %354 = arith.cmpi eq, %0, %353 : vector<8x1xi32>
    %355 = vector.shape_cast %354 : vector<8x1xi1> to vector<8x1xi1>
    %356 = vector.broadcast %355 : vector<8x1xi1> to vector<8x128xi1>
    %357 = arith.select %356, %352, %321 : vector<8x128xi1>, vector<8x128xf32>
    %c2_104 = arith.constant 2 : index
    %c0_105 = arith.constant 0 : index
    %c0_106 = arith.constant 0 : index
    %358 = vector.load %arg6[%c2_104, %c0_105, %c0_106] : memref<8x8x128xf32, #tpu.memory_space<vmem>>, vector<1x8x128xf32>
    %359 = vector.shape_cast %358 : vector<1x8x128xf32> to vector<8x128xf32>
    %360 = tpu.concatenate %359, %352 in 1 : vector<8x128xf32>, vector<8x128xf32> -> vector<8x256xf32>
    %cst_107 = arith.constant dense<0.000000e+00> : vector<8x512xf32>
    %361 = tpu.matmul %360, %281, %cst_107 {dimension_numbers = #tpu.dot_dimension_numbers<[1], [0], [0], [1], [0, 0, 1, 1], [], []>} : vector<8x256xf32>, vector<256x512xf32>, vector<8x512xf32> -> vector<8x512xf32>
    %362 = vector.broadcast %283 : vector<1x512xf32> to vector<8x512xf32>
    %363 = arith.addf %361, %362 : vector<8x512xf32>
    %364 = vector.extract_strided_slice %363 {offsets = [0, 0], sizes = [8, 128], strides = [1, 1]} : vector<8x512xf32> to vector<8x128xf32>
    %365 = arith.negf %364 : vector<8x128xf32>
    %366 = math.exp %365 : vector<8x128xf32>
    %cst_108 = arith.constant 1.000000e+00 : f32
    %367 = vector.broadcast %cst_108 : f32 to vector<8x128xf32>
    %368 = arith.addf %367, %366 : vector<8x128xf32>
    %369 = arith.divf %367, %368 : vector<8x128xf32>
    %370 = vector.extract_strided_slice %363 {offsets = [0, 128], sizes = [8, 128], strides = [1, 1]} : vector<8x512xf32> to vector<8x128xf32>
    %371 = arith.negf %370 : vector<8x128xf32>
    %372 = math.exp %371 : vector<8x128xf32>
    %cst_109 = arith.constant 1.000000e+00 : f32
    %373 = vector.broadcast %cst_109 : f32 to vector<8x128xf32>
    %374 = arith.addf %373, %372 : vector<8x128xf32>
    %375 = arith.divf %373, %374 : vector<8x128xf32>
    %376 = vector.extract_strided_slice %363 {offsets = [0, 256], sizes = [8, 128], strides = [1, 1]} : vector<8x512xf32> to vector<8x128xf32>
    %377 = math.tanh %376 : vector<8x128xf32>
    %378 = vector.extract_strided_slice %363 {offsets = [0, 384], sizes = [8, 128], strides = [1, 1]} : vector<8x512xf32> to vector<8x128xf32>
    %379 = arith.negf %378 : vector<8x128xf32>
    %380 = math.exp %379 : vector<8x128xf32>
    %cst_110 = arith.constant 1.000000e+00 : f32
    %381 = vector.broadcast %cst_110 : f32 to vector<8x128xf32>
    %382 = arith.addf %381, %380 : vector<8x128xf32>
    %383 = arith.divf %381, %382 : vector<8x128xf32>
    %384 = arith.mulf %375, %350 : vector<8x128xf32>
    %385 = arith.mulf %369, %377 : vector<8x128xf32>
    %386 = arith.addf %384, %385 : vector<8x128xf32>
    %387 = math.tanh %386 : vector<8x128xf32>
    %388 = arith.mulf %383, %387 : vector<8x128xf32>
    %c3_i32 = arith.constant 3 : i32
    %389 = vector.broadcast %c3_i32 : i32 to vector<8x1xi32>
    %390 = arith.cmpi eq, %0, %389 : vector<8x1xi32>
    %391 = vector.shape_cast %390 : vector<8x1xi1> to vector<8x1xi1>
    %392 = vector.broadcast %391 : vector<8x1xi1> to vector<8x128xi1>
    %393 = arith.select %392, %388, %357 : vector<8x128xi1>, vector<8x128xf32>
    %c3_111 = arith.constant 3 : index
    %c0_112 = arith.constant 0 : index
    %c0_113 = arith.constant 0 : index
    %394 = vector.load %arg6[%c3_111, %c0_112, %c0_113] : memref<8x8x128xf32, #tpu.memory_space<vmem>>, vector<1x8x128xf32>
    %395 = vector.shape_cast %394 : vector<1x8x128xf32> to vector<8x128xf32>
    %396 = tpu.concatenate %395, %388 in 1 : vector<8x128xf32>, vector<8x128xf32> -> vector<8x256xf32>
    %cst_114 = arith.constant dense<0.000000e+00> : vector<8x512xf32>
    %397 = tpu.matmul %396, %281, %cst_114 {dimension_numbers = #tpu.dot_dimension_numbers<[1], [0], [0], [1], [0, 0, 1, 1], [], []>} : vector<8x256xf32>, vector<256x512xf32>, vector<8x512xf32> -> vector<8x512xf32>
    %398 = vector.broadcast %283 : vector<1x512xf32> to vector<8x512xf32>
    %399 = arith.addf %397, %398 : vector<8x512xf32>
    %400 = vector.extract_strided_slice %399 {offsets = [0, 0], sizes = [8, 128], strides = [1, 1]} : vector<8x512xf32> to vector<8x128xf32>
    %401 = arith.negf %400 : vector<8x128xf32>
    %402 = math.exp %401 : vector<8x128xf32>
    %cst_115 = arith.constant 1.000000e+00 : f32
    %403 = vector.broadcast %cst_115 : f32 to vector<8x128xf32>
    %404 = arith.addf %403, %402 : vector<8x128xf32>
    %405 = arith.divf %403, %404 : vector<8x128xf32>
    %406 = vector.extract_strided_slice %399 {offsets = [0, 128], sizes = [8, 128], strides = [1, 1]} : vector<8x512xf32> to vector<8x128xf32>
    %407 = arith.negf %406 : vector<8x128xf32>
    %408 = math.exp %407 : vector<8x128xf32>
    %cst_116 = arith.constant 1.000000e+00 : f32
    %409 = vector.broadcast %cst_116 : f32 to vector<8x128xf32>
    %410 = arith.addf %409, %408 : vector<8x128xf32>
    %411 = arith.divf %409, %410 : vector<8x128xf32>
    %412 = vector.extract_strided_slice %399 {offsets = [0, 256], sizes = [8, 128], strides = [1, 1]} : vector<8x512xf32> to vector<8x128xf32>
    %413 = math.tanh %412 : vector<8x128xf32>
    %414 = vector.extract_strided_slice %399 {offsets = [0, 384], sizes = [8, 128], strides = [1, 1]} : vector<8x512xf32> to vector<8x128xf32>
    %415 = arith.negf %414 : vector<8x128xf32>
    %416 = math.exp %415 : vector<8x128xf32>
    %cst_117 = arith.constant 1.000000e+00 : f32
    %417 = vector.broadcast %cst_117 : f32 to vector<8x128xf32>
    %418 = arith.addf %417, %416 : vector<8x128xf32>
    %419 = arith.divf %417, %418 : vector<8x128xf32>
    %420 = arith.mulf %411, %386 : vector<8x128xf32>
    %421 = arith.mulf %405, %413 : vector<8x128xf32>
    %422 = arith.addf %420, %421 : vector<8x128xf32>
    %423 = math.tanh %422 : vector<8x128xf32>
    %424 = arith.mulf %419, %423 : vector<8x128xf32>
    %c4_i32 = arith.constant 4 : i32
    %425 = vector.broadcast %c4_i32 : i32 to vector<8x1xi32>
    %426 = arith.cmpi eq, %0, %425 : vector<8x1xi32>
    %427 = vector.shape_cast %426 : vector<8x1xi1> to vector<8x1xi1>
    %428 = vector.broadcast %427 : vector<8x1xi1> to vector<8x128xi1>
    %429 = arith.select %428, %424, %393 : vector<8x128xi1>, vector<8x128xf32>
    %c4_118 = arith.constant 4 : index
    %c0_119 = arith.constant 0 : index
    %c0_120 = arith.constant 0 : index
    %430 = vector.load %arg6[%c4_118, %c0_119, %c0_120] : memref<8x8x128xf32, #tpu.memory_space<vmem>>, vector<1x8x128xf32>
    %431 = vector.shape_cast %430 : vector<1x8x128xf32> to vector<8x128xf32>
    %432 = tpu.concatenate %431, %424 in 1 : vector<8x128xf32>, vector<8x128xf32> -> vector<8x256xf32>
    %cst_121 = arith.constant dense<0.000000e+00> : vector<8x512xf32>
    %433 = tpu.matmul %432, %281, %cst_121 {dimension_numbers = #tpu.dot_dimension_numbers<[1], [0], [0], [1], [0, 0, 1, 1], [], []>} : vector<8x256xf32>, vector<256x512xf32>, vector<8x512xf32> -> vector<8x512xf32>
    %434 = vector.broadcast %283 : vector<1x512xf32> to vector<8x512xf32>
    %435 = arith.addf %433, %434 : vector<8x512xf32>
    %436 = vector.extract_strided_slice %435 {offsets = [0, 0], sizes = [8, 128], strides = [1, 1]} : vector<8x512xf32> to vector<8x128xf32>
    %437 = arith.negf %436 : vector<8x128xf32>
    %438 = math.exp %437 : vector<8x128xf32>
    %cst_122 = arith.constant 1.000000e+00 : f32
    %439 = vector.broadcast %cst_122 : f32 to vector<8x128xf32>
    %440 = arith.addf %439, %438 : vector<8x128xf32>
    %441 = arith.divf %439, %440 : vector<8x128xf32>
    %442 = vector.extract_strided_slice %435 {offsets = [0, 128], sizes = [8, 128], strides = [1, 1]} : vector<8x512xf32> to vector<8x128xf32>
    %443 = arith.negf %442 : vector<8x128xf32>
    %444 = math.exp %443 : vector<8x128xf32>
    %cst_123 = arith.constant 1.000000e+00 : f32
    %445 = vector.broadcast %cst_123 : f32 to vector<8x128xf32>
    %446 = arith.addf %445, %444 : vector<8x128xf32>
    %447 = arith.divf %445, %446 : vector<8x128xf32>
    %448 = vector.extract_strided_slice %435 {offsets = [0, 256], sizes = [8, 128], strides = [1, 1]} : vector<8x512xf32> to vector<8x128xf32>
    %449 = math.tanh %448 : vector<8x128xf32>
    %450 = vector.extract_strided_slice %435 {offsets = [0, 384], sizes = [8, 128], strides = [1, 1]} : vector<8x512xf32> to vector<8x128xf32>
    %451 = arith.negf %450 : vector<8x128xf32>
    %452 = math.exp %451 : vector<8x128xf32>
    %cst_124 = arith.constant 1.000000e+00 : f32
    %453 = vector.broadcast %cst_124 : f32 to vector<8x128xf32>
    %454 = arith.addf %453, %452 : vector<8x128xf32>
    %455 = arith.divf %453, %454 : vector<8x128xf32>
    %456 = arith.mulf %447, %422 : vector<8x128xf32>
    %457 = arith.mulf %441, %449 : vector<8x128xf32>
    %458 = arith.addf %456, %457 : vector<8x128xf32>
    %459 = math.tanh %458 : vector<8x128xf32>
    %460 = arith.mulf %455, %459 : vector<8x128xf32>
    %c5_i32 = arith.constant 5 : i32
    %461 = vector.broadcast %c5_i32 : i32 to vector<8x1xi32>
    %462 = arith.cmpi eq, %0, %461 : vector<8x1xi32>
    %463 = vector.shape_cast %462 : vector<8x1xi1> to vector<8x1xi1>
    %464 = vector.broadcast %463 : vector<8x1xi1> to vector<8x128xi1>
    %465 = arith.select %464, %460, %429 : vector<8x128xi1>, vector<8x128xf32>
    %c5_125 = arith.constant 5 : index
    %c0_126 = arith.constant 0 : index
    %c0_127 = arith.constant 0 : index
    %466 = vector.load %arg6[%c5_125, %c0_126, %c0_127] : memref<8x8x128xf32, #tpu.memory_space<vmem>>, vector<1x8x128xf32>
    %467 = vector.shape_cast %466 : vector<1x8x128xf32> to vector<8x128xf32>
    %468 = tpu.concatenate %467, %460 in 1 : vector<8x128xf32>, vector<8x128xf32> -> vector<8x256xf32>
    %cst_128 = arith.constant dense<0.000000e+00> : vector<8x512xf32>
    %469 = tpu.matmul %468, %281, %cst_128 {dimension_numbers = #tpu.dot_dimension_numbers<[1], [0], [0], [1], [0, 0, 1, 1], [], []>} : vector<8x256xf32>, vector<256x512xf32>, vector<8x512xf32> -> vector<8x512xf32>
    %470 = vector.broadcast %283 : vector<1x512xf32> to vector<8x512xf32>
    %471 = arith.addf %469, %470 : vector<8x512xf32>
    %472 = vector.extract_strided_slice %471 {offsets = [0, 0], sizes = [8, 128], strides = [1, 1]} : vector<8x512xf32> to vector<8x128xf32>
    %473 = arith.negf %472 : vector<8x128xf32>
    %474 = math.exp %473 : vector<8x128xf32>
    %cst_129 = arith.constant 1.000000e+00 : f32
    %475 = vector.broadcast %cst_129 : f32 to vector<8x128xf32>
    %476 = arith.addf %475, %474 : vector<8x128xf32>
    %477 = arith.divf %475, %476 : vector<8x128xf32>
    %478 = vector.extract_strided_slice %471 {offsets = [0, 128], sizes = [8, 128], strides = [1, 1]} : vector<8x512xf32> to vector<8x128xf32>
    %479 = arith.negf %478 : vector<8x128xf32>
    %480 = math.exp %479 : vector<8x128xf32>
    %cst_130 = arith.constant 1.000000e+00 : f32
    %481 = vector.broadcast %cst_130 : f32 to vector<8x128xf32>
    %482 = arith.addf %481, %480 : vector<8x128xf32>
    %483 = arith.divf %481, %482 : vector<8x128xf32>
    %484 = vector.extract_strided_slice %471 {offsets = [0, 256], sizes = [8, 128], strides = [1, 1]} : vector<8x512xf32> to vector<8x128xf32>
    %485 = math.tanh %484 : vector<8x128xf32>
    %486 = vector.extract_strided_slice %471 {offsets = [0, 384], sizes = [8, 128], strides = [1, 1]} : vector<8x512xf32> to vector<8x128xf32>
    %487 = arith.negf %486 : vector<8x128xf32>
    %488 = math.exp %487 : vector<8x128xf32>
    %cst_131 = arith.constant 1.000000e+00 : f32
    %489 = vector.broadcast %cst_131 : f32 to vector<8x128xf32>
    %490 = arith.addf %489, %488 : vector<8x128xf32>
    %491 = arith.divf %489, %490 : vector<8x128xf32>
    %492 = arith.mulf %483, %458 : vector<8x128xf32>
    %493 = arith.mulf %477, %485 : vector<8x128xf32>
    %494 = arith.addf %492, %493 : vector<8x128xf32>
    %495 = math.tanh %494 : vector<8x128xf32>
    %496 = arith.mulf %491, %495 : vector<8x128xf32>
    %c6_i32 = arith.constant 6 : i32
    %497 = vector.broadcast %c6_i32 : i32 to vector<8x1xi32>
    %498 = arith.cmpi eq, %0, %497 : vector<8x1xi32>
    %499 = vector.shape_cast %498 : vector<8x1xi1> to vector<8x1xi1>
    %500 = vector.broadcast %499 : vector<8x1xi1> to vector<8x128xi1>
    %501 = arith.select %500, %496, %465 : vector<8x128xi1>, vector<8x128xf32>
    %c6_132 = arith.constant 6 : index
    %c0_133 = arith.constant 0 : index
    %c0_134 = arith.constant 0 : index
    %502 = vector.load %arg6[%c6_132, %c0_133, %c0_134] : memref<8x8x128xf32, #tpu.memory_space<vmem>>, vector<1x8x128xf32>
    %503 = vector.shape_cast %502 : vector<1x8x128xf32> to vector<8x128xf32>
    %504 = tpu.concatenate %503, %496 in 1 : vector<8x128xf32>, vector<8x128xf32> -> vector<8x256xf32>
    %cst_135 = arith.constant dense<0.000000e+00> : vector<8x512xf32>
    %505 = tpu.matmul %504, %281, %cst_135 {dimension_numbers = #tpu.dot_dimension_numbers<[1], [0], [0], [1], [0, 0, 1, 1], [], []>} : vector<8x256xf32>, vector<256x512xf32>, vector<8x512xf32> -> vector<8x512xf32>
    %506 = vector.broadcast %283 : vector<1x512xf32> to vector<8x512xf32>
    %507 = arith.addf %505, %506 : vector<8x512xf32>
    %508 = vector.extract_strided_slice %507 {offsets = [0, 0], sizes = [8, 128], strides = [1, 1]} : vector<8x512xf32> to vector<8x128xf32>
    %509 = arith.negf %508 : vector<8x128xf32>
    %510 = math.exp %509 : vector<8x128xf32>
    %cst_136 = arith.constant 1.000000e+00 : f32
    %511 = vector.broadcast %cst_136 : f32 to vector<8x128xf32>
    %512 = arith.addf %511, %510 : vector<8x128xf32>
    %513 = arith.divf %511, %512 : vector<8x128xf32>
    %514 = vector.extract_strided_slice %507 {offsets = [0, 128], sizes = [8, 128], strides = [1, 1]} : vector<8x512xf32> to vector<8x128xf32>
    %515 = arith.negf %514 : vector<8x128xf32>
    %516 = math.exp %515 : vector<8x128xf32>
    %cst_137 = arith.constant 1.000000e+00 : f32
    %517 = vector.broadcast %cst_137 : f32 to vector<8x128xf32>
    %518 = arith.addf %517, %516 : vector<8x128xf32>
    %519 = arith.divf %517, %518 : vector<8x128xf32>
    %520 = vector.extract_strided_slice %507 {offsets = [0, 256], sizes = [8, 128], strides = [1, 1]} : vector<8x512xf32> to vector<8x128xf32>
    %521 = math.tanh %520 : vector<8x128xf32>
    %522 = vector.extract_strided_slice %507 {offsets = [0, 384], sizes = [8, 128], strides = [1, 1]} : vector<8x512xf32> to vector<8x128xf32>
    %523 = arith.negf %522 : vector<8x128xf32>
    %524 = math.exp %523 : vector<8x128xf32>
    %cst_138 = arith.constant 1.000000e+00 : f32
    %525 = vector.broadcast %cst_138 : f32 to vector<8x128xf32>
    %526 = arith.addf %525, %524 : vector<8x128xf32>
    %527 = arith.divf %525, %526 : vector<8x128xf32>
    %528 = arith.mulf %519, %494 : vector<8x128xf32>
    %529 = arith.mulf %513, %521 : vector<8x128xf32>
    %530 = arith.addf %528, %529 : vector<8x128xf32>
    %531 = math.tanh %530 : vector<8x128xf32>
    %532 = arith.mulf %527, %531 : vector<8x128xf32>
    %c7_i32 = arith.constant 7 : i32
    %533 = vector.broadcast %c7_i32 : i32 to vector<8x1xi32>
    %534 = arith.cmpi eq, %0, %533 : vector<8x1xi32>
    %535 = vector.shape_cast %534 : vector<8x1xi1> to vector<8x1xi1>
    %536 = vector.broadcast %535 : vector<8x1xi1> to vector<8x128xi1>
    %537 = arith.select %536, %532, %501 : vector<8x128xi1>, vector<8x128xf32>
    %c7_139 = arith.constant 7 : index
    %c0_140 = arith.constant 0 : index
    %c0_141 = arith.constant 0 : index
    %538 = vector.load %arg6[%c7_139, %c0_140, %c0_141] : memref<8x8x128xf32, #tpu.memory_space<vmem>>, vector<1x8x128xf32>
    %539 = vector.shape_cast %538 : vector<1x8x128xf32> to vector<8x128xf32>
    %540 = tpu.concatenate %539, %532 in 1 : vector<8x128xf32>, vector<8x128xf32> -> vector<8x256xf32>
    %cst_142 = arith.constant dense<0.000000e+00> : vector<8x512xf32>
    %541 = tpu.matmul %540, %281, %cst_142 {dimension_numbers = #tpu.dot_dimension_numbers<[1], [0], [0], [1], [0, 0, 1, 1], [], []>} : vector<8x256xf32>, vector<256x512xf32>, vector<8x512xf32> -> vector<8x512xf32>
    %542 = vector.broadcast %283 : vector<1x512xf32> to vector<8x512xf32>
    %543 = arith.addf %541, %542 : vector<8x512xf32>
    %544 = vector.extract_strided_slice %543 {offsets = [0, 0], sizes = [8, 128], strides = [1, 1]} : vector<8x512xf32> to vector<8x128xf32>
    %545 = arith.negf %544 : vector<8x128xf32>
    %546 = math.exp %545 : vector<8x128xf32>
    %cst_143 = arith.constant 1.000000e+00 : f32
    %547 = vector.broadcast %cst_143 : f32 to vector<8x128xf32>
    %548 = arith.addf %547, %546 : vector<8x128xf32>
    %549 = arith.divf %547, %548 : vector<8x128xf32>
    %550 = vector.extract_strided_slice %543 {offsets = [0, 128], sizes = [8, 128], strides = [1, 1]} : vector<8x512xf32> to vector<8x128xf32>
    %551 = arith.negf %550 : vector<8x128xf32>
    %552 = math.exp %551 : vector<8x128xf32>
    %cst_144 = arith.constant 1.000000e+00 : f32
    %553 = vector.broadcast %cst_144 : f32 to vector<8x128xf32>
    %554 = arith.addf %553, %552 : vector<8x128xf32>
    %555 = arith.divf %553, %554 : vector<8x128xf32>
    %556 = vector.extract_strided_slice %543 {offsets = [0, 256], sizes = [8, 128], strides = [1, 1]} : vector<8x512xf32> to vector<8x128xf32>
    %557 = math.tanh %556 : vector<8x128xf32>
    %558 = vector.extract_strided_slice %543 {offsets = [0, 384], sizes = [8, 128], strides = [1, 1]} : vector<8x512xf32> to vector<8x128xf32>
    %559 = arith.negf %558 : vector<8x128xf32>
    %560 = math.exp %559 : vector<8x128xf32>
    %cst_145 = arith.constant 1.000000e+00 : f32
    %561 = vector.broadcast %cst_145 : f32 to vector<8x128xf32>
    %562 = arith.addf %561, %560 : vector<8x128xf32>
    %563 = arith.divf %561, %562 : vector<8x128xf32>
    %564 = arith.mulf %555, %530 : vector<8x128xf32>
    %565 = arith.mulf %549, %557 : vector<8x128xf32>
    %566 = arith.addf %564, %565 : vector<8x128xf32>
    %567 = math.tanh %566 : vector<8x128xf32>
    %568 = arith.mulf %563, %567 : vector<8x128xf32>
    %c8_i32 = arith.constant 8 : i32
    %569 = vector.broadcast %c8_i32 : i32 to vector<8x1xi32>
    %570 = arith.cmpi eq, %0, %569 : vector<8x1xi32>
    %571 = vector.shape_cast %570 : vector<8x1xi1> to vector<8x1xi1>
    %572 = vector.broadcast %571 : vector<8x1xi1> to vector<8x128xi1>
    %573 = arith.select %572, %568, %537 : vector<8x128xi1>, vector<8x128xf32>
    %c0_146 = arith.constant 0 : index
    %c0_147 = arith.constant 0 : index
    %574 = vector.load %arg5[%c0_146, %c0_147] : memref<8x128xf32, #tpu.memory_space<vmem>>, vector<8x128xf32>
    tpu.vector_store %arg5[%c0_146, %c0_147], %573 {strides = array<i32>} : memref<8x128xf32, #tpu.memory_space<vmem>>, vector<8x128xf32>,
    return
  }
  func.func @transform_0(%arg0: i32) -> (i32, i32, i32) {
    %c0_i32 = arith.constant 0 : i32
    %c0_i32_0 = arith.constant 0 : i32
    %c0_i32_1 = arith.constant 0 : i32
    return %c0_i32, %arg0, %c0_i32_0 : i32, i32, i32
  }
  func.func @transform_1(%arg0: i32) -> (i32, i32, i32) {
    %c0_i32 = arith.constant 0 : i32
    %c0_i32_0 = arith.constant 0 : i32
    %c0_i32_1 = arith.constant 0 : i32
    %c0_i32_2 = arith.constant 0 : i32
    return %c0_i32, %c0_i32_0, %c0_i32_1 : i32, i32, i32
  }
  func.func @transform_2(%arg0: i32) -> (i32, i32, i32) {
    %c0_i32 = arith.constant 0 : i32
    %c0_i32_0 = arith.constant 0 : i32
    %c0_i32_1 = arith.constant 0 : i32
    %c0_i32_2 = arith.constant 0 : i32
    return %c0_i32, %c0_i32_0, %c0_i32_1 : i32, i32, i32
  }
  func.func @transform_3(%arg0: i32) -> (i32, i32) {
    %c0_i32 = arith.constant 0 : i32
    %c0_i32_0 = arith.constant 0 : i32
    return %arg0, %c0_i32 : i32, i32
  }
  func.func @transform_4(%arg0: i32) -> (i32, i32) {
    %c0_i32 = arith.constant 0 : i32
    %c0_i32_0 = arith.constant 0 : i32
    return %arg0, %c0_i32 : i32, i32
  }
}

</mosaic_0001>

<bundles_post_ra>
// kernel: lstm_encoder_forward.1
= control target key start
LH: loop header
LB: loop body
LE: loop exit
PB: predicated region body
PF: predicated region fallthrough
CT: control target
= control target key end

     0   :  { %s10742_s1 = inlined_call_operand.vmem [shape: f32[2,256,512], index: 1, kind: input, shape index: {}]   ;;  %s10743_s0 = inlined_call_operand.vmem [shape: f32[8,8,128], index: 0, kind: input, shape index: {}]   ;;  %s10744_s2 = inlined_call_operand.vmem [shape: f32[2,1,512], index: 2, kind: input, shape index: {}]   ;;  %s10745_s3 = inlined_call_operand.vmem [shape: s32[8,1], index: 3, kind: input, shape index: {}]   ;;  %s10746_s4 = inlined_call_operand.vmem [shape: f32[8,128], index: 4, kind: output, shape index: {}]  }
   0x1   :  { %v4926_v0 = vld [vmem:[%s10742_s1 + $0x1e0] sm:$0xff]  ;;  %v4931_v1 = vld [vmem:[%s10742_s1 + $0x1e8] sm:$0xff]  ;;  %v5288_v61 = vld [vmem:[%s10742_s1 + $0x1f0] sm:$0xff] }
   0x2   :  { %v4936_v2 = vld [vmem:[%s10742_s1 + $0x1c0] sm:$0xff]  ;;  %157 = vmatpush.msra.mxu0 %v4926_v0  ;;  %197 = vmatpush.msra.mxu2 %v4931_v1  ;;  %v4943_v3 = vld [vmem:[%s10742_s1 + $0x1c8] sm:$0xff]  ;;  %11329 = vst [vmem:[#allocation10_spill] sm:$0xff] %v5288_v61  ;;  %v5293_v62 = vld [vmem:[%s10742_s1 + $0x1f8] sm:$0xff] }
   0x3   :  { %v4948_v4 = vld [vmem:[%s10742_s1 + $0x3e8] sm:$0xff]  ;;  %v4953_v5 = vld [vmem:[%s10742_s1 + $0x1a0] sm:$0xff]  ;;  %11330 = vst [vmem:[#allocation11_spill] sm:$0xff] %v5293_v62 }
   0x4   :  { %217 = vmatpush.msra.mxu3 %v4948_v4  ;;  %v4959_v6 = vld [vmem:[%s10742_s1 + $0x1a8] sm:$0xff]  ;;  %v4969_v8 = vld [vmem:[%s10742_s1 + $0x3e0] sm:$0xff]  ;;  %158 = vmatpush.msra.mxu0 %v4936_v2 }
   0x5   :  { %v4964_v7 = vld [vmem:[%s10742_s1 + $0x3c8] sm:$0xff]  ;;  %198 = vmatpush.msra.mxu2 %v4943_v3  ;;  %177 = vmatpush.msra.mxu1 %v4969_v8  ;;  %v4983_v10 = vld [vmem:[%s10742_s1 + $0x180] sm:$0xff] }
   0x6   :  { %v4976_v9 = vld [vmem:[%s10742_s1 + $0x3a8] sm:$0xff]  ;;  %218 = vmatpush.msra.mxu3 %v4964_v7  ;;  %v4993_v12 = vld [vmem:[%s10742_s1 + $0x3c0] sm:$0xff]  ;;  %159 = vmatpush.msra.mxu0 %v4953_v5 }
   0x7   :  { %v4988_v11 = vld [vmem:[%s10742_s1 + $0x188] sm:$0xff]  ;;  %199 = vmatpush.msra.mxu2 %v4959_v6  ;;  %v5005_v14 = vld [vmem:[%s10742_s1 + $0x3a0] sm:$0xff]  ;;  %178 = vmatpush.msra.mxu1 %v4993_v12 }
   0x8   :  { %v5000_v13 = vld [vmem:[%s10742_s1 + $0x388] sm:$0xff]  ;;  %219 = vmatpush.msra.mxu3 %v4976_v9  ;;  %v5012_v15 = vld [vmem:[%s10742_s1 + $0x160] sm:$0xff]  ;;  %160 = vmatpush.msra.mxu0 %v4983_v10 }
   0x9   :  { %v5017_v16 = vld [vmem:[%s10742_s1 + $0x168] sm:$0xff]  ;;  %200 = vmatpush.msra.mxu2 %v4988_v11  ;;  %v5029_v18 = vld [vmem:[%s10742_s1 + $0x380] sm:$0xff]  ;;  %179 = vmatpush.msra.mxu1 %v5005_v14 }
   0xa   :  { %v5024_v17 = vld [vmem:[%s10742_s1 + $0x368] sm:$0xff]  ;;  %220 = vmatpush.msra.mxu3 %v5000_v13  ;;  %v5036_v19 = vld [vmem:[%s10742_s1 + $0x140] sm:$0xff]  ;;  %161 = vmatpush.msra.mxu0 %v5012_v15 }
   0xb   :  { %v5041_v20 = vld [vmem:[%s10742_s1 + $0x148] sm:$0xff]  ;;  %201 = vmatpush.msra.mxu2 %v5017_v16  ;;  %v5053_v22 = vld [vmem:[%s10742_s1 + $0x360] sm:$0xff]  ;;  %180 = vmatpush.msra.mxu1 %v5029_v18 }
   0xc   :  { %v5048_v21 = vld [vmem:[%s10742_s1 + $0x348] sm:$0xff]  ;;  %221 = vmatpush.msra.mxu3 %v5024_v17  ;;  %v5060_v23 = vld [vmem:[%s10742_s1 + $0x120] sm:$0xff]  ;;  %162 = vmatpush.msra.mxu0 %v5036_v19 }
   0xd   :  { %v5065_v24 = vld [vmem:[%s10742_s1 + $0x128] sm:$0xff]  ;;  %202 = vmatpush.msra.mxu2 %v5041_v20  ;;  %v5077_v26 = vld [vmem:[%s10742_s1 + $0x340] sm:$0xff]  ;;  %181 = vmatpush.msra.mxu1 %v5053_v22 }
   0xe   :  { %v5072_v25 = vld [vmem:[%s10742_s1 + $0x328] sm:$0xff]  ;;  %222 = vmatpush.msra.mxu3 %v5048_v21  ;;  %v5084_v27 = vld [vmem:[%s10742_s1 + $0x100] sm:$0xff]  ;;  %163 = vmatpush.msra.mxu0 %v5060_v23 }
   0xf   :  { %v5089_v28 = vld [vmem:[%s10742_s1 + $0x108] sm:$0xff]  ;;  %203 = vmatpush.msra.mxu2 %v5065_v24  ;;  %v5101_v30 = vld [vmem:[%s10742_s1 + $0x320] sm:$0xff]  ;;  %182 = vmatpush.msra.mxu1 %v5077_v26 }
  0x10   :  { %v5096_v29 = vld [vmem:[%s10742_s1 + $0x308] sm:$0xff]  ;;  %223 = vmatpush.msra.mxu3 %v5072_v25  ;;  %v5108_v31 = vld [vmem:[%s10742_s1 + $0xe0] sm:$0xff]  ;;  %164 = vmatpush.msra.mxu0 %v5084_v27 }
  0x11   :  { %v5113_v32 = vld [vmem:[%s10742_s1 + $0xe8] sm:$0xff]  ;;  %204 = vmatpush.msra.mxu2 %v5089_v28  ;;  %v5125_v34 = vld [vmem:[%s10742_s1 + $0x300] sm:$0xff]  ;;  %183 = vmatpush.msra.mxu1 %v5101_v30 }
  0x12   :  { %v5120_v33 = vld [vmem:[%s10742_s1 + $0x2e8] sm:$0xff]  ;;  %224 = vmatpush.msra.mxu3 %v5096_v29  ;;  %v5132_v35 = vld [vmem:[%s10742_s1 + $0xc0] sm:$0xff]  ;;  %165 = vmatpush.msra.mxu0 %v5108_v31 }
  0x13   :  { %v5137_v36 = vld [vmem:[%s10742_s1 + $0xc8] sm:$0xff]  ;;  %205 = vmatpush.msra.mxu2 %v5113_v32  ;;  %v5149_v38 = vld [vmem:[%s10742_s1 + $0x2e0] sm:$0xff]  ;;  %184 = vmatpush.msra.mxu1 %v5125_v34 }
  0x14   :  { %v5144_v37 = vld [vmem:[%s10742_s1 + $0x2c8] sm:$0xff]  ;;  %225 = vmatpush.msra.mxu3 %v5120_v33  ;;  %v5156_v39 = vld [vmem:[%s10742_s1 + $0xa0] sm:$0xff]  ;;  %166 = vmatpush.msra.mxu0 %v5132_v35 }
  0x15   :  { %v5161_v40 = vld [vmem:[%s10742_s1 + $0xa8] sm:$0xff]  ;;  %206 = vmatpush.msra.mxu2 %v5137_v36  ;;  %v5173_v42 = vld [vmem:[%s10742_s1 + $0x2c0] sm:$0xff]  ;;  %185 = vmatpush.msra.mxu1 %v5149_v38 }
  0x16   :  { %v5168_v41 = vld [vmem:[%s10742_s1 + $0x2a8] sm:$0xff]  ;;  %226 = vmatpush.msra.mxu3 %v5144_v37  ;;  %v5180_v43 = vld [vmem:[%s10742_s1 + $0x80] sm:$0xff]  ;;  %167 = vmatpush.msra.mxu0 %v5156_v39 }
  0x17   :  { %v5185_v44 = vld [vmem:[%s10742_s1 + $0x88] sm:$0xff]  ;;  %207 = vmatpush.msra.mxu2 %v5161_v40  ;;  %v5197_v46 = vld [vmem:[%s10742_s1 + $0x2a0] sm:$0xff]  ;;  %186 = vmatpush.msra.mxu1 %v5173_v42 }
  0x18   :  { %v5192_v45 = vld [vmem:[%s10742_s1 + $0x288] sm:$0xff]  ;;  %227 = vmatpush.msra.mxu3 %v5168_v41  ;;  %v5204_v47 = vld [vmem:[%s10742_s1 + $0x60] sm:$0xff]  ;;  %168 = vmatpush.msra.mxu0 %v5180_v43 }
  0x19   :  { %v5209_v48 = vld [vmem:[%s10742_s1 + $0x68] sm:$0xff]  ;;  %208 = vmatpush.msra.mxu2 %v5185_v44  ;;  %v5221_v50 = vld [vmem:[%s10742_s1 + $0x280] sm:$0xff]  ;;  %187 = vmatpush.msra.mxu1 %v5197_v46 }
  0x1a   :  { %v5216_v49 = vld [vmem:[%s10742_s1 + $0x268] sm:$0xff]  ;;  %228 = vmatpush.msra.mxu3 %v5192_v45  ;;  %v5228_v51 = vld [vmem:[%s10742_s1 + $0x40] sm:$0xff]  ;;  %169 = vmatpush.msra.mxu0 %v5204_v47 }
  0x1b   :  { %11322 = vst [vmem:[#allocation3_spill] sm:$0xff] %v5216_v49  ;;  %v5233_v52 = vld [vmem:[%s10742_s1 + $0x48] sm:$0xff]  ;;  %209 = vmatpush.msra.mxu2 %v5209_v48  ;;  %v5245_v54 = vld [vmem:[%s10742_s1 + $0x260] sm:$0xff]  ;;  %188 = vmatpush.msra.mxu1 %v5221_v50 }
  0x1c   :  { %v5240_v53 = vld [vmem:[%s10742_s1 + $0x248] sm:$0xff]  ;;  %11324 = vst [vmem:[#allocation5_spill] sm:$0xff] %v5245_v54  ;;  %229 = vmatpush.msra.mxu3 %v5216_v49  ;;  %v5252_v55 = vld [vmem:[%s10742_s1 + $0x20] sm:$0xff]  ;;  %170 = vmatpush.msra.mxu0 %v5228_v51  ;;  %v5525_v49 = vld [vmem:[%s10742_s1 + $0x2f8] sm:$0xff] }
  0x1d   :  { %11323 = vst [vmem:[#allocation4_spill] sm:$0xff] %v5240_v53  ;;  %v5257_v56 = vld [vmem:[%s10742_s1 + $0x28] sm:$0xff]  ;;  %210 = vmatpush.msra.mxu2 %v5233_v52  ;;  %v5269_v58 = vld [vmem:[%s10742_s1 + $0x240] sm:$0xff]  ;;  %189 = vmatpush.msra.mxu1 %v5245_v54  ;;  %v5324_v54 = vld [vmem:[%s10742_s1 + $0x3f8] sm:$0xff] }
  0x1e   :  { %v5264_v57 = vld [vmem:[%s10742_s1 + $0x228] sm:$0xff]  ;;  %11326 = vst [vmem:[#allocation7_spill] sm:$0xff] %v5269_v58  ;;  %230 = vmatpush.msra.mxu3 %v5240_v53  ;;  %v5276_v59 = vld [vmem:[%s10742_s1] sm:$0xff]  ;;  %171 = vmatpush.msra.mxu0 %v5252_v55 }
  0x1f   :  { %11325 = vst [vmem:[#allocation6_spill] sm:$0xff] %v5264_v57  ;;  %v5281_v60 = vld [vmem:[%s10742_s1 + $0x8] sm:$0xff]  ;;  %211 = vmatpush.msra.mxu2 %v5257_v56  ;;  %190 = vmatpush.msra.mxu1 %v5269_v58  ;;  %v5305_v53 = vld [vmem:[%s10742_s1 + $0x220] sm:$0xff]  ;;  %v5317_v58 = vld [vmem:[%s10742_s1 + $0x1d8] sm:$0xff] }
  0x20   :  { %11327 = vst [vmem:[#allocation8_spill] sm:$0xff] %v5276_v59  ;;  %231 = vmatpush.msra.mxu3 %v5264_v57  ;;  %v5300_v63 = vld [vmem:[%s10742_s1 + $0x208] sm:$0xff]  ;;  %172 = vmatpush.msra.mxu0 %v5276_v59  ;;  %v5312_v57 = vld [vmem:[%s10742_s1 + $0x1d0] sm:$0xff]  ;;  %v10784_v59 = vmov 0.0  }
  0x21   :  { %11328 = vst [vmem:[#allocation9_spill] sm:$0xff] %v5281_v60  ;;  %212 = vmatpush.msra.mxu2 %v5281_v60  ;;  %v5329_v60 = vld [vmem:[%s10742_s1 + $0x200] sm:$0xff]  ;;  %191 = vmatpush.msra.mxu1 %v5305_v53 }
  0x22   :  { %11331 = vst [vmem:[#allocation12_spill] sm:$0xff] %v5300_v63  ;;  %237 = vmatpush.msrb.mxu0 %v5288_v61  ;;  %232 = vmatpush.msra.mxu3 %v5300_v63  ;;  %v5336_v61 = vld [vmem:[%s10742_s1 + $0x1b0] sm:$0xff]  ;;  %v5348_v63 = vld [vmem:[%s10742_s1 + $0x3d8] sm:$0xff] }
  0x23   :  { %11332 = vst [vmem:[#allocation13_spill] sm:$0xff] %v5305_v53  ;;  %277 = vmatpush.msrb.mxu2 %v5293_v62  ;;  %v5341_v62 = vld [vmem:[%s10742_s1 + $0x1b8] sm:$0xff]  ;;  %v5353_v53 = vld [vmem:[%s10742_s1 + $0x3f0] sm:$0xff]  ;;  %192 = vmatpush.msra.mxu1 %v5329_v60 }
  0x24   :  { %11333 = vst [vmem:[#allocation14_spill] sm:$0xff] %v5312_v57  ;;  %238 = vmatpush.msrb.mxu0 %v5312_v57  ;;  %297 = vmatpush.msrb.mxu3 %v5324_v54  ;;  %v5360_v57 = vld [vmem:[%s10742_s1 + $0x190] sm:$0xff] }
  0x25   :  { %11334 = vst [vmem:[#allocation15_spill] sm:$0xff] %v5317_v58  ;;  %278 = vmatpush.msrb.mxu2 %v5317_v58  ;;  %v5365_v58 = vld [vmem:[%s10742_s1 + $0x198] sm:$0xff]  ;;  %257 = vmatpush.msrb.mxu1 %v5353_v53 }
  0x26   :  { %11335 = vst [vmem:[#allocation16_spill] sm:$0xff] %v5324_v54  ;;  %239 = vmatpush.msrb.mxu0 %v5336_v61  ;;  %v5372_v54 = vld [vmem:[%s10742_s1 + $0x3b8] sm:$0xff]  ;;  %298 = vmatpush.msrb.mxu3 %v5348_v63 }
  0x27   :  { %11336 = vst [vmem:[#allocation17_spill] sm:$0xff] %v5329_v60  ;;  %279 = vmatpush.msrb.mxu2 %v5341_v62  ;;  %v5377_v60 = vld [vmem:[%s10743_s0] sm:$0xff]  ;;  %233 = vmatmul.f32.vlgmr.msra.gmra.mxu3 %v10784_v59  ;;  %v5451_v59 = vld [vmem:[%s10742_s1 + $0x358] sm:$0xff] }
  0x28   :  { %11337 = vst [vmem:[#allocation18_spill] sm:$0xff] %v5336_v61  ;;  %v5384_v61 = vld [vmem:[%s10742_s1 + $0x3d0] sm:$0xff]  ;;  %240 = vmatpush.msrb.mxu0 %v5360_v57  ;;  %299 = vmatpush.msrb.mxu3 %v5372_v54 }
  0x29   :  { %11338 = vst [vmem:[#allocation19_spill] sm:$0xff] %v5341_v62  ;;  %v5389_v62 = vld [vmem:[%s10742_s1 + $0x170] sm:$0xff]  ;;  %280 = vmatpush.msrb.mxu2 %v5365_v58  ;;  %258 = vmatpush.msrb.mxu1 %v5384_v61 }
  0x2a   :  { %11339 = vst [vmem:[#allocation20_spill] sm:$0xff] %v5348_v63  ;;  %v5396_v63 = vld [vmem:[%s10742_s1 + $0x178] sm:$0xff]  ;;  %213 = vmatmul.f32.vlgmr.msra.gmra.mxu2 %v5377_v60  ;;  %241 = vmatpush.msrb.mxu0 %v5389_v62 }
  0x2b   :  { %11340 = vst [vmem:[#allocation21_spill] sm:$0xff] %v5353_v53  ;;  %v5401_v53 = vld [vmem:[%s10742_s1 + $0x398] sm:$0xff]  ;;  %281 = vmatpush.msrb.mxu2 %v5396_v63  ;;  %173 = vmatmul.f32.vlgmr.msra.gmra.mxu0 %v5377_v60 }
  0x2c   :  { %11341 = vst [vmem:[#allocation22_spill] sm:$0xff] %v5360_v57  ;;  %v5408_v57 = vld [vmem:[%s10742_s1 + $0x3b0] sm:$0xff]  ;;  %300 = vmatpush.msrb.mxu3 %v5401_v53 }
  0x2d   :  { %11342 = vst [vmem:[#allocation23_spill] sm:$0xff] %v5365_v58  ;;  %v5415_v58 = vld [vmem:[%s10742_s1 + $0x150] sm:$0xff]  ;;  %259 = vmatpush.msrb.mxu1 %v5408_v57 }
  0x2e   :  { %11343 = vst [vmem:[#allocation24_spill] sm:$0xff] %v5372_v54  ;;  %v5420_v54 = vld [vmem:[%s10742_s1 + $0x158] sm:$0xff]  ;;  %242 = vmatpush.msrb.mxu0 %v5415_v58 }
  0x2f   :  { %11344 = vst [vmem:[#allocation25_spill] sm:$0xff] %v5384_v61  ;;  %v5427_v61 = vld [vmem:[%s10742_s1 + $0x378] sm:$0xff]  ;;  %282 = vmatpush.msrb.mxu2 %v5420_v54 }
  0x30   :  { %11345 = vst [vmem:[#allocation26_spill] sm:$0xff] %v5389_v62  ;;  %v5432_v62 = vld [vmem:[%s10742_s1 + $0x390] sm:$0xff]  ;;  %301 = vmatpush.msrb.mxu3 %v5427_v61 }
  0x31   :  { %11346 = vst [vmem:[#allocation27_spill] sm:$0xff] %v5396_v63  ;;  %v5439_v63 = vld [vmem:[%s10742_s1 + $0x130] sm:$0xff]  ;;  %260 = vmatpush.msrb.mxu1 %v5432_v62 }
  0x32   :  { %11347 = vst [vmem:[#allocation28_spill] sm:$0xff] %v5401_v53  ;;  %v5444_v53 = vld [vmem:[%s10742_s1 + $0x138] sm:$0xff]  ;;  %243 = vmatpush.msrb.mxu0 %v5439_v63  ;;  %302 = vmatpush.msrb.mxu3 %v5451_v59 }
  0x33   :  { %11348 = vst [vmem:[#allocation29_spill] sm:$0xff] %v5408_v57  ;;  %v5458_v57 = vld [vmem:[%s10742_s1 + $0x370] sm:$0xff]  ;;  %283 = vmatpush.msrb.mxu2 %v5444_v53 }
  0x34   :  { %11349 = vst [vmem:[#allocation30_spill] sm:$0xff] %v5415_v58  ;;  %v5463_v58 = vld [vmem:[%s10742_s1 + $0x110] sm:$0xff]  ;;  %261 = vmatpush.msrb.mxu1 %v5458_v57 }
  0x35   :  { %11350 = vst [vmem:[#allocation31_spill] sm:$0xff] %v5420_v54  ;;  %244 = vmatpush.msrb.mxu0 %v5463_v58  ;;  %v11365_v54 = vmov 0.0  }
  0x36   :  { %11351 = vst [vmem:[#allocation32_spill] sm:$0xff] %v5427_v61  ;;  %v5470_v61 = vld [vmem:[%s10742_s1 + $0x118] sm:$0xff]  ;;  %193 = vmatmul.f32.vlgmr.msra.gmra.mxu1 %v11365_v54 }
  0x37   :  { %11352 = vst [vmem:[#allocation33_spill] sm:$0xff] %v5432_v62  ;;  %v5475_v62 = vld [vmem:[%s10742_s1 + $0x338] sm:$0xff]  ;;  %284 = vmatpush.msrb.mxu2 %v5470_v61 }
  0x38   :  { %11353 = vst [vmem:[#allocation34_spill] sm:$0xff] %v5439_v63  ;;  %v5482_v63 = vld [vmem:[%s10742_s1 + $0xf0] sm:$0xff]  ;;  %303 = vmatpush.msrb.mxu3 %v5475_v62 }
  0x39   :  { %11354 = vst [vmem:[#allocation35_spill] sm:$0xff] %v5444_v53  ;;  %v5489_v53 = vld [vmem:[%s10742_s1 + $0x350] sm:$0xff]  ;;  %245 = vmatpush.msrb.mxu0 %v5482_v63 }
  0x3a   :  { %11355 = vst [vmem:[#allocation36_spill] sm:$0xff] %v5451_v59  ;;  %v5494_v59 = vld [vmem:[%s10742_s1 + $0xf8] sm:$0xff]  ;;  %262 = vmatpush.msrb.mxu1 %v5489_v53 }
  0x3b   :  { %11356 = vst [vmem:[#allocation37_spill] sm:$0xff] %v5458_v57  ;;  %v5501_v57 = vld [vmem:[%s10742_s1 + $0x318] sm:$0xff]  ;;  %285 = vmatpush.msrb.mxu2 %v5494_v59 }
  0x3c   :  { %11357 = vst [vmem:[#allocation38_spill] sm:$0xff] %v5463_v58  ;;  %v5506_v58 = vld [vmem:[%s10742_s1 + $0xd0] sm:$0xff]  ;;  %304 = vmatpush.msrb.mxu3 %v5501_v57 }
  0x3d   :  { %11358 = vst [vmem:[#allocation39_spill] sm:$0xff] %v5470_v61  ;;  %v5513_v61 = vld [vmem:[%s10742_s1 + $0x330] sm:$0xff]  ;;  %246 = vmatpush.msrb.mxu0 %v5506_v58 }
  0x3e   :  { %11359 = vst [vmem:[#allocation40_spill] sm:$0xff] %v5475_v62  ;;  %v5518_v62 = vld [vmem:[%s10742_s1 + $0xd8] sm:$0xff]  ;;  %263 = vmatpush.msrb.mxu1 %v5513_v61  ;;  %305 = vmatpush.msrb.mxu3 %v5525_v49 }
  0x3f   :  { %11360 = vst [vmem:[#allocation41_spill] sm:$0xff] %v5482_v63  ;;  %v5530_v63 = vld [vmem:[%s10742_s1 + $0xb0] sm:$0xff]  ;;  %286 = vmatpush.msrb.mxu2 %v5518_v62 }
  0x40   :  { %11361 = vst [vmem:[#allocation42_spill] sm:$0xff] %v5489_v53  ;;  %v5537_v53 = vld [vmem:[%s10742_s1 + $0x310] sm:$0xff]  ;;  %247 = vmatpush.msrb.mxu0 %v5530_v63 }
  0x41   :  { %11362 = vst [vmem:[#allocation43_spill] sm:$0xff] %v5494_v59  ;;  %v5542_v59 = vld [vmem:[%s10742_s1 + $0xb8] sm:$0xff]  ;;  %264 = vmatpush.msrb.mxu1 %v5537_v53 }
  0x42   :  { %11363 = vst [vmem:[#allocation44_spill] sm:$0xff] %v5501_v57  ;;  %v5549_v57 = vld [vmem:[%s10742_s1 + $0x2d8] sm:$0xff]  ;;  %287 = vmatpush.msrb.mxu2 %v5542_v59 }
  0x43   :  { %11364 = vst [vmem:[#allocation45_spill] sm:$0xff] %v5506_v58  ;;  %v5554_v58 = vld [vmem:[%s10742_s1 + $0x90] sm:$0xff]  ;;  %306 = vmatpush.msrb.mxu3 %v5549_v57 }
  0x44   :  { %11366 = vst [vmem:[#allocation46_spill] sm:$0xff] %v5513_v61  ;;  %v5561_v61 = vld [vmem:[%s10742_s1 + $0x2f0] sm:$0xff]  ;;  %248 = vmatpush.msrb.mxu0 %v5554_v58 }
  0x45   :  { %11367 = vst [vmem:[#allocation47_spill] sm:$0xff] %v5518_v62  ;;  %v5566_v62 = vld [vmem:[%s10742_s1 + $0x98] sm:$0xff]  ;;  %265 = vmatpush.msrb.mxu1 %v5561_v61 }
  0x46   :  { %11368 = vst [vmem:[#allocation48_spill] sm:$0xff] %v5525_v49  ;;  %v5573_v49 = vld [vmem:[%s10742_s1 + $0x2b8] sm:$0xff]  ;;  %288 = vmatpush.msrb.mxu2 %v5566_v62 }
  0x47   :  { %11369 = vst [vmem:[#allocation49_spill] sm:$0xff] %v5530_v63  ;;  %v5578_v63 = vld [vmem:[%s10742_s1 + $0x70] sm:$0xff]  ;;  %307 = vmatpush.msrb.mxu3 %v5573_v49 }
  0x48   :  { %11370 = vst [vmem:[#allocation50_spill] sm:$0xff] %v5537_v53  ;;  %v5585_v53 = vld [vmem:[%s10742_s1 + $0x2d0] sm:$0xff]  ;;  %249 = vmatpush.msrb.mxu0 %v5578_v63 }
  0x49   :  { %11371 = vst [vmem:[#allocation51_spill] sm:$0xff] %v5542_v59  ;;  %v5590_v59 = vld [vmem:[%s10742_s1 + $0x78] sm:$0xff]  ;;  %266 = vmatpush.msrb.mxu1 %v5585_v53 }
  0x4a   :  { %11372 = vst [vmem:[#allocation52_spill] sm:$0xff] %v5549_v57  ;;  %v5597_v57 = vld [vmem:[%s10742_s1 + $0x298] sm:$0xff]  ;;  %289 = vmatpush.msrb.mxu2 %v5590_v59 }
  0x4b   :  { %11373 = vst [vmem:[#allocation53_spill] sm:$0xff] %v5554_v58  ;;  %v5602_v58 = vld [vmem:[%s10742_s1 + $0x50] sm:$0xff]  ;;  %308 = vmatpush.msrb.mxu3 %v5597_v57 }
  0x4c   :  { %11374 = vst [vmem:[#allocation54_spill] sm:$0xff] %v5561_v61  ;;  %v5609_v61 = vld [vmem:[%s10742_s1 + $0x2b0] sm:$0xff]  ;;  %250 = vmatpush.msrb.mxu0 %v5602_v58 }
  0x4d   :  { %11375 = vst [vmem:[#allocation55_spill] sm:$0xff] %v5566_v62  ;;  %v5614_v62 = vld [vmem:[%s10742_s1 + $0x58] sm:$0xff]  ;;  %267 = vmatpush.msrb.mxu1 %v5609_v61 }
  0x4e   :  { %11376 = vst [vmem:[#allocation56_spill] sm:$0xff] %v5573_v49  ;;  %v5621_v49 = vld [vmem:[%s10742_s1 + $0x278] sm:$0xff]  ;;  %290 = vmatpush.msrb.mxu2 %v5614_v62 }
  0x4f   :  { %11377 = vst [vmem:[#allocation57_spill] sm:$0xff] %v5578_v63  ;;  %v5626_v63 = vld [vmem:[%s10742_s1 + $0x30] sm:$0xff]  ;;  %309 = vmatpush.msrb.mxu3 %v5621_v49 }
  0x50   :  { %11378 = vst [vmem:[#allocation58_spill] sm:$0xff] %v5585_v53  ;;  %v5633_v53 = vld [vmem:[%s10742_s1 + $0x290] sm:$0xff]  ;;  %251 = vmatpush.msrb.mxu0 %v5626_v63 }
  0x51   :  { %11379 = vst [vmem:[#allocation59_spill] sm:$0xff] %v5590_v59  ;;  %v5638_v59 = vld [vmem:[%s10742_s1 + $0x38] sm:$0xff]  ;;  %268 = vmatpush.msrb.mxu1 %v5633_v53 }
  0x52   :  { %11380 = vst [vmem:[#allocation60_spill] sm:$0xff] %v5597_v57  ;;  %v5645_v57 = vld [vmem:[%s10742_s1 + $0x258] sm:$0xff]  ;;  %291 = vmatpush.msrb.mxu2 %v5638_v59 }
  0x53   :  { %11381 = vst [vmem:[#allocation61_spill] sm:$0xff] %v5602_v58  ;;  %v5650_v58 = vld [vmem:[%s10742_s1 + $0x10] sm:$0xff]  ;;  %310 = vmatpush.msrb.mxu3 %v5645_v57 }
  0x54   :  { %11382 = vst [vmem:[#allocation62_spill] sm:$0xff] %v5609_v61  ;;  %v5657_v61 = vld [vmem:[%s10742_s1 + $0x270] sm:$0xff]  ;;  %252 = vmatpush.msrb.mxu0 %v5650_v58 }
  0x55   :  { %11383 = vst [vmem:[#allocation63_spill] sm:$0xff] %v5614_v62  ;;  %v5662_v62 = vld [vmem:[%s10742_s1 + $0x18] sm:$0xff]  ;;  %269 = vmatpush.msrb.mxu1 %v5657_v61  ;;  %253 = vmatmul.f32.vlgmr.msrb.gmra.mxu0 %v5377_v60 }
  0x56   :  { %11384 = vst [vmem:[#allocation64_spill] sm:$0xff] %v5621_v49  ;;  %v5669_v49 = vld [vmem:[%s10742_s1 + $0x238] sm:$0xff]  ;;  %292 = vmatpush.msrb.mxu2 %v5662_v62  ;;  %383 = vmatpush.msra.mxu0 %v4926_v0 }
  0x57   :  { %11385 = vst [vmem:[#allocation65_spill] sm:$0xff] %v5626_v63  ;;  %v5676_v63 = vld [vmem:[%s10742_s1 + $0x250] sm:$0xff]  ;;  %311 = vmatpush.msrb.mxu3 %v5669_v49  ;;  %293 = vmatmul.f32.vlgmr.msrb.gmra.mxu2 %v5377_v60 }
  0x58   :  { %11386 = vst [vmem:[#allocation66_spill] sm:$0xff] %v5633_v53  ;;  %v5683_v53 = vld [vmem:[%s10742_s1 + $0x218] sm:$0xff]  ;;  %270 = vmatpush.msrb.mxu1 %v5676_v63  ;;  %423 = vmatpush.msra.mxu2 %v4931_v1  ;;  %v11420_v60 = vld [vmem:[#allocation21_spill] sm:$0xff] }
  0x59   :  { %11387 = vst [vmem:[#allocation67_spill] sm:$0xff] %v5638_v59  ;;  %312 = vmatpush.msrb.mxu3 %v5683_v53  ;;  %384 = vmatpush.msra.mxu0 %v4936_v2 }
  0x5a   :  { %11388 = vst [vmem:[#allocation68_spill] sm:$0xff] %v5645_v57  ;;  %v5690_v57 = vld [vmem:[%s10742_s1 + $0x230] sm:$0xff]  ;;  %313 = vmatmul.f32.vlgmr.msrb.gmra.mxu3 %v11365_v54  ;;  %424 = vmatpush.msra.mxu2 %v4943_v3 }
  0x5b   :  { %11389 = vst [vmem:[#allocation69_spill] sm:$0xff] %v5650_v58  ;;  %271 = vmatpush.msrb.mxu1 %v5690_v57  ;;  %385 = vmatpush.msra.mxu0 %v4953_v5 }
  0x5c   :  { %11390 = vst [vmem:[#allocation70_spill] sm:$0xff] %v5657_v61  ;;  %v5699_v61 = vld [vmem:[%s10742_s1 + $0x210] sm:$0xff]  ;;  %425 = vmatpush.msra.mxu2 %v4959_v6  ;;  %443 = vmatpush.msra.mxu3 %v4948_v4  ;;  %v5760_v4 = vld [vmem:[%s10743_s0 + $0x8] sm:$0xff] }
  0x5d   :  { %11391 = vst [vmem:[#allocation71_spill] sm:$0xff] %v5662_v62  ;;  %272 = vmatpush.msrb.mxu1 %v5699_v61  ;;  %386 = vmatpush.msra.mxu0 %v4983_v10 }
  0x5e   :  { %11392 = vst [vmem:[#allocation72_spill] sm:$0xff] %v5669_v49  ;;  %273 = vmatmul.f32.vlgmr.msrb.gmra.mxu1 %v11365_v54  ;;  %426 = vmatpush.msra.mxu2 %v4988_v11  ;;  %v11430_v54 = vld [vmem:[#allocation41_spill] sm:$0xff] }
  0x5f   :  { %11393 = vst [vmem:[#allocation73_spill] sm:$0xff] %v5676_v63  ;;  %403 = vmatpush.msra.mxu1 %v4969_v8  ;;  %444 = vmatpush.msra.mxu3 %v4964_v7  ;;  %v11397_v7 = vld [vmem:[#allocation3_spill] sm:$0xff]  ;;  %v11398_v8 = vld [vmem:[#allocation8_spill] sm:$0xff] }
  0x60   :  { %11394 = vst [vmem:[#allocation74_spill] sm:$0xff] %v5683_v53  ;;  %387 = vmatpush.msra.mxu0 %v5012_v15  ;;  %427 = vmatpush.msra.mxu2 %v5017_v16 }
  0x61   :  { %11395 = vst [vmem:[#allocation75_spill] sm:$0xff] %v5690_v57  ;;  %404 = vmatpush.msra.mxu1 %v4993_v12  ;;  %445 = vmatpush.msra.mxu3 %v4976_v9  ;;  %v11399_v9 = vld [vmem:[#allocation9_spill] sm:$0xff]  ;;  %v11400_v12 = vld [vmem:[#allocation10_spill] sm:$0xff] }
  0x62   :  { %11396 = vst [vmem:[#allocation76_spill] sm:$0xff] %v5699_v61  ;;  %388 = vmatpush.msra.mxu0 %v5036_v19  ;;  %428 = vmatpush.msra.mxu2 %v5041_v20 }
  0x63   :  { %405 = vmatpush.msra.mxu1 %v5005_v14  ;;  %446 = vmatpush.msra.mxu3 %v5000_v13  ;;  %v11401_v13 = vld [vmem:[#allocation11_spill] sm:$0xff]  ;;  %v11402_v14 = vld [vmem:[#allocation14_spill] sm:$0xff] }
  0x64   :  { %389 = vmatpush.msra.mxu0 %v5060_v23  ;;  %429 = vmatpush.msra.mxu2 %v5065_v24 }
  0x65   :  { %406 = vmatpush.msra.mxu1 %v5029_v18  ;;  %447 = vmatpush.msra.mxu3 %v5024_v17  ;;  %v11403_v17 = vld [vmem:[#allocation15_spill] sm:$0xff]  ;;  %v11404_v18 = vld [vmem:[#allocation5_spill] sm:$0xff] }
  0x66   :  { %390 = vmatpush.msra.mxu0 %v5084_v27  ;;  %430 = vmatpush.msra.mxu2 %v5089_v28 }
  0x67   :  { %407 = vmatpush.msra.mxu1 %v5053_v22  ;;  %448 = vmatpush.msra.mxu3 %v5048_v21  ;;  %v11405_v21 = vld [vmem:[#allocation4_spill] sm:$0xff]  ;;  %v11406_v22 = vld [vmem:[#allocation18_spill] sm:$0xff] }
  0x68   :  { %391 = vmatpush.msra.mxu0 %v5108_v31  ;;  %431 = vmatpush.msra.mxu2 %v5113_v32 }
  0x69   :  { %408 = vmatpush.msra.mxu1 %v5077_v26  ;;  %449 = vmatpush.msra.mxu3 %v5072_v25  ;;  %v11407_v25 = vld [vmem:[#allocation19_spill] sm:$0xff] }
  0x6a   :  { %392 = vmatpush.msra.mxu0 %v5132_v35  ;;  %432 = vmatpush.msra.mxu2 %v5137_v36  ;;  %v11408_v26 = vld [vmem:[#allocation7_spill] sm:$0xff] }
  0x6b   :  { %409 = vmatpush.msra.mxu1 %v5101_v30  ;;  %450 = vmatpush.msra.mxu3 %v5096_v29  ;;  %v11409_v29 = vld [vmem:[#allocation6_spill] sm:$0xff] }
  0x6c   :  { %393 = vmatpush.msra.mxu0 %v5156_v39  ;;  %433 = vmatpush.msra.mxu2 %v5161_v40  ;;  %v11410_v30 = vld [vmem:[#allocation22_spill] sm:$0xff] }
  0x6d   :  { %410 = vmatpush.msra.mxu1 %v5125_v34  ;;  %451 = vmatpush.msra.mxu3 %v5120_v33  ;;  %v11411_v33 = vld [vmem:[#allocation23_spill] sm:$0xff]  ;;  %v11412_v34 = vld [vmem:[#allocation13_spill] sm:$0xff] }
  0x6e   :  { %394 = vmatpush.msra.mxu0 %v5180_v43  ;;  %434 = vmatpush.msra.mxu2 %v5185_v44 }
  0x6f   :  { %411 = vmatpush.msra.mxu1 %v5149_v38  ;;  %452 = vmatpush.msra.mxu3 %v5144_v37  ;;  %v11413_v37 = vld [vmem:[#allocation12_spill] sm:$0xff]  ;;  %v11414_v38 = vld [vmem:[#allocation26_spill] sm:$0xff] }
  0x70   :  { %395 = vmatpush.msra.mxu0 %v5204_v47  ;;  %435 = vmatpush.msra.mxu2 %v5209_v48 }
  0x71   :  { %412 = vmatpush.msra.mxu1 %v5173_v42  ;;  %453 = vmatpush.msra.mxu3 %v5168_v41  ;;  %v11415_v41 = vld [vmem:[#allocation27_spill] sm:$0xff]  ;;  %v11416_v42 = vld [vmem:[#allocation17_spill] sm:$0xff] }
  0x72   :  { %396 = vmatpush.msra.mxu0 %v5228_v51  ;;  %436 = vmatpush.msra.mxu2 %v5233_v52 }
  0x73   :  { %413 = vmatpush.msra.mxu1 %v5197_v46  ;;  %454 = vmatpush.msra.mxu3 %v5192_v45  ;;  %v11417_v45 = vld [vmem:[#allocation16_spill] sm:$0xff]  ;;  %v11418_v46 = vld [vmem:[#allocation30_spill] sm:$0xff] }
  0x74   :  { %397 = vmatpush.msra.mxu0 %v5252_v55  ;;  %437 = vmatpush.msra.mxu2 %v5257_v56 }
  0x75   :  { %414 = vmatpush.msra.mxu1 %v5221_v50  ;;  %455 = vmatpush.msra.mxu3 %v11397_v7  ;;  %v11419_v50 = vld [vmem:[#allocation31_spill] sm:$0xff]  ;;  %v11421_v7 = vld [vmem:[#allocation20_spill] sm:$0xff] }
  0x76   :  { %398 = vmatpush.msra.mxu0 %v11398_v8  ;;  %438 = vmatpush.msra.mxu2 %v11399_v9 }
  0x77   :  { %399 = vmatmul.f32.vlgmr.msra.gmra.mxu0 %v5760_v4  ;;  %439 = vmatmul.f32.vlgmr.msra.gmra.mxu2 %v5760_v4 }
  0x78   :  { %463 = vmatpush.msrb.mxu0 %v11400_v12  ;;  %503 = vmatpush.msrb.mxu2 %v11401_v13 }
  0x79   :  { %415 = vmatpush.msra.mxu1 %v11404_v18  ;;  %456 = vmatpush.msra.mxu3 %v11405_v21  ;;  %v11422_v18 = vld [vmem:[#allocation34_spill] sm:$0xff]  ;;  %v11423_v21 = vld [vmem:[#allocation35_spill] sm:$0xff] }
  0x7a   :  { %464 = vmatpush.msrb.mxu0 %v11402_v14  ;;  %504 = vmatpush.msrb.mxu2 %v11403_v17 }
  0x7b   :  { %416 = vmatpush.msra.mxu1 %v11408_v26  ;;  %457 = vmatpush.msra.mxu3 %v11409_v29  ;;  %v11424_v26 = vld [vmem:[#allocation25_spill] sm:$0xff]  ;;  %v11425_v29 = vld [vmem:[#allocation24_spill] sm:$0xff] }
  0x7c   :  { %465 = vmatpush.msrb.mxu0 %v11406_v22  ;;  %505 = vmatpush.msrb.mxu2 %v11407_v25 }
  0x7d   :  { %417 = vmatpush.msra.mxu1 %v11412_v34  ;;  %458 = vmatpush.msra.mxu3 %v11413_v37  ;;  %v11426_v34 = vld [vmem:[#allocation38_spill] sm:$0xff]  ;;  %v11427_v37 = vld [vmem:[#allocation39_spill] sm:$0xff] }
  0x7e   :  { %466 = vmatpush.msrb.mxu0 %v11410_v30  ;;  %506 = vmatpush.msrb.mxu2 %v11411_v33 }
  0x7f   :  { %418 = vmatpush.msra.mxu1 %v11416_v42  ;;  %523 = vmatpush.msrb.mxu3 %v11417_v45  ;;  %v11428_v42 = vld [vmem:[#allocation29_spill] sm:$0xff]  ;;  %v11429_v45 = vld [vmem:[#allocation28_spill] sm:$0xff] }
  0x80   :  { %467 = vmatpush.msrb.mxu0 %v11414_v38  ;;  %507 = vmatpush.msrb.mxu2 %v11415_v41 }
  0x81   :  { %483 = vmatpush.msrb.mxu1 %v11420_v60  ;;  %524 = vmatpush.msrb.mxu3 %v11421_v7  ;;  %v11431_v60 = vld [vmem:[#allocation43_spill] sm:$0xff]  ;;  %v11432_v7 = vld [vmem:[#allocation33_spill] sm:$0xff] }
  0x82   :  { %468 = vmatpush.msrb.mxu0 %v11418_v46  ;;  %508 = vmatpush.msrb.mxu2 %v11419_v50 }
  0x83   :  { %484 = vmatpush.msrb.mxu1 %v11424_v26  ;;  %525 = vmatpush.msrb.mxu3 %v11425_v29  ;;  %v11435_v26 = vld [vmem:[#allocation47_spill] sm:$0xff]  ;;  %v11436_v29 = vld [vmem:[#allocation37_spill] sm:$0xff] }
  0x84   :  { %469 = vmatpush.msrb.mxu0 %v11422_v18  ;;  %509 = vmatpush.msrb.mxu2 %v11423_v21  ;;  %v11433_v18 = vld [vmem:[#allocation32_spill] sm:$0xff]  ;;  %v11434_v21 = vld [vmem:[#allocation45_spill] sm:$0xff] }
  0x85   :  { %485 = vmatpush.msrb.mxu1 %v11428_v42  ;;  %526 = vmatpush.msrb.mxu3 %v11429_v45  ;;  %v11439_v42 = vld [vmem:[#allocation51_spill] sm:$0xff]  ;;  %v11440_v45 = vld [vmem:[#allocation42_spill] sm:$0xff] }
  0x86   :  { %470 = vmatpush.msrb.mxu0 %v11426_v34  ;;  %510 = vmatpush.msrb.mxu2 %v11427_v37  ;;  %v11437_v34 = vld [vmem:[#allocation36_spill] sm:$0xff]  ;;  %v11438_v37 = vld [vmem:[#allocation49_spill] sm:$0xff] }
  0x87   :  { %486 = vmatpush.msrb.mxu1 %v11432_v7  ;;  %527 = vmatpush.msrb.mxu3 %v11433_v18  ;;  %v11443_v7 = vld [vmem:[#allocation55_spill] sm:$0xff]  ;;  %v11444_v18 = vld [vmem:[#allocation46_spill] sm:$0xff] }
  0x88   :  { %471 = vmatpush.msrb.mxu0 %v11430_v54  ;;  %511 = vmatpush.msrb.mxu2 %v11431_v60  ;;  %v11441_v54 = vld [vmem:[#allocation40_spill] sm:$0xff]  ;;  %v11442_v60 = vld [vmem:[#allocation53_spill] sm:$0xff] }
  0x89   :  { %487 = vmatpush.msrb.mxu1 %v11436_v29  ;;  %528 = vmatpush.msrb.mxu3 %v11437_v34  ;;  %v11447_v29 = vld [vmem:[#allocation59_spill] sm:$0xff]  ;;  %v11448_v34 = vld [vmem:[#allocation50_spill] sm:$0xff] }
  0x8a   :  { %472 = vmatpush.msrb.mxu0 %v11434_v21  ;;  %512 = vmatpush.msrb.mxu2 %v11435_v26  ;;  %v11445_v21 = vld [vmem:[#allocation44_spill] sm:$0xff]  ;;  %v11446_v26 = vld [vmem:[#allocation57_spill] sm:$0xff] }
  0x8b   :  { %488 = vmatpush.msrb.mxu1 %v11440_v45  ;;  %529 = vmatpush.msrb.mxu3 %v11441_v54  ;;  %v11451_v45 = vld [vmem:[#allocation63_spill] sm:$0xff]  ;;  %v11452_v54 = vld [vmem:[#allocation54_spill] sm:$0xff] }
  0x8c   :  { %473 = vmatpush.msrb.mxu0 %v11438_v37  ;;  %513 = vmatpush.msrb.mxu2 %v11439_v42  ;;  %v11449_v37 = vld [vmem:[#allocation48_spill] sm:$0xff]  ;;  %v11450_v42 = vld [vmem:[#allocation61_spill] sm:$0xff] }
  0x8d   :  { %489 = vmatpush.msrb.mxu1 %v11444_v18  ;;  %530 = vmatpush.msrb.mxu3 %v11445_v21  ;;  %v11455_v21 = vld [vmem:[#allocation58_spill] sm:$0xff]  ;;  %v11456_v18 = vld [vmem:[#allocation56_spill] sm:$0xff] }
  0x8e   :  { %474 = vmatpush.msrb.mxu0 %v11442_v60  ;;  %514 = vmatpush.msrb.mxu2 %v11443_v7  ;;  %v11453_v60 = vld [vmem:[#allocation52_spill] sm:$0xff]  ;;  %v11454_v7 = vld [vmem:[#allocation65_spill] sm:$0xff] }
  0x8f   :  { %490 = vmatpush.msrb.mxu1 %v11448_v34  ;;  %531 = vmatpush.msrb.mxu3 %v11449_v37  ;;  %v11457_v37 = vld [vmem:[#allocation62_spill] sm:$0xff] }
  0x90   :  { %475 = vmatpush.msrb.mxu0 %v11446_v26  ;;  %515 = vmatpush.msrb.mxu2 %v11447_v29  ;;  %v11467_v34 = vld [vmem:[#allocation38_spill] sm:$0xff] }
  0x91   :  { %491 = vmatpush.msrb.mxu1 %v11452_v54  ;;  %532 = vmatpush.msrb.mxu3 %v11453_v60  ;;  %v11458_v60 = vld [vmem:[#allocation60_spill] sm:$0xff] }
  0x92   :  { %476 = vmatpush.msrb.mxu0 %v11450_v42  ;;  %516 = vmatpush.msrb.mxu2 %v11451_v45  ;;  %v11462_v54 = vld [vmem:[#allocation68_spill] sm:$0xff] }
  0x93   :  { %492 = vmatpush.msrb.mxu1 %v11455_v21  ;;  %533 = vmatpush.msrb.mxu3 %v11456_v18  ;;  %v11459_v18 = vld [vmem:[#allocation66_spill] sm:$0xff]  ;;  %v11460_v21 = vld [vmem:[#allocation64_spill] sm:$0xff] }
  0x94   :  { %477 = vmatpush.msrb.mxu0 %v11454_v7  ;;  %517 = vmatpush.msrb.mxu2 %v5638_v59 }
  0x95   :  { %493 = vmatpush.msrb.mxu1 %v11457_v37  ;;  %534 = vmatpush.msrb.mxu3 %v11458_v60  ;;  %v11466_v60 = vld [vmem:[#allocation35_spill] sm:$0xff] }
  0x96   :  { %478 = vmatpush.msrb.mxu0 %v5650_v58  ;;  %518 = vmatpush.msrb.mxu2 %v5662_v62 }
  0x97   :  { %479 = vmatmul.f32.vlgmr.msrb.gmra.mxu0 %v5760_v4  ;;  %519 = vmatmul.f32.vlgmr.msrb.gmra.mxu2 %v5760_v4  ;;  %v11461_v4 = vld [vmem:[#allocation70_spill] sm:$0xff] }
  0x98   :  { %610 = vmatpush.msra.mxu0 %v4926_v0  ;;  %650 = vmatpush.msra.mxu2 %v4931_v1 }
  0x99   :  { %494 = vmatpush.msrb.mxu1 %v11459_v18  ;;  %535 = vmatpush.msrb.mxu3 %v11460_v21 }
  0x9a   :  { %611 = vmatpush.msra.mxu0 %v4936_v2  ;;  %651 = vmatpush.msra.mxu2 %v4943_v3 }
  0x9b   :  { %495 = vmatpush.msrb.mxu1 %v11461_v4  ;;  %536 = vmatpush.msrb.mxu3 %v11462_v54  ;;  %v11465_v4 = vld [vmem:[#allocation34_spill] sm:$0xff] }
  0x9c   :  { %612 = vmatpush.msra.mxu0 %v4953_v5  ;;  %652 = vmatpush.msra.mxu2 %v4959_v6 }
  0x9d   :  { %496 = vmatpush.msrb.mxu1 %v5676_v63  ;;  %537 = vmatpush.msrb.mxu3 %v5669_v49 }
  0x9e   :  { %613 = vmatpush.msra.mxu0 %v4983_v10  ;;  %653 = vmatpush.msra.mxu2 %v4988_v11 }
  0x9f   :  { %497 = vmatpush.msrb.mxu1 %v5690_v57  ;;  %538 = vmatpush.msrb.mxu3 %v5683_v53  ;;  %v3970_v53 = vld [vmem:[%s10743_s0 + $0x10] sm:$0xff] }
  0xa0   :  { %614 = vmatpush.msra.mxu0 %v5012_v15  ;;  %654 = vmatpush.msra.mxu2 %v5017_v16 }
  0xa1   :  { %498 = vmatpush.msrb.mxu1 %v5699_v61  ;;  %v146_v61 = vld [vmem:[%s10744_s2] sm:$0xf] }
  0xa2   :  { %615 = vmatpush.msra.mxu0 %v5036_v19  ;;  %655 = vmatpush.msra.mxu2 %v5041_v20  ;;  %v5887_v49 = vperm.slane %v146_v61, 1  ;;  %v5891_v57 = vperm.slane %v146_v61, 0 }
  0xa4   :  { %616 = vmatpush.msra.mxu0 %v5060_v23  ;;  %656 = vmatpush.msra.mxu2 %v5065_v24  ;;  %11463 = vst [vmem:[#allocation3_spill] sm:$0xff] %v5887_v49 }
  0xa5   :  { %11464 = vst [vmem:[#allocation8_spill] sm:$0xff] %v5891_v57 }
  0xa6   :  { %617 = vmatpush.msra.mxu0 %v5084_v27  ;;  %657 = vmatpush.msra.mxu2 %v5089_v28 }
  0xa8   :  { %618 = vmatpush.msra.mxu0 %v5108_v31  ;;  %658 = vmatpush.msra.mxu2 %v5113_v32  ;;  %v174_v63 = vpop.f32.mrf.mxu0 }
  0xa9   :  { %v175_v18 = vadd.f32 %v174_v63, %v5891_v57  ;;  %v11473_v63 = vld [vmem:[#allocation49_spill] sm:$0xff]  ;;  %v11474_v57 = vld [vmem:[#allocation51_spill] sm:$0xff] }
  0xaa   :  { %619 = vmatpush.msra.mxu0 %v5132_v35  ;;  %659 = vmatpush.msra.mxu2 %v5137_v36  ;;  %v234_v37 = vpop.f32.mrf.mxu3 }
  0xac   :  { %620 = vmatpush.msra.mxu0 %v5156_v39  ;;  %660 = vmatpush.msra.mxu2 %v5161_v40 }
  0xad   :  { %v214_v54 = vpop.f32.mrf.mxu2 }
  0xae   :  { %621 = vmatpush.msra.mxu0 %v5180_v43  ;;  %661 = vmatpush.msra.mxu2 %v5185_v44  ;;  %v215_v21 = vadd.f32 %v214_v54, %v5887_v49  ;;  %v11471_v49 = vld [vmem:[#allocation45_spill] sm:$0xff] }
  0xb0   :  { %622 = vmatpush.msra.mxu0 %v5204_v47  ;;  %662 = vmatpush.msra.mxu2 %v5209_v48 }
  0xb2   :  { %623 = vmatpush.msra.mxu0 %v5228_v51  ;;  %663 = vmatpush.msra.mxu2 %v5233_v52 }
  0xb4   :  { %624 = vmatpush.msra.mxu0 %v5252_v55  ;;  %664 = vmatpush.msra.mxu2 %v5257_v56 }
  0xb6   :  { %625 = vmatpush.msra.mxu0 %v11398_v8  ;;  %665 = vmatpush.msra.mxu2 %v11399_v9 }
  0xb7   :  { %626 = vmatmul.f32.vlgmr.msra.gmra.mxu0 %v3970_v53  ;;  %666 = vmatmul.f32.vlgmr.msra.gmra.mxu2 %v3970_v53 }
  0xb8   :  { %690 = vmatpush.msrb.mxu0 %v11400_v12  ;;  %730 = vmatpush.msrb.mxu2 %v11401_v13 }
  0xba   :  { %691 = vmatpush.msrb.mxu0 %v11402_v14  ;;  %731 = vmatpush.msrb.mxu2 %v11403_v17 }
  0xbc   :  { %692 = vmatpush.msrb.mxu0 %v11406_v22  ;;  %732 = vmatpush.msrb.mxu2 %v11407_v25  ;;  %v11470_v25 = vld [vmem:[#allocation43_spill] sm:$0xff] }
  0xbe   :  { %693 = vmatpush.msrb.mxu0 %v11410_v30  ;;  %733 = vmatpush.msrb.mxu2 %v11411_v33  ;;  %v235_v33 = vadd.f32 %v234_v37, %v215_v21  ;;  %v11476_v21 = vld [vmem:[#allocation55_spill] sm:$0xff] }
  0xc0   :  { %694 = vmatpush.msrb.mxu0 %v11414_v38  ;;  %734 = vmatpush.msrb.mxu2 %v11415_v41  ;;  %v11468_v41 = vld [vmem:[#allocation39_spill] sm:$0xff]  ;;  %v194_v38 = vpop.f32.mrf.mxu1  ;;  %v3964_v30 = vmul.f32 -1.442695, %v235_v33 }
  0xc2   :  { %695 = vmatpush.msrb.mxu0 %v11418_v46  ;;  %735 = vmatpush.msrb.mxu2 %v11419_v50  ;;  %v195_v46 = vadd.f32 %v194_v38, %v175_v18  ;;  %v11469_v50 = vld [vmem:[#allocation41_spill] sm:$0xff]  ;;  %4152 = vpow2.f32 %v3964_v30  ;;  %v5929_v18 = vperm.slane %v146_v61, 3 }
  0xc4   :  { %696 = vmatpush.msrb.mxu0 %v11465_v4  ;;  %736 = vmatpush.msrb.mxu2 %v11466_v60  ;;  %v3963_v54 = vmul.f32 -1.442695, %v195_v46  ;;  %v11472_v60 = vld [vmem:[#allocation47_spill] sm:$0xff]  ;;  %11477 = vst [vmem:[#allocation9_spill] sm:$0xff] %v5929_v18 }
  0xc6   :  { %697 = vmatpush.msrb.mxu0 %v11467_v34  ;;  %737 = vmatpush.msrb.mxu2 %v11468_v41  ;;  %4154 = vpow2.f32 %v3963_v54  ;;  %v11475_v41 = vld [vmem:[#allocation53_spill] sm:$0xff] }
  0xc8   :  { %698 = vmatpush.msrb.mxu0 %v11469_v50  ;;  %738 = vmatpush.msrb.mxu2 %v11470_v25  ;;  %v4153_v33 = vpop.eup %4152 }
  0xc9   :  { %v5911_v30 = vadd.f32 1.0, %v4153_v33 }
  0xca   :  { %699 = vmatpush.msrb.mxu0 %v11471_v49  ;;  %739 = vmatpush.msrb.mxu2 %v11472_v60 }
  0xcb   :  { %4156 = vrcp.f32 %v5911_v30  ;;  %vm345_vm0 = vweird.f32 %v5911_v30 }
  0xcc   :  { %700 = vmatpush.msrb.mxu0 %v11473_v63  ;;  %740 = vmatpush.msrb.mxu2 %v11474_v57  ;;  %v4155_v38 = vpop.eup %4154 }
  0xcd   :  { %v5913_v46 = vadd.f32 1.0, %v4155_v38  ;;  %v5933_v38 = vperm.slane %v146_v61, 2 }
  0xce   :  { %701 = vmatpush.msrb.mxu0 %v11475_v41  ;;  %741 = vmatpush.msrb.mxu2 %v11476_v21 }
  0xcf   :  { %4158 = vrcp.f32 %v5913_v46  ;;  %11478 = vst [vmem:[#allocation10_spill] sm:$0xff] %v5933_v38  ;;  %vm326_vm2 = vweird.f32 %v5913_v46 }
  0xd0   :  { %702 = vmatpush.msrb.mxu0 %v11446_v26  ;;  %742 = vmatpush.msrb.mxu2 %v11447_v29 }
  0xd1   :  { %v5925_v37 = vpop.eup %4156 }
  0xd2   :  { %703 = vmatpush.msrb.mxu0 %v11450_v42  ;;  %743 = vmatpush.msrb.mxu2 %v11451_v45  ;;  %v341_v33 = vmul.f32 %v5925_v37, %v5911_v30  ;;  %vm346_vm1 = vweird.f32 %v5925_v37 }
  0xd3   :  { %vm5956_vm4 = vmor %vm345_vm0, %vm346_vm1 }
  0xd4   :  { %704 = vmatpush.msrb.mxu0 %v11454_v7  ;;  %744 = vmatpush.msrb.mxu2 %v5638_v59 }
  0xd5   :  { %v4159_v54 = vpop.eup %4158 }
  0xd6   :  { %705 = vmatpush.msrb.mxu0 %v5650_v58  ;;  %745 = vmatpush.msrb.mxu2 %v5662_v62  ;;  %v254_v62 = vpop.f32.mrf.mxu0  ;;  %vm327_vm3 = vweird.f32 %v4159_v54 }
  0xd7   :  { %706 = vmatmul.f32.vlgmr.msrb.gmra.mxu0 %v3970_v53  ;;  %746 = vmatmul.f32.vlgmr.msrb.gmra.mxu2 %v3970_v53  ;;  %v255_v58 = vadd.f32 %v254_v62, %v5933_v38  ;;  %v349_v62 = vand.u32 2147483647, %v5911_v30  ;;  %vm5963_vm5 = vmor %vm326_vm2, %vm327_vm3  ;;  %v6728_v38 = vld [vmem:[%s10742_s1 + $0x38] sm:$0xff] }
  0xd8   :  { %837 = vmatpush.msra.mxu0 %v4926_v0  ;;  %877 = vmatpush.msra.mxu2 %v4931_v1  ;;  %v322_v0 = vmul.f32 %v4159_v54, %v5913_v46 }
  0xd9   :  { %vm350_vm7 = vcmp.eq.f32.partialorder %v349_v62, 8.507059e+37  ;;  %v6173_v62 = vld [vmem:[%s10742_s1 + $0x1a0] sm:$0xff] }
  0xda   :  { %838 = vmatpush.msra.mxu0 %v4936_v2  ;;  %878 = vmatpush.msra.mxu2 %v4943_v3  ;;  %v294_v1 = vpop.f32.mrf.mxu2  ;;  %v323_v53 = vsub.f32 1.0, %v322_v0  ;;  %v342_v2 = vsub.f32 1.0, %v341_v33 }
  0xdb   :  { %v295_v3 = vadd.f32 %v294_v1, %v5929_v18  ;;  %v274_v61 = vpop.f32.mrf.mxu1  ;;  %v11490_v1 = vld [vmem:[#allocation30_spill] sm:$0xff] }
  0xdc   :  { %839 = vmatpush.msra.mxu0 %v4953_v5  ;;  %879 = vmatpush.msra.mxu2 %v4959_v6  ;;  %v343_v6 = vmul.f32 %v5925_v37, %v342_v2  ;;  %v324_v7 = vmul.f32 %v4159_v54, %v323_v53  ;;  %v11492_v53 = vld [vmem:[#allocation35_spill] sm:$0xff] }
  0xdd   :  { %v314_v59 = vpop.f32.mrf.mxu3  ;;  %v6019_v2 = vld [vmem:[%s10742_s1 + $0x3e0] sm:$0xff] }
  0xde   :  { %840 = vmatpush.msra.mxu0 %v4983_v10  ;;  %880 = vmatpush.msra.mxu2 %v4988_v11  ;;  %v315_v5 = vadd.f32 %v314_v59, %v295_v3  ;;  %v275_v10 = vadd.f32 %v274_v61, %v255_v58  ;;  %v344_v58 = vadd.f32 %v5925_v37, %v343_v6  ;;  %v6025_v3 = vld [vmem:[%s10742_s1 + $0x3e8] sm:$0xff]  ;;  %v11495_v61 = vld [vmem:[#allocation39_spill] sm:$0xff] }
  0xdf   :  { %11493 = vst [vmem:[#allocation15_spill] sm:$0xff] %v6019_v2  ;;  %v6053_v6 = vld [vmem:[%s10742_s1 + $0x3a8] sm:$0xff] }
  0xe0   :  { %841 = vmatpush.msra.mxu0 %v5012_v15  ;;  %881 = vmatpush.msra.mxu2 %v5017_v16  ;;  %v3965_v11 = vmul.f32 -1.442695, %v315_v5  ;;  %v351_v15 = vand.u32 2147483648, %v5911_v30  ;;  %v332_v16 = vand.u32 2147483648, %v5913_v46  ;;  %11494 = vst [vmem:[#allocation5_spill] sm:$0xff] %v6025_v3  ;;  %v6039_v5 = vld [vmem:[%s10742_s1 + $0x3c8] sm:$0xff] }
  0xe1   :  { %11497 = vst [vmem:[#allocation18_spill] sm:$0xff] %v6039_v5  ;;  %v6167_v59 = vld [vmem:[%s10742_s1 + $0x2e8] sm:$0xff] }
  0xe2   :  { %842 = vmatpush.msra.mxu0 %v5036_v19  ;;  %882 = vmatpush.msra.mxu2 %v5041_v20  ;;  %4160 = vpow2.f32 %v3965_v11  ;;  %v325_v19 = vadd.f32 %v4159_v54, %v324_v7  ;;  %v330_v20 = vand.u32 2147483647, %v5913_v46  ;;  %v333_v7 = vor.u32 1.1754944e-38, %v332_v16  ;;  %11499 = vst [vmem:[#allocation6_spill] sm:$0xff] %v6053_v6  ;;  %v11513_v11 = vld [vmem:[#allocation71_spill] sm:$0xff]  ;;  %v6141_v16 = vld [vmem:[%s10742_s1 + $0x1e8] sm:$0xff] }
  0xe3   :  { %4162 = vtanh.f32 %v275_v10  ;;  %v11512_v10 = vld [vmem:[#allocation69_spill] sm:$0xff]  ;;  %11515 = vst [vmem:[#allocation32_spill] sm:$0xff] %v6141_v16 }
  0xe4   :  { %843 = vmatpush.msra.mxu0 %v5060_v23  ;;  %883 = vmatpush.msra.mxu2 %v5065_v24  ;;  %v352_v24 = vor.u32 1.1754944e-38, %v351_v15  ;;  %v329_v46 = vsel %vm5963_vm5, %v4159_v54, %v325_v19  ;;  %vm331_vm6 = vcmp.eq.f32.partialorder %v330_v20, 8.507059e+37  ;;  %v6135_v15 = vld [vmem:[%s10742_s1 + $0x1e0] sm:$0xff]  ;;  %v6155_v20 = vld [vmem:[%s10742_s1 + $0x1c8] sm:$0xff]  ;;  %11519 = vst [vmem:[#allocation40_spill] sm:$0xff] %v6167_v59 }
  0xe5   :  { %11514 = vst [vmem:[#allocation33_spill] sm:$0xff] %v6135_v15  ;;  %v6149_v19 = vld [vmem:[%s10742_s1 + $0x1c0] sm:$0xff]  ;;  %v6179_v23 = vld [vmem:[%s10742_s1 + $0x1a8] sm:$0xff] }
  0xe6   :  { %844 = vmatpush.msra.mxu0 %v5084_v27  ;;  %884 = vmatpush.msra.mxu2 %v5089_v28  ;;  %v348_v27 = vsel %vm5956_vm4, %v5925_v37, %v344_v58  ;;  %11516 = vst [vmem:[#allocation37_spill] sm:$0xff] %v6149_v19  ;;  %v6161_v58 = vld [vmem:[%s10742_s1 + $0x2e0] sm:$0xff] }
  0xe7   :  { %v353_v33 = vsel %vm350_vm7, %v352_v24, %v348_v27  ;;  %11517 = vst [vmem:[#allocation36_spill] sm:$0xff] %v6155_v20  ;;  %v6185_v24 = vld [vmem:[%s10742_s1 + $0x2c0] sm:$0xff]  ;;  %v6203_v27 = vld [vmem:[%s10742_s1 + $0x188] sm:$0xff] }
  0xe8   :  { %845 = vmatpush.msra.mxu0 %v5108_v31  ;;  %885 = vmatpush.msra.mxu2 %v5113_v32  ;;  %v4161_v28 = vpop.eup %4160  ;;  %v334_v32 = vsel %vm331_vm6, %v333_v7, %v329_v46  ;;  %v375_v37 = vmul.f32 0.0, %v353_v33  ;;  %11518 = vst [vmem:[#allocation42_spill] sm:$0xff] %v6161_v58  ;;  %v6191_v7 = vld [vmem:[%s10742_s1 + $0x2c8] sm:$0xff]  ;;  %v6197_v46 = vld [vmem:[%s10742_s1 + $0x180] sm:$0xff] }
  0xe9   :  { %v359_v30 = vadd.f32 1.0, %v4161_v28  ;;  %v4163_v31 = vpop.eup %4162  ;;  %11520 = vst [vmem:[#allocation46_spill] sm:$0xff] %v6185_v24  ;;  %v6209_v28 = vld [vmem:[%s10742_s1 + $0x2a0] sm:$0xff] }
  0xea   :  { %846 = vmatpush.msra.mxu0 %v5132_v35  ;;  %886 = vmatpush.msra.mxu2 %v5137_v36  ;;  %v376_v54 = vmul.f32 %v4163_v31, %v334_v32  ;;  %11521 = vst [vmem:[#allocation44_spill] sm:$0xff] %v6191_v7  ;;  %v6221_v31 = vld [vmem:[%s10742_s1 + $0x160] sm:$0xff]  ;;  %v6227_v32 = vld [vmem:[%s10742_s1 + $0x168] sm:$0xff] }
  0xeb   :  { %4164 = vrcp.f32 %v359_v30  ;;  %vm365_vm9 = vweird.f32 %v359_v30  ;;  %11522 = vst [vmem:[#allocation57_spill] sm:$0xff] %v6209_v28  ;;  %v6233_v33 = vld [vmem:[%s10742_s1 + $0x280] sm:$0xff] }
  0xec   :  { %847 = vmatpush.msra.mxu0 %v5156_v39  ;;  %887 = vmatpush.msra.mxu2 %v5161_v40  ;;  %v5984_v36 = vadd.f32 %v376_v54, %v375_v37  ;;  %v5991_v40 = vld [vmem:[%s10743_s0 + $0x18] sm:$0xff]  ;;  %11524 = vst [vmem:[#allocation48_spill] sm:$0xff] %v6233_v33  ;;  %v6239_v37 = vld [vmem:[%s10742_s1 + $0x288] sm:$0xff]  ;;  %v6245_v54 = vld [vmem:[%s10742_s1 + $0x140] sm:$0xff] }
  0xed   :  { %11525 = vst [vmem:[#allocation61_spill] sm:$0xff] %v6239_v37 }
  0xee   :  { %848 = vmatpush.msra.mxu0 %v5180_v43  ;;  %888 = vmatpush.msra.mxu2 %v5185_v44  ;;  %11483 = vst [vmem:[#allocation11_spill] sm:$0xff] %v5984_v36  ;;  %4166 = vtanh.f32 %v5984_v36  ;;  %v371_v44 = vand.u32 2147483648, %v359_v30  ;;  %v6722_v36 = vld [vmem:[%s10742_s1 + $0x30] sm:$0xff] }
  0xef   :  { %11526 = vst [vmem:[#allocation63_spill] sm:$0xff] %v6245_v54 }
  0xf0   :  { %849 = vmatpush.msra.mxu0 %v5204_v47  ;;  %889 = vmatpush.msra.mxu2 %v5209_v48  ;;  %v369_v48 = vand.u32 2147483647, %v359_v30 }
  0xf1   :  { %v4165_v35 = vpop.eup %4164 }
  0xf2   :  { %850 = vmatpush.msra.mxu0 %v5228_v51  ;;  %890 = vmatpush.msra.mxu2 %v5233_v52  ;;  %v361_v39 = vmul.f32 %v4165_v35, %v359_v30  ;;  %vm366_vm8 = vweird.f32 %v4165_v35  ;;  %v11484_v52 = vld [vmem:[#allocation19_spill] sm:$0xff]  ;;  %vm370_vm11 = vcmp.eq.f32.partialorder %v369_v48, 8.507059e+37  ;;  %v6215_v30 = vld [vmem:[%s10742_s1 + $0x2a8] sm:$0xff] }
  0xf3   :  { %vm367_vm10 = vmor %vm365_vm9, %vm366_vm8  ;;  %11523 = vst [vmem:[#allocation59_spill] sm:$0xff] %v6215_v30  ;;  %v6287_v48 = vld [vmem:[%s10742_s1 + $0x248] sm:$0xff] }
  0xf4   :  { %851 = vmatpush.msra.mxu0 %v5252_v55  ;;  %891 = vmatpush.msra.mxu2 %v5257_v56  ;;  %v362_v43 = vsub.f32 1.0, %v361_v39  ;;  %v372_v55 = vor.u32 1.1754944e-38, %v371_v44  ;;  %v6257_v39 = vld [vmem:[%s10742_s1 + $0x260] sm:$0xff]  ;;  %v6275_v44 = vld [vmem:[%s10742_s1 + $0x128] sm:$0xff]  ;;  %11531 = vst [vmem:[#allocation41_spill] sm:$0xff] %v6287_v48 }
  0xf5   :  { %11528 = vst [vmem:[#allocation56_spill] sm:$0xff] %v6257_v39 }
  0xf6   :  { %852 = vmatpush.msra.mxu0 %v11398_v8  ;;  %892 = vmatpush.msra.mxu2 %v11399_v9  ;;  %v363_v47 = vmul.f32 %v4165_v35, %v362_v43  ;;  %v11485_v8 = vld [vmem:[#allocation22_spill] sm:$0xff]  ;;  %v11486_v9 = vld [vmem:[#allocation23_spill] sm:$0xff] }
  0xf7   :  { %853 = vmatmul.f32.vlgmr.msra.gmra.mxu0 %v5991_v40  ;;  %893 = vmatmul.f32.vlgmr.msra.gmra.mxu2 %v5991_v40  ;;  %v6269_v43 = vld [vmem:[%s10742_s1 + $0x120] sm:$0xff] }
  0xf8   :  { %917 = vmatpush.msrb.mxu0 %v11400_v12  ;;  %957 = vmatpush.msrb.mxu2 %v11401_v13  ;;  %v364_v51 = vadd.f32 %v4165_v35, %v363_v47  ;;  %v4167_v12 = vpop.eup %4166  ;;  %v6281_v47 = vld [vmem:[%s10742_s1 + $0x240] sm:$0xff] }
  0xf9   :  { %11530 = vst [vmem:[#allocation38_spill] sm:$0xff] %v6281_v47 }
  0xfa   :  { %918 = vmatpush.msrb.mxu0 %v11402_v14  ;;  %958 = vmatpush.msrb.mxu2 %v11403_v17  ;;  %v368_v56 = vsel %vm367_vm10, %v4165_v35, %v364_v51  ;;  %v11488_v14 = vld [vmem:[#allocation26_spill] sm:$0xff]  ;;  %v11489_v17 = vld [vmem:[#allocation27_spill] sm:$0xff]  ;;  %v6251_v35 = vld [vmem:[%s10742_s1 + $0x148] sm:$0xff] }
  0xfb   :  { %v373_v13 = vsel %vm370_vm11, %v372_v55, %v368_v56  ;;  %11527 = vst [vmem:[#allocation52_spill] sm:$0xff] %v6251_v35  ;;  %v6293_v51 = vld [vmem:[%s10742_s1 + $0x100] sm:$0xff]  ;;  %v6311_v56 = vld [vmem:[%s10742_s1 + $0x228] sm:$0xff] }
  0xfc   :  { %919 = vmatpush.msrb.mxu0 %v11406_v22  ;;  %959 = vmatpush.msrb.mxu2 %v11484_v52  ;;  %v6006_v0 = vmul.f32 %v4167_v12, %v373_v13  ;;  %v11491_v22 = vld [vmem:[#allocation31_spill] sm:$0xff]  ;;  %v6299_v52 = vld [vmem:[%s10742_s1 + $0x108] sm:$0xff]  ;;  %11533 = vst [vmem:[#allocation45_spill] sm:$0xff] %v6311_v56 }
  0xfd   :  { %v6305_v55 = vld [vmem:[%s10742_s1 + $0x220] sm:$0xff]  ;;  %v6335_v13 = vld [vmem:[%s10742_s1 + $0x208] sm:$0xff] }
  0xfe   :  { %920 = vmatpush.msrb.mxu0 %v11485_v8  ;;  %960 = vmatpush.msrb.mxu2 %v11486_v9  ;;  %11487 = vst [vmem:[#allocation14_spill] sm:$0xff] %v6006_v0  ;;  %v6317_v8 = vld [vmem:[%s10742_s1 + $0xe0] sm:$0xff]  ;;  %v6323_v9 = vld [vmem:[%s10742_s1 + $0xe8] sm:$0xff] }
  0xff   :  { %419 = vmatmul.f32.vlgmr.msra.gmra.mxu1 %v6006_v0  ;;  %459 = vmatmul.f32.vlgmr.msra.gmra.mxu3 %v6006_v0  ;;  %11532 = vst [vmem:[#allocation43_spill] sm:$0xff] %v6305_v55  ;;  %v6329_v12 = vld [vmem:[%s10742_s1 + $0x200] sm:$0xff] }
 0x100   :  { %921 = vmatpush.msrb.mxu0 %v11488_v14  ;;  %961 = vmatpush.msrb.mxu2 %v11489_v17  ;;  %11534 = vst [vmem:[#allocation47_spill] sm:$0xff] %v6329_v12  ;;  %v6341_v14 = vld [vmem:[%s10742_s1 + $0xc0] sm:$0xff]  ;;  %v6347_v17 = vld [vmem:[%s10742_s1 + $0xc8] sm:$0xff] }
 0x101   :  { %630 = vmatpush.msra.mxu1 %v6019_v2  ;;  %670 = vmatpush.msra.mxu3 %v6025_v3  ;;  %11535 = vst [vmem:[#allocation49_spill] sm:$0xff] %v6335_v13  ;;  %v6710_v3 = vld [vmem:[%s10742_s1 + $0x50] sm:$0xff]  ;;  %v6716_v2 = vld [vmem:[%s10742_s1 + $0x58] sm:$0xff] }
 0x102   :  { %922 = vmatpush.msrb.mxu0 %v11490_v1  ;;  %962 = vmatpush.msrb.mxu2 %v11491_v22  ;;  %v6353_v1 = vld [vmem:[%s10742_s1 + $0x3f0] sm:$0xff]  ;;  %v6359_v22 = vld [vmem:[%s10742_s1 + $0x3f8] sm:$0xff] }
 0x103   :  { %671 = vmatpush.msra.mxu3 %v6039_v5  ;;  %11536 = vst [vmem:[#allocation51_spill] sm:$0xff] %v6353_v1  ;;  %v11575_v5 = vld [vmem:[#allocation76_spill] sm:$0xff] }
 0x104   :  { %923 = vmatpush.msrb.mxu0 %v11465_v4  ;;  %963 = vmatpush.msrb.mxu2 %v11492_v53  ;;  %v6033_v4 = vld [vmem:[%s10742_s1 + $0x3c0] sm:$0xff]  ;;  %11537 = vst [vmem:[#allocation53_spill] sm:$0xff] %v6359_v22 }
 0x105   :  { %11496 = vst [vmem:[#allocation4_spill] sm:$0xff] %v6033_v4  ;;  %631 = vmatpush.msra.mxu1 %v6033_v4  ;;  %672 = vmatpush.msra.mxu3 %v6053_v6  ;;  %v6365_v53 = vld [vmem:[%s10742_s1 + $0xa0] sm:$0xff]  ;;  %v11576_v4 = vld [vmem:[#allocation74_spill] sm:$0xff] }
 0x106   :  { %924 = vmatpush.msrb.mxu0 %v11467_v34  ;;  %964 = vmatpush.msrb.mxu2 %v11495_v61  ;;  %v6047_v34 = vld [vmem:[%s10742_s1 + $0x3a0] sm:$0xff]  ;;  %v6371_v61 = vld [vmem:[%s10742_s1 + $0xa8] sm:$0xff] }
 0x107   :  { %11498 = vst [vmem:[#allocation7_spill] sm:$0xff] %v6047_v34  ;;  %632 = vmatpush.msra.mxu1 %v6047_v34  ;;  %539 = vmatmul.f32.vlgmr.msrb.gmra.mxu3 %v6006_v0  ;;  %v11573_v6 = vld [vmem:[#allocation75_spill] sm:$0xff]  ;;  %v11574_v34 = vld [vmem:[#allocation72_spill] sm:$0xff] }
 0x108   :  { %925 = vmatpush.msrb.mxu0 %v11469_v50  ;;  %965 = vmatpush.msrb.mxu2 %v11470_v25  ;;  %v6065_v25 = vld [vmem:[%s10742_s1 + $0x380] sm:$0xff]  ;;  %v6085_v50 = vld [vmem:[%s10742_s1 + $0x368] sm:$0xff] }
 0x109   :  { %499 = vmatmul.f32.vlgmr.msrb.gmra.mxu1 %v6006_v0  ;;  %11500 = vst [vmem:[#allocation13_spill] sm:$0xff] %v6065_v25  ;;  %v6401_v0 = vld [vmem:[%s10742_s1 + $0x3b0] sm:$0xff] }
 0x10a   :  { %926 = vmatpush.msrb.mxu0 %v11471_v49  ;;  %966 = vmatpush.msrb.mxu2 %v11472_v60  ;;  %v6071_v49 = vld [vmem:[%s10742_s1 + $0x388] sm:$0xff]  ;;  %11503 = vst [vmem:[#allocation16_spill] sm:$0xff] %v6085_v50 }
 0x10b   :  { %633 = vmatpush.msra.mxu1 %v6065_v25  ;;  %11501 = vst [vmem:[#allocation12_spill] sm:$0xff] %v6071_v49  ;;  %673 = vmatpush.msra.mxu3 %v6071_v49  ;;  %v6099_v60 = vld [vmem:[%s10742_s1 + $0x348] sm:$0xff]  ;;  %v11571_v49 = vld [vmem:[#allocation73_spill] sm:$0xff] }
 0x10c   :  { %927 = vmatpush.msrb.mxu0 %v11473_v63  ;;  %967 = vmatpush.msrb.mxu2 %v11474_v57  ;;  %v6079_v57 = vld [vmem:[%s10742_s1 + $0x360] sm:$0xff]  ;;  %11505 = vst [vmem:[#allocation20_spill] sm:$0xff] %v6099_v60  ;;  %v11508_v63 = vld [vmem:[#allocation65_spill] sm:$0xff]  ;;  %v11572_v25 = vld [vmem:[#allocation68_spill] sm:$0xff] }
 0x10d   :  { %11502 = vst [vmem:[#allocation17_spill] sm:$0xff] %v6079_v57  ;;  %634 = vmatpush.msra.mxu1 %v6079_v57  ;;  %674 = vmatpush.msra.mxu3 %v6085_v50  ;;  %v11569_v50 = vld [vmem:[#allocation70_spill] sm:$0xff]  ;;  %v11570_v57 = vld [vmem:[#allocation64_spill] sm:$0xff] }
 0x10e   :  { %928 = vmatpush.msrb.mxu0 %v11475_v41  ;;  %968 = vmatpush.msrb.mxu2 %v11476_v21  ;;  %v6093_v41 = vld [vmem:[%s10742_s1 + $0x340] sm:$0xff]  ;;  %11540 = vst [vmem:[#allocation22_spill] sm:$0xff] %v6401_v0 }
 0x10f   :  { %11504 = vst [vmem:[#allocation21_spill] sm:$0xff] %v6093_v41  ;;  %635 = vmatpush.msra.mxu1 %v6093_v41  ;;  %675 = vmatpush.msra.mxu3 %v6099_v60  ;;  %v11509_v21 = vld [vmem:[#allocation67_spill] sm:$0xff]  ;;  %v11568_v60 = vld [vmem:[#allocation60_spill] sm:$0xff]  ;;  %v6636_v41 = vld [vmem:[%s10742_s1 + $0x118] sm:$0xff] }
 0x110   :  { %929 = vmatpush.msrb.mxu0 %v11446_v26  ;;  %969 = vmatpush.msrb.mxu2 %v11447_v29  ;;  %v6107_v26 = vld [vmem:[%s10742_s1 + $0x320] sm:$0xff]  ;;  %v6113_v29 = vld [vmem:[%s10742_s1 + $0x328] sm:$0xff]  ;;  %11579 = vst [vmem:[#allocation70_spill] sm:$0xff] %v6710_v3 }
 0x111   :  { %11506 = vst [vmem:[#allocation25_spill] sm:$0xff] %v6107_v26  ;;  %636 = vmatpush.msra.mxu1 %v6107_v26  ;;  %676 = vmatpush.msra.mxu3 %v6113_v29  ;;  %v6622_v26 = vld [vmem:[%s10742_s1 + $0x138] sm:$0xff] }
 0x112   :  { %930 = vmatpush.msrb.mxu0 %v11450_v42  ;;  %970 = vmatpush.msrb.mxu2 %v11451_v45  ;;  %11507 = vst [vmem:[#allocation24_spill] sm:$0xff] %v6113_v29  ;;  %v6121_v42 = vld [vmem:[%s10742_s1 + $0x300] sm:$0xff]  ;;  %v6127_v45 = vld [vmem:[%s10742_s1 + $0x308] sm:$0xff]  ;;  %v6616_v29 = vld [vmem:[%s10742_s1 + $0x130] sm:$0xff] }
 0x113   :  { %11510 = vst [vmem:[#allocation29_spill] sm:$0xff] %v6121_v42  ;;  %637 = vmatpush.msra.mxu1 %v6121_v42  ;;  %677 = vmatpush.msra.mxu3 %v6127_v45  ;;  %v6603_v42 = vld [vmem:[%s10742_s1 + $0x158] sm:$0xff] }
 0x114   :  { %931 = vmatpush.msrb.mxu0 %v11508_v63  ;;  %971 = vmatpush.msrb.mxu2 %v11509_v21  ;;  %11511 = vst [vmem:[#allocation28_spill] sm:$0xff] %v6127_v45  ;;  %v6377_v63 = vld [vmem:[%s10742_s1 + $0x3d0] sm:$0xff]  ;;  %v6383_v21 = vld [vmem:[%s10742_s1 + $0x3d8] sm:$0xff] }
 0x115   :  { %638 = vmatpush.msra.mxu1 %v6161_v58  ;;  %678 = vmatpush.msra.mxu3 %v6167_v59  ;;  %11538 = vst [vmem:[#allocation55_spill] sm:$0xff] %v6377_v63  ;;  %v6578_v59 = vld [vmem:[%s10742_s1 + $0x170] sm:$0xff]  ;;  %v6584_v58 = vld [vmem:[%s10742_s1 + $0x178] sm:$0xff] }
 0x116   :  { %932 = vmatpush.msrb.mxu0 %v11512_v10  ;;  %972 = vmatpush.msrb.mxu2 %v11513_v11  ;;  %11539 = vst [vmem:[#allocation19_spill] sm:$0xff] %v6383_v21  ;;  %v6389_v10 = vld [vmem:[%s10742_s1 + $0x80] sm:$0xff]  ;;  %v6395_v11 = vld [vmem:[%s10742_s1 + $0x88] sm:$0xff]  ;;  %v6597_v45 = vld [vmem:[%s10742_s1 + $0x150] sm:$0xff] }
 0x117   :  { %933 = vmatmul.f32.vlgmr.msrb.gmra.mxu0 %v5991_v40  ;;  %973 = vmatmul.f32.vlgmr.msrb.gmra.mxu2 %v5991_v40  ;;  %v6263_v40 = vld [vmem:[%s10742_s1 + $0x268] sm:$0xff]  ;;  %11561 = vst [vmem:[#allocation82_spill] sm:$0xff] %v6578_v59 }
 0x118   :  { %1064 = vmatpush.msra.mxu0 %v6135_v15  ;;  %1104 = vmatpush.msra.mxu2 %v6141_v16  ;;  %11529 = vst [vmem:[#allocation34_spill] sm:$0xff] %v6263_v40 }
 0x119   :  { %639 = vmatpush.msra.mxu1 %v6185_v24  ;;  %679 = vmatpush.msra.mxu3 %v6191_v7  ;;  %v6559_v7 = vld [vmem:[%s10742_s1 + $0x190] sm:$0xff]  ;;  %v6565_v24 = vld [vmem:[%s10742_s1 + $0x198] sm:$0xff]  ;;  %11562 = vst [vmem:[#allocation83_spill] sm:$0xff] %v6584_v58 }
 0x11a   :  { %1065 = vmatpush.msra.mxu0 %v6149_v19  ;;  %1105 = vmatpush.msra.mxu2 %v6155_v20  ;;  %11557 = vst [vmem:[#allocation80_spill] sm:$0xff] %v6559_v7 }
 0x11b   :  { %640 = vmatpush.msra.mxu1 %v6209_v28  ;;  %680 = vmatpush.msra.mxu3 %v6215_v30  ;;  %v6540_v30 = vld [vmem:[%s10742_s1 + $0x1b0] sm:$0xff]  ;;  %v6546_v28 = vld [vmem:[%s10742_s1 + $0x1b8] sm:$0xff]  ;;  %11558 = vst [vmem:[#allocation81_spill] sm:$0xff] %v6565_v24 }
 0x11c   :  { %1066 = vmatpush.msra.mxu0 %v6173_v62  ;;  %1106 = vmatpush.msra.mxu2 %v6179_v23  ;;  %11580 = vst [vmem:[#allocation64_spill] sm:$0xff] %v6716_v2 }
 0x11d   :  { %641 = vmatpush.msra.mxu1 %v6233_v33  ;;  %681 = vmatpush.msra.mxu3 %v6239_v37  ;;  %v6528_v37 = vld [vmem:[%s10742_s1 + $0x330] sm:$0xff]  ;;  %v6534_v33 = vld [vmem:[%s10742_s1 + $0x338] sm:$0xff]  ;;  %11581 = vst [vmem:[#allocation73_spill] sm:$0xff] %v6728_v38 }
 0x11e   :  { %1067 = vmatpush.msra.mxu0 %v6197_v46  ;;  %1107 = vmatpush.msra.mxu2 %v6203_v27  ;;  %11553 = vst [vmem:[#allocation78_spill] sm:$0xff] %v6528_v37 }
 0x11f   :  { %642 = vmatpush.msra.mxu1 %v6257_v39  ;;  %682 = vmatpush.msra.mxu3 %v6263_v40  ;;  %v6516_v40 = vld [vmem:[%s10742_s1 + $0x1d0] sm:$0xff]  ;;  %v6522_v39 = vld [vmem:[%s10742_s1 + $0x1d8] sm:$0xff]  ;;  %11554 = vst [vmem:[#allocation79_spill] sm:$0xff] %v6534_v33 }
 0x120   :  { %1068 = vmatpush.msra.mxu0 %v6221_v31  ;;  %1108 = vmatpush.msra.mxu2 %v6227_v32  ;;  %11551 = vst [vmem:[#allocation71_spill] sm:$0xff] %v6516_v40 }
 0x121   :  { %643 = vmatpush.msra.mxu1 %v6281_v47  ;;  %683 = vmatpush.msra.mxu3 %v6287_v48  ;;  %v6490_v48 = vld [vmem:[%s10742_s1] sm:$0xff]  ;;  %v6496_v47 = vld [vmem:[%s10742_s1 + $0x8] sm:$0xff]  ;;  %11552 = vst [vmem:[#allocation77_spill] sm:$0xff] %v6522_v39 }
 0x122   :  { %1069 = vmatpush.msra.mxu0 %v6245_v54  ;;  %1109 = vmatpush.msra.mxu2 %v6251_v35  ;;  %11548 = vst [vmem:[#allocation65_spill] sm:$0xff] %v6496_v47 }
 0x123   :  { %644 = vmatpush.msra.mxu1 %v6305_v55  ;;  %684 = vmatpush.msra.mxu3 %v6311_v56  ;;  %v6467_v56 = vld [vmem:[%s10742_s1 + $0x28] sm:$0xff]  ;;  %v6484_v55 = vld [vmem:[%s10742_s1 + $0x358] sm:$0xff] }
 0x124   :  { %1070 = vmatpush.msra.mxu0 %v6269_v43  ;;  %1110 = vmatpush.msra.mxu2 %v6275_v44  ;;  %11547 = vst [vmem:[#allocation39_spill] sm:$0xff] %v6484_v55 }
 0x125   :  { %645 = vmatpush.msra.mxu1 %v6329_v12  ;;  %685 = vmatpush.msra.mxu3 %v6335_v13  ;;  %v6443_v13 = vld [vmem:[%s10742_s1 + $0x48] sm:$0xff]  ;;  %v6461_v12 = vld [vmem:[%s10742_s1 + $0x20] sm:$0xff] }
 0x126   :  { %1071 = vmatpush.msra.mxu0 %v6293_v51  ;;  %1111 = vmatpush.msra.mxu2 %v6299_v52 }
 0x127   :  { %710 = vmatpush.msrb.mxu1 %v6353_v1  ;;  %750 = vmatpush.msrb.mxu3 %v6359_v22  ;;  %v6419_v22 = vld [vmem:[%s10742_s1 + $0x68] sm:$0xff]  ;;  %v6437_v1 = vld [vmem:[%s10742_s1 + $0x40] sm:$0xff] }
 0x128   :  { %1072 = vmatpush.msra.mxu0 %v6317_v8  ;;  %1112 = vmatpush.msra.mxu2 %v6323_v9 }
 0x129   :  { %711 = vmatpush.msrb.mxu1 %v6377_v63  ;;  %751 = vmatpush.msrb.mxu3 %v6383_v21  ;;  %v6407_v21 = vld [vmem:[%s10742_s1 + $0x3b8] sm:$0xff]  ;;  %v6413_v63 = vld [vmem:[%s10742_s1 + $0x60] sm:$0xff] }
 0x12a   :  { %1073 = vmatpush.msra.mxu0 %v6341_v14  ;;  %1113 = vmatpush.msra.mxu2 %v6347_v17  ;;  %11541 = vst [vmem:[#allocation23_spill] sm:$0xff] %v6407_v21 }
 0x12b   :  { %712 = vmatpush.msrb.mxu1 %v6401_v0  ;;  %752 = vmatpush.msrb.mxu3 %v6407_v21  ;;  %v6425_v0 = vld [vmem:[%s10742_s1 + $0x390] sm:$0xff]  ;;  %v6431_v21 = vld [vmem:[%s10742_s1 + $0x398] sm:$0xff] }
 0x12c   :  { %1074 = vmatpush.msra.mxu0 %v6365_v53  ;;  %1114 = vmatpush.msra.mxu2 %v6371_v61  ;;  %11542 = vst [vmem:[#allocation26_spill] sm:$0xff] %v6425_v0 }
 0x12d   :  { %713 = vmatpush.msrb.mxu1 %v6425_v0  ;;  %11543 = vst [vmem:[#allocation27_spill] sm:$0xff] %v6431_v21  ;;  %753 = vmatpush.msrb.mxu3 %v6431_v21  ;;  %v6449_v0 = vld [vmem:[%s10742_s1 + $0x370] sm:$0xff]  ;;  %v6455_v21 = vld [vmem:[%s10742_s1 + $0x378] sm:$0xff] }
 0x12e   :  { %1075 = vmatpush.msra.mxu0 %v6389_v10  ;;  %1115 = vmatpush.msra.mxu2 %v6395_v11  ;;  %11544 = vst [vmem:[#allocation30_spill] sm:$0xff] %v6449_v0 }
 0x12f   :  { %714 = vmatpush.msrb.mxu1 %v6449_v0  ;;  %11545 = vst [vmem:[#allocation31_spill] sm:$0xff] %v6455_v21  ;;  %754 = vmatpush.msrb.mxu3 %v6455_v21  ;;  %v6473_v0 = vld [vmem:[%s10743_s0 + $0x20] sm:$0xff]  ;;  %v6478_v21 = vld [vmem:[%s10742_s1 + $0x350] sm:$0xff] }
 0x130   :  { %1076 = vmatpush.msra.mxu0 %v6413_v63  ;;  %1116 = vmatpush.msra.mxu2 %v6419_v22  ;;  %11546 = vst [vmem:[#allocation35_spill] sm:$0xff] %v6478_v21 }
 0x131   :  { %715 = vmatpush.msrb.mxu1 %v6478_v21  ;;  %755 = vmatpush.msrb.mxu3 %v6484_v55  ;;  %v6502_v21 = vld [vmem:[%s10742_s1 + $0x1f0] sm:$0xff]  ;;  %v6508_v55 = vld [vmem:[%s10742_s1 + $0x1f8] sm:$0xff] }
 0x132   :  { %1077 = vmatpush.msra.mxu0 %v6437_v1  ;;  %1117 = vmatpush.msra.mxu2 %v6443_v13  ;;  %11549 = vst [vmem:[#allocation67_spill] sm:$0xff] %v6502_v21 }
 0x133   :  { %11550 = vst [vmem:[#allocation69_spill] sm:$0xff] %v6508_v55  ;;  %716 = vmatpush.msrb.mxu1 %v6528_v37  ;;  %756 = vmatpush.msrb.mxu3 %v6534_v33  ;;  %v11555_v37 = vld [vmem:[#allocation50_spill] sm:$0xff] }
 0x134   :  { %1078 = vmatpush.msra.mxu0 %v6461_v12  ;;  %1118 = vmatpush.msra.mxu2 %v6467_v56  ;;  %v6553_v33 = vld [vmem:[%s10742_s1 + $0x318] sm:$0xff] }
 0x135   :  { %717 = vmatpush.msrb.mxu1 %v11555_v37  ;;  %11556 = vst [vmem:[#allocation50_spill] sm:$0xff] %v6553_v33  ;;  %757 = vmatpush.msrb.mxu3 %v6553_v33  ;;  %v11559_v37 = vld [vmem:[#allocation54_spill] sm:$0xff] }
 0x136   :  { %1079 = vmatpush.msra.mxu0 %v6490_v48  ;;  %1119 = vmatpush.msra.mxu2 %v6496_v47  ;;  %v6572_v33 = vld [vmem:[%s10742_s1 + $0x2f8] sm:$0xff] }
 0x137   :  { %1080 = vmatmul.f32.vlgmr.msra.gmra.mxu0 %v6473_v0  ;;  %1120 = vmatmul.f32.vlgmr.msra.gmra.mxu2 %v6473_v0  ;;  %11560 = vst [vmem:[#allocation54_spill] sm:$0xff] %v6572_v33 }
 0x138   :  { %1144 = vmatpush.msrb.mxu0 %v6502_v21  ;;  %1184 = vmatpush.msrb.mxu2 %v6508_v55 }
 0x139   :  { %718 = vmatpush.msrb.mxu1 %v11559_v37  ;;  %758 = vmatpush.msrb.mxu3 %v6572_v33  ;;  %v11563_v37 = vld [vmem:[#allocation58_spill] sm:$0xff] }
 0x13a   :  { %1145 = vmatpush.msrb.mxu0 %v6516_v40  ;;  %1185 = vmatpush.msrb.mxu2 %v6522_v39  ;;  %v6591_v33 = vld [vmem:[%s10742_s1 + $0x2d8] sm:$0xff] }
 0x13b   :  { %719 = vmatpush.msrb.mxu1 %v11563_v37  ;;  %11564 = vst [vmem:[#allocation58_spill] sm:$0xff] %v6591_v33  ;;  %759 = vmatpush.msrb.mxu3 %v6591_v33  ;;  %v11565_v37 = vld [vmem:[#allocation62_spill] sm:$0xff] }
 0x13c   :  { %1146 = vmatpush.msrb.mxu0 %v6540_v30  ;;  %1186 = vmatpush.msrb.mxu2 %v6546_v28  ;;  %v6610_v33 = vld [vmem:[%s10742_s1 + $0x2b8] sm:$0xff] }
 0x13d   :  { %720 = vmatpush.msrb.mxu1 %v11565_v37  ;;  %11566 = vst [vmem:[#allocation62_spill] sm:$0xff] %v6610_v33  ;;  %760 = vmatpush.msrb.mxu3 %v6610_v33  ;;  %v11567_v37 = vld [vmem:[#allocation66_spill] sm:$0xff]  ;;  %v6630_v33 = vld [vmem:[%s10742_s1 + $0x110] sm:$0xff] }
 0x13e   :  { %1147 = vmatpush.msrb.mxu0 %v6559_v7  ;;  %1187 = vmatpush.msrb.mxu2 %v6565_v24 }
 0x13f   :  { %721 = vmatpush.msrb.mxu1 %v11567_v37  ;;  %761 = vmatpush.msrb.mxu3 %v11568_v60  ;;  %v6644_v60 = vld [vmem:[%s10742_s1 + $0xf0] sm:$0xff]  ;;  %v6650_v37 = vld [vmem:[%s10742_s1 + $0xf8] sm:$0xff] }
 0x140   :  { %1148 = vmatpush.msrb.mxu0 %v6578_v59  ;;  %1188 = vmatpush.msrb.mxu2 %v6584_v58 }
 0x141   :  { %722 = vmatpush.msrb.mxu1 %v11569_v50  ;;  %762 = vmatpush.msrb.mxu3 %v11570_v57  ;;  %v6658_v57 = vld [vmem:[%s10742_s1 + $0xd0] sm:$0xff]  ;;  %v6664_v50 = vld [vmem:[%s10742_s1 + $0xd8] sm:$0xff] }
 0x142   :  { %1149 = vmatpush.msrb.mxu0 %v6597_v45  ;;  %1189 = vmatpush.msrb.mxu2 %v6603_v42 }
 0x143   :  { %723 = vmatpush.msrb.mxu1 %v11571_v49  ;;  %763 = vmatpush.msrb.mxu3 %v11572_v25  ;;  %v6672_v25 = vld [vmem:[%s10742_s1 + $0xb0] sm:$0xff]  ;;  %v6678_v49 = vld [vmem:[%s10742_s1 + $0xb8] sm:$0xff] }
 0x144   :  { %1150 = vmatpush.msrb.mxu0 %v6616_v29  ;;  %1190 = vmatpush.msrb.mxu2 %v6622_v26 }
 0x145   :  { %724 = vmatpush.msrb.mxu1 %v11573_v6  ;;  %764 = vmatpush.msrb.mxu3 %v11574_v34  ;;  %v6686_v34 = vld [vmem:[%s10742_s1 + $0x90] sm:$0xff]  ;;  %v6692_v6 = vld [vmem:[%s10742_s1 + $0x98] sm:$0xff] }
 0x146   :  { %1151 = vmatpush.msrb.mxu0 %v6630_v33  ;;  %1191 = vmatpush.msrb.mxu2 %v6636_v41  ;;  %11577 = vst [vmem:[#allocation66_spill] sm:$0xff] %v6686_v34 }
 0x147   :  { %725 = vmatpush.msrb.mxu1 %v11575_v5  ;;  %765 = vmatpush.msrb.mxu3 %v11576_v4  ;;  %11578 = vst [vmem:[#allocation60_spill] sm:$0xff] %v6692_v6  ;;  %v6698_v5 = vld [vmem:[%s10742_s1 + $0x70] sm:$0xff]  ;;  %v6704_v4 = vld [vmem:[%s10742_s1 + $0x78] sm:$0xff] }
 0x148   :  { %1152 = vmatpush.msrb.mxu0 %v6644_v60  ;;  %1192 = vmatpush.msrb.mxu2 %v6650_v37 }
 0x14a   :  { %1153 = vmatpush.msrb.mxu0 %v6658_v57  ;;  %1193 = vmatpush.msrb.mxu2 %v6664_v50 }
 0x14c   :  { %1154 = vmatpush.msrb.mxu0 %v6672_v25  ;;  %1194 = vmatpush.msrb.mxu2 %v6678_v49 }
 0x14e   :  { %1155 = vmatpush.msrb.mxu0 %v6686_v34  ;;  %1195 = vmatpush.msrb.mxu2 %v6692_v6 }
 0x150   :  { %1156 = vmatpush.msrb.mxu0 %v6698_v5  ;;  %1196 = vmatpush.msrb.mxu2 %v6704_v4 }
 0x152   :  { %1157 = vmatpush.msrb.mxu0 %v6710_v3  ;;  %1197 = vmatpush.msrb.mxu2 %v6716_v2  ;;  %v6734_v3 = vld [vmem:[%s10742_s1 + $0x10] sm:$0xff]  ;;  %v6740_v2 = vld [vmem:[%s10742_s1 + $0x18] sm:$0xff] }
 0x153   :  { %11582 = vst [vmem:[#allocation68_spill] sm:$0xff] %v6740_v2 }
 0x154   :  { %1158 = vmatpush.msrb.mxu0 %v6722_v36  ;;  %1198 = vmatpush.msrb.mxu2 %v6728_v38 }
 0x156   :  { %1159 = vmatpush.msrb.mxu0 %v6734_v3  ;;  %1199 = vmatpush.msrb.mxu2 %v6740_v2 }
 0x157   :  { %1160 = vmatmul.f32.vlgmr.msrb.gmra.mxu0 %v6473_v0  ;;  %1200 = vmatmul.f32.vlgmr.msrb.gmra.mxu2 %v6473_v0  ;;  %v6780_v0 = vld [vmem:[%s10743_s0 + $0x28] sm:$0xff] }
 0x158   :  { %1291 = vmatpush.msra.mxu0 %v6135_v15  ;;  %1331 = vmatpush.msra.mxu2 %v6141_v16 }
 0x15a   :  { %1292 = vmatpush.msra.mxu0 %v6149_v19  ;;  %1332 = vmatpush.msra.mxu2 %v6155_v20 }
 0x15c   :  { %1293 = vmatpush.msra.mxu0 %v6173_v62  ;;  %1333 = vmatpush.msra.mxu2 %v6179_v23 }
 0x15e   :  { %1294 = vmatpush.msra.mxu0 %v6197_v46  ;;  %1334 = vmatpush.msra.mxu2 %v6203_v27 }
 0x160   :  { %1295 = vmatpush.msra.mxu0 %v6221_v31  ;;  %1335 = vmatpush.msra.mxu2 %v6227_v32 }
 0x162   :  { %1296 = vmatpush.msra.mxu0 %v6245_v54  ;;  %1336 = vmatpush.msra.mxu2 %v6251_v35 }
 0x164   :  { %1297 = vmatpush.msra.mxu0 %v6269_v43  ;;  %1337 = vmatpush.msra.mxu2 %v6275_v44 }
 0x166   :  { %1298 = vmatpush.msra.mxu0 %v6293_v51  ;;  %1338 = vmatpush.msra.mxu2 %v6299_v52 }
 0x168   :  { %1299 = vmatpush.msra.mxu0 %v6317_v8  ;;  %1339 = vmatpush.msra.mxu2 %v6323_v9 }
 0x16a   :  { %1300 = vmatpush.msra.mxu0 %v6341_v14  ;;  %1340 = vmatpush.msra.mxu2 %v6347_v17 }
 0x16c   :  { %1301 = vmatpush.msra.mxu0 %v6365_v53  ;;  %1341 = vmatpush.msra.mxu2 %v6371_v61 }
 0x16e   :  { %1302 = vmatpush.msra.mxu0 %v6389_v10  ;;  %1342 = vmatpush.msra.mxu2 %v6395_v11 }
 0x170   :  { %1303 = vmatpush.msra.mxu0 %v6413_v63  ;;  %1343 = vmatpush.msra.mxu2 %v6419_v22 }
 0x172   :  { %1304 = vmatpush.msra.mxu0 %v6437_v1  ;;  %1344 = vmatpush.msra.mxu2 %v6443_v13 }
 0x174   :  { %1305 = vmatpush.msra.mxu0 %v6461_v12  ;;  %1345 = vmatpush.msra.mxu2 %v6467_v56 }
 0x176   :  { %1306 = vmatpush.msra.mxu0 %v6490_v48  ;;  %1346 = vmatpush.msra.mxu2 %v6496_v47  ;;  %v400_v47 = vpop.f32.mrf.mxu0 }
 0x177   :  { %1307 = vmatmul.f32.vlgmr.msra.gmra.mxu0 %v6780_v0  ;;  %1347 = vmatmul.f32.vlgmr.msra.gmra.mxu2 %v6780_v0 }
 0x178   :  { %1371 = vmatpush.msrb.mxu0 %v6502_v21  ;;  %1411 = vmatpush.msrb.mxu2 %v6508_v55  ;;  %v11583_v55 = vld [vmem:[#allocation8_spill] sm:$0xff] }
 0x179   :  { %v401_v21 = vadd.f32 %v400_v47, %v11583_v55 }
 0x17a   :  { %1372 = vmatpush.msrb.mxu0 %v6516_v40  ;;  %1412 = vmatpush.msrb.mxu2 %v6522_v39  ;;  %v440_v39 = vpop.f32.mrf.mxu2 }
 0x17c   :  { %1373 = vmatpush.msrb.mxu0 %v6540_v30  ;;  %1413 = vmatpush.msrb.mxu2 %v6546_v28  ;;  %v420_v40 = vpop.f32.mrf.mxu1 }
 0x17e   :  { %1374 = vmatpush.msrb.mxu0 %v6559_v7  ;;  %1414 = vmatpush.msrb.mxu2 %v6565_v24  ;;  %v421_v7 = vadd.f32 %v420_v40, %v401_v21  ;;  %v11584_v24 = vld [vmem:[#allocation3_spill] sm:$0xff] }
 0x180   :  { %1375 = vmatpush.msrb.mxu0 %v6578_v59  ;;  %1415 = vmatpush.msrb.mxu2 %v6584_v58  ;;  %v3967_v59 = vmul.f32 -1.442695, %v421_v7  ;;  %v441_v58 = vadd.f32 %v440_v39, %v11584_v24  ;;  %v11586_v24 = vld [vmem:[#allocation64_spill] sm:$0xff] }
 0x182   :  { %1376 = vmatpush.msrb.mxu0 %v6597_v45  ;;  %1416 = vmatpush.msrb.mxu2 %v6603_v42  ;;  %4168 = vpow2.f32 %v3967_v59  ;;  %v460_v47 = vpop.f32.mrf.mxu3  ;;  %v520_v40 = vpop.f32.mrf.mxu2 }
 0x183   :  { %v461_v55 = vadd.f32 %v460_v47, %v441_v58  ;;  %v521_v59 = vadd.f32 %v520_v40, %v5929_v18  ;;  %v11585_v47 = vld [vmem:[#allocation70_spill] sm:$0xff]  ;;  %v480_v40 = vpop.f32.mrf.mxu0 }
 0x184   :  { %1377 = vmatpush.msrb.mxu0 %v6616_v29  ;;  %1417 = vmatpush.msrb.mxu2 %v6622_v26 }
 0x185   :  { %v3968_v21 = vmul.f32 -1.442695, %v461_v55 }
 0x186   :  { %1378 = vmatpush.msrb.mxu0 %v6630_v33  ;;  %1418 = vmatpush.msrb.mxu2 %v6636_v41  ;;  %v500_v18 = vpop.f32.mrf.mxu1 }
 0x187   :  { %4170 = vpow2.f32 %v3968_v21 }
 0x188   :  { %1379 = vmatpush.msrb.mxu0 %v6644_v60  ;;  %1419 = vmatpush.msrb.mxu2 %v6650_v37  ;;  %v4169_v7 = vpop.eup %4168 }
 0x189   :  { %v546_v39 = vadd.f32 1.0, %v4169_v7 }
 0x18a   :  { %1380 = vmatpush.msrb.mxu0 %v6658_v57  ;;  %1420 = vmatpush.msrb.mxu2 %v6664_v50  ;;  %v540_v58 = vpop.f32.mrf.mxu3 }
 0x18b   :  { %4172 = vrcp.f32 %v546_v39  ;;  %v541_v55 = vadd.f32 %v540_v58, %v521_v59  ;;  %vm552_vm13 = vweird.f32 %v546_v39 }
 0x18c   :  { %1381 = vmatpush.msrb.mxu0 %v6672_v25  ;;  %1421 = vmatpush.msrb.mxu2 %v6678_v49 }
 0x18d   :  { %v3969_v21 = vmul.f32 -1.442695, %v541_v55 }
 0x18e   :  { %1382 = vmatpush.msrb.mxu0 %v6686_v34  ;;  %1422 = vmatpush.msrb.mxu2 %v6692_v6  ;;  %v4171_v6 = vpop.eup %4170 }
 0x18f   :  { %v565_v34 = vadd.f32 1.0, %v4171_v6  ;;  %4174 = vpow2.f32 %v3969_v21  ;;  %v11587_v6 = vld [vmem:[#allocation10_spill] sm:$0xff] }
 0x190   :  { %1383 = vmatpush.msrb.mxu0 %v6698_v5  ;;  %1423 = vmatpush.msrb.mxu2 %v6704_v4  ;;  %v481_v58 = vadd.f32 %v480_v40, %v11587_v6  ;;  %v558_v40 = vand.u32 2147483648, %v546_v39 }
 0x191   :  { %v4173_v7 = vpop.eup %4172  ;;  %4176 = vrcp.f32 %v565_v34  ;;  %v575_v6 = vand.u32 2147483647, %v565_v34  ;;  %vm571_vm0 = vweird.f32 %v565_v34 }
 0x192   :  { %1384 = vmatpush.msrb.mxu0 %v11585_v47  ;;  %1424 = vmatpush.msrb.mxu2 %v11586_v24  ;;  %v548_v59 = vmul.f32 %v4173_v7, %v546_v39  ;;  %vm553_vm12 = vweird.f32 %v4173_v7 }
 0x193   :  { %vm6837_vm14 = vmor %vm552_vm13, %vm553_vm12  ;;  %vm576_vm3 = vcmp.eq.f32.partialorder %v575_v6, 8.507059e+37 }
 0x194   :  { %1385 = vmatpush.msrb.mxu0 %v6722_v36  ;;  %1425 = vmatpush.msrb.mxu2 %v6728_v38  ;;  %v549_v55 = vsub.f32 1.0, %v548_v59 }
 0x195   :  { %v4175_v21 = vpop.eup %4174 }
 0x196   :  { %1386 = vmatpush.msrb.mxu0 %v6734_v3  ;;  %1426 = vmatpush.msrb.mxu2 %v6740_v2  ;;  %v6830_v2 = vadd.f32 1.0, %v4175_v21 }
 0x197   :  { %1387 = vmatmul.f32.vlgmr.msrb.gmra.mxu0 %v6780_v0  ;;  %1427 = vmatmul.f32.vlgmr.msrb.gmra.mxu2 %v6780_v0  ;;  %v4177_v0 = vpop.eup %4176 }
 0x198   :  { %1518 = vmatpush.msra.mxu0 %v6135_v15  ;;  %1558 = vmatpush.msra.mxu2 %v6141_v16  ;;  %v550_v16 = vmul.f32 %v4173_v7, %v549_v55  ;;  %v501_v15 = vadd.f32 %v500_v18, %v481_v58  ;;  %4178 = vrcp.f32 %v6830_v2  ;;  %v556_v55 = vand.u32 2147483647, %v546_v39 }
 0x199   :  { %v577_v18 = vand.u32 2147483648, %v565_v34  ;;  %vm572_vm15 = vweird.f32 %v4177_v0  ;;  %vm591_vm5 = vweird.f32 %v6830_v2 }
 0x19a   :  { %1519 = vmatpush.msra.mxu0 %v6149_v19  ;;  %1559 = vmatpush.msra.mxu2 %v6155_v20  ;;  %v567_v19 = vmul.f32 %v4177_v0, %v565_v34  ;;  %v551_v20 = vadd.f32 %v4173_v7, %v550_v16  ;;  %4180 = vtanh.f32 %v501_v15  ;;  %vm557_vm1 = vcmp.eq.f32.partialorder %v556_v55, 8.507059e+37  ;;  %vm573_vm2 = vmor %vm571_vm0, %vm572_vm15 }
 0x19b   :  { %v578_v15 = vor.u32 1.1754944e-38, %v577_v18 }
 0x19c   :  { %1520 = vmatpush.msra.mxu0 %v6173_v62  ;;  %1560 = vmatpush.msra.mxu2 %v6179_v23  ;;  %v568_v59 = vsub.f32 1.0, %v567_v19  ;;  %v555_v21 = vsel %vm6837_vm14, %v4173_v7, %v551_v20  ;;  %v559_v19 = vor.u32 1.1754944e-38, %v558_v40  ;;  %v11590_v40 = vld [vmem:[#allocation11_spill] sm:$0xff] }
 0x19e   :  { %1521 = vmatpush.msra.mxu0 %v6197_v46  ;;  %1561 = vmatpush.msra.mxu2 %v6203_v27  ;;  %v569_v16 = vmul.f32 %v4177_v0, %v568_v59  ;;  %v560_v59 = vsel %vm557_vm1, %v559_v19, %v555_v21  ;;  %v595_v21 = vand.u32 2147483647, %v6830_v2 }
 0x1a0   :  { %1522 = vmatpush.msra.mxu0 %v6221_v31  ;;  %1562 = vmatpush.msra.mxu2 %v6227_v32  ;;  %v570_v39 = vadd.f32 %v4177_v0, %v569_v16  ;;  %vm596_vm7 = vcmp.eq.f32.partialorder %v595_v21, 8.507059e+37  ;;  %v11603_v21 = vld [vmem:[#allocation81_spill] sm:$0xff] }
 0x1a2   :  { %1523 = vmatpush.msra.mxu0 %v6245_v54  ;;  %1563 = vmatpush.msra.mxu2 %v6251_v35  ;;  %v4179_v35 = vpop.eup %4178  ;;  %v574_v54 = vsel %vm573_vm2, %v4177_v0, %v570_v39 }
 0x1a3   :  { %v587_v20 = vmul.f32 %v4179_v35, %v6830_v2  ;;  %v4181_v7 = vpop.eup %4180  ;;  %v579_v34 = vsel %vm576_vm3, %v578_v15, %v574_v54  ;;  %vm592_vm4 = vweird.f32 %v4179_v35  ;;  %v597_v54 = vand.u32 2147483648, %v6830_v2  ;;  %v11593_v2 = vld [vmem:[#allocation65_spill] sm:$0xff] }
 0x1a4   :  { %1524 = vmatpush.msra.mxu0 %v6269_v43  ;;  %1564 = vmatpush.msra.mxu2 %v6275_v44  ;;  %v601_v55 = vmul.f32 %v579_v34, %v11590_v40  ;;  %v602_v58 = vmul.f32 %v4181_v7, %v560_v59  ;;  %vm593_vm6 = vmor %vm591_vm5, %vm592_vm4  ;;  %v11594_v7 = vld [vmem:[#allocation67_spill] sm:$0xff]  ;;  %v11595_v34 = vld [vmem:[#allocation69_spill] sm:$0xff] }
 0x1a5   :  { %v588_v16 = vsub.f32 1.0, %v587_v20  ;;  %v598_v39 = vor.u32 1.1754944e-38, %v597_v54  ;;  %v11596_v40 = vld [vmem:[#allocation71_spill] sm:$0xff]  ;;  %v11602_v54 = vld [vmem:[#allocation80_spill] sm:$0xff] }
 0x1a6   :  { %1525 = vmatpush.msra.mxu0 %v6293_v51  ;;  %1565 = vmatpush.msra.mxu2 %v6299_v52  ;;  %v6853_v18 = vadd.f32 %v602_v58, %v601_v55  ;;  %v11597_v55 = vld [vmem:[#allocation77_spill] sm:$0xff]  ;;  %v11598_v58 = vld [vmem:[#allocation15_spill] sm:$0xff] }
 0x1a7   :  { %v589_v0 = vmul.f32 %v4179_v35, %v588_v16  ;;  %v11599_v16 = vld [vmem:[#allocation5_spill] sm:$0xff] }
 0x1a8   :  { %1526 = vmatpush.msra.mxu0 %v6317_v8  ;;  %1566 = vmatpush.msra.mxu2 %v6323_v9  ;;  %11591 = vst [vmem:[#allocation75_spill] sm:$0xff] %v6853_v18  ;;  %4182 = vtanh.f32 %v6853_v18  ;;  %v11623_v18 = vld [vmem:[#allocation44_spill] sm:$0xff] }
 0x1a9   :  { %v590_v6 = vadd.f32 %v4179_v35, %v589_v0  ;;  %v11600_v0 = vld [vmem:[#allocation4_spill] sm:$0xff] }
 0x1aa   :  { %1527 = vmatpush.msra.mxu0 %v6341_v14  ;;  %1567 = vmatpush.msra.mxu2 %v6347_v17 }
 0x1ab   :  { %v594_v19 = vsel %vm593_vm6, %v4179_v35, %v590_v6  ;;  %v6876_v35 = vld [vmem:[%s10743_s0 + $0x30] sm:$0xff]  ;;  %v11601_v6 = vld [vmem:[#allocation18_spill] sm:$0xff] }
 0x1ac   :  { %1528 = vmatpush.msra.mxu0 %v6365_v53  ;;  %1568 = vmatpush.msra.mxu2 %v6371_v61  ;;  %v599_v59 = vsel %vm596_vm7, %v598_v39, %v594_v19  ;;  %v11604_v19 = vld [vmem:[#allocation82_spill] sm:$0xff]  ;;  %v11605_v39 = vld [vmem:[#allocation83_spill] sm:$0xff] }
 0x1ae   :  { %1529 = vmatpush.msra.mxu0 %v6389_v10  ;;  %1569 = vmatpush.msra.mxu2 %v6395_v11  ;;  %v4183_v15 = vpop.eup %4182 }
 0x1af   :  { %v6869_v20 = vmul.f32 %v4183_v15, %v599_v59  ;;  %v11606_v15 = vld [vmem:[#allocation7_spill] sm:$0xff]  ;;  %v11607_v59 = vld [vmem:[#allocation6_spill] sm:$0xff] }
 0x1b0   :  { %1530 = vmatpush.msra.mxu0 %v6413_v63  ;;  %1570 = vmatpush.msra.mxu2 %v6419_v22 }
 0x1b1   :  { %11592 = vst [vmem:[#allocation72_spill] sm:$0xff] %v6869_v20  ;;  %646 = vmatmul.f32.vlgmr.msra.gmra.mxu1 %v6869_v20  ;;  %686 = vmatmul.f32.vlgmr.msra.gmra.mxu3 %v6869_v20 }
 0x1b2   :  { %1531 = vmatpush.msra.mxu0 %v6437_v1  ;;  %1571 = vmatpush.msra.mxu2 %v6443_v13 }
 0x1b3   :  { %857 = vmatpush.msra.mxu1 %v11598_v58  ;;  %897 = vmatpush.msra.mxu3 %v11599_v16  ;;  %v11608_v58 = vld [vmem:[#allocation13_spill] sm:$0xff]  ;;  %v11609_v16 = vld [vmem:[#allocation12_spill] sm:$0xff] }
 0x1b4   :  { %1532 = vmatpush.msra.mxu0 %v6461_v12  ;;  %1572 = vmatpush.msra.mxu2 %v6467_v56 }
 0x1b5   :  { %858 = vmatpush.msra.mxu1 %v11600_v0  ;;  %898 = vmatpush.msra.mxu3 %v11601_v6  ;;  %v11610_v0 = vld [vmem:[#allocation17_spill] sm:$0xff]  ;;  %v11611_v6 = vld [vmem:[#allocation16_spill] sm:$0xff] }
 0x1b6   :  { %1533 = vmatpush.msra.mxu0 %v6490_v48  ;;  %1573 = vmatpush.msra.mxu2 %v11593_v2 }
 0x1b7   :  { %1534 = vmatmul.f32.vlgmr.msra.gmra.mxu0 %v6876_v35  ;;  %1574 = vmatmul.f32.vlgmr.msra.gmra.mxu2 %v6876_v35 }
 0x1b8   :  { %1598 = vmatpush.msrb.mxu0 %v11594_v7  ;;  %1638 = vmatpush.msrb.mxu2 %v11595_v34 }
 0x1b9   :  { %726 = vmatmul.f32.vlgmr.msrb.gmra.mxu1 %v6869_v20  ;;  %766 = vmatmul.f32.vlgmr.msrb.gmra.mxu3 %v6869_v20  ;;  %v11620_v20 = vld [vmem:[#allocation66_spill] sm:$0xff] }
 0x1ba   :  { %1599 = vmatpush.msrb.mxu0 %v11596_v40  ;;  %1639 = vmatpush.msrb.mxu2 %v11597_v55 }
 0x1bb   :  { %859 = vmatpush.msra.mxu1 %v11606_v15  ;;  %899 = vmatpush.msra.mxu3 %v11607_v59  ;;  %v11612_v15 = vld [vmem:[#allocation21_spill] sm:$0xff]  ;;  %v11613_v59 = vld [vmem:[#allocation20_spill] sm:$0xff] }
 0x1bc   :  { %1600 = vmatpush.msrb.mxu0 %v6540_v30  ;;  %1640 = vmatpush.msrb.mxu2 %v6546_v28 }
 0x1bd   :  { %860 = vmatpush.msra.mxu1 %v11608_v58  ;;  %900 = vmatpush.msra.mxu3 %v11609_v16  ;;  %v11614_v58 = vld [vmem:[#allocation25_spill] sm:$0xff]  ;;  %v11615_v16 = vld [vmem:[#allocation24_spill] sm:$0xff] }
 0x1be   :  { %1601 = vmatpush.msrb.mxu0 %v11602_v54  ;;  %1641 = vmatpush.msrb.mxu2 %v11603_v21 }
 0x1bf   :  { %861 = vmatpush.msra.mxu1 %v11610_v0  ;;  %901 = vmatpush.msra.mxu3 %v11611_v6  ;;  %v11616_v0 = vld [vmem:[#allocation29_spill] sm:$0xff]  ;;  %v11617_v6 = vld [vmem:[#allocation28_spill] sm:$0xff] }
 0x1c0   :  { %1602 = vmatpush.msrb.mxu0 %v11604_v19  ;;  %1642 = vmatpush.msrb.mxu2 %v11605_v39 }
 0x1c1   :  { %862 = vmatpush.msra.mxu1 %v11612_v15  ;;  %902 = vmatpush.msra.mxu3 %v11613_v59  ;;  %v11618_v15 = vld [vmem:[#allocation42_spill] sm:$0xff]  ;;  %v11619_v59 = vld [vmem:[#allocation40_spill] sm:$0xff] }
 0x1c2   :  { %1603 = vmatpush.msrb.mxu0 %v6597_v45  ;;  %1643 = vmatpush.msrb.mxu2 %v6603_v42 }
 0x1c3   :  { %863 = vmatpush.msra.mxu1 %v11614_v58  ;;  %903 = vmatpush.msra.mxu3 %v11615_v16  ;;  %v11621_v58 = vld [vmem:[#allocation60_spill] sm:$0xff]  ;;  %v11622_v16 = vld [vmem:[#allocation46_spill] sm:$0xff] }
 0x1c4   :  { %1604 = vmatpush.msrb.mxu0 %v6616_v29  ;;  %1644 = vmatpush.msrb.mxu2 %v6622_v26 }
 0x1c5   :  { %864 = vmatpush.msra.mxu1 %v11616_v0  ;;  %904 = vmatpush.msra.mxu3 %v11617_v6  ;;  %v11624_v0 = vld [vmem:[#allocation57_spill] sm:$0xff]  ;;  %v11625_v6 = vld [vmem:[#allocation59_spill] sm:$0xff] }
 0x1c6   :  { %1605 = vmatpush.msrb.mxu0 %v6630_v33  ;;  %1645 = vmatpush.msrb.mxu2 %v6636_v41 }
 0x1c7   :  { %865 = vmatpush.msra.mxu1 %v11618_v15  ;;  %905 = vmatpush.msra.mxu3 %v11619_v59  ;;  %v11626_v15 = vld [vmem:[#allocation48_spill] sm:$0xff]  ;;  %v11627_v59 = vld [vmem:[#allocation61_spill] sm:$0xff] }
 0x1c8   :  { %1606 = vmatpush.msrb.mxu0 %v6644_v60  ;;  %1646 = vmatpush.msrb.mxu2 %v6650_v37 }
 0x1c9   :  { %866 = vmatpush.msra.mxu1 %v11622_v16  ;;  %906 = vmatpush.msra.mxu3 %v11623_v18  ;;  %v11628_v18 = vld [vmem:[#allocation56_spill] sm:$0xff]  ;;  %v11629_v16 = vld [vmem:[#allocation34_spill] sm:$0xff] }
 0x1ca   :  { %1607 = vmatpush.msrb.mxu0 %v6658_v57  ;;  %1647 = vmatpush.msrb.mxu2 %v6664_v50 }
 0x1cb   :  { %867 = vmatpush.msra.mxu1 %v11624_v0  ;;  %907 = vmatpush.msra.mxu3 %v11625_v6  ;;  %v11630_v0 = vld [vmem:[#allocation68_spill] sm:$0xff]  ;;  %v11631_v6 = vld [vmem:[#allocation33_spill] sm:$0xff] }
 0x1cc   :  { %1608 = vmatpush.msrb.mxu0 %v6672_v25  ;;  %1648 = vmatpush.msrb.mxu2 %v6678_v49 }
 0x1cd   :  { %868 = vmatpush.msra.mxu1 %v11626_v15  ;;  %908 = vmatpush.msra.mxu3 %v11627_v59  ;;  %v11633_v15 = vld [vmem:[#allocation37_spill] sm:$0xff]  ;;  %v11634_v59 = vld [vmem:[#allocation36_spill] sm:$0xff] }
 0x1ce   :  { %1609 = vmatpush.msrb.mxu0 %v11620_v20  ;;  %1649 = vmatpush.msrb.mxu2 %v11621_v58 }
 0x1cf   :  { %869 = vmatpush.msra.mxu1 %v11628_v18  ;;  %909 = vmatpush.msra.mxu3 %v11629_v16  ;;  %v11636_v18 = vld [vmem:[#allocation41_spill] sm:$0xff]  ;;  %v11637_v16 = vld [vmem:[#allocation43_spill] sm:$0xff] }
 0x1d0   :  { %1610 = vmatpush.msrb.mxu0 %v6698_v5  ;;  %1650 = vmatpush.msrb.mxu2 %v6704_v4 }
 0x1d1   :  { %910 = vmatpush.msra.mxu3 %v11636_v18  ;;  %v11650_v18 = vld [vmem:[#allocation27_spill] sm:$0xff] }
 0x1d2   :  { %1611 = vmatpush.msrb.mxu0 %v11585_v47  ;;  %1651 = vmatpush.msrb.mxu2 %v11586_v24  ;;  %v11632_v47 = vld [vmem:[#allocation32_spill] sm:$0xff] }
 0x1d4   :  { %1612 = vmatpush.msrb.mxu0 %v6722_v36  ;;  %1652 = vmatpush.msrb.mxu2 %v6728_v38  ;;  %v11635_v38 = vld [vmem:[#allocation38_spill] sm:$0xff] }
 0x1d5   :  { %870 = vmatpush.msra.mxu1 %v11635_v38  ;;  %v11641_v38 = vld [vmem:[#allocation51_spill] sm:$0xff] }
 0x1d6   :  { %1613 = vmatpush.msrb.mxu0 %v6734_v3  ;;  %1653 = vmatpush.msrb.mxu2 %v11630_v0 }
 0x1d7   :  { %1614 = vmatmul.f32.vlgmr.msrb.gmra.mxu0 %v6876_v35  ;;  %1654 = vmatmul.f32.vlgmr.msrb.gmra.mxu2 %v6876_v35  ;;  %v11640_v35 = vld [vmem:[#allocation49_spill] sm:$0xff] }
 0x1d8   :  { %1745 = vmatpush.msra.mxu0 %v11631_v6  ;;  %1785 = vmatpush.msra.mxu2 %v11632_v47  ;;  %v11638_v6 = vld [vmem:[#allocation45_spill] sm:$0xff]  ;;  %v11639_v47 = vld [vmem:[#allocation47_spill] sm:$0xff] }
 0x1d9   :  { %871 = vmatpush.msra.mxu1 %v11637_v16  ;;  %911 = vmatpush.msra.mxu3 %v11638_v6  ;;  %v11651_v16 = vld [vmem:[#allocation30_spill] sm:$0xff]  ;;  %v7270_v6 = vld [vmem:[%s10742_s1 + $0x460] sm:$0xff] }
 0x1da   :  { %1746 = vmatpush.msra.mxu0 %v11633_v15  ;;  %1786 = vmatpush.msra.mxu2 %v11634_v59  ;;  %v11644_v15 = vld [vmem:[#allocation52_spill] sm:$0xff]  ;;  %v11645_v59 = vld [vmem:[#allocation55_spill] sm:$0xff] }
 0x1db   :  { %872 = vmatpush.msra.mxu1 %v11639_v47  ;;  %912 = vmatpush.msra.mxu3 %v11640_v35  ;;  %v7275_v47 = vld [vmem:[%s10742_s1 + $0x468] sm:$0xff]  ;;  %v7282_v35 = vld [vmem:[%s10742_s1 + $0x440] sm:$0xff] }
 0x1dc   :  { %1747 = vmatpush.msra.mxu0 %v6173_v62  ;;  %1787 = vmatpush.msra.mxu2 %v6179_v23  ;;  %v11642_v62 = vld [vmem:[#allocation53_spill] sm:$0xff]  ;;  %v11643_v23 = vld [vmem:[#allocation63_spill] sm:$0xff] }
 0x1dd   :  { %937 = vmatpush.msrb.mxu1 %v11641_v38  ;;  %977 = vmatpush.msrb.mxu3 %v11642_v62  ;;  %v7287_v38 = vld [vmem:[%s10742_s1 + $0x448] sm:$0xff]  ;;  %v7294_v62 = vld [vmem:[%s10742_s1 + $0x420] sm:$0xff] }
 0x1de   :  { %1748 = vmatpush.msra.mxu0 %v6197_v46  ;;  %1788 = vmatpush.msra.mxu2 %v6203_v27  ;;  %v11646_v46 = vld [vmem:[#allocation19_spill] sm:$0xff]  ;;  %v11647_v27 = vld [vmem:[#allocation22_spill] sm:$0xff] }
 0x1df   :  { %938 = vmatpush.msrb.mxu1 %v11645_v59  ;;  %978 = vmatpush.msrb.mxu3 %v11646_v46  ;;  %v7306_v59 = vld [vmem:[%s10742_s1 + $0x400] sm:$0xff]  ;;  %v7311_v46 = vld [vmem:[%s10742_s1 + $0x408] sm:$0xff] }
 0x1e0   :  { %1749 = vmatpush.msra.mxu0 %v6221_v31  ;;  %1789 = vmatpush.msra.mxu2 %v6227_v32  ;;  %v11648_v31 = vld [vmem:[#allocation23_spill] sm:$0xff]  ;;  %v11649_v32 = vld [vmem:[#allocation26_spill] sm:$0xff] }
 0x1e1   :  { %939 = vmatpush.msrb.mxu1 %v11647_v27  ;;  %979 = vmatpush.msrb.mxu3 %v11648_v31  ;;  %v11681_v27 = vld [vmem:[#allocation8_spill] sm:$0xff] }
 0x1e2   :  { %1750 = vmatpush.msra.mxu0 %v11643_v23  ;;  %1790 = vmatpush.msra.mxu2 %v11644_v15  ;;  %v7299_v23 = vld [vmem:[%s10742_s1 + $0x428] sm:$0xff]  ;;  %v627_v15 = vpop.f32.mrf.mxu0 }
 0x1e3   :  { %940 = vmatpush.msrb.mxu1 %v11649_v32  ;;  %980 = vmatpush.msrb.mxu3 %v11650_v18  ;;  %v628_v31 = vadd.f32 %v627_v15, %v11681_v27  ;;  %v7319_v32 = vld [vmem:[%s10742_s1 + $0x5f0] sm:$0xff]  ;;  %v7324_v18 = vld [vmem:[%s10742_s1 + $0x5f8] sm:$0xff] }
 0x1e4   :  { %1751 = vmatpush.msra.mxu0 %v6269_v43  ;;  %1791 = vmatpush.msra.mxu2 %v6275_v44  ;;  %v11652_v43 = vld [vmem:[#allocation31_spill] sm:$0xff] }
 0x1e5   :  { %941 = vmatpush.msrb.mxu1 %v11651_v16  ;;  %981 = vmatpush.msrb.mxu3 %v11652_v43  ;;  %v11653_v44 = vld [vmem:[#allocation35_spill] sm:$0xff]  ;;  %v667_v16 = vpop.f32.mrf.mxu2  ;;  %v11682_v43 = vld [vmem:[#allocation14_spill] sm:$0xff] }
 0x1e6   :  { %1752 = vmatpush.msra.mxu0 %v6293_v51  ;;  %1792 = vmatpush.msra.mxu2 %v6299_v52  ;;  %v11654_v51 = vld [vmem:[#allocation39_spill] sm:$0xff]  ;;  %v11655_v52 = vld [vmem:[#allocation78_spill] sm:$0xff] }
 0x1e7   :  { %942 = vmatpush.msrb.mxu1 %v11653_v44  ;;  %982 = vmatpush.msrb.mxu3 %v11654_v51  ;;  %v7333_v51 = vld [vmem:[%s10742_s1 + $0x5d0] sm:$0xff] }
 0x1e8   :  { %1753 = vmatpush.msra.mxu0 %v6317_v8  ;;  %1793 = vmatpush.msra.mxu2 %v6323_v9  ;;  %v11656_v8 = vld [vmem:[#allocation79_spill] sm:$0xff]  ;;  %v6991_v9 = vld [vmem:[%s10742_s1 + $0x310] sm:$0xff] }
 0x1e9   :  { %943 = vmatpush.msrb.mxu1 %v11655_v52  ;;  %983 = vmatpush.msrb.mxu3 %v11656_v8  ;;  %11657 = vst [vmem:[#allocation76_spill] sm:$0xff] %v6991_v9  ;;  %v7338_v52 = vld [vmem:[%s10742_s1 + $0x5d8] sm:$0xff] }
 0x1ea   :  { %1754 = vmatpush.msra.mxu0 %v6341_v14  ;;  %1794 = vmatpush.msra.mxu2 %v6347_v17  ;;  %v11658_v14 = vld [vmem:[#allocation50_spill] sm:$0xff]  ;;  %v7000_v17 = vld [vmem:[%s10742_s1 + $0x2f0] sm:$0xff] }
 0x1eb   :  { %944 = vmatpush.msrb.mxu1 %v6991_v9  ;;  %984 = vmatpush.msrb.mxu3 %v11658_v14  ;;  %11659 = vst [vmem:[#allocation74_spill] sm:$0xff] %v7000_v17  ;;  %v7345_v14 = vld [vmem:[%s10742_s1 + $0x5b0] sm:$0xff] }
 0x1ec   :  { %1755 = vmatpush.msra.mxu0 %v6365_v53  ;;  %1795 = vmatpush.msra.mxu2 %v6371_v61  ;;  %v11660_v53 = vld [vmem:[#allocation54_spill] sm:$0xff]  ;;  %v7009_v61 = vld [vmem:[%s10742_s1 + $0x2d0] sm:$0xff] }
 0x1ed   :  { %945 = vmatpush.msrb.mxu1 %v7000_v17  ;;  %985 = vmatpush.msrb.mxu3 %v11660_v53  ;;  %11661 = vst [vmem:[#allocation64_spill] sm:$0xff] %v7009_v61  ;;  %v7350_v53 = vld [vmem:[%s10742_s1 + $0x5b8] sm:$0xff] }
 0x1ee   :  { %1756 = vmatpush.msra.mxu0 %v6389_v10  ;;  %1796 = vmatpush.msra.mxu2 %v6395_v11  ;;  %v7058_v10 = vld [vmem:[%s10742_s1 + $0x278] sm:$0xff]  ;;  %v7080_v11 = vld [vmem:[%s10742_s1 + $0x230] sm:$0xff] }
 0x1ef   :  { %946 = vmatpush.msrb.mxu1 %v7009_v61  ;;  %11668 = vst [vmem:[#allocation71_spill] sm:$0xff] %v7058_v10  ;;  %v7466_v61 = vld [vmem:[%s10742_s1 + $0x498] sm:$0xff] }
 0x1f0   :  { %1757 = vmatpush.msra.mxu0 %v6413_v63  ;;  %1797 = vmatpush.msra.mxu2 %v6419_v22  ;;  %v11662_v22 = vld [vmem:[#allocation58_spill] sm:$0xff]  ;;  %11671 = vst [vmem:[#allocation5_spill] sm:$0xff] %v7080_v11 }
 0x1f1   :  { %986 = vmatpush.msrb.mxu3 %v11662_v22  ;;  %v7018_v63 = vld [vmem:[%s10743_s0 + $0x38] sm:$0xff]  ;;  %11696 = vst [vmem:[#allocation42_spill] sm:$0xff] %v7466_v61 }
 0x1f2   :  { %1758 = vmatpush.msra.mxu0 %v6437_v1  ;;  %1798 = vmatpush.msra.mxu2 %v6443_v13  ;;  %v7023_v13 = vld [vmem:[%s10742_s1 + $0x2b0] sm:$0xff]  ;;  %v11664_v1 = vld [vmem:[#allocation62_spill] sm:$0xff] }
 0x1f3   :  { %11663 = vst [vmem:[#allocation11_spill] sm:$0xff] %v7023_v13  ;;  %947 = vmatpush.msrb.mxu1 %v7023_v13  ;;  %987 = vmatpush.msrb.mxu3 %v11664_v1  ;;  %v707_v13 = vpop.f32.mrf.mxu0 }
 0x1f4   :  { %1759 = vmatpush.msra.mxu0 %v6461_v12  ;;  %1799 = vmatpush.msra.mxu2 %v6467_v56  ;;  %v7038_v56 = vld [vmem:[%s10742_s1 + $0x290] sm:$0xff] }
 0x1f5   :  { %11665 = vst [vmem:[#allocation65_spill] sm:$0xff] %v7038_v56  ;;  %948 = vmatpush.msrb.mxu1 %v7038_v56  ;;  %v7052_v12 = vld [vmem:[%s10742_s1 + $0x270] sm:$0xff] }
 0x1f6   :  { %1760 = vmatpush.msra.mxu0 %v6490_v48  ;;  %1800 = vmatpush.msra.mxu2 %v11593_v2  ;;  %v7044_v48 = vld [vmem:[%s10742_s1 + $0x298] sm:$0xff]  ;;  %11667 = vst [vmem:[#allocation69_spill] sm:$0xff] %v7052_v12 }
 0x1f7   :  { %1761 = vmatmul.f32.vlgmr.msra.gmra.mxu0 %v7018_v63  ;;  %1801 = vmatmul.f32.vlgmr.msra.gmra.mxu2 %v7018_v63  ;;  %11666 = vst [vmem:[#allocation67_spill] sm:$0xff] %v7044_v48  ;;  %v7086_v2 = vld [vmem:[%s10742_s1 + $0x238] sm:$0xff] }
 0x1f8   :  { %1825 = vmatpush.msrb.mxu0 %v11594_v7  ;;  %1865 = vmatpush.msrb.mxu2 %v11595_v34  ;;  %11672 = vst [vmem:[#allocation4_spill] sm:$0xff] %v7086_v2  ;;  %v7094_v7 = vld [vmem:[%s10742_s1 + $0x210] sm:$0xff]  ;;  %v7100_v34 = vld [vmem:[%s10742_s1 + $0x218] sm:$0xff] }
 0x1f9   :  { %988 = vmatpush.msrb.mxu3 %v7044_v48  ;;  %949 = vmatpush.msrb.mxu1 %v7052_v12  ;;  %11673 = vst [vmem:[#allocation18_spill] sm:$0xff] %v7094_v7 }
 0x1fa   :  { %1826 = vmatpush.msrb.mxu0 %v11596_v40  ;;  %1866 = vmatpush.msrb.mxu2 %v11597_v55  ;;  %11674 = vst [vmem:[#allocation80_spill] sm:$0xff] %v7100_v34  ;;  %v7222_v40 = vld [vmem:[%s10742_s1 + $0x4e0] sm:$0xff]  ;;  %v7227_v55 = vld [vmem:[%s10742_s1 + $0x4e8] sm:$0xff] }
 0x1fb   :  { %989 = vmatpush.msrb.mxu3 %v7058_v10  ;;  %v7439_v10 = vld [vmem:[%s10742_s1 + $0x4d8] sm:$0xff] }
 0x1fc   :  { %1827 = vmatpush.msrb.mxu0 %v6540_v30  ;;  %1867 = vmatpush.msrb.mxu2 %v6546_v28  ;;  %v7066_v28 = vld [vmem:[%s10742_s1 + $0x250] sm:$0xff]  ;;  %v7072_v30 = vld [vmem:[%s10742_s1 + $0x258] sm:$0xff]  ;;  %11692 = vst [vmem:[#allocation25_spill] sm:$0xff] %v7439_v10 }
 0x1fd   :  { %11669 = vst [vmem:[#allocation77_spill] sm:$0xff] %v7066_v28  ;;  %950 = vmatpush.msrb.mxu1 %v7066_v28  ;;  %990 = vmatpush.msrb.mxu3 %v7072_v30  ;;  %v7434_v28 = vld [vmem:[%s10742_s1 + $0x4d0] sm:$0xff] }
 0x1fe   :  { %1828 = vmatpush.msrb.mxu0 %v11602_v54  ;;  %1868 = vmatpush.msrb.mxu2 %v11603_v21  ;;  %11670 = vst [vmem:[#allocation15_spill] sm:$0xff] %v7072_v30  ;;  %v7234_v54 = vld [vmem:[%s10742_s1 + $0x4c0] sm:$0xff]  ;;  %v7239_v21 = vld [vmem:[%s10742_s1 + $0x4c8] sm:$0xff]  ;;  %v7414_v30 = vld [vmem:[%s10742_s1 + $0x518] sm:$0xff] }
 0x1ff   :  { %951 = vmatpush.msrb.mxu1 %v7080_v11  ;;  %991 = vmatpush.msrb.mxu3 %v7086_v2  ;;  %v7409_v11 = vld [vmem:[%s10742_s1 + $0x510] sm:$0xff]  ;;  %11688 = vst [vmem:[#allocation17_spill] sm:$0xff] %v7414_v30 }
 0x200   :  { %1829 = vmatpush.msrb.mxu0 %v11604_v19  ;;  %1869 = vmatpush.msrb.mxu2 %v11605_v39  ;;  %v7246_v19 = vld [vmem:[%s10742_s1 + $0x4a0] sm:$0xff]  ;;  %v7251_v39 = vld [vmem:[%s10742_s1 + $0x4a8] sm:$0xff]  ;;  %11687 = vst [vmem:[#allocation12_spill] sm:$0xff] %v7409_v11 }
 0x201   :  { %952 = vmatpush.msrb.mxu1 %v7094_v7  ;;  %992 = vmatpush.msrb.mxu3 %v7100_v34  ;;  %11691 = vst [vmem:[#allocation20_spill] sm:$0xff] %v7434_v28 }
 0x202   :  { %1830 = vmatpush.msrb.mxu0 %v6597_v45  ;;  %1870 = vmatpush.msrb.mxu2 %v6603_v42  ;;  %v7129_v42 = vld [vmem:[%s10742_s1 + $0x5e8] sm:$0xff] }
 0x203   :  { %v7141_v45 = vld [vmem:[%s10742_s1 + $0x5c8] sm:$0xff] }
 0x204   :  { %1831 = vmatpush.msrb.mxu0 %v6616_v29  ;;  %1871 = vmatpush.msrb.mxu2 %v6622_v26  ;;  %v11676_v26 = vld [vmem:[#allocation73_spill] sm:$0xff]  ;;  %v7124_v29 = vld [vmem:[%s10742_s1 + $0x5e0] sm:$0xff] }
 0x205   :  { %11677 = vst [vmem:[#allocation81_spill] sm:$0xff] %v7124_v29 }
 0x206   :  { %1832 = vmatpush.msrb.mxu0 %v6630_v33  ;;  %1872 = vmatpush.msrb.mxu2 %v6636_v41  ;;  %v11675_v41 = vld [vmem:[#allocation70_spill] sm:$0xff]  ;;  %v7162_v33 = vld [vmem:[%s10742_s1 + $0x580] sm:$0xff] }
 0x208   :  { %1833 = vmatpush.msrb.mxu0 %v6644_v60  ;;  %1873 = vmatpush.msrb.mxu2 %v6650_v37  ;;  %v7167_v60 = vld [vmem:[%s10742_s1 + $0x588] sm:$0xff]  ;;  %v7174_v37 = vld [vmem:[%s10742_s1 + $0x560] sm:$0xff] }
 0x20a   :  { %1834 = vmatpush.msrb.mxu0 %v6658_v57  ;;  %1874 = vmatpush.msrb.mxu2 %v6664_v50  ;;  %v7179_v57 = vld [vmem:[%s10742_s1 + $0x568] sm:$0xff]  ;;  %v7186_v50 = vld [vmem:[%s10742_s1 + $0x540] sm:$0xff] }
 0x20c   :  { %1835 = vmatpush.msrb.mxu0 %v6672_v25  ;;  %1875 = vmatpush.msrb.mxu2 %v6678_v49  ;;  %v7191_v25 = vld [vmem:[%s10742_s1 + $0x548] sm:$0xff]  ;;  %v7198_v49 = vld [vmem:[%s10742_s1 + $0x520] sm:$0xff] }
 0x20e   :  { %1836 = vmatpush.msrb.mxu0 %v11620_v20  ;;  %1876 = vmatpush.msrb.mxu2 %v11621_v58  ;;  %v7215_v20 = vld [vmem:[%s10742_s1 + $0x508] sm:$0xff]  ;;  %v7258_v58 = vld [vmem:[%s10742_s1 + $0x480] sm:$0xff] }
 0x210   :  { %1837 = vmatpush.msrb.mxu0 %v6698_v5  ;;  %1877 = vmatpush.msrb.mxu2 %v6704_v4  ;;  %v7203_v5 = vld [vmem:[%s10742_s1 + $0x528] sm:$0xff]  ;;  %v7210_v4 = vld [vmem:[%s10742_s1 + $0x500] sm:$0xff] }
 0x211   :  { %11679 = vst [vmem:[#allocation83_spill] sm:$0xff] %v7203_v5 }
 0x212   :  { %1838 = vmatpush.msrb.mxu0 %v11675_v41  ;;  %1878 = vmatpush.msrb.mxu2 %v11586_v24  ;;  %v7153_v24 = vld [vmem:[%s10742_s1 + $0x5a8] sm:$0xff]  ;;  %11680 = vst [vmem:[#allocation7_spill] sm:$0xff] %v7210_v4  ;;  %v7358_v41 = vld [vmem:[%s10742_s1 + $0x590] sm:$0xff] }
 0x213   :  { %11678 = vst [vmem:[#allocation82_spill] sm:$0xff] %v7153_v24 }
 0x214   :  { %1839 = vmatpush.msrb.mxu0 %v6722_v36  ;;  %1879 = vmatpush.msrb.mxu2 %v11676_v26  ;;  %v7136_v36 = vld [vmem:[%s10742_s1 + $0x5c0] sm:$0xff]  ;;  %v7363_v26 = vld [vmem:[%s10742_s1 + $0x598] sm:$0xff] }
 0x216   :  { %1840 = vmatpush.msrb.mxu0 %v6734_v3  ;;  %1880 = vmatpush.msrb.mxu2 %v11630_v0  ;;  %v7148_v3 = vld [vmem:[%s10742_s1 + $0x5a0] sm:$0xff]  ;;  %v7263_v0 = vld [vmem:[%s10742_s1 + $0x488] sm:$0xff] }
 0x217   :  { %1841 = vmatmul.f32.vlgmr.msrb.gmra.mxu0 %v7018_v63  ;;  %1881 = vmatmul.f32.vlgmr.msrb.gmra.mxu2 %v7018_v63  ;;  %v11683_v63 = vld [vmem:[#allocation3_spill] sm:$0xff] }
 0x218   :  { %2111 = vmatpush.msra.mxu0 %v7124_v29  ;;  %2151 = vmatpush.msra.mxu2 %v7129_v42  ;;  %v668_v1 = vadd.f32 %v667_v16, %v11683_v63  ;;  %v7375_v16 = vld [vmem:[%s10742_s1 + $0x578] sm:$0xff]  ;;  %v747_v63 = vpop.f32.mrf.mxu2 }
 0x21a   :  { %2112 = vmatpush.msra.mxu0 %v7136_v36  ;;  %2152 = vmatpush.msra.mxu2 %v7141_v45 }
 0x21c   :  { %2113 = vmatpush.msra.mxu0 %v7148_v3  ;;  %2153 = vmatpush.msra.mxu2 %v7153_v24 }
 0x21e   :  { %2114 = vmatpush.msra.mxu0 %v7162_v33  ;;  %2154 = vmatpush.msra.mxu2 %v7167_v60 }
 0x220   :  { %2115 = vmatpush.msra.mxu0 %v7174_v37  ;;  %2155 = vmatpush.msra.mxu2 %v7179_v57 }
 0x222   :  { %2116 = vmatpush.msra.mxu0 %v7186_v50  ;;  %2156 = vmatpush.msra.mxu2 %v7191_v25 }
 0x224   :  { %2117 = vmatpush.msra.mxu0 %v7198_v49  ;;  %2157 = vmatpush.msra.mxu2 %v7203_v5 }
 0x226   :  { %2118 = vmatpush.msra.mxu0 %v7210_v4  ;;  %2158 = vmatpush.msra.mxu2 %v7215_v20 }
 0x228   :  { %2119 = vmatpush.msra.mxu0 %v7222_v40  ;;  %2159 = vmatpush.msra.mxu2 %v7227_v55 }
 0x22a   :  { %2120 = vmatpush.msra.mxu0 %v7234_v54  ;;  %2160 = vmatpush.msra.mxu2 %v7239_v21 }
 0x22c   :  { %2121 = vmatpush.msra.mxu0 %v7246_v19  ;;  %2161 = vmatpush.msra.mxu2 %v7251_v39 }
 0x22e   :  { %2122 = vmatpush.msra.mxu0 %v7258_v58  ;;  %2162 = vmatpush.msra.mxu2 %v7263_v0  ;;  %v647_v44 = vpop.f32.mrf.mxu1 }
 0x22f   :  { %v648_v8 = vadd.f32 %v647_v44, %v628_v31  ;;  %v7370_v31 = vld [vmem:[%s10742_s1 + $0x570] sm:$0xff] }
 0x230   :  { %2123 = vmatpush.msra.mxu0 %v7270_v6  ;;  %2163 = vmatpush.msra.mxu2 %v7275_v47 }
 0x231   :  { %v3971_v22 = vmul.f32 -1.442695, %v648_v8  ;;  %v7382_v8 = vld [vmem:[%s10742_s1 + $0x550] sm:$0xff] }
 0x232   :  { %2124 = vmatpush.msra.mxu0 %v7282_v35  ;;  %2164 = vmatpush.msra.mxu2 %v7287_v38 }
 0x233   :  { %4184 = vpow2.f32 %v3971_v22  ;;  %v7387_v22 = vld [vmem:[%s10742_s1 + $0x558] sm:$0xff] }
 0x234   :  { %2125 = vmatpush.msra.mxu0 %v7294_v62  ;;  %2165 = vmatpush.msra.mxu2 %v7299_v23  ;;  %v687_v15 = vpop.f32.mrf.mxu3 }
 0x235   :  { %v688_v44 = vadd.f32 %v687_v15, %v668_v1  ;;  %v7394_v1 = vld [vmem:[%s10742_s1 + $0x530] sm:$0xff]  ;;  %v7399_v15 = vld [vmem:[%s10742_s1 + $0x538] sm:$0xff] }
 0x236   :  { %2126 = vmatpush.msra.mxu0 %v7306_v59  ;;  %2166 = vmatpush.msra.mxu2 %v7311_v46  ;;  %11684 = vst [vmem:[#allocation6_spill] sm:$0xff] %v7394_v1 }
 0x237   :  { %2127 = vmatmul.f32.vlgmr.msra.gmra.mxu0 %v11682_v43  ;;  %2167 = vmatmul.f32.vlgmr.msra.gmra.mxu2 %v11682_v43  ;;  %v3972_v27 = vmul.f32 -1.442695, %v688_v44  ;;  %11685 = vst [vmem:[#allocation13_spill] sm:$0xff] %v7399_v15  ;;  %v11686_v44 = vld [vmem:[#allocation9_spill] sm:$0xff] }
 0x238   :  { %2191 = vmatpush.msrb.mxu0 %v7319_v32  ;;  %2231 = vmatpush.msrb.mxu2 %v7324_v18  ;;  %v748_v7 = vadd.f32 %v747_v63, %v11686_v44  ;;  %v7427_v63 = vld [vmem:[%s10742_s1 + $0x4f8] sm:$0xff] }
 0x239   :  { %v4185_v34 = vpop.eup %4184  ;;  %4186 = vpow2.f32 %v3972_v27  ;;  %11690 = vst [vmem:[#allocation21_spill] sm:$0xff] %v7427_v63 }
 0x23a   :  { %2192 = vmatpush.msrb.mxu0 %v7333_v51  ;;  %2232 = vmatpush.msrb.mxu2 %v7338_v52  ;;  %v7404_v2 = vadd.f32 1.0, %v4185_v34  ;;  %v7422_v34 = vld [vmem:[%s10742_s1 + $0x4f0] sm:$0xff] }
 0x23b   :  { %11689 = vst [vmem:[#allocation16_spill] sm:$0xff] %v7422_v34 }
 0x23c   :  { %2193 = vmatpush.msrb.mxu0 %v7345_v14  ;;  %2233 = vmatpush.msrb.mxu2 %v7350_v53  ;;  %4188 = vrcp.f32 %v7404_v2  ;;  %v767_v27 = vpop.f32.mrf.mxu3  ;;  %vm779_vm9 = vweird.f32 %v7404_v2 }
 0x23d   :  { %v768_v44 = vadd.f32 %v767_v27, %v748_v7  ;;  %v7448_v7 = vld [vmem:[%s10742_s1 + $0x4b0] sm:$0xff]  ;;  %v7453_v27 = vld [vmem:[%s10742_s1 + $0x4b8] sm:$0xff] }
 0x23e   :  { %2194 = vmatpush.msrb.mxu0 %v7358_v41  ;;  %2234 = vmatpush.msrb.mxu2 %v7363_v26  ;;  %11693 = vst [vmem:[#allocation24_spill] sm:$0xff] %v7448_v7 }
 0x23f   :  { %v4187_v12 = vpop.eup %4186  ;;  %v3973_v48 = vmul.f32 -1.442695, %v768_v44  ;;  %11694 = vst [vmem:[#allocation29_spill] sm:$0xff] %v7453_v27 }
 0x240   :  { %2195 = vmatpush.msrb.mxu0 %v7370_v31  ;;  %2235 = vmatpush.msrb.mxu2 %v7375_v16  ;;  %v7443_v56 = vadd.f32 1.0, %v4187_v12  ;;  %v7461_v12 = vld [vmem:[%s10742_s1 + $0x490] sm:$0xff] }
 0x241   :  { %4190 = vpow2.f32 %v3973_v48  ;;  %11695 = vst [vmem:[#allocation28_spill] sm:$0xff] %v7461_v12  ;;  %v11697_v48 = vld [vmem:[#allocation10_spill] sm:$0xff] }
 0x242   :  { %2196 = vmatpush.msrb.mxu0 %v7382_v8  ;;  %2236 = vmatpush.msrb.mxu2 %v7387_v22  ;;  %v4189_v44 = vpop.eup %4188  ;;  %4192 = vrcp.f32 %v7443_v56  ;;  %v708_v9 = vadd.f32 %v707_v13, %v11697_v48  ;;  %v7487_v13 = vld [vmem:[%s10742_s1 + $0x450] sm:$0xff]  ;;  %v7492_v48 = vld [vmem:[%s10742_s1 + $0x458] sm:$0xff]  ;;  %vm798_vm12 = vweird.f32 %v7443_v56 }
 0x243   :  { %v775_v17 = vmul.f32 %v4189_v44, %v7404_v2  ;;  %11700 = vst [vmem:[#allocation60_spill] sm:$0xff] %v7487_v13  ;;  %vm780_vm8 = vweird.f32 %v4189_v44 }
 0x244   :  { %2197 = vmatpush.msrb.mxu0 %v7394_v1  ;;  %2237 = vmatpush.msrb.mxu2 %v7399_v15  ;;  %11701 = vst [vmem:[#allocation46_spill] sm:$0xff] %v7492_v48  ;;  %vm7528_vm10 = vmor %vm779_vm9, %vm780_vm8  ;;  %v802_v1 = vand.u32 2147483647, %v7443_v56 }
 0x246   :  { %2198 = vmatpush.msrb.mxu0 %v7409_v11  ;;  %2238 = vmatpush.msrb.mxu2 %v7414_v30  ;;  %v7506_v11 = vld [vmem:[%s10742_s1 + $0x438] sm:$0xff]  ;;  %vm803_vm15 = vcmp.eq.f32.partialorder %v802_v1, 8.507059e+37 }
 0x247   :  { %11702 = vst [vmem:[#allocation44_spill] sm:$0xff] %v7506_v11 }
 0x248   :  { %2199 = vmatpush.msrb.mxu0 %v7422_v34  ;;  %2239 = vmatpush.msrb.mxu2 %v7427_v63  ;;  %v776_v63 = vsub.f32 1.0, %v775_v17  ;;  %v727_v34 = vpop.f32.mrf.mxu1 }
 0x24a   :  { %2200 = vmatpush.msrb.mxu0 %v7434_v28  ;;  %2240 = vmatpush.msrb.mxu2 %v7439_v10  ;;  %v7475_v10 = vld [vmem:[%s10742_s1 + $0x470] sm:$0xff]  ;;  %v7480_v28 = vld [vmem:[%s10742_s1 + $0x478] sm:$0xff] }
 0x24b   :  { %11698 = vst [vmem:[#allocation40_spill] sm:$0xff] %v7475_v10 }
 0x24c   :  { %2201 = vmatpush.msrb.mxu0 %v7448_v7  ;;  %2241 = vmatpush.msrb.mxu2 %v7453_v27  ;;  %11699 = vst [vmem:[#allocation66_spill] sm:$0xff] %v7480_v28  ;;  %v4191_v27 = vpop.eup %4190  ;;  %v777_v7 = vmul.f32 %v4189_v44, %v776_v63 }
 0x24d   :  { %v4193_v17 = vpop.eup %4192  ;;  %v7496_v30 = vadd.f32 1.0, %v4191_v27  ;;  %v7521_v27 = vld [vmem:[%s10742_s1 + $0x418] sm:$0xff] }
 0x24e   :  { %2202 = vmatpush.msrb.mxu0 %v7461_v12  ;;  %2242 = vmatpush.msrb.mxu2 %v7466_v61  ;;  %v728_v12 = vadd.f32 %v727_v34, %v708_v9  ;;  %v7501_v61 = vld [vmem:[%s10742_s1 + $0x430] sm:$0xff]  ;;  %v794_v63 = vmul.f32 %v4193_v17, %v7443_v56  ;;  %v778_v15 = vadd.f32 %v4189_v44, %v777_v7  ;;  %v785_v9 = vand.u32 2147483648, %v7404_v2 }
 0x24f   :  { %4194 = vrcp.f32 %v7496_v30  ;;  %v7516_v34 = vld [vmem:[%s10742_s1 + $0x410] sm:$0xff]  ;;  %11703 = vst [vmem:[#allocation57_spill] sm:$0xff] %v7521_v27  ;;  %vm799_vm11 = vweird.f32 %v4193_v17  ;;  %vm818_vm1 = vweird.f32 %v7496_v30 }
 0x250   :  { %2203 = vmatpush.msrb.mxu0 %v7475_v10  ;;  %2243 = vmatpush.msrb.mxu2 %v7480_v28  ;;  %v795_v7 = vsub.f32 1.0, %v794_v63  ;;  %4196 = vtanh.f32 %v728_v12  ;;  %v782_v63 = vsel %vm7528_vm10, %v4189_v44, %v778_v15  ;;  %vm800_vm14 = vmor %vm798_vm12, %vm799_vm11 }
 0x252   :  { %2204 = vmatpush.msrb.mxu0 %v7487_v13  ;;  %2244 = vmatpush.msrb.mxu2 %v7492_v48  ;;  %v783_v13 = vand.u32 2147483647, %v7404_v2  ;;  %v804_v48 = vand.u32 2147483648, %v7443_v56  ;;  %v796_v10 = vmul.f32 %v4193_v17, %v795_v7  ;;  %v786_v2 = vor.u32 1.1754944e-38, %v785_v9 }
 0x254   :  { %2205 = vmatpush.msrb.mxu0 %v7501_v61  ;;  %2245 = vmatpush.msrb.mxu2 %v7506_v11  ;;  %vm784_vm13 = vcmp.eq.f32.partialorder %v783_v13, 8.507059e+37  ;;  %v797_v12 = vadd.f32 %v4193_v17, %v796_v10  ;;  %v805_v15 = vor.u32 1.1754944e-38, %v804_v48  ;;  %v11706_v13 = vld [vmem:[#allocation75_spill] sm:$0xff] }
 0x255   :  { %v4195_v28 = vpop.eup %4194  ;;  %v787_v44 = vsel %vm784_vm13, %v786_v2, %v782_v63  ;;  %v824_v63 = vand.u32 2147483648, %v7496_v30 }
 0x256   :  { %2206 = vmatpush.msrb.mxu0 %v7516_v34  ;;  %2246 = vmatpush.msrb.mxu2 %v7521_v27  ;;  %v801_v7 = vsel %vm800_vm14, %v4193_v17, %v797_v12  ;;  %v814_v9 = vmul.f32 %v4195_v28, %v7496_v30  ;;  %vm819_vm0 = vweird.f32 %v4195_v28 }
 0x257   :  { %2207 = vmatmul.f32.vlgmr.msrb.gmra.mxu0 %v11682_v43  ;;  %2247 = vmatmul.f32.vlgmr.msrb.gmra.mxu2 %v11682_v43  ;;  %v4197_v43 = vpop.eup %4196  ;;  %v806_v56 = vsel %vm803_vm15, %v805_v15, %v801_v7  ;;  %vm820_vm2 = vmor %vm818_vm1, %vm819_vm0  ;;  %v825_v2 = vor.u32 1.1754944e-38, %v824_v63  ;;  %v7589_v7 = vld [vmem:[%s10742_s1 + $0x3c0] sm:$0xff]  ;;  %v11718_v63 = vld [vmem:[#allocation72_spill] sm:$0xff] }
 0x258   :  { %2342 = vmatpush.msra.mxu0 %v7124_v29  ;;  %2382 = vmatpush.msra.mxu2 %v7129_v42  ;;  %v828_v10 = vmul.f32 %v806_v56, %v11706_v13  ;;  %v829_v27 = vmul.f32 %v4197_v43, %v787_v44  ;;  %v815_v29 = vsub.f32 1.0, %v814_v9  ;;  %11710 = vst [vmem:[#allocation56_spill] sm:$0xff] %v7589_v7  ;;  %v7595_v9 = vld [vmem:[%s10742_s1 + $0x3c8] sm:$0xff]  ;;  %v7603_v43 = vld [vmem:[%s10742_s1 + $0x3a0] sm:$0xff] }
 0x259   :  { %11711 = vst [vmem:[#allocation34_spill] sm:$0xff] %v7595_v9  ;;  %v7609_v56 = vld [vmem:[%s10742_s1 + $0x3a8] sm:$0xff]  ;;  %v7621_v13 = vld [vmem:[%s10742_s1 + $0x380] sm:$0xff] }
 0x25a   :  { %2343 = vmatpush.msra.mxu0 %v7136_v36  ;;  %2383 = vmatpush.msra.mxu2 %v7141_v45  ;;  %v7548_v48 = vadd.f32 %v829_v27, %v828_v10  ;;  %v816_v17 = vmul.f32 %v4195_v28, %v815_v29  ;;  %v822_v27 = vand.u32 2147483647, %v7496_v30  ;;  %v7575_v30 = vld [vmem:[%s10742_s1 + $0x3e0] sm:$0xff]  ;;  %11712 = vst [vmem:[#allocation68_spill] sm:$0xff] %v7603_v43  ;;  %v7627_v10 = vld [vmem:[%s10742_s1 + $0x388] sm:$0xff] }
 0x25b   :  { %11708 = vst [vmem:[#allocation48_spill] sm:$0xff] %v7575_v30 }
 0x25c   :  { %2344 = vmatpush.msra.mxu0 %v7148_v3  ;;  %2384 = vmatpush.msra.mxu2 %v7153_v24  ;;  %11707 = vst [vmem:[#allocation59_spill] sm:$0xff] %v7548_v48  ;;  %4198 = vtanh.f32 %v7548_v48  ;;  %v817_v1 = vadd.f32 %v4195_v28, %v816_v17  ;;  %vm823_vm3 = vcmp.eq.f32.partialorder %v822_v27, 8.507059e+37  ;;  %v7635_v17 = vld [vmem:[%s10742_s1 + $0x360] sm:$0xff]  ;;  %v11755_v48 = vld [vmem:[#allocation40_spill] sm:$0xff] }
 0x25d   :  { %11713 = vst [vmem:[#allocation33_spill] sm:$0xff] %v7609_v56  ;;  %v7653_v27 = vld [vmem:[%s10742_s1 + $0x340] sm:$0xff] }
 0x25e   :  { %2345 = vmatpush.msra.mxu0 %v7162_v33  ;;  %2385 = vmatpush.msra.mxu2 %v7167_v60  ;;  %v821_v29 = vsel %vm820_vm2, %v4195_v28, %v817_v1  ;;  %v7581_v28 = vld [vmem:[%s10742_s1 + $0x3e8] sm:$0xff]  ;;  %11714 = vst [vmem:[#allocation32_spill] sm:$0xff] %v7621_v13 }
 0x25f   :  { %v826_v15 = vsel %vm823_vm3, %v825_v2, %v821_v29  ;;  %11709 = vst [vmem:[#allocation61_spill] sm:$0xff] %v7581_v28  ;;  %v7641_v1 = vld [vmem:[%s10742_s1 + $0x368] sm:$0xff]  ;;  %v7667_v2 = vld [vmem:[%s10742_s1 + $0x320] sm:$0xff] }
 0x260   :  { %2346 = vmatpush.msra.mxu0 %v7174_v37  ;;  %2386 = vmatpush.msra.mxu2 %v7179_v57  ;;  %11715 = vst [vmem:[#allocation37_spill] sm:$0xff] %v7627_v10  ;;  %v7659_v29 = vld [vmem:[%s10742_s1 + $0x348] sm:$0xff] }
 0x261   :  { %11716 = vst [vmem:[#allocation36_spill] sm:$0xff] %v7635_v17 }
 0x262   :  { %2347 = vmatpush.msra.mxu0 %v7186_v50  ;;  %2387 = vmatpush.msra.mxu2 %v7191_v25  ;;  %v4199_v12 = vpop.eup %4198  ;;  %11717 = vst [vmem:[#allocation38_spill] sm:$0xff] %v7641_v1 }
 0x263   :  { %v7564_v44 = vmul.f32 %v4199_v12, %v826_v15  ;;  %11719 = vst [vmem:[#allocation41_spill] sm:$0xff] %v7653_v27  ;;  %v7673_v12 = vld [vmem:[%s10742_s1 + $0x328] sm:$0xff]  ;;  %v7681_v15 = vld [vmem:[%s10742_s1 + $0x300] sm:$0xff] }
 0x264   :  { %2348 = vmatpush.msra.mxu0 %v7198_v49  ;;  %2388 = vmatpush.msra.mxu2 %v7203_v5  ;;  %11720 = vst [vmem:[#allocation43_spill] sm:$0xff] %v7659_v29 }
 0x265   :  { %873 = vmatmul.f32.vlgmr.msra.gmra.mxu1 %v7564_v44  ;;  %913 = vmatmul.f32.vlgmr.msra.gmra.mxu3 %v7564_v44  ;;  %11721 = vst [vmem:[#allocation45_spill] sm:$0xff] %v7667_v2 }
 0x266   :  { %2349 = vmatpush.msra.mxu0 %v7210_v4  ;;  %2389 = vmatpush.msra.mxu2 %v7215_v20  ;;  %11722 = vst [vmem:[#allocation47_spill] sm:$0xff] %v7673_v12 }
 0x267   :  { %1084 = vmatpush.msra.mxu1 %v7575_v30  ;;  %1124 = vmatpush.msra.mxu3 %v7581_v28  ;;  %11723 = vst [vmem:[#allocation49_spill] sm:$0xff] %v7681_v15  ;;  %v11751_v28 = vld [vmem:[#allocation28_spill] sm:$0xff]  ;;  %v7807_v30 = vld [vmem:[%s10742_s1 + $0x3f0] sm:$0xff] }
 0x268   :  { %2350 = vmatpush.msra.mxu0 %v7222_v40  ;;  %2390 = vmatpush.msra.mxu2 %v7227_v55  ;;  %11753 = vst [vmem:[#allocation54_spill] sm:$0xff] %v7807_v30 }
 0x269   :  { %1085 = vmatpush.msra.mxu1 %v7589_v7  ;;  %1125 = vmatpush.msra.mxu3 %v7595_v9  ;;  %v11747_v9 = vld [vmem:[#allocation24_spill] sm:$0xff]  ;;  %v7793_v7 = vld [vmem:[%s10742_s1 + $0x200] sm:$0xff] }
 0x26a   :  { %2351 = vmatpush.msra.mxu0 %v7234_v54  ;;  %2391 = vmatpush.msra.mxu2 %v7239_v21  ;;  %11749 = vst [vmem:[#allocation79_spill] sm:$0xff] %v7793_v7 }
 0x26b   :  { %1086 = vmatpush.msra.mxu1 %v7603_v43  ;;  %1126 = vmatpush.msra.mxu3 %v7609_v56  ;;  %v11743_v56 = vld [vmem:[#allocation20_spill] sm:$0xff]  ;;  %v7779_v43 = vld [vmem:[%s10742_s1 + $0x220] sm:$0xff] }
 0x26c   :  { %2352 = vmatpush.msra.mxu0 %v7246_v19  ;;  %2392 = vmatpush.msra.mxu2 %v7251_v39  ;;  %11745 = vst [vmem:[#allocation39_spill] sm:$0xff] %v7779_v43 }
 0x26d   :  { %953 = vmatmul.f32.vlgmr.msrb.gmra.mxu1 %v7564_v44  ;;  %993 = vmatmul.f32.vlgmr.msrb.gmra.mxu3 %v7564_v44 }
 0x26e   :  { %2353 = vmatpush.msra.mxu0 %v7258_v58  ;;  %2393 = vmatpush.msra.mxu2 %v7263_v0 }
 0x26f   :  { %1087 = vmatpush.msra.mxu1 %v7621_v13  ;;  %1127 = vmatpush.msra.mxu3 %v7627_v10  ;;  %v11739_v10 = vld [vmem:[#allocation16_spill] sm:$0xff]  ;;  %v7765_v13 = vld [vmem:[%s10742_s1 + $0x240] sm:$0xff] }
 0x270   :  { %2354 = vmatpush.msra.mxu0 %v7270_v6  ;;  %2394 = vmatpush.msra.mxu2 %v7275_v47  ;;  %11741 = vst [vmem:[#allocation31_spill] sm:$0xff] %v7765_v13 }
 0x271   :  { %1088 = vmatpush.msra.mxu1 %v7635_v17  ;;  %1128 = vmatpush.msra.mxu3 %v7641_v1  ;;  %v11735_v1 = vld [vmem:[#allocation12_spill] sm:$0xff]  ;;  %v7751_v17 = vld [vmem:[%s10742_s1 + $0x260] sm:$0xff] }
 0x272   :  { %2355 = vmatpush.msra.mxu0 %v7282_v35  ;;  %2395 = vmatpush.msra.mxu2 %v7287_v38  ;;  %11737 = vst [vmem:[#allocation27_spill] sm:$0xff] %v7751_v17 }
 0x273   :  { %1089 = vmatpush.msra.mxu1 %v7653_v27  ;;  %1129 = vmatpush.msra.mxu3 %v7659_v29  ;;  %v11731_v29 = vld [vmem:[#allocation6_spill] sm:$0xff]  ;;  %v7737_v27 = vld [vmem:[%s10742_s1 + $0x280] sm:$0xff] }
 0x274   :  { %2356 = vmatpush.msra.mxu0 %v7294_v62  ;;  %2396 = vmatpush.msra.mxu2 %v7299_v23  ;;  %11733 = vst [vmem:[#allocation23_spill] sm:$0xff] %v7737_v27 }
 0x275   :  { %1090 = vmatpush.msra.mxu1 %v7667_v2  ;;  %1130 = vmatpush.msra.mxu3 %v7673_v12  ;;  %v7687_v2 = vld [vmem:[%s10742_s1 + $0x308] sm:$0xff]  ;;  %v7695_v12 = vld [vmem:[%s10742_s1 + $0x2e0] sm:$0xff] }
 0x276   :  { %2357 = vmatpush.msra.mxu0 %v7306_v59  ;;  %2397 = vmatpush.msra.mxu2 %v7311_v46  ;;  %11724 = vst [vmem:[#allocation51_spill] sm:$0xff] %v7687_v2 }
 0x277   :  { %2358 = vmatmul.f32.vlgmr.msra.gmra.mxu0 %v11718_v63  ;;  %2398 = vmatmul.f32.vlgmr.msra.gmra.mxu2 %v11718_v63  ;;  %11725 = vst [vmem:[#allocation53_spill] sm:$0xff] %v7695_v12 }
 0x278   :  { %2422 = vmatpush.msrb.mxu0 %v7319_v32  ;;  %2462 = vmatpush.msrb.mxu2 %v7324_v18 }
 0x279   :  { %1091 = vmatpush.msra.mxu1 %v7681_v15  ;;  %1131 = vmatpush.msra.mxu3 %v7687_v2  ;;  %v7701_v15 = vld [vmem:[%s10742_s1 + $0x2e8] sm:$0xff]  ;;  %v7709_v2 = vld [vmem:[%s10742_s1 + $0x2c0] sm:$0xff] }
 0x27a   :  { %2423 = vmatpush.msrb.mxu0 %v7333_v51  ;;  %2463 = vmatpush.msrb.mxu2 %v7338_v52  ;;  %11726 = vst [vmem:[#allocation63_spill] sm:$0xff] %v7701_v15 }
 0x27b   :  { %1092 = vmatpush.msra.mxu1 %v7695_v12  ;;  %1132 = vmatpush.msra.mxu3 %v7701_v15  ;;  %11727 = vst [vmem:[#allocation52_spill] sm:$0xff] %v7709_v2  ;;  %v7715_v12 = vld [vmem:[%s10742_s1 + $0x2c8] sm:$0xff]  ;;  %v7723_v15 = vld [vmem:[%s10742_s1 + $0x2a0] sm:$0xff] }
 0x27c   :  { %2424 = vmatpush.msrb.mxu0 %v7345_v14  ;;  %2464 = vmatpush.msrb.mxu2 %v7350_v53  ;;  %11728 = vst [vmem:[#allocation55_spill] sm:$0xff] %v7715_v12 }
 0x27d   :  { %1093 = vmatpush.msra.mxu1 %v7709_v2  ;;  %1133 = vmatpush.msra.mxu3 %v7715_v12  ;;  %11729 = vst [vmem:[#allocation19_spill] sm:$0xff] %v7723_v15  ;;  %v7729_v2 = vld [vmem:[%s10742_s1 + $0x2a8] sm:$0xff]  ;;  %v11732_v12 = vld [vmem:[#allocation13_spill] sm:$0xff] }
 0x27e   :  { %2425 = vmatpush.msrb.mxu0 %v7358_v41  ;;  %2465 = vmatpush.msrb.mxu2 %v7363_v26  ;;  %11730 = vst [vmem:[#allocation22_spill] sm:$0xff] %v7729_v2 }
 0x27f   :  { %1094 = vmatpush.msra.mxu1 %v7723_v15  ;;  %1134 = vmatpush.msra.mxu3 %v7729_v2  ;;  %v7743_v15 = vld [vmem:[%s10742_s1 + $0x288] sm:$0xff]  ;;  %v11736_v2 = vld [vmem:[#allocation17_spill] sm:$0xff] }
 0x280   :  { %2426 = vmatpush.msrb.mxu0 %v7370_v31  ;;  %2466 = vmatpush.msrb.mxu2 %v7375_v16  ;;  %11734 = vst [vmem:[#allocation26_spill] sm:$0xff] %v7743_v15 }
 0x281   :  { %1095 = vmatpush.msra.mxu1 %v7737_v27  ;;  %1135 = vmatpush.msra.mxu3 %v7743_v15  ;;  %v7757_v27 = vld [vmem:[%s10742_s1 + $0x268] sm:$0xff]  ;;  %v11740_v15 = vld [vmem:[#allocation21_spill] sm:$0xff] }
 0x282   :  { %2427 = vmatpush.msrb.mxu0 %v7382_v8  ;;  %2467 = vmatpush.msrb.mxu2 %v7387_v22  ;;  %11738 = vst [vmem:[#allocation30_spill] sm:$0xff] %v7757_v27 }
 0x283   :  { %1096 = vmatpush.msra.mxu1 %v7751_v17  ;;  %1136 = vmatpush.msra.mxu3 %v7757_v27  ;;  %v7771_v17 = vld [vmem:[%s10742_s1 + $0x248] sm:$0xff]  ;;  %v11744_v27 = vld [vmem:[#allocation25_spill] sm:$0xff] }
 0x284   :  { %2428 = vmatpush.msrb.mxu0 %v11731_v29  ;;  %2468 = vmatpush.msrb.mxu2 %v11732_v12  ;;  %11742 = vst [vmem:[#allocation35_spill] sm:$0xff] %v7771_v17 }
 0x285   :  { %1097 = vmatpush.msra.mxu1 %v7765_v13  ;;  %1137 = vmatpush.msra.mxu3 %v7771_v17  ;;  %v7785_v13 = vld [vmem:[%s10742_s1 + $0x228] sm:$0xff]  ;;  %v11748_v17 = vld [vmem:[#allocation29_spill] sm:$0xff] }
 0x286   :  { %2429 = vmatpush.msrb.mxu0 %v11735_v1  ;;  %2469 = vmatpush.msrb.mxu2 %v11736_v2  ;;  %11746 = vst [vmem:[#allocation78_spill] sm:$0xff] %v7785_v13 }
 0x287   :  { %1098 = vmatpush.msra.mxu1 %v7779_v43  ;;  %1138 = vmatpush.msra.mxu3 %v7785_v13  ;;  %v7799_v43 = vld [vmem:[%s10742_s1 + $0x208] sm:$0xff]  ;;  %v11752_v13 = vld [vmem:[#allocation42_spill] sm:$0xff] }
 0x288   :  { %2430 = vmatpush.msrb.mxu0 %v11739_v10  ;;  %2470 = vmatpush.msrb.mxu2 %v11740_v15  ;;  %11750 = vst [vmem:[#allocation50_spill] sm:$0xff] %v7799_v43 }
 0x289   :  { %1099 = vmatpush.msra.mxu1 %v7793_v7  ;;  %1139 = vmatpush.msra.mxu3 %v7799_v43  ;;  %v7813_v7 = vld [vmem:[%s10742_s1 + $0x3f8] sm:$0xff] }
 0x28a   :  { %2431 = vmatpush.msrb.mxu0 %v11743_v56  ;;  %2471 = vmatpush.msrb.mxu2 %v11744_v27  ;;  %11754 = vst [vmem:[#allocation58_spill] sm:$0xff] %v7813_v7  ;;  %v11756_v43 = vld [vmem:[#allocation66_spill] sm:$0xff] }
 0x28b   :  { %1164 = vmatpush.msrb.mxu1 %v7807_v30  ;;  %1204 = vmatpush.msrb.mxu3 %v7813_v7  ;;  %v7827_v30 = vld [vmem:[%s10742_s1 + $0x3d8] sm:$0xff] }
 0x28c   :  { %2432 = vmatpush.msrb.mxu0 %v11747_v9  ;;  %2472 = vmatpush.msrb.mxu2 %v11748_v17  ;;  %11758 = vst [vmem:[#allocation70_spill] sm:$0xff] %v7827_v30  ;;  %v11760_v7 = vld [vmem:[#allocation46_spill] sm:$0xff] }
 0x28d   :  { %1205 = vmatpush.msrb.mxu3 %v7827_v30  ;;  %v7849_v30 = vld [vmem:[%s10742_s1 + $0x390] sm:$0xff] }
 0x28e   :  { %2433 = vmatpush.msrb.mxu0 %v11751_v28  ;;  %2473 = vmatpush.msrb.mxu2 %v11752_v13  ;;  %v7821_v13 = vld [vmem:[%s10742_s1 + $0x3d0] sm:$0xff]  ;;  %v11759_v28 = vld [vmem:[#allocation60_spill] sm:$0xff]  ;;  %11763 = vst [vmem:[#allocation75_spill] sm:$0xff] %v7849_v30 }
 0x28f   :  { %11757 = vst [vmem:[#allocation62_spill] sm:$0xff] %v7821_v13  ;;  %1165 = vmatpush.msrb.mxu1 %v7821_v13  ;;  %v7841_v13 = vld [vmem:[%s10742_s1 + $0x3b8] sm:$0xff] }
 0x290   :  { %2434 = vmatpush.msrb.mxu0 %v11755_v48  ;;  %2474 = vmatpush.msrb.mxu2 %v11756_v43  ;;  %v7835_v43 = vld [vmem:[%s10742_s1 + $0x3b0] sm:$0xff]  ;;  %11762 = vst [vmem:[#allocation14_spill] sm:$0xff] %v7841_v13 }
 0x291   :  { %11761 = vst [vmem:[#allocation73_spill] sm:$0xff] %v7835_v43  ;;  %1166 = vmatpush.msrb.mxu1 %v7835_v43  ;;  %1206 = vmatpush.msrb.mxu3 %v7841_v13  ;;  %v7855_v43 = vld [vmem:[%s10742_s1 + $0x398] sm:$0xff]  ;;  %v11765_v13 = vld [vmem:[#allocation57_spill] sm:$0xff] }
 0x292   :  { %2435 = vmatpush.msrb.mxu0 %v11759_v28  ;;  %2475 = vmatpush.msrb.mxu2 %v11760_v7  ;;  %11764 = vst [vmem:[#allocation72_spill] sm:$0xff] %v7855_v43 }
 0x293   :  { %1167 = vmatpush.msrb.mxu1 %v7849_v30  ;;  %1207 = vmatpush.msrb.mxu3 %v7855_v43  ;;  %v7867_v30 = vld [vmem:[%s10742_s1 + $0x370] sm:$0xff]  ;;  %v7873_v43 = vld [vmem:[%s10742_s1 + $0x378] sm:$0xff] }
 0x294   :  { %2436 = vmatpush.msrb.mxu0 %v7501_v61  ;;  %2476 = vmatpush.msrb.mxu2 %v7506_v11  ;;  %v11766_v11 = vld [vmem:[#allocation81_spill] sm:$0xff]  ;;  %11767 = vst [vmem:[#allocation6_spill] sm:$0xff] %v7867_v30 }
 0x295   :  { %1168 = vmatpush.msrb.mxu1 %v7867_v30  ;;  %11768 = vst [vmem:[#allocation13_spill] sm:$0xff] %v7873_v43  ;;  %1208 = vmatpush.msrb.mxu3 %v7873_v43  ;;  %v7887_v30 = vld [vmem:[%s10742_s1 + $0x358] sm:$0xff]  ;;  %v7895_v43 = vld [vmem:[%s10742_s1 + $0x330] sm:$0xff] }
 0x296   :  { %2437 = vmatpush.msrb.mxu0 %v7516_v34  ;;  %2477 = vmatpush.msrb.mxu2 %v11765_v13  ;;  %11770 = vst [vmem:[#allocation17_spill] sm:$0xff] %v7887_v30 }
 0x297   :  { %2438 = vmatmul.f32.vlgmr.msrb.gmra.mxu0 %v11718_v63  ;;  %2478 = vmatmul.f32.vlgmr.msrb.gmra.mxu2 %v11718_v63  ;;  %v7881_v63 = vld [vmem:[%s10742_s1 + $0x350] sm:$0xff]  ;;  %11771 = vst [vmem:[#allocation16_spill] sm:$0xff] %v7895_v43 }
 0x298   :  { %2573 = vmatpush.msra.mxu0 %v11766_v11  ;;  %2613 = vmatpush.msra.mxu2 %v7129_v42  ;;  %11769 = vst [vmem:[#allocation12_spill] sm:$0xff] %v7881_v63 }
 0x299   :  { %1169 = vmatpush.msrb.mxu1 %v7881_v63  ;;  %1209 = vmatpush.msrb.mxu3 %v7887_v30  ;;  %v7901_v63 = vld [vmem:[%s10742_s1 + $0x338] sm:$0xff]  ;;  %v11773_v30 = vld [vmem:[#allocation76_spill] sm:$0xff] }
 0x29a   :  { %2574 = vmatpush.msra.mxu0 %v7136_v36  ;;  %2614 = vmatpush.msra.mxu2 %v7141_v45  ;;  %11772 = vst [vmem:[#allocation21_spill] sm:$0xff] %v7901_v63 }
 0x29b   :  { %1170 = vmatpush.msrb.mxu1 %v7895_v43  ;;  %1210 = vmatpush.msrb.mxu3 %v7901_v63  ;;  %v11775_v43 = vld [vmem:[#allocation74_spill] sm:$0xff] }
 0x29c   :  { %2575 = vmatpush.msra.mxu0 %v7148_v3  ;;  %2615 = vmatpush.msra.mxu2 %v7153_v24  ;;  %v7910_v24 = vld [vmem:[%s10742_s1 + $0x318] sm:$0xff] }
 0x29d   :  { %1171 = vmatpush.msrb.mxu1 %v11773_v30  ;;  %11774 = vst [vmem:[#allocation20_spill] sm:$0xff] %v7910_v24  ;;  %1211 = vmatpush.msrb.mxu3 %v7910_v24  ;;  %v7919_v63 = vld [vmem:[%s10742_s1 + $0x2f8] sm:$0xff]  ;;  %v11777_v30 = vld [vmem:[#allocation64_spill] sm:$0xff] }
 0x29e   :  { %2576 = vmatpush.msra.mxu0 %v7162_v33  ;;  %2616 = vmatpush.msra.mxu2 %v7167_v60  ;;  %11776 = vst [vmem:[#allocation25_spill] sm:$0xff] %v7919_v63  ;;  %v7928_v24 = vld [vmem:[%s10742_s1 + $0x2d8] sm:$0xff] }
 0x29f   :  { %1172 = vmatpush.msrb.mxu1 %v11775_v43  ;;  %1212 = vmatpush.msrb.mxu3 %v7919_v63  ;;  %11778 = vst [vmem:[#allocation24_spill] sm:$0xff] %v7928_v24  ;;  %v11779_v43 = vld [vmem:[#allocation11_spill] sm:$0xff]  ;;  %v7937_v63 = vld [vmem:[%s10742_s1 + $0x2b8] sm:$0xff] }
 0x2a0   :  { %2577 = vmatpush.msra.mxu0 %v7174_v37  ;;  %2617 = vmatpush.msra.mxu2 %v7179_v57  ;;  %11780 = vst [vmem:[#allocation29_spill] sm:$0xff] %v7937_v63 }
 0x2a1   :  { %1173 = vmatpush.msrb.mxu1 %v11777_v30  ;;  %1213 = vmatpush.msrb.mxu3 %v7928_v24  ;;  %v11781_v30 = vld [vmem:[#allocation65_spill] sm:$0xff]  ;;  %v11782_v24 = vld [vmem:[#allocation67_spill] sm:$0xff] }
 0x2a2   :  { %2578 = vmatpush.msra.mxu0 %v7186_v50  ;;  %2618 = vmatpush.msra.mxu2 %v7191_v25 }
 0x2a3   :  { %1174 = vmatpush.msrb.mxu1 %v11779_v43  ;;  %1214 = vmatpush.msrb.mxu3 %v7937_v63  ;;  %v11783_v43 = vld [vmem:[#allocation69_spill] sm:$0xff] }
 0x2a4   :  { %2579 = vmatpush.msra.mxu0 %v7198_v49  ;;  %2619 = vmatpush.msra.mxu2 %v7203_v5  ;;  %v11784_v5 = vld [vmem:[#allocation71_spill] sm:$0xff]  ;;  %v11785_v63 = vld [vmem:[#allocation77_spill] sm:$0xff] }
 0x2a5   :  { %1175 = vmatpush.msrb.mxu1 %v11781_v30  ;;  %1215 = vmatpush.msrb.mxu3 %v11782_v24  ;;  %v11787_v24 = vld [vmem:[#allocation5_spill] sm:$0xff]  ;;  %v11788_v30 = vld [vmem:[#allocation4_spill] sm:$0xff] }
 0x2a6   :  { %2580 = vmatpush.msra.mxu0 %v7210_v4  ;;  %2620 = vmatpush.msra.mxu2 %v7215_v20  ;;  %v11786_v4 = vld [vmem:[#allocation15_spill] sm:$0xff] }
 0x2a7   :  { %1176 = vmatpush.msrb.mxu1 %v11783_v43  ;;  %1216 = vmatpush.msrb.mxu3 %v11784_v5  ;;  %v11789_v5 = vld [vmem:[#allocation18_spill] sm:$0xff]  ;;  %v11790_v43 = vld [vmem:[#allocation80_spill] sm:$0xff] }
 0x2a8   :  { %2581 = vmatpush.msra.mxu0 %v7222_v40  ;;  %2621 = vmatpush.msra.mxu2 %v7227_v55 }
 0x2a9   :  { %1177 = vmatpush.msrb.mxu1 %v11785_v63  ;;  %1217 = vmatpush.msrb.mxu3 %v11786_v4  ;;  %v11791_v4 = vld [vmem:[#allocation28_spill] sm:$0xff]  ;;  %v11792_v63 = vld [vmem:[#allocation42_spill] sm:$0xff] }
 0x2aa   :  { %2582 = vmatpush.msra.mxu0 %v7234_v54  ;;  %2622 = vmatpush.msra.mxu2 %v7239_v21 }
 0x2ab   :  { %1178 = vmatpush.msrb.mxu1 %v11787_v24  ;;  %1218 = vmatpush.msrb.mxu3 %v11788_v30  ;;  %v11793_v24 = vld [vmem:[#allocation66_spill] sm:$0xff]  ;;  %v11794_v30 = vld [vmem:[#allocation44_spill] sm:$0xff] }
 0x2ac   :  { %2583 = vmatpush.msra.mxu0 %v7246_v19  ;;  %2623 = vmatpush.msra.mxu2 %v7251_v39 }
 0x2ad   :  { %1179 = vmatpush.msrb.mxu1 %v11789_v5  ;;  %1219 = vmatpush.msrb.mxu3 %v11790_v43  ;;  %v11795_v5 = vld [vmem:[#allocation82_spill] sm:$0xff] }
 0x2ae   :  { %2584 = vmatpush.msra.mxu0 %v7258_v58  ;;  %2624 = vmatpush.msra.mxu2 %v7263_v0 }
 0x2b0   :  { %2585 = vmatpush.msra.mxu0 %v7270_v6  ;;  %2625 = vmatpush.msra.mxu2 %v7275_v47 }
 0x2b2   :  { %2586 = vmatpush.msra.mxu0 %v7282_v35  ;;  %2626 = vmatpush.msra.mxu2 %v7287_v38 }
 0x2b4   :  { %2587 = vmatpush.msra.mxu0 %v7294_v62  ;;  %2627 = vmatpush.msra.mxu2 %v7299_v23 }
 0x2b6   :  { %2588 = vmatpush.msra.mxu0 %v7306_v59  ;;  %2628 = vmatpush.msra.mxu2 %v7311_v46 }
 0x2b7   :  { %2589 = vmatmul.f32.vlgmr.msra.gmra.mxu0 %v7564_v44  ;;  %2629 = vmatmul.f32.vlgmr.msra.gmra.mxu2 %v7564_v44 }
 0x2b8   :  { %2653 = vmatpush.msrb.mxu0 %v7319_v32  ;;  %2693 = vmatpush.msrb.mxu2 %v7324_v18 }
 0x2ba   :  { %2654 = vmatpush.msrb.mxu0 %v7333_v51  ;;  %2694 = vmatpush.msrb.mxu2 %v7338_v52 }
 0x2bc   :  { %2655 = vmatpush.msrb.mxu0 %v7345_v14  ;;  %2695 = vmatpush.msrb.mxu2 %v7350_v53 }
 0x2be   :  { %2656 = vmatpush.msrb.mxu0 %v7358_v41  ;;  %2696 = vmatpush.msrb.mxu2 %v7363_v26 }
 0x2c0   :  { %2657 = vmatpush.msrb.mxu0 %v7370_v31  ;;  %2697 = vmatpush.msrb.mxu2 %v7375_v16 }
 0x2c2   :  { %2658 = vmatpush.msrb.mxu0 %v7382_v8  ;;  %2698 = vmatpush.msrb.mxu2 %v7387_v22 }
 0x2c4   :  { %2659 = vmatpush.msrb.mxu0 %v11731_v29  ;;  %2699 = vmatpush.msrb.mxu2 %v11732_v12 }
 0x2c6   :  { %2660 = vmatpush.msrb.mxu0 %v11735_v1  ;;  %2700 = vmatpush.msrb.mxu2 %v11736_v2 }
 0x2c8   :  { %2661 = vmatpush.msrb.mxu0 %v11739_v10  ;;  %2701 = vmatpush.msrb.mxu2 %v11740_v15 }
 0x2ca   :  { %2662 = vmatpush.msrb.mxu0 %v11743_v56  ;;  %2702 = vmatpush.msrb.mxu2 %v11744_v27 }
 0x2cc   :  { %2663 = vmatpush.msrb.mxu0 %v11747_v9  ;;  %2703 = vmatpush.msrb.mxu2 %v11748_v17 }
 0x2ce   :  { %2664 = vmatpush.msrb.mxu0 %v11791_v4  ;;  %2704 = vmatpush.msrb.mxu2 %v11792_v63 }
 0x2d0   :  { %2665 = vmatpush.msrb.mxu0 %v11755_v48  ;;  %2705 = vmatpush.msrb.mxu2 %v11793_v24 }
 0x2d2   :  { %2666 = vmatpush.msrb.mxu0 %v11759_v28  ;;  %2706 = vmatpush.msrb.mxu2 %v11760_v7 }
 0x2d4   :  { %2667 = vmatpush.msrb.mxu0 %v7501_v61  ;;  %2707 = vmatpush.msrb.mxu2 %v11794_v30 }
 0x2d6   :  { %2668 = vmatpush.msrb.mxu0 %v7516_v34  ;;  %2708 = vmatpush.msrb.mxu2 %v11765_v13 }
 0x2d7   :  { %2669 = vmatmul.f32.vlgmr.msrb.gmra.mxu0 %v7564_v44  ;;  %2709 = vmatmul.f32.vlgmr.msrb.gmra.mxu2 %v7564_v44  ;;  %v854_v44 = vpop.f32.mrf.mxu0 }
 0x2d8   :  { %2804 = vmatpush.msra.mxu0 %v11766_v11  ;;  %2844 = vmatpush.msra.mxu2 %v7129_v42  ;;  %v11796_v11 = vld [vmem:[#allocation8_spill] sm:$0xff] }
 0x2d9   :  { %v855_v42 = vadd.f32 %v854_v44, %v11796_v11 }
 0x2da   :  { %2805 = vmatpush.msra.mxu0 %v7136_v36  ;;  %2845 = vmatpush.msra.mxu2 %v7141_v45  ;;  %v11797_v36 = vld [vmem:[#allocation83_spill] sm:$0xff]  ;;  %v894_v45 = vpop.f32.mrf.mxu2 }
 0x2dc   :  { %2806 = vmatpush.msra.mxu0 %v7148_v3  ;;  %2846 = vmatpush.msra.mxu2 %v11795_v5 }
 0x2de   :  { %2807 = vmatpush.msra.mxu0 %v7162_v33  ;;  %2847 = vmatpush.msra.mxu2 %v7167_v60  ;;  %v11798_v33 = vld [vmem:[#allocation7_spill] sm:$0xff] }
 0x2e0   :  { %2808 = vmatpush.msra.mxu0 %v7174_v37  ;;  %2848 = vmatpush.msra.mxu2 %v7179_v57  ;;  %v11799_v37 = vld [vmem:[#allocation3_spill] sm:$0xff] }
 0x2e1   :  { %v895_v57 = vadd.f32 %v894_v45, %v11799_v37 }
 0x2e2   :  { %2809 = vmatpush.msra.mxu0 %v7186_v50  ;;  %2849 = vmatpush.msra.mxu2 %v7191_v25  ;;  %v874_v3 = vpop.f32.mrf.mxu1 }
 0x2e3   :  { %v875_v60 = vadd.f32 %v874_v3, %v855_v42 }
 0x2e4   :  { %2810 = vmatpush.msra.mxu0 %v7198_v49  ;;  %2850 = vmatpush.msra.mxu2 %v11797_v36 }
 0x2e5   :  { %v3975_v50 = vmul.f32 -1.442695, %v875_v60 }
 0x2e6   :  { %2811 = vmatpush.msra.mxu0 %v11798_v33  ;;  %2851 = vmatpush.msra.mxu2 %v7215_v20 }
 0x2e7   :  { %4200 = vpow2.f32 %v3975_v50 }
 0x2e8   :  { %2812 = vmatpush.msra.mxu0 %v7222_v40  ;;  %2852 = vmatpush.msra.mxu2 %v7227_v55  ;;  %v914_v25 = vpop.f32.mrf.mxu3  ;;  %v974_v40 = vpop.f32.mrf.mxu2 }
 0x2e9   :  { %v915_v49 = vadd.f32 %v914_v25, %v895_v57  ;;  %v11804_v57 = vld [vmem:[#allocation59_spill] sm:$0xff] }
 0x2ea   :  { %2813 = vmatpush.msra.mxu0 %v7234_v54  ;;  %2853 = vmatpush.msra.mxu2 %v7239_v21  ;;  %v11800_v54 = vld [vmem:[#allocation9_spill] sm:$0xff] }
 0x2eb   :  { %v3976_v20 = vmul.f32 -1.442695, %v915_v49  ;;  %v975_v21 = vadd.f32 %v974_v40, %v11800_v54  ;;  %v8114_v40 = vld [vmem:[%s10742_s1 + $0x5c8] sm:$0xff] }
 0x2ec   :  { %2814 = vmatpush.msra.mxu0 %v7246_v19  ;;  %2854 = vmatpush.msra.mxu2 %v7251_v39 }
 0x2ed   :  { %v4201_v55 = vpop.eup %4200  ;;  %4202 = vpow2.f32 %v3976_v20  ;;  %v8108_v20 = vld [vmem:[%s10742_s1 + $0x5c0] sm:$0xff] }
 0x2ee   :  { %2815 = vmatpush.msra.mxu0 %v7258_v58  ;;  %2855 = vmatpush.msra.mxu2 %v7263_v0  ;;  %v1000_v43 = vadd.f32 1.0, %v4201_v55  ;;  %v11809_v55 = vld [vmem:[#allocation68_spill] sm:$0xff] }
 0x2f0   :  { %2816 = vmatpush.msra.mxu0 %v7270_v6  ;;  %2856 = vmatpush.msra.mxu2 %v7275_v47  ;;  %4204 = vrcp.f32 %v1000_v43  ;;  %v994_v19 = vpop.f32.mrf.mxu3  ;;  %vm1006_vm5 = vweird.f32 %v1000_v43  ;;  %v1010_v44 = vand.u32 2147483647, %v1000_v43 }
 0x2f1   :  { %v995_v39 = vadd.f32 %v994_v19, %v975_v21  ;;  %v11810_v21 = vld [vmem:[#allocation33_spill] sm:$0xff]  ;;  %v8128_v19 = vld [vmem:[%s10742_s1 + $0x5a8] sm:$0xff] }
 0x2f2   :  { %2817 = vmatpush.msra.mxu0 %v7282_v35  ;;  %2857 = vmatpush.msra.mxu2 %v7287_v38  ;;  %v934_v35 = vpop.f32.mrf.mxu0  ;;  %vm1011_vm9 = vcmp.eq.f32.partialorder %v1010_v44, 8.507059e+37  ;;  %v8198_v44 = vld [vmem:[%s10742_s1 + $0x508] sm:$0xff] }
 0x2f3   :  { %v4203_v58 = vpop.eup %4202  ;;  %v3977_v0 = vmul.f32 -1.442695, %v995_v39  ;;  %v11811_v39 = vld [vmem:[#allocation32_spill] sm:$0xff] }
 0x2f4   :  { %2818 = vmatpush.msra.mxu0 %v7294_v62  ;;  %2858 = vmatpush.msra.mxu2 %v7299_v23  ;;  %v1019_v6 = vadd.f32 1.0, %v4203_v58  ;;  %v11801_v62 = vld [vmem:[#allocation10_spill] sm:$0xff]  ;;  %v11812_v58 = vld [vmem:[#allocation37_spill] sm:$0xff] }
 0x2f5   :  { %4206 = vpow2.f32 %v3977_v0  ;;  %v935_v23 = vadd.f32 %v934_v35, %v11801_v62  ;;  %v8136_v0 = vld [vmem:[%s10742_s1 + $0x580] sm:$0xff]  ;;  %v11814_v35 = vld [vmem:[#allocation38_spill] sm:$0xff] }
 0x2f6   :  { %2819 = vmatpush.msra.mxu0 %v7306_v59  ;;  %2859 = vmatpush.msra.mxu2 %v7311_v46  ;;  %v4205_v47 = vpop.eup %4204  ;;  %4208 = vrcp.f32 %v1019_v6  ;;  %v954_v46 = vpop.f32.mrf.mxu1  ;;  %vm1025_vm8 = vweird.f32 %v1019_v6 }
 0x2f7   :  { %v1002_v38 = vmul.f32 %v4205_v47, %v1000_v43  ;;  %vm1007_vm4 = vweird.f32 %v4205_v47 }
 0x2f8   :  { %2884 = vmatpush.msrb.mxu0 %v7319_v32  ;;  %2924 = vmatpush.msrb.mxu2 %v7324_v18  ;;  %vm8057_vm6 = vmor %vm1006_vm5, %vm1007_vm4 }
 0x2f9   :  { %v1003_v59 = vsub.f32 1.0, %v1002_v38  ;;  %v8150_v38 = vld [vmem:[%s10742_s1 + $0x560] sm:$0xff] }
 0x2fa   :  { %2885 = vmatpush.msrb.mxu0 %v7333_v51  ;;  %2925 = vmatpush.msrb.mxu2 %v7338_v52  ;;  %v955_v52 = vadd.f32 %v954_v46, %v935_v23  ;;  %v8156_v23 = vld [vmem:[%s10742_s1 + $0x568] sm:$0xff]  ;;  %v11816_v46 = vld [vmem:[#allocation43_spill] sm:$0xff] }
 0x2fb   :  { %v4207_v32 = vpop.eup %4206  ;;  %v1004_v18 = vmul.f32 %v4205_v47, %v1003_v59  ;;  %v11815_v59 = vld [vmem:[#allocation41_spill] sm:$0xff] }
 0x2fc   :  { %2886 = vmatpush.msrb.mxu0 %v7345_v14  ;;  %2926 = vmatpush.msrb.mxu2 %v7350_v53  ;;  %v4209_v51 = vpop.eup %4208  ;;  %v8050_v5 = vadd.f32 1.0, %v4207_v32  ;;  %v8164_v32 = vld [vmem:[%s10742_s1 + $0x540] sm:$0xff] }
 0x2fd   :  { %v1021_v14 = vmul.f32 %v4209_v51, %v1019_v6  ;;  %v1005_v53 = vadd.f32 %v4205_v47, %v1004_v18  ;;  %vm1026_vm7 = vweird.f32 %v4209_v51  ;;  %v8170_v18 = vld [vmem:[%s10742_s1 + $0x548] sm:$0xff] }
 0x2fe   :  { %2887 = vmatpush.msrb.mxu0 %v7358_v41  ;;  %2927 = vmatpush.msrb.mxu2 %v7363_v26  ;;  %v1012_v41 = vand.u32 2147483648, %v1000_v43  ;;  %4210 = vrcp.f32 %v8050_v5  ;;  %vm1027_vm10 = vmor %vm1025_vm8, %vm1026_vm7  ;;  %vm1045_vm13 = vweird.f32 %v8050_v5  ;;  %v8122_v43 = vld [vmem:[%s10742_s1 + $0x5a0] sm:$0xff] }
 0x2ff   :  { %v1022_v26 = vsub.f32 1.0, %v1021_v14  ;;  %4212 = vtanh.f32 %v955_v52  ;;  %v11818_v52 = vld [vmem:[#allocation47_spill] sm:$0xff]  ;;  %v8184_v14 = vld [vmem:[%s10742_s1 + $0x528] sm:$0xff] }
 0x300   :  { %2888 = vmatpush.msrb.mxu0 %v7370_v31  ;;  %2928 = vmatpush.msrb.mxu2 %v7375_v16  ;;  %v1031_v31 = vand.u32 2147483648, %v1019_v6  ;;  %v1013_v36 = vor.u32 1.1754944e-38, %v1012_v41  ;;  %v11820_v41 = vld [vmem:[#allocation51_spill] sm:$0xff] }
 0x301   :  { %v1023_v42 = vmul.f32 %v4209_v51, %v1022_v26  ;;  %v8192_v26 = vld [vmem:[%s10742_s1 + $0x500] sm:$0xff] }
 0x302   :  { %2889 = vmatpush.msrb.mxu0 %v7382_v8  ;;  %2929 = vmatpush.msrb.mxu2 %v7387_v22  ;;  %v1009_v8 = vsel %vm8057_vm6, %v4205_v47, %v1005_v53  ;;  %v1029_v22 = vand.u32 2147483647, %v1019_v6  ;;  %v1032_v45 = vor.u32 1.1754944e-38, %v1031_v31  ;;  %v8142_v6 = vld [vmem:[%s10742_s1 + $0x588] sm:$0xff]  ;;  %v11819_v53 = vld [vmem:[#allocation49_spill] sm:$0xff]  ;;  %v11822_v16 = vld [vmem:[#allocation63_spill] sm:$0xff] }
 0x303   :  { %v1014_v3 = vsel %vm1011_vm9, %v1013_v36, %v1009_v8  ;;  %v11813_v47 = vld [vmem:[#allocation36_spill] sm:$0xff]  ;;  %v11821_v31 = vld [vmem:[#allocation53_spill] sm:$0xff]  ;;  %v11824_v36 = vld [vmem:[#allocation55_spill] sm:$0xff] }
 0x304   :  { %2890 = vmatpush.msrb.mxu0 %v11731_v29  ;;  %2930 = vmatpush.msrb.mxu2 %v11732_v12  ;;  %v1024_v29 = vadd.f32 %v4209_v51, %v1023_v42  ;;  %v4211_v12 = vpop.eup %4210  ;;  %vm1030_vm11 = vcmp.eq.f32.partialorder %v1029_v22, 8.507059e+37  ;;  %v8206_v42 = vld [vmem:[%s10742_s1 + $0x4e0] sm:$0xff]  ;;  %v8212_v8 = vld [vmem:[%s10742_s1 + $0x4e8] sm:$0xff] }
 0x305   :  { %v1041_v60 = vmul.f32 %v4211_v12, %v8050_v5  ;;  %vm1046_vm12 = vweird.f32 %v4211_v12  ;;  %v11823_v22 = vld [vmem:[#allocation52_spill] sm:$0xff] }
 0x306   :  { %2891 = vmatpush.msrb.mxu0 %v11735_v1  ;;  %2931 = vmatpush.msrb.mxu2 %v11736_v2  ;;  %v1028_v33 = vsel %vm1027_vm10, %v4209_v51, %v1024_v29  ;;  %v4213_v1 = vpop.eup %4212  ;;  %vm1047_vm14 = vmor %vm1045_vm13, %vm1046_vm12  ;;  %v11817_v51 = vld [vmem:[#allocation45_spill] sm:$0xff]  ;;  %v8220_v29 = vld [vmem:[%s10742_s1 + $0x4c0] sm:$0xff] }
 0x307   :  { %v1033_v2 = vsel %vm1030_vm11, %v1032_v45, %v1028_v33  ;;  %v1056_v25 = vmul.f32 %v4213_v1, %v1014_v3  ;;  %v11826_v45 = vld [vmem:[#allocation19_spill] sm:$0xff]  ;;  %v11827_v3 = vld [vmem:[#allocation22_spill] sm:$0xff] }
 0x308   :  { %2892 = vmatpush.msrb.mxu0 %v11739_v10  ;;  %2932 = vmatpush.msrb.mxu2 %v11740_v15  ;;  %v1055_v50 = vmul.f32 %v1033_v2, %v11804_v57  ;;  %v1042_v10 = vsub.f32 1.0, %v1041_v60  ;;  %v8234_v33 = vld [vmem:[%s10742_s1 + $0x4a0] sm:$0xff]  ;;  %v8240_v60 = vld [vmem:[%s10742_s1 + $0x4a8] sm:$0xff]  ;;  %v11831_v2 = vld [vmem:[#allocation26_spill] sm:$0xff] }
 0x309   :  { %11828 = vst [vmem:[#allocation60_spill] sm:$0xff] %v8234_v33  ;;  %v11830_v1 = vld [vmem:[#allocation23_spill] sm:$0xff] }
 0x30a   :  { %2893 = vmatpush.msrb.mxu0 %v11743_v56  ;;  %2933 = vmatpush.msrb.mxu2 %v11744_v27  ;;  %v8073_v15 = vadd.f32 %v1056_v25, %v1055_v50  ;;  %v1043_v49 = vmul.f32 %v4211_v12, %v1042_v10  ;;  %v1051_v27 = vand.u32 2147483648, %v8050_v5  ;;  %11829 = vst [vmem:[#allocation46_spill] sm:$0xff] %v8240_v60  ;;  %v8248_v57 = vld [vmem:[%s10742_s1 + $0x480] sm:$0xff]  ;;  %v8254_v50 = vld [vmem:[%s10742_s1 + $0x488] sm:$0xff]  ;;  %v11835_v10 = vld [vmem:[#allocation30_spill] sm:$0xff] }
 0x30b   :  { %11832 = vst [vmem:[#allocation57_spill] sm:$0xff] %v8248_v57  ;;  %v11834_v25 = vld [vmem:[#allocation27_spill] sm:$0xff] }
 0x30c   :  { %2894 = vmatpush.msrb.mxu0 %v11747_v9  ;;  %2934 = vmatpush.msrb.mxu2 %v11748_v17  ;;  %4214 = vtanh.f32 %v8073_v15  ;;  %v1044_v56 = vadd.f32 %v4211_v12, %v1043_v49  ;;  %v1049_v9 = vand.u32 2147483647, %v8050_v5  ;;  %v8178_v5 = vld [vmem:[%s10742_s1 + $0x520] sm:$0xff]  ;;  %11833 = vst [vmem:[#allocation81_spill] sm:$0xff] %v8254_v50 }
 0x30d   :  { %v8262_v49 = vld [vmem:[%s10742_s1 + $0x460] sm:$0xff] }
 0x30e   :  { %2895 = vmatpush.msrb.mxu0 %v11791_v4  ;;  %2935 = vmatpush.msrb.mxu2 %v11792_v63  ;;  %v1048_v17 = vsel %vm1047_vm14, %v4211_v12, %v1044_v56  ;;  %v1052_v4 = vor.u32 1.1754944e-38, %v1051_v27  ;;  %vm1050_vm15 = vcmp.eq.f32.partialorder %v1049_v9, 8.507059e+37  ;;  %v8226_v12 = vld [vmem:[%s10742_s1 + $0x4c8] sm:$0xff]  ;;  %11836 = vst [vmem:[#allocation76_spill] sm:$0xff] %v8262_v49  ;;  %v11838_v27 = vld [vmem:[#allocation31_spill] sm:$0xff] }
 0x30f   :  { %11825 = vst [vmem:[#allocation40_spill] sm:$0xff] %v8226_v12  ;;  %v8268_v56 = vld [vmem:[%s10742_s1 + $0x468] sm:$0xff]  ;;  %v11839_v9 = vld [vmem:[#allocation35_spill] sm:$0xff] }
 0x310   :  { %2896 = vmatpush.msrb.mxu0 %v11755_v48  ;;  %2936 = vmatpush.msrb.mxu2 %v11793_v24  ;;  %v1053_v48 = vsel %vm1050_vm15, %v1052_v4, %v1048_v17  ;;  %11837 = vst [vmem:[#allocation74_spill] sm:$0xff] %v8268_v56  ;;  %v8276_v17 = vld [vmem:[%s10742_s1 + $0x440] sm:$0xff]  ;;  %v8282_v4 = vld [vmem:[%s10742_s1 + $0x448] sm:$0xff] }
 0x311   :  { %11840 = vst [vmem:[#allocation64_spill] sm:$0xff] %v8276_v17 }
 0x312   :  { %2897 = vmatpush.msrb.mxu0 %v11759_v28  ;;  %2937 = vmatpush.msrb.mxu2 %v11760_v7  ;;  %v4215_v63 = vpop.eup %4214  ;;  %v11805_v28 = vld [vmem:[#allocation48_spill] sm:$0xff]  ;;  %v11806_v7 = vld [vmem:[#allocation61_spill] sm:$0xff]  ;;  %11841 = vst [vmem:[#allocation11_spill] sm:$0xff] %v8282_v4 }
 0x313   :  { %v1059_v24 = vmul.f32 %v4215_v63, %v1053_v48  ;;  %v11842_v63 = vld [vmem:[#allocation39_spill] sm:$0xff]  ;;  %v11843_v48 = vld [vmem:[#allocation78_spill] sm:$0xff] }
 0x314   :  { %2898 = vmatpush.msrb.mxu0 %v7501_v61  ;;  %2938 = vmatpush.msrb.mxu2 %v11794_v30  ;;  %v8094_v61 = vld [vmem:[%s10742_s1 + $0x5e0] sm:$0xff]  ;;  %v11808_v30 = vld [vmem:[#allocation34_spill] sm:$0xff] }
 0x315   :  { %1100 = vmatmul.f32.vlgmr.msra.gmra.mxu1 %v1059_v24  ;;  %1140 = vmatmul.f32.vlgmr.msra.gmra.mxu3 %v1059_v24 }
 0x316   :  { %2899 = vmatpush.msrb.mxu0 %v7516_v34  ;;  %2939 = vmatpush.msrb.mxu2 %v11765_v13  ;;  %v8100_v34 = vld [vmem:[%s10742_s1 + $0x5e8] sm:$0xff] }
 0x317   :  { %2820 = vmatmul.f32.vlgmr.msra.gmra.mxu0 %v1059_v24  ;;  %2860 = vmatmul.f32.vlgmr.msra.gmra.mxu2 %v1059_v24  ;;  %v11807_v13 = vld [vmem:[#allocation56_spill] sm:$0xff] }
 0x318   :  { %1311 = vmatpush.msra.mxu1 %v11805_v28  ;;  %1351 = vmatpush.msra.mxu3 %v11806_v7  ;;  %v8296_v28 = vld [vmem:[%s10742_s1 + $0x428] sm:$0xff]  ;;  %v11846_v7 = vld [vmem:[#allocation79_spill] sm:$0xff] }
 0x319   :  { %3035 = vmatpush.msra.mxu0 %v8094_v61  ;;  %3075 = vmatpush.msra.mxu2 %v8100_v34  ;;  %11845 = vst [vmem:[#allocation67_spill] sm:$0xff] %v8296_v28 }
 0x31a   :  { %1312 = vmatpush.msra.mxu1 %v11807_v13  ;;  %1352 = vmatpush.msra.mxu3 %v11808_v30  ;;  %v11847_v13 = vld [vmem:[#allocation50_spill] sm:$0xff]  ;;  %v8304_v30 = vld [vmem:[%s10742_s1 + $0x400] sm:$0xff] }
 0x31b   :  { %3036 = vmatpush.msra.mxu0 %v8108_v20  ;;  %3076 = vmatpush.msra.mxu2 %v8114_v40  ;;  %11848 = vst [vmem:[#allocation69_spill] sm:$0xff] %v8304_v30 }
 0x31c   :  { %1313 = vmatpush.msra.mxu1 %v11809_v55  ;;  %1353 = vmatpush.msra.mxu3 %v11810_v21  ;;  %v8310_v55 = vld [vmem:[%s10742_s1 + $0x408] sm:$0xff]  ;;  %v11850_v21 = vld [vmem:[#allocation54_spill] sm:$0xff] }
 0x31d   :  { %3037 = vmatpush.msra.mxu0 %v8122_v43  ;;  %3077 = vmatpush.msra.mxu2 %v8128_v19  ;;  %11849 = vst [vmem:[#allocation71_spill] sm:$0xff] %v8310_v55 }
 0x31e   :  { %1180 = vmatmul.f32.vlgmr.msrb.gmra.mxu1 %v1059_v24  ;;  %1220 = vmatmul.f32.vlgmr.msrb.gmra.mxu3 %v1059_v24 }
 0x31f   :  { %2900 = vmatmul.f32.vlgmr.msrb.gmra.mxu0 %v1059_v24  ;;  %2940 = vmatmul.f32.vlgmr.msrb.gmra.mxu2 %v1059_v24  ;;  %v8290_v24 = vld [vmem:[%s10742_s1 + $0x420] sm:$0xff] }
 0x320   :  { %1314 = vmatpush.msra.mxu1 %v11811_v39  ;;  %1354 = vmatpush.msra.mxu3 %v11812_v58  ;;  %11844 = vst [vmem:[#allocation65_spill] sm:$0xff] %v8290_v24  ;;  %v11851_v39 = vld [vmem:[#allocation58_spill] sm:$0xff]  ;;  %v8318_v58 = vld [vmem:[%s10742_s1 + $0x5f0] sm:$0xff] }
 0x321   :  { %3038 = vmatpush.msra.mxu0 %v8136_v0  ;;  %3078 = vmatpush.msra.mxu2 %v8142_v6  ;;  %11852 = vst [vmem:[#allocation77_spill] sm:$0xff] %v8318_v58 }
 0x322   :  { %1315 = vmatpush.msra.mxu1 %v11813_v47  ;;  %1355 = vmatpush.msra.mxu3 %v11814_v35  ;;  %v8324_v47 = vld [vmem:[%s10742_s1 + $0x5f8] sm:$0xff] }
 0x323   :  { %3039 = vmatpush.msra.mxu0 %v8150_v38  ;;  %3079 = vmatpush.msra.mxu2 %v8156_v23  ;;  %11853 = vst [vmem:[#allocation15_spill] sm:$0xff] %v8324_v47  ;;  %v11854_v35 = vld [vmem:[#allocation62_spill] sm:$0xff] }
 0x324   :  { %1316 = vmatpush.msra.mxu1 %v11815_v59  ;;  %1356 = vmatpush.msra.mxu3 %v11816_v46  ;;  %v11855_v59 = vld [vmem:[#allocation70_spill] sm:$0xff]  ;;  %v8332_v46 = vld [vmem:[%s10742_s1 + $0x5d0] sm:$0xff] }
 0x325   :  { %3040 = vmatpush.msra.mxu0 %v8164_v32  ;;  %3080 = vmatpush.msra.mxu2 %v8170_v18  ;;  %11856 = vst [vmem:[#allocation5_spill] sm:$0xff] %v8332_v46 }
 0x326   :  { %1317 = vmatpush.msra.mxu1 %v11817_v51  ;;  %1357 = vmatpush.msra.mxu3 %v11818_v52  ;;  %v8338_v51 = vld [vmem:[%s10742_s1 + $0x5d8] sm:$0xff]  ;;  %v11858_v52 = vld [vmem:[#allocation73_spill] sm:$0xff] }
 0x327   :  { %3041 = vmatpush.msra.mxu0 %v8178_v5  ;;  %3081 = vmatpush.msra.mxu2 %v8184_v14  ;;  %11857 = vst [vmem:[#allocation4_spill] sm:$0xff] %v8338_v51 }
 0x328   :  { %1318 = vmatpush.msra.mxu1 %v11819_v53  ;;  %1358 = vmatpush.msra.mxu3 %v11820_v41  ;;  %v11859_v53 = vld [vmem:[#allocation14_spill] sm:$0xff]  ;;  %v8346_v41 = vld [vmem:[%s10742_s1 + $0x5b0] sm:$0xff] }
 0x329   :  { %3042 = vmatpush.msra.mxu0 %v8192_v26  ;;  %3082 = vmatpush.msra.mxu2 %v8198_v44  ;;  %11860 = vst [vmem:[#allocation18_spill] sm:$0xff] %v8346_v41 }
 0x32a   :  { %1319 = vmatpush.msra.mxu1 %v11821_v31  ;;  %1359 = vmatpush.msra.mxu3 %v11822_v16  ;;  %v8352_v31 = vld [vmem:[%s10742_s1 + $0x5b8] sm:$0xff]  ;;  %v11862_v16 = vld [vmem:[#allocation75_spill] sm:$0xff] }
 0x32b   :  { %3043 = vmatpush.msra.mxu0 %v8206_v42  ;;  %3083 = vmatpush.msra.mxu2 %v8212_v8  ;;  %11861 = vst [vmem:[#allocation80_spill] sm:$0xff] %v8352_v31 }
 0x32c   :  { %1320 = vmatpush.msra.mxu1 %v11823_v22  ;;  %1360 = vmatpush.msra.mxu3 %v11824_v36  ;;  %v11863_v22 = vld [vmem:[#allocation72_spill] sm:$0xff]  ;;  %v8360_v36 = vld [vmem:[%s10742_s1 + $0x590] sm:$0xff] }
 0x32d   :  { %3044 = vmatpush.msra.mxu0 %v8220_v29  ;;  %3084 = vmatpush.msra.mxu2 %v8226_v12  ;;  %11864 = vst [vmem:[#allocation28_spill] sm:$0xff] %v8360_v36 }
 0x32e   :  { %1321 = vmatpush.msra.mxu1 %v11826_v45  ;;  %1361 = vmatpush.msra.mxu3 %v11827_v3  ;;  %v8366_v45 = vld [vmem:[%s10742_s1 + $0x598] sm:$0xff] }
 0x32f   :  { %3045 = vmatpush.msra.mxu0 %v8234_v33  ;;  %3085 = vmatpush.msra.mxu2 %v8240_v60  ;;  %11865 = vst [vmem:[#allocation42_spill] sm:$0xff] %v8366_v45  ;;  %v11866_v3 = vld [vmem:[#allocation6_spill] sm:$0xff] }
 0x330   :  { %1322 = vmatpush.msra.mxu1 %v11830_v1  ;;  %1362 = vmatpush.msra.mxu3 %v11831_v2  ;;  %v11867_v1 = vld [vmem:[#allocation13_spill] sm:$0xff] }
 0x331   :  { %3046 = vmatpush.msra.mxu0 %v8248_v57  ;;  %3086 = vmatpush.msra.mxu2 %v8254_v50  ;;  %v8374_v2 = vld [vmem:[%s10742_s1 + $0x570] sm:$0xff] }
 0x332   :  { %1323 = vmatpush.msra.mxu1 %v11834_v25  ;;  %1363 = vmatpush.msra.mxu3 %v11835_v10  ;;  %11868 = vst [vmem:[#allocation66_spill] sm:$0xff] %v8374_v2  ;;  %v8380_v25 = vld [vmem:[%s10742_s1 + $0x578] sm:$0xff]  ;;  %v11870_v10 = vld [vmem:[#allocation12_spill] sm:$0xff] }
 0x333   :  { %3047 = vmatpush.msra.mxu0 %v8262_v49  ;;  %3087 = vmatpush.msra.mxu2 %v8268_v56  ;;  %11869 = vst [vmem:[#allocation44_spill] sm:$0xff] %v8380_v25 }
 0x334   :  { %1324 = vmatpush.msra.mxu1 %v11838_v27  ;;  %1364 = vmatpush.msra.mxu3 %v11839_v9  ;;  %v11871_v27 = vld [vmem:[#allocation17_spill] sm:$0xff] }
 0x335   :  { %3048 = vmatpush.msra.mxu0 %v8276_v17  ;;  %3088 = vmatpush.msra.mxu2 %v8282_v4  ;;  %v8388_v9 = vld [vmem:[%s10742_s1 + $0x550] sm:$0xff] }
 0x336   :  { %1325 = vmatpush.msra.mxu1 %v11842_v63  ;;  %1365 = vmatpush.msra.mxu3 %v11843_v48  ;;  %11872 = vst [vmem:[#allocation82_spill] sm:$0xff] %v8388_v9  ;;  %v8394_v63 = vld [vmem:[%s10742_s1 + $0x558] sm:$0xff]  ;;  %v11874_v48 = vld [vmem:[#allocation16_spill] sm:$0xff] }
 0x337   :  { %3049 = vmatpush.msra.mxu0 %v8290_v24  ;;  %3089 = vmatpush.msra.mxu2 %v8296_v28  ;;  %11873 = vst [vmem:[#allocation83_spill] sm:$0xff] %v8394_v63 }
 0x338   :  { %1326 = vmatpush.msra.mxu1 %v11846_v7  ;;  %1366 = vmatpush.msra.mxu3 %v11847_v13  ;;  %v11875_v7 = vld [vmem:[#allocation21_spill] sm:$0xff] }
 0x339   :  { %3050 = vmatpush.msra.mxu0 %v8304_v30  ;;  %3090 = vmatpush.msra.mxu2 %v8310_v55  ;;  %v8402_v13 = vld [vmem:[%s10742_s1 + $0x530] sm:$0xff] }
 0x33a   :  { %1391 = vmatpush.msrb.mxu1 %v11850_v21  ;;  %1431 = vmatpush.msrb.mxu3 %v11851_v39  ;;  %11876 = vst [vmem:[#allocation7_spill] sm:$0xff] %v8402_v13  ;;  %v8408_v21 = vld [vmem:[%s10742_s1 + $0x538] sm:$0xff]  ;;  %v8414_v39 = vld [vmem:[%s10742_s1 + $0x310] sm:$0xff] }
 0x33b   :  { %3115 = vmatpush.msrb.mxu0 %v8318_v58  ;;  %3155 = vmatpush.msrb.mxu2 %v8324_v47  ;;  %11877 = vst [vmem:[#allocation59_spill] sm:$0xff] %v8408_v21 }
 0x33c   :  { %1392 = vmatpush.msrb.mxu1 %v11854_v35  ;;  %1432 = vmatpush.msrb.mxu3 %v11855_v59  ;;  %11878 = vst [vmem:[#allocation48_spill] sm:$0xff] %v8414_v39  ;;  %v11879_v35 = vld [vmem:[#allocation20_spill] sm:$0xff]  ;;  %v8421_v59 = vld [vmem:[%s10742_s1 + $0x510] sm:$0xff] }
 0x33d   :  { %3116 = vmatpush.msrb.mxu0 %v8332_v46  ;;  %3156 = vmatpush.msrb.mxu2 %v8338_v51  ;;  %11880 = vst [vmem:[#allocation61_spill] sm:$0xff] %v8421_v59 }
 0x33e   :  { %1393 = vmatpush.msrb.mxu1 %v11858_v52  ;;  %1433 = vmatpush.msrb.mxu3 %v11859_v53  ;;  %v8427_v52 = vld [vmem:[%s10742_s1 + $0x518] sm:$0xff]  ;;  %v8433_v53 = vld [vmem:[%s10742_s1 + $0x2f0] sm:$0xff] }
 0x33f   :  { %3117 = vmatpush.msrb.mxu0 %v8346_v41  ;;  %3157 = vmatpush.msrb.mxu2 %v8352_v31  ;;  %11881 = vst [vmem:[#allocation56_spill] sm:$0xff] %v8427_v52 }
 0x340   :  { %1394 = vmatpush.msrb.mxu1 %v11862_v16  ;;  %1434 = vmatpush.msrb.mxu3 %v11863_v22  ;;  %11882 = vst [vmem:[#allocation34_spill] sm:$0xff] %v8433_v53  ;;  %v11883_v16 = vld [vmem:[#allocation25_spill] sm:$0xff] }
 0x341   :  { %3118 = vmatpush.msrb.mxu0 %v8360_v36  ;;  %3158 = vmatpush.msrb.mxu2 %v8366_v45  ;;  %v8440_v22 = vld [vmem:[%s10742_s1 + $0x4f0] sm:$0xff] }
 0x342   :  { %1395 = vmatpush.msrb.mxu1 %v11866_v3  ;;  %1435 = vmatpush.msrb.mxu3 %v11867_v1  ;;  %11884 = vst [vmem:[#allocation68_spill] sm:$0xff] %v8440_v22  ;;  %v8446_v3 = vld [vmem:[%s10742_s1 + $0x4f8] sm:$0xff]  ;;  %v8452_v1 = vld [vmem:[%s10742_s1 + $0x2d0] sm:$0xff] }
 0x343   :  { %3119 = vmatpush.msrb.mxu0 %v8374_v2  ;;  %3159 = vmatpush.msrb.mxu2 %v8380_v25  ;;  %11885 = vst [vmem:[#allocation33_spill] sm:$0xff] %v8446_v3 }
 0x344   :  { %1396 = vmatpush.msrb.mxu1 %v11870_v10  ;;  %1436 = vmatpush.msrb.mxu3 %v11871_v27  ;;  %11886 = vst [vmem:[#allocation32_spill] sm:$0xff] %v8452_v1  ;;  %v11887_v10 = vld [vmem:[#allocation24_spill] sm:$0xff]  ;;  %v8459_v27 = vld [vmem:[%s10742_s1 + $0x4d0] sm:$0xff] }
 0x345   :  { %3120 = vmatpush.msrb.mxu0 %v8388_v9  ;;  %3160 = vmatpush.msrb.mxu2 %v8394_v63  ;;  %11888 = vst [vmem:[#allocation37_spill] sm:$0xff] %v8459_v27 }
 0x346   :  { %1397 = vmatpush.msrb.mxu1 %v11874_v48  ;;  %1437 = vmatpush.msrb.mxu3 %v11875_v7  ;;  %v8465_v48 = vld [vmem:[%s10742_s1 + $0x4d8] sm:$0xff]  ;;  %v8471_v7 = vld [vmem:[%s10742_s1 + $0x2b0] sm:$0xff] }
 0x347   :  { %3121 = vmatpush.msrb.mxu0 %v8402_v13  ;;  %3161 = vmatpush.msrb.mxu2 %v8408_v21  ;;  %11889 = vst [vmem:[#allocation36_spill] sm:$0xff] %v8465_v48 }
 0x348   :  { %1398 = vmatpush.msrb.mxu1 %v8414_v39  ;;  %1438 = vmatpush.msrb.mxu3 %v11879_v35  ;;  %11890 = vst [vmem:[#allocation38_spill] sm:$0xff] %v8471_v7  ;;  %v11891_v35 = vld [vmem:[#allocation29_spill] sm:$0xff] }
 0x349   :  { %3122 = vmatpush.msrb.mxu0 %v8421_v59  ;;  %3162 = vmatpush.msrb.mxu2 %v8427_v52 }
 0x34a   :  { %1399 = vmatpush.msrb.mxu1 %v8433_v53  ;;  %1439 = vmatpush.msrb.mxu3 %v11883_v16  ;;  %v8478_v16 = vld [vmem:[%s10742_s1 + $0x4b0] sm:$0xff] }
 0x34b   :  { %3123 = vmatpush.msrb.mxu0 %v8440_v22  ;;  %3163 = vmatpush.msrb.mxu2 %v8446_v3  ;;  %11892 = vst [vmem:[#allocation41_spill] sm:$0xff] %v8478_v16 }
 0x34c   :  { %1400 = vmatpush.msrb.mxu1 %v8452_v1  ;;  %1440 = vmatpush.msrb.mxu3 %v11887_v10  ;;  %v8484_v10 = vld [vmem:[%s10742_s1 + $0x4b8] sm:$0xff] }
 0x34d   :  { %3124 = vmatpush.msrb.mxu0 %v8459_v27  ;;  %3164 = vmatpush.msrb.mxu2 %v8465_v48  ;;  %11893 = vst [vmem:[#allocation43_spill] sm:$0xff] %v8484_v10  ;;  %v1121_v27 = vpop.f32.mrf.mxu2 }
 0x34e   :  { %1401 = vmatpush.msrb.mxu1 %v8471_v7  ;;  %1441 = vmatpush.msrb.mxu3 %v11891_v35  ;;  %v8490_v7 = vld [vmem:[%s10742_s1 + $0x290] sm:$0xff]  ;;  %v8496_v35 = vld [vmem:[%s10742_s1 + $0x298] sm:$0xff]  ;;  %v1122_v3 = vadd.f32 %v1121_v27, %v11799_v37 }
 0x34f   :  { %3125 = vmatpush.msrb.mxu0 %v8478_v16  ;;  %3165 = vmatpush.msrb.mxu2 %v8484_v10  ;;  %11894 = vst [vmem:[#allocation45_spill] sm:$0xff] %v8490_v7  ;;  %v8502_v16 = vld [vmem:[%s10742_s1 + $0x490] sm:$0xff]  ;;  %v8508_v10 = vld [vmem:[%s10742_s1 + $0x498] sm:$0xff] }
 0x350   :  { %1402 = vmatpush.msrb.mxu1 %v8490_v7  ;;  %11895 = vst [vmem:[#allocation47_spill] sm:$0xff] %v8496_v35  ;;  %1442 = vmatpush.msrb.mxu3 %v8496_v35  ;;  %v8514_v7 = vld [vmem:[%s10742_s1 + $0x270] sm:$0xff]  ;;  %v8520_v35 = vld [vmem:[%s10742_s1 + $0x278] sm:$0xff] }
 0x351   :  { %11896 = vst [vmem:[#allocation49_spill] sm:$0xff] %v8502_v16  ;;  %3126 = vmatpush.msrb.mxu0 %v8502_v16  ;;  %3166 = vmatpush.msrb.mxu2 %v8508_v10  ;;  %v8526_v16 = vld [vmem:[%s10742_s1 + $0x470] sm:$0xff] }
 0x352   :  { %11897 = vst [vmem:[#allocation51_spill] sm:$0xff] %v8508_v10  ;;  %1403 = vmatpush.msrb.mxu1 %v8514_v7  ;;  %1443 = vmatpush.msrb.mxu3 %v8520_v35  ;;  %v8532_v10 = vld [vmem:[%s10742_s1 + $0x478] sm:$0xff] }
 0x353   :  { %11898 = vst [vmem:[#allocation53_spill] sm:$0xff] %v8514_v7  ;;  %3127 = vmatpush.msrb.mxu0 %v8526_v16  ;;  %3167 = vmatpush.msrb.mxu2 %v8532_v10  ;;  %v8538_v7 = vld [vmem:[%s10742_s1 + $0x250] sm:$0xff] }
 0x354   :  { %11899 = vst [vmem:[#allocation63_spill] sm:$0xff] %v8520_v35  ;;  %1404 = vmatpush.msrb.mxu1 %v8538_v7  ;;  %v8544_v35 = vld [vmem:[%s10742_s1 + $0x258] sm:$0xff] }
 0x355   :  { %11900 = vst [vmem:[#allocation52_spill] sm:$0xff] %v8526_v16  ;;  %1444 = vmatpush.msrb.mxu3 %v8544_v35  ;;  %v8550_v16 = vld [vmem:[%s10742_s1 + $0x450] sm:$0xff]  ;;  %v1201_v59 = vpop.f32.mrf.mxu2 }
 0x356   :  { %11901 = vst [vmem:[#allocation55_spill] sm:$0xff] %v8532_v10  ;;  %3128 = vmatpush.msrb.mxu0 %v8550_v16  ;;  %v8556_v10 = vld [vmem:[%s10742_s1 + $0x458] sm:$0xff]  ;;  %v1202_v21 = vadd.f32 %v1201_v59, %v11800_v54 }
 0x357   :  { %11902 = vst [vmem:[#allocation19_spill] sm:$0xff] %v8538_v7  ;;  %3168 = vmatpush.msrb.mxu2 %v8556_v10  ;;  %v8562_v7 = vld [vmem:[%s10742_s1 + $0x230] sm:$0xff] }
 0x358   :  { %11903 = vst [vmem:[#allocation22_spill] sm:$0xff] %v8544_v35  ;;  %1405 = vmatpush.msrb.mxu1 %v8562_v7  ;;  %v8568_v35 = vld [vmem:[%s10742_s1 + $0x238] sm:$0xff] }
 0x359   :  { %11904 = vst [vmem:[#allocation23_spill] sm:$0xff] %v8550_v16  ;;  %1445 = vmatpush.msrb.mxu3 %v8568_v35  ;;  %v8574_v16 = vld [vmem:[%s10742_s1 + $0x430] sm:$0xff] }
 0x35a   :  { %11905 = vst [vmem:[#allocation26_spill] sm:$0xff] %v8556_v10  ;;  %3129 = vmatpush.msrb.mxu0 %v8574_v16  ;;  %v8580_v10 = vld [vmem:[%s10742_s1 + $0x438] sm:$0xff] }
 0x35b   :  { %11906 = vst [vmem:[#allocation27_spill] sm:$0xff] %v8562_v7  ;;  %3169 = vmatpush.msrb.mxu2 %v8580_v10  ;;  %v8586_v7 = vld [vmem:[%s10742_s1 + $0x210] sm:$0xff] }
 0x35c   :  { %11907 = vst [vmem:[#allocation30_spill] sm:$0xff] %v8568_v35  ;;  %1406 = vmatpush.msrb.mxu1 %v8586_v7  ;;  %v8592_v35 = vld [vmem:[%s10742_s1 + $0x218] sm:$0xff] }
 0x35d   :  { %11908 = vst [vmem:[#allocation31_spill] sm:$0xff] %v8574_v16  ;;  %1446 = vmatpush.msrb.mxu3 %v8592_v35  ;;  %v8598_v16 = vld [vmem:[%s10742_s1 + $0x410] sm:$0xff] }
 0x35e   :  { %11909 = vst [vmem:[#allocation35_spill] sm:$0xff] %v8580_v10  ;;  %3130 = vmatpush.msrb.mxu0 %v8598_v16  ;;  %v8604_v10 = vld [vmem:[%s10742_s1 + $0x418] sm:$0xff] }
 0x35f   :  { %11910 = vst [vmem:[#allocation39_spill] sm:$0xff] %v8586_v7  ;;  %3170 = vmatpush.msrb.mxu2 %v8604_v10  ;;  %v1081_v7 = vpop.f32.mrf.mxu0 }
 0x360   :  { %11911 = vst [vmem:[#allocation78_spill] sm:$0xff] %v8592_v35  ;;  %v1082_v48 = vadd.f32 %v1081_v7, %v11796_v11 }
 0x361   :  { %11912 = vst [vmem:[#allocation79_spill] sm:$0xff] %v8598_v16 }
 0x362   :  { %11913 = vst [vmem:[#allocation50_spill] sm:$0xff] %v8604_v10 }
 0x367   :  { %v1161_v27 = vpop.f32.mrf.mxu0 }
 0x392   :  { %v1101_v1 = vpop.f32.mrf.mxu1 }
 0x393   :  { %v1102_v35 = vadd.f32 %v1101_v1, %v1082_v48 }
 0x395   :  { %v3979_v22 = vmul.f32 -1.442695, %v1102_v35 }
 0x397   :  { %4216 = vpow2.f32 %v3979_v22 }
 0x398   :  { %v1141_v53 = vpop.f32.mrf.mxu3 }
 0x399   :  { %v1142_v52 = vadd.f32 %v1141_v53, %v1122_v3  ;;  %v1162_v53 = vadd.f32 %v1161_v27, %v11801_v62 }
 0x39b   :  { %v3980_v16 = vmul.f32 -1.442695, %v1142_v52  ;;  %v1181_v3 = vpop.f32.mrf.mxu1 }
 0x39d   :  { %v4217_v39 = vpop.eup %4216  ;;  %4218 = vpow2.f32 %v3980_v16  ;;  %v1182_v16 = vadd.f32 %v1181_v3, %v1162_v53 }
 0x39e   :  { %v1227_v13 = vadd.f32 1.0, %v4217_v39 }
 0x3a0   :  { %4220 = vrcp.f32 %v1227_v13  ;;  %vm1233_vm1 = vweird.f32 %v1227_v13 }
 0x3a1   :  { %v1221_v10 = vpop.f32.mrf.mxu3 }
 0x3a2   :  { %v1222_v63 = vadd.f32 %v1221_v10, %v1202_v21  ;;  %v1239_v21 = vand.u32 2147483648, %v1227_v13 }
 0x3a3   :  { %v4219_v7 = vpop.eup %4218 }
 0x3a4   :  { %v3981_v11 = vmul.f32 -1.442695, %v1222_v63  ;;  %v1246_v9 = vadd.f32 1.0, %v4219_v7  ;;  %v1240_v62 = vor.u32 1.1754944e-38, %v1239_v21 }
 0x3a6   :  { %4222 = vpow2.f32 %v3981_v11  ;;  %v4221_v1 = vpop.eup %4220  ;;  %v1237_v11 = vand.u32 2147483647, %v1227_v13  ;;  %v1258_v10 = vand.u32 2147483648, %v1246_v9  ;;  %vm1252_vm4 = vweird.f32 %v1246_v9 }
 0x3a7   :  { %4224 = vrcp.f32 %v1246_v9  ;;  %v1229_v22 = vmul.f32 %v4221_v1, %v1227_v13  ;;  %vm1234_vm0 = vweird.f32 %v4221_v1 }
 0x3a8   :  { %vm1235_vm2 = vmor %vm1233_vm1, %vm1234_vm0  ;;  %vm1238_vm5 = vcmp.eq.f32.partialorder %v1237_v11, 8.507059e+37  ;;  %v1259_v3 = vor.u32 1.1754944e-38, %v1258_v10 }
 0x3a9   :  { %v1230_v52 = vsub.f32 1.0, %v1229_v22  ;;  %v1256_v22 = vand.u32 2147483647, %v1246_v9 }
 0x3ab   :  { %v1231_v35 = vmul.f32 %v4221_v1, %v1230_v52  ;;  %vm1257_vm7 = vcmp.eq.f32.partialorder %v1256_v22, 8.507059e+37  ;;  %v8652_v22 = vld [vmem:[%s10742_s1 + $0x3a8] sm:$0xff] }
 0x3ac   :  { %v4223_v48 = vpop.eup %4222 }
 0x3ad   :  { %v4225_v59 = vpop.eup %4224  ;;  %v1266_v39 = vadd.f32 1.0, %v4223_v48  ;;  %v1232_v37 = vadd.f32 %v4221_v1, %v1231_v35 }
 0x3ae   :  { %v1248_v54 = vmul.f32 %v4225_v59, %v1246_v9  ;;  %vm1253_vm3 = vweird.f32 %v4225_v59 }
 0x3af   :  { %4226 = vrcp.f32 %v1266_v39  ;;  %v1236_v27 = vsel %vm1235_vm2, %v4221_v1, %v1232_v37  ;;  %vm1254_vm6 = vmor %vm1252_vm4, %vm1253_vm3  ;;  %v1278_v1 = vand.u32 2147483648, %v1266_v39  ;;  %vm1272_vm9 = vweird.f32 %v1266_v39 }
 0x3b0   :  { %v1249_v63 = vsub.f32 1.0, %v1248_v54  ;;  %4228 = vtanh.f32 %v1182_v16  ;;  %v1241_v48 = vsel %vm1238_vm5, %v1240_v62, %v1236_v27  ;;  %v1276_v21 = vand.u32 2147483647, %v1266_v39  ;;  %v8646_v27 = vld [vmem:[%s10742_s1 + $0x3a0] sm:$0xff] }
 0x3b2   :  { %v1250_v7 = vmul.f32 %v4225_v59, %v1249_v63  ;;  %vm1277_vm11 = vcmp.eq.f32.partialorder %v1276_v21, 8.507059e+37  ;;  %v8744_v21 = vld [vmem:[%s10742_s1 + $0x2c0] sm:$0xff] }
 0x3b4   :  { %v1251_v53 = vadd.f32 %v4225_v59, %v1250_v7 }
 0x3b5   :  { %v4227_v52 = vpop.eup %4226 }
 0x3b6   :  { %v1255_v35 = vsel %vm1254_vm6, %v4225_v59, %v1251_v53  ;;  %v1268_v54 = vmul.f32 %v4227_v52, %v1266_v39  ;;  %v4229_v25 = vpop.eup %4228  ;;  %vm1273_vm8 = vweird.f32 %v4227_v52  ;;  %v1279_v59 = vor.u32 1.1754944e-38, %v1278_v1  ;;  %v8638_v39 = vld [vmem:[%s10742_s1 + $0x3c8] sm:$0xff]  ;;  %v8660_v53 = vld [vmem:[%s10742_s1 + $0x380] sm:$0xff] }
 0x3b7   :  { %v1260_v13 = vsel %vm1257_vm7, %v1259_v3, %v1255_v35  ;;  %v1283_v16 = vmul.f32 %v4229_v25, %v1241_v48  ;;  %vm1274_vm10 = vmor %vm1272_vm9, %vm1273_vm8  ;;  %v8632_v25 = vld [vmem:[%s10742_s1 + $0x3c0] sm:$0xff]  ;;  %v8680_v48 = vld [vmem:[%s10742_s1 + $0x368] sm:$0xff] }
 0x3b8   :  { %v1282_v2 = vmul.f32 %v1260_v13, %v8073_v15  ;;  %v1269_v63 = vsub.f32 1.0, %v1268_v54  ;;  %v8618_v15 = vld [vmem:[%s10742_s1 + $0x3e0] sm:$0xff]  ;;  %v8694_v54 = vld [vmem:[%s10742_s1 + $0x348] sm:$0xff] }
 0x3b9   :  { %v8674_v3 = vld [vmem:[%s10742_s1 + $0x360] sm:$0xff]  ;;  %v8736_v1 = vld [vmem:[%s10742_s1 + $0x2e8] sm:$0xff] }
 0x3ba   :  { %v8612_v45 = vadd.f32 %v1283_v16, %v1282_v2  ;;  %v1270_v37 = vmul.f32 %v4227_v52, %v1269_v63  ;;  %v8624_v2 = vld [vmem:[%s10742_s1 + $0x3e8] sm:$0xff]  ;;  %v8688_v35 = vld [vmem:[%s10742_s1 + $0x340] sm:$0xff] }
 0x3bb   :  { %v8702_v13 = vld [vmem:[%s10742_s1 + $0x320] sm:$0xff]  ;;  %v8708_v16 = vld [vmem:[%s10742_s1 + $0x328] sm:$0xff] }
 0x3bc   :  { %4230 = vtanh.f32 %v8612_v45  ;;  %v1271_v9 = vadd.f32 %v4227_v52, %v1270_v37  ;;  %v8716_v63 = vld [vmem:[%s10742_s1 + $0x300] sm:$0xff]  ;;  %v8722_v37 = vld [vmem:[%s10742_s1 + $0x308] sm:$0xff] }
 0x3be   :  { %v1275_v62 = vsel %vm1274_vm10, %v4227_v52, %v1271_v9  ;;  %v8666_v52 = vld [vmem:[%s10742_s1 + $0x388] sm:$0xff]  ;;  %v8730_v9 = vld [vmem:[%s10742_s1 + $0x2e0] sm:$0xff] }
 0x3bf   :  { %v1280_v10 = vsel %vm1277_vm11, %v1279_v59, %v1275_v62  ;;  %v8750_v62 = vld [vmem:[%s10742_s1 + $0x2c8] sm:$0xff]  ;;  %v8758_v59 = vld [vmem:[%s10742_s1 + $0x2a0] sm:$0xff] }
 0x3c0   :  { %11914 = vst [vmem:[#allocation54_spill] sm:$0xff] %v8758_v59 }
 0x3c2   :  { %v4231_v11 = vpop.eup %4230 }
 0x3c3   :  { %v1286_v7 = vmul.f32 %v4231_v11, %v1280_v10  ;;  %v8764_v11 = vld [vmem:[%s10742_s1 + $0x2a8] sm:$0xff]  ;;  %v8772_v10 = vld [vmem:[%s10742_s1 + $0x280] sm:$0xff] }
 0x3c4   :  { %11915 = vst [vmem:[#allocation58_spill] sm:$0xff] %v8764_v11 }
 0x3c5   :  { %1327 = vmatmul.f32.vlgmr.msra.gmra.mxu1 %v1286_v7  ;;  %1367 = vmatmul.f32.vlgmr.msra.gmra.mxu3 %v1286_v7  ;;  %11916 = vst [vmem:[#allocation62_spill] sm:$0xff] %v8772_v10 }
 0x3c6   :  { %3051 = vmatmul.f32.vlgmr.msra.gmra.mxu0 %v1286_v7  ;;  %3091 = vmatmul.f32.vlgmr.msra.gmra.mxu2 %v1286_v7 }
 0x3c7   :  { %1538 = vmatpush.msra.mxu1 %v8618_v15  ;;  %1578 = vmatpush.msra.mxu3 %v8624_v2 }
 0x3c8   :  { %3266 = vmatpush.msra.mxu0 %v8094_v61  ;;  %3306 = vmatpush.msra.mxu2 %v8100_v34 }
 0x3c9   :  { %1539 = vmatpush.msra.mxu1 %v8632_v25  ;;  %1579 = vmatpush.msra.mxu3 %v8638_v39 }
 0x3ca   :  { %3267 = vmatpush.msra.mxu0 %v8108_v20  ;;  %3307 = vmatpush.msra.mxu2 %v8114_v40 }
 0x3cb   :  { %1540 = vmatpush.msra.mxu1 %v8646_v27  ;;  %1580 = vmatpush.msra.mxu3 %v8652_v22 }
 0x3cc   :  { %3268 = vmatpush.msra.mxu0 %v8122_v43  ;;  %3308 = vmatpush.msra.mxu2 %v8128_v19 }
 0x3cd   :  { %1407 = vmatmul.f32.vlgmr.msrb.gmra.mxu1 %v1286_v7  ;;  %1447 = vmatmul.f32.vlgmr.msrb.gmra.mxu3 %v1286_v7 }
 0x3ce   :  { %3131 = vmatmul.f32.vlgmr.msrb.gmra.mxu0 %v1286_v7  ;;  %3171 = vmatmul.f32.vlgmr.msrb.gmra.mxu2 %v1286_v7  ;;  %v8778_v7 = vld [vmem:[%s10742_s1 + $0x288] sm:$0xff] }
 0x3cf   :  { %1541 = vmatpush.msra.mxu1 %v8660_v53  ;;  %1581 = vmatpush.msra.mxu3 %v8666_v52  ;;  %11917 = vst [vmem:[#allocation70_spill] sm:$0xff] %v8778_v7 }
 0x3d0   :  { %3269 = vmatpush.msra.mxu0 %v8136_v0  ;;  %3309 = vmatpush.msra.mxu2 %v8142_v6 }
 0x3d1   :  { %1542 = vmatpush.msra.mxu1 %v8674_v3  ;;  %1582 = vmatpush.msra.mxu3 %v8680_v48 }
 0x3d2   :  { %3270 = vmatpush.msra.mxu0 %v8150_v38  ;;  %3310 = vmatpush.msra.mxu2 %v8156_v23 }
 0x3d3   :  { %1543 = vmatpush.msra.mxu1 %v8688_v35  ;;  %1583 = vmatpush.msra.mxu3 %v8694_v54 }
 0x3d4   :  { %3271 = vmatpush.msra.mxu0 %v8164_v32  ;;  %3311 = vmatpush.msra.mxu2 %v8170_v18 }
 0x3d5   :  { %1544 = vmatpush.msra.mxu1 %v8702_v13  ;;  %1584 = vmatpush.msra.mxu3 %v8708_v16 }
 0x3d6   :  { %3272 = vmatpush.msra.mxu0 %v8178_v5  ;;  %3312 = vmatpush.msra.mxu2 %v8184_v14 }
 0x3d7   :  { %1545 = vmatpush.msra.mxu1 %v8716_v63  ;;  %1585 = vmatpush.msra.mxu3 %v8722_v37 }
 0x3d8   :  { %3273 = vmatpush.msra.mxu0 %v8192_v26  ;;  %3313 = vmatpush.msra.mxu2 %v8198_v44 }
 0x3d9   :  { %1546 = vmatpush.msra.mxu1 %v8730_v9  ;;  %1586 = vmatpush.msra.mxu3 %v8736_v1 }
 0x3da   :  { %3274 = vmatpush.msra.mxu0 %v8206_v42  ;;  %3314 = vmatpush.msra.mxu2 %v8212_v8 }
 0x3db   :  { %1547 = vmatpush.msra.mxu1 %v8744_v21  ;;  %1587 = vmatpush.msra.mxu3 %v8750_v62 }
 0x3dc   :  { %3275 = vmatpush.msra.mxu0 %v8220_v29  ;;  %3315 = vmatpush.msra.mxu2 %v8226_v12 }
 0x3dd   :  { %1548 = vmatpush.msra.mxu1 %v8758_v59  ;;  %1588 = vmatpush.msra.mxu3 %v8764_v11 }
 0x3de   :  { %3276 = vmatpush.msra.mxu0 %v8234_v33  ;;  %3316 = vmatpush.msra.mxu2 %v8240_v60  ;;  %v8786_v60 = vld [vmem:[%s10742_s1 + $0x260] sm:$0xff] }
 0x3df   :  { %1549 = vmatpush.msra.mxu1 %v8772_v10  ;;  %1589 = vmatpush.msra.mxu3 %v8778_v7  ;;  %11918 = vst [vmem:[#allocation73_spill] sm:$0xff] %v8786_v60  ;;  %v8792_v10 = vld [vmem:[%s10742_s1 + $0x268] sm:$0xff] }
 0x3e0   :  { %3277 = vmatpush.msra.mxu0 %v8248_v57  ;;  %3317 = vmatpush.msra.mxu2 %v8254_v50  ;;  %11919 = vst [vmem:[#allocation14_spill] sm:$0xff] %v8792_v10  ;;  %v8800_v50 = vld [vmem:[%s10742_s1 + $0x240] sm:$0xff] }
 0x3e1   :  { %1550 = vmatpush.msra.mxu1 %v8786_v60  ;;  %1590 = vmatpush.msra.mxu3 %v8792_v10  ;;  %11920 = vst [vmem:[#allocation75_spill] sm:$0xff] %v8800_v50  ;;  %v8806_v60 = vld [vmem:[%s10742_s1 + $0x248] sm:$0xff] }
 0x3e2   :  { %3278 = vmatpush.msra.mxu0 %v8262_v49  ;;  %3318 = vmatpush.msra.mxu2 %v8268_v56  ;;  %11921 = vst [vmem:[#allocation72_spill] sm:$0xff] %v8806_v60  ;;  %v8814_v56 = vld [vmem:[%s10742_s1 + $0x220] sm:$0xff] }
 0x3e3   :  { %1551 = vmatpush.msra.mxu1 %v8800_v50  ;;  %1591 = vmatpush.msra.mxu3 %v8806_v60  ;;  %11922 = vst [vmem:[#allocation6_spill] sm:$0xff] %v8814_v56  ;;  %v8820_v50 = vld [vmem:[%s10742_s1 + $0x228] sm:$0xff] }
 0x3e4   :  { %3279 = vmatpush.msra.mxu0 %v8276_v17  ;;  %3319 = vmatpush.msra.mxu2 %v8282_v4  ;;  %11923 = vst [vmem:[#allocation13_spill] sm:$0xff] %v8820_v50  ;;  %v8828_v4 = vld [vmem:[%s10742_s1 + $0x200] sm:$0xff] }
 0x3e5   :  { %1552 = vmatpush.msra.mxu1 %v8814_v56  ;;  %1592 = vmatpush.msra.mxu3 %v8820_v50  ;;  %11924 = vst [vmem:[#allocation12_spill] sm:$0xff] %v8828_v4  ;;  %v8834_v56 = vld [vmem:[%s10742_s1 + $0x208] sm:$0xff]  ;;  %v11984_v50 = vld [vmem:[#allocation3_spill] sm:$0xff] }
 0x3e6   :  { %3280 = vmatpush.msra.mxu0 %v8290_v24  ;;  %3320 = vmatpush.msra.mxu2 %v8296_v28  ;;  %11925 = vst [vmem:[#allocation17_spill] sm:$0xff] %v8834_v56  ;;  %v8842_v28 = vld [vmem:[%s10742_s1 + $0x3f0] sm:$0xff] }
 0x3e7   :  { %1553 = vmatpush.msra.mxu1 %v8828_v4  ;;  %1593 = vmatpush.msra.mxu3 %v8834_v56  ;;  %11926 = vst [vmem:[#allocation16_spill] sm:$0xff] %v8842_v28  ;;  %v8848_v4 = vld [vmem:[%s10742_s1 + $0x3f8] sm:$0xff] }
 0x3e8   :  { %3281 = vmatpush.msra.mxu0 %v8304_v30  ;;  %3321 = vmatpush.msra.mxu2 %v8310_v55  ;;  %11927 = vst [vmem:[#allocation21_spill] sm:$0xff] %v8848_v4  ;;  %v8856_v55 = vld [vmem:[%s10742_s1 + $0x3d0] sm:$0xff]  ;;  %v8862_v30 = vld [vmem:[%s10742_s1 + $0x3d8] sm:$0xff] }
 0x3e9   :  { %1618 = vmatpush.msrb.mxu1 %v8842_v28  ;;  %1658 = vmatpush.msrb.mxu3 %v8848_v4  ;;  %11928 = vst [vmem:[#allocation20_spill] sm:$0xff] %v8856_v55  ;;  %v11969_v4 = vld [vmem:[#allocation52_spill] sm:$0xff]  ;;  %v11970_v28 = vld [vmem:[#allocation55_spill] sm:$0xff] }
 0x3ea   :  { %3346 = vmatpush.msrb.mxu0 %v8318_v58  ;;  %3386 = vmatpush.msrb.mxu2 %v8324_v47  ;;  %11929 = vst [vmem:[#allocation25_spill] sm:$0xff] %v8862_v30  ;;  %v8870_v47 = vld [vmem:[%s10742_s1 + $0x3b0] sm:$0xff]  ;;  %v8876_v58 = vld [vmem:[%s10742_s1 + $0x3b8] sm:$0xff] }
 0x3eb   :  { %1619 = vmatpush.msrb.mxu1 %v8856_v55  ;;  %1659 = vmatpush.msrb.mxu3 %v8862_v30  ;;  %11930 = vst [vmem:[#allocation24_spill] sm:$0xff] %v8870_v47  ;;  %v11951_v30 = vld [vmem:[#allocation34_spill] sm:$0xff]  ;;  %v11968_v55 = vld [vmem:[#allocation63_spill] sm:$0xff] }
 0x3ec   :  { %3347 = vmatpush.msrb.mxu0 %v8332_v46  ;;  %3387 = vmatpush.msrb.mxu2 %v8338_v51  ;;  %11931 = vst [vmem:[#allocation29_spill] sm:$0xff] %v8876_v58  ;;  %v8884_v51 = vld [vmem:[%s10742_s1 + $0x390] sm:$0xff]  ;;  %v8890_v46 = vld [vmem:[%s10742_s1 + $0x398] sm:$0xff] }
 0x3ed   :  { %1620 = vmatpush.msrb.mxu1 %v8870_v47  ;;  %1660 = vmatpush.msrb.mxu3 %v8876_v58  ;;  %11932 = vst [vmem:[#allocation84_spill] sm:$0xff] %v8884_v51  ;;  %v11934_v58 = vld [vmem:[#allocation42_spill] sm:$0xff]  ;;  %v11950_v47 = vld [vmem:[#allocation56_spill] sm:$0xff] }
 0x3ee   :  { %3348 = vmatpush.msrb.mxu0 %v8346_v41  ;;  %3388 = vmatpush.msrb.mxu2 %v8352_v31  ;;  %11933 = vst [vmem:[#allocation85_spill] sm:$0xff] %v8890_v46  ;;  %v8898_v31 = vld [vmem:[%s10742_s1 + $0x370] sm:$0xff]  ;;  %v8904_v41 = vld [vmem:[%s10742_s1 + $0x378] sm:$0xff] }
 0x3ef   :  { %1621 = vmatpush.msrb.mxu1 %v8884_v51  ;;  %1661 = vmatpush.msrb.mxu3 %v8890_v46  ;;  %11935 = vst [vmem:[#allocation86_spill] sm:$0xff] %v8898_v31  ;;  %v11937_v51 = vld [vmem:[#allocation66_spill] sm:$0xff]  ;;  %v11938_v46 = vld [vmem:[#allocation44_spill] sm:$0xff] }
 0x3f0   :  { %3349 = vmatpush.msrb.mxu0 %v8360_v36  ;;  %3389 = vmatpush.msrb.mxu2 %v11934_v58  ;;  %11936 = vst [vmem:[#allocation87_spill] sm:$0xff] %v8904_v41  ;;  %v8912_v58 = vld [vmem:[%s10742_s1 + $0x350] sm:$0xff]  ;;  %v8918_v36 = vld [vmem:[%s10742_s1 + $0x358] sm:$0xff] }
 0x3f1   :  { %1622 = vmatpush.msrb.mxu1 %v8898_v31  ;;  %1662 = vmatpush.msrb.mxu3 %v8904_v41  ;;  %11939 = vst [vmem:[#allocation88_spill] sm:$0xff] %v8912_v58  ;;  %v11941_v31 = vld [vmem:[#allocation82_spill] sm:$0xff]  ;;  %v11942_v41 = vld [vmem:[#allocation83_spill] sm:$0xff] }
 0x3f2   :  { %3350 = vmatpush.msrb.mxu0 %v11937_v51  ;;  %3390 = vmatpush.msrb.mxu2 %v11938_v46  ;;  %11940 = vst [vmem:[#allocation89_spill] sm:$0xff] %v8918_v36  ;;  %v8926_v46 = vld [vmem:[%s10742_s1 + $0x330] sm:$0xff]  ;;  %v8932_v51 = vld [vmem:[%s10742_s1 + $0x338] sm:$0xff] }
 0x3f3   :  { %1623 = vmatpush.msrb.mxu1 %v8912_v58  ;;  %1663 = vmatpush.msrb.mxu3 %v8918_v36  ;;  %11943 = vst [vmem:[#allocation90_spill] sm:$0xff] %v8926_v46  ;;  %v11945_v58 = vld [vmem:[#allocation7_spill] sm:$0xff] }
 0x3f4   :  { %3351 = vmatpush.msrb.mxu0 %v11941_v31  ;;  %3391 = vmatpush.msrb.mxu2 %v11942_v41  ;;  %11944 = vst [vmem:[#allocation91_spill] sm:$0xff] %v8932_v51  ;;  %v11946_v36 = vld [vmem:[#allocation59_spill] sm:$0xff]  ;;  %v11947_v31 = vld [vmem:[#allocation48_spill] sm:$0xff]  ;;  %v8941_v41 = vld [vmem:[%s10742_s1 + $0x318] sm:$0xff] }
 0x3f5   :  { %1624 = vmatpush.msrb.mxu1 %v8926_v46  ;;  %1664 = vmatpush.msrb.mxu3 %v8932_v51  ;;  %11948 = vst [vmem:[#allocation92_spill] sm:$0xff] %v8941_v41  ;;  %v11949_v46 = vld [vmem:[#allocation61_spill] sm:$0xff]  ;;  %v11955_v51 = vld [vmem:[#allocation32_spill] sm:$0xff] }
 0x3f6   :  { %3352 = vmatpush.msrb.mxu0 %v11945_v58  ;;  %3392 = vmatpush.msrb.mxu2 %v11946_v36  ;;  %v8950_v58 = vld [vmem:[%s10742_s1 + $0x2f8] sm:$0xff]  ;;  %v11953_v36 = vld [vmem:[#allocation68_spill] sm:$0xff] }
 0x3f7   :  { %1625 = vmatpush.msrb.mxu1 %v11947_v31  ;;  %1665 = vmatpush.msrb.mxu3 %v8941_v41  ;;  %11952 = vst [vmem:[#allocation93_spill] sm:$0xff] %v8950_v58  ;;  %v11954_v31 = vld [vmem:[#allocation33_spill] sm:$0xff]  ;;  %v11959_v41 = vld [vmem:[#allocation38_spill] sm:$0xff] }
 0x3f8   :  { %3353 = vmatpush.msrb.mxu0 %v11949_v46  ;;  %3393 = vmatpush.msrb.mxu2 %v11950_v47  ;;  %v8959_v46 = vld [vmem:[%s10742_s1 + $0x2d8] sm:$0xff]  ;;  %v11957_v47 = vld [vmem:[#allocation37_spill] sm:$0xff] }
 0x3f9   :  { %1626 = vmatpush.msrb.mxu1 %v11951_v30  ;;  %1666 = vmatpush.msrb.mxu3 %v8950_v58  ;;  %11956 = vst [vmem:[#allocation94_spill] sm:$0xff] %v8959_v46  ;;  %v11958_v30 = vld [vmem:[#allocation36_spill] sm:$0xff]  ;;  %v11963_v58 = vld [vmem:[#allocation45_spill] sm:$0xff] }
 0x3fa   :  { %3354 = vmatpush.msrb.mxu0 %v11953_v36  ;;  %3394 = vmatpush.msrb.mxu2 %v11954_v31  ;;  %v8968_v36 = vld [vmem:[%s10742_s1 + $0x2b8] sm:$0xff]  ;;  %v11961_v31 = vld [vmem:[#allocation41_spill] sm:$0xff] }
 0x3fb   :  { %1627 = vmatpush.msrb.mxu1 %v11955_v51  ;;  %1667 = vmatpush.msrb.mxu3 %v8959_v46  ;;  %11960 = vst [vmem:[#allocation95_spill] sm:$0xff] %v8968_v36  ;;  %v11962_v51 = vld [vmem:[#allocation43_spill] sm:$0xff] }
 0x3fc   :  { %3355 = vmatpush.msrb.mxu0 %v11957_v47  ;;  %3395 = vmatpush.msrb.mxu2 %v11958_v30  ;;  %v11964_v46 = vld [vmem:[#allocation47_spill] sm:$0xff]  ;;  %v11965_v47 = vld [vmem:[#allocation49_spill] sm:$0xff] }
 0x3fd   :  { %1628 = vmatpush.msrb.mxu1 %v11959_v41  ;;  %1668 = vmatpush.msrb.mxu3 %v8968_v36  ;;  %v11966_v30 = vld [vmem:[#allocation51_spill] sm:$0xff]  ;;  %v11967_v41 = vld [vmem:[#allocation53_spill] sm:$0xff] }
 0x3fe   :  { %3356 = vmatpush.msrb.mxu0 %v11961_v31  ;;  %3396 = vmatpush.msrb.mxu2 %v11962_v51  ;;  %v11971_v36 = vld [vmem:[#allocation19_spill] sm:$0xff]  ;;  %v11972_v31 = vld [vmem:[#allocation22_spill] sm:$0xff] }
 0x3ff   :  { %1629 = vmatpush.msrb.mxu1 %v11963_v58  ;;  %1669 = vmatpush.msrb.mxu3 %v11964_v46  ;;  %v11973_v51 = vld [vmem:[#allocation23_spill] sm:$0xff]  ;;  %v11974_v58 = vld [vmem:[#allocation26_spill] sm:$0xff] }
 0x400   :  { %3357 = vmatpush.msrb.mxu0 %v11965_v47  ;;  %3397 = vmatpush.msrb.mxu2 %v11966_v30  ;;  %v11975_v46 = vld [vmem:[#allocation27_spill] sm:$0xff]  ;;  %v11976_v47 = vld [vmem:[#allocation30_spill] sm:$0xff] }
 0x401   :  { %1630 = vmatpush.msrb.mxu1 %v11967_v41  ;;  %1670 = vmatpush.msrb.mxu3 %v11968_v55  ;;  %v11977_v30 = vld [vmem:[#allocation31_spill] sm:$0xff] }
 0x402   :  { %3358 = vmatpush.msrb.mxu0 %v11969_v4  ;;  %3398 = vmatpush.msrb.mxu2 %v11970_v28  ;;  %v11978_v41 = vld [vmem:[#allocation35_spill] sm:$0xff]  ;;  %v11980_v4 = vld [vmem:[#allocation78_spill] sm:$0xff] }
 0x403   :  { %1631 = vmatpush.msrb.mxu1 %v11971_v36  ;;  %1671 = vmatpush.msrb.mxu3 %v11972_v31  ;;  %v11979_v55 = vld [vmem:[#allocation39_spill] sm:$0xff]  ;;  %v11982_v36 = vld [vmem:[#allocation50_spill] sm:$0xff]  ;;  %v1308_v31 = vpop.f32.mrf.mxu0 }
 0x404   :  { %3359 = vmatpush.msrb.mxu0 %v11973_v51  ;;  %3399 = vmatpush.msrb.mxu2 %v11974_v58  ;;  %v11981_v28 = vld [vmem:[#allocation79_spill] sm:$0xff]  ;;  %v11983_v51 = vld [vmem:[#allocation8_spill] sm:$0xff]  ;;  %v1348_v58 = vpop.f32.mrf.mxu2 }
 0x405   :  { %1632 = vmatpush.msrb.mxu1 %v11975_v46  ;;  %1672 = vmatpush.msrb.mxu3 %v11976_v47  ;;  %v1309_v56 = vadd.f32 %v1308_v31, %v11983_v51  ;;  %v1349_v47 = vadd.f32 %v1348_v58, %v11984_v50  ;;  %v11986_v58 = vld [vmem:[#allocation10_spill] sm:$0xff] }
 0x406   :  { %3360 = vmatpush.msrb.mxu0 %v11977_v30  ;;  %3400 = vmatpush.msrb.mxu2 %v11978_v41 }
 0x407   :  { %1633 = vmatpush.msrb.mxu1 %v11979_v55  ;;  %1673 = vmatpush.msrb.mxu3 %v11980_v4  ;;  %v11985_v4 = vld [vmem:[#allocation9_spill] sm:$0xff] }
 0x408   :  { %3361 = vmatpush.msrb.mxu0 %v11981_v28  ;;  %3401 = vmatpush.msrb.mxu2 %v11982_v36 }
 0x40c   :  { %v1428_v55 = vpop.f32.mrf.mxu2 }
 0x40d   :  { %v1429_v10 = vadd.f32 %v1428_v55, %v11985_v4 }
 0x442   :  { %v1328_v24 = vpop.f32.mrf.mxu1 }
 0x443   :  { %v1329_v46 = vadd.f32 %v1328_v24, %v1309_v56  ;;  %v1388_v24 = vpop.f32.mrf.mxu0 }
 0x445   :  { %v3983_v17 = vmul.f32 -1.442695, %v1329_v46 }
 0x447   :  { %4232 = vpow2.f32 %v3983_v17 }
 0x448   :  { %v1368_v30 = vpop.f32.mrf.mxu3 }
 0x449   :  { %v1369_v41 = vadd.f32 %v1368_v30, %v1349_v47  ;;  %v1389_v30 = vadd.f32 %v1388_v24, %v11986_v58 }
 0x44a   :  { %v1408_v46 = vpop.f32.mrf.mxu1 }
 0x44b   :  { %v3984_v60 = vmul.f32 -1.442695, %v1369_v41 }
 0x44d   :  { %v4233_v49 = vpop.eup %4232  ;;  %4234 = vpow2.f32 %v3984_v60  ;;  %v1409_v60 = vadd.f32 %v1408_v46, %v1389_v30 }
 0x44e   :  { %v1454_v28 = vadd.f32 1.0, %v4233_v49 }
 0x450   :  { %4236 = vrcp.f32 %v1454_v28  ;;  %v1448_v36 = vpop.f32.mrf.mxu3  ;;  %vm1460_vm13 = vweird.f32 %v1454_v28 }
 0x451   :  { %v1449_v57 = vadd.f32 %v1448_v36, %v1429_v10  ;;  %v1466_v36 = vand.u32 2147483648, %v1454_v28 }
 0x453   :  { %v4235_v31 = vpop.eup %4234  ;;  %v3985_v51 = vmul.f32 -1.442695, %v1449_v57  ;;  %v1467_v58 = vor.u32 1.1754944e-38, %v1466_v36 }
 0x454   :  { %v1473_v7 = vadd.f32 1.0, %v4235_v31 }
 0x455   :  { %4238 = vpow2.f32 %v3985_v51  ;;  %v1464_v51 = vand.u32 2147483647, %v1454_v28 }
 0x456   :  { %v4237_v56 = vpop.eup %4236  ;;  %4240 = vrcp.f32 %v1473_v7  ;;  %v1485_v10 = vand.u32 2147483648, %v1473_v7  ;;  %vm1479_vm0 = vweird.f32 %v1473_v7 }
 0x457   :  { %v1456_v17 = vmul.f32 %v4237_v56, %v1454_v28  ;;  %vm1461_vm12 = vweird.f32 %v4237_v56  ;;  %vm1465_vm1 = vcmp.eq.f32.partialorder %v1464_v51, 8.507059e+37 }
 0x458   :  { %vm1462_vm14 = vmor %vm1460_vm13, %vm1461_vm12 }
 0x459   :  { %v1457_v47 = vsub.f32 1.0, %v1456_v17  ;;  %v1483_v17 = vand.u32 2147483647, %v1473_v7 }
 0x45b   :  { %v4239_v41 = vpop.eup %4238  ;;  %v1458_v50 = vmul.f32 %v4237_v56, %v1457_v47  ;;  %vm1484_vm3 = vcmp.eq.f32.partialorder %v1483_v17, 8.507059e+37  ;;  %v12031_v17 = vld [vmem:[#allocation89_spill] sm:$0xff] }
 0x45c   :  { %v4241_v55 = vpop.eup %4240  ;;  %v1493_v49 = vadd.f32 1.0, %v4239_v41 }
 0x45d   :  { %v1475_v4 = vmul.f32 %v4241_v55, %v1473_v7  ;;  %v1459_v33 = vadd.f32 %v4237_v56, %v1458_v50  ;;  %vm1480_vm15 = vweird.f32 %v4241_v55  ;;  %v1486_v50 = vor.u32 1.1754944e-38, %v1485_v10 }
 0x45e   :  { %4242 = vrcp.f32 %v1493_v49  ;;  %vm1481_vm2 = vmor %vm1479_vm0, %vm1480_vm15  ;;  %vm1499_vm5 = vweird.f32 %v1493_v49  ;;  %v1503_v36 = vand.u32 2147483647, %v1493_v49 }
 0x45f   :  { %v1476_v57 = vsub.f32 1.0, %v1475_v4  ;;  %4244 = vtanh.f32 %v1409_v60  ;;  %v1463_v24 = vsel %vm1462_vm14, %v4237_v56, %v1459_v33  ;;  %v1505_v56 = vand.u32 2147483648, %v1493_v49 }
 0x460   :  { %v1468_v46 = vsel %vm1465_vm1, %v1467_v58, %v1463_v24  ;;  %vm1504_vm7 = vcmp.eq.f32.partialorder %v1503_v36, 8.507059e+37  ;;  %v12030_v24 = vld [vmem:[#allocation88_spill] sm:$0xff]  ;;  %v12044_v36 = vld [vmem:[#allocation61_spill] sm:$0xff] }
 0x461   :  { %v1477_v31 = vmul.f32 %v4241_v55, %v1476_v57 }
 0x463   :  { %v1478_v30 = vadd.f32 %v4241_v55, %v1477_v31 }
 0x464   :  { %v4243_v47 = vpop.eup %4242 }
 0x465   :  { %v1482_v41 = vsel %vm1481_vm2, %v4241_v55, %v1478_v30  ;;  %v1495_v4 = vmul.f32 %v4243_v47, %v1493_v49  ;;  %v4245_v11 = vpop.eup %4244  ;;  %vm1500_vm4 = vweird.f32 %v4243_v47  ;;  %v1506_v55 = vor.u32 1.1754944e-38, %v1505_v56  ;;  %v12029_v49 = vld [vmem:[#allocation42_spill] sm:$0xff]  ;;  %v12043_v56 = vld [vmem:[#allocation93_spill] sm:$0xff] }
 0x466   :  { %v1487_v28 = vsel %vm1484_vm3, %v1486_v50, %v1482_v41  ;;  %v1510_v60 = vmul.f32 %v4245_v11, %v1468_v46  ;;  %vm1501_vm6 = vmor %vm1499_vm5, %vm1500_vm4  ;;  %v12028_v11 = vld [vmem:[#allocation28_spill] sm:$0xff]  ;;  %v12032_v30 = vld [vmem:[#allocation66_spill] sm:$0xff] }
 0x467   :  { %v1509_v59 = vmul.f32 %v1487_v28, %v8612_v45  ;;  %v1496_v57 = vsub.f32 1.0, %v1495_v4  ;;  %v12006_v45 = vld [vmem:[#allocation65_spill] sm:$0xff]  ;;  %v12034_v50 = vld [vmem:[#allocation90_spill] sm:$0xff]  ;;  %v12035_v46 = vld [vmem:[#allocation91_spill] sm:$0xff] }
 0x468   :  { %v12036_v41 = vld [vmem:[#allocation82_spill] sm:$0xff]  ;;  %v12037_v4 = vld [vmem:[#allocation83_spill] sm:$0xff]  ;;  %v12038_v28 = vld [vmem:[#allocation48_spill] sm:$0xff] }
 0x469   :  { %v8998_v12 = vadd.f32 %v1510_v60, %v1509_v59  ;;  %v1497_v33 = vmul.f32 %v4243_v47, %v1496_v57  ;;  %v12027_v59 = vld [vmem:[#allocation87_spill] sm:$0xff]  ;;  %v12039_v60 = vld [vmem:[#allocation92_spill] sm:$0xff] }
 0x46a   :  { %v12040_v57 = vld [vmem:[#allocation7_spill] sm:$0xff] }
 0x46b   :  { %4246 = vtanh.f32 %v8998_v12  ;;  %v1498_v7 = vadd.f32 %v4243_v47, %v1497_v33  ;;  %v12041_v33 = vld [vmem:[#allocation59_spill] sm:$0xff] }
 0x46d   :  { %v1502_v58 = vsel %vm1501_vm6, %v4243_v47, %v1498_v7  ;;  %v12033_v47 = vld [vmem:[#allocation44_spill] sm:$0xff]  ;;  %v12042_v7 = vld [vmem:[#allocation34_spill] sm:$0xff] }
 0x46e   :  { %v1507_v10 = vsel %vm1504_vm7, %v1506_v55, %v1502_v58  ;;  %v12045_v58 = vld [vmem:[#allocation56_spill] sm:$0xff] }
 0x46f   :  { %v12046_v55 = vld [vmem:[#allocation32_spill] sm:$0xff] }
 0x471   :  { %v4247_v51 = vpop.eup %4246 }
 0x472   :  { %v1513_v31 = vmul.f32 %v4247_v51, %v1507_v10  ;;  %v12047_v51 = vld [vmem:[#allocation94_spill] sm:$0xff]  ;;  %v12048_v10 = vld [vmem:[#allocation68_spill] sm:$0xff] }
 0x474   :  { %1554 = vmatmul.f32.vlgmr.msra.gmra.mxu1 %v1513_v31  ;;  %1594 = vmatmul.f32.vlgmr.msra.gmra.mxu3 %v1513_v31 }
 0x475   :  { %3282 = vmatmul.f32.vlgmr.msra.gmra.mxu0 %v1513_v31  ;;  %3322 = vmatmul.f32.vlgmr.msra.gmra.mxu2 %v1513_v31 }
 0x476   :  { %1765 = vmatpush.msra.mxu1 %v8618_v15  ;;  %1805 = vmatpush.msra.mxu3 %v8624_v2  ;;  %v12007_v15 = vld [vmem:[#allocation67_spill] sm:$0xff]  ;;  %v12008_v2 = vld [vmem:[#allocation12_spill] sm:$0xff] }
 0x477   :  { %3497 = vmatpush.msra.mxu0 %v8094_v61  ;;  %3537 = vmatpush.msra.mxu2 %v8100_v34  ;;  %v11987_v61 = vld [vmem:[#allocation40_spill] sm:$0xff]  ;;  %v11988_v34 = vld [vmem:[#allocation54_spill] sm:$0xff] }
 0x478   :  { %1766 = vmatpush.msra.mxu1 %v8632_v25  ;;  %1806 = vmatpush.msra.mxu3 %v8638_v39  ;;  %v12009_v25 = vld [vmem:[#allocation17_spill] sm:$0xff]  ;;  %v12010_v39 = vld [vmem:[#allocation16_spill] sm:$0xff] }
 0x479   :  { %3498 = vmatpush.msra.mxu0 %v8108_v20  ;;  %3538 = vmatpush.msra.mxu2 %v8114_v40  ;;  %v11989_v20 = vld [vmem:[#allocation58_spill] sm:$0xff]  ;;  %v11990_v40 = vld [vmem:[#allocation60_spill] sm:$0xff] }
 0x47a   :  { %1767 = vmatpush.msra.mxu1 %v8646_v27  ;;  %1807 = vmatpush.msra.mxu3 %v8652_v22  ;;  %v12011_v27 = vld [vmem:[#allocation21_spill] sm:$0xff] }
 0x47b   :  { %3499 = vmatpush.msra.mxu0 %v8122_v43  ;;  %3539 = vmatpush.msra.mxu2 %v8128_v19  ;;  %v11991_v43 = vld [vmem:[#allocation46_spill] sm:$0xff]  ;;  %v12012_v22 = vld [vmem:[#allocation69_spill] sm:$0xff] }
 0x47c   :  { %1634 = vmatmul.f32.vlgmr.msrb.gmra.mxu1 %v1513_v31  ;;  %1674 = vmatmul.f32.vlgmr.msrb.gmra.mxu3 %v1513_v31  ;;  %v11992_v19 = vld [vmem:[#allocation62_spill] sm:$0xff] }
 0x47d   :  { %3362 = vmatmul.f32.vlgmr.msrb.gmra.mxu0 %v1513_v31  ;;  %3402 = vmatmul.f32.vlgmr.msrb.gmra.mxu2 %v1513_v31  ;;  %v12049_v31 = vld [vmem:[#allocation33_spill] sm:$0xff] }
 0x47e   :  { %1768 = vmatpush.msra.mxu1 %v8660_v53  ;;  %1808 = vmatpush.msra.mxu3 %v8666_v52  ;;  %v12013_v53 = vld [vmem:[#allocation71_spill] sm:$0xff]  ;;  %v12014_v52 = vld [vmem:[#allocation20_spill] sm:$0xff] }
 0x47f   :  { %3500 = vmatpush.msra.mxu0 %v8136_v0  ;;  %3540 = vmatpush.msra.mxu2 %v8142_v6  ;;  %v11993_v0 = vld [vmem:[#allocation70_spill] sm:$0xff]  ;;  %v11994_v6 = vld [vmem:[#allocation57_spill] sm:$0xff] }
 0x480   :  { %1769 = vmatpush.msra.mxu1 %v8674_v3  ;;  %1809 = vmatpush.msra.mxu3 %v8680_v48  ;;  %v12015_v3 = vld [vmem:[#allocation25_spill] sm:$0xff] }
 0x481   :  { %3501 = vmatpush.msra.mxu0 %v8150_v38  ;;  %3541 = vmatpush.msra.mxu2 %v8156_v23  ;;  %v11995_v38 = vld [vmem:[#allocation81_spill] sm:$0xff] }
 0x482   :  { %1770 = vmatpush.msra.mxu1 %v8688_v35  ;;  %1810 = vmatpush.msra.mxu3 %v8694_v54  ;;  %v11996_v23 = vld [vmem:[#allocation73_spill] sm:$0xff]  ;;  %v12017_v35 = vld [vmem:[#allocation15_spill] sm:$0xff]  ;;  %v12018_v54 = vld [vmem:[#allocation24_spill] sm:$0xff] }
 0x483   :  { %3502 = vmatpush.msra.mxu0 %v8164_v32  ;;  %3542 = vmatpush.msra.mxu2 %v8170_v18  ;;  %v11997_v32 = vld [vmem:[#allocation14_spill] sm:$0xff]  ;;  %v11998_v18 = vld [vmem:[#allocation76_spill] sm:$0xff]  ;;  %v12016_v48 = vld [vmem:[#allocation77_spill] sm:$0xff] }
 0x484   :  { %1771 = vmatpush.msra.mxu1 %v8702_v13  ;;  %1811 = vmatpush.msra.mxu3 %v8708_v16  ;;  %v12019_v13 = vld [vmem:[#allocation29_spill] sm:$0xff] }
 0x485   :  { %3503 = vmatpush.msra.mxu0 %v8178_v5  ;;  %3543 = vmatpush.msra.mxu2 %v8184_v14  ;;  %v11999_v5 = vld [vmem:[#allocation74_spill] sm:$0xff]  ;;  %v12000_v14 = vld [vmem:[#allocation75_spill] sm:$0xff]  ;;  %v12020_v16 = vld [vmem:[#allocation5_spill] sm:$0xff] }
 0x486   :  { %1772 = vmatpush.msra.mxu1 %v8716_v63  ;;  %1812 = vmatpush.msra.mxu3 %v8722_v37  ;;  %v12021_v63 = vld [vmem:[#allocation4_spill] sm:$0xff] }
 0x487   :  { %3504 = vmatpush.msra.mxu0 %v8192_v26  ;;  %3544 = vmatpush.msra.mxu2 %v8198_v44  ;;  %v12001_v26 = vld [vmem:[#allocation72_spill] sm:$0xff] }
 0x488   :  { %1773 = vmatpush.msra.mxu1 %v8730_v9  ;;  %1813 = vmatpush.msra.mxu3 %v8736_v1  ;;  %v12002_v44 = vld [vmem:[#allocation64_spill] sm:$0xff]  ;;  %v12023_v9 = vld [vmem:[#allocation85_spill] sm:$0xff]  ;;  %v12024_v1 = vld [vmem:[#allocation18_spill] sm:$0xff] }
 0x489   :  { %3505 = vmatpush.msra.mxu0 %v8206_v42  ;;  %3545 = vmatpush.msra.mxu2 %v8212_v8  ;;  %v12003_v42 = vld [vmem:[#allocation11_spill] sm:$0xff]  ;;  %v12004_v8 = vld [vmem:[#allocation6_spill] sm:$0xff]  ;;  %v12022_v37 = vld [vmem:[#allocation84_spill] sm:$0xff] }
 0x48a   :  { %1774 = vmatpush.msra.mxu1 %v8744_v21  ;;  %1814 = vmatpush.msra.mxu3 %v8750_v62  ;;  %v12025_v21 = vld [vmem:[#allocation80_spill] sm:$0xff]  ;;  %v12026_v62 = vld [vmem:[#allocation86_spill] sm:$0xff] }
 0x48b   :  { %3506 = vmatpush.msra.mxu0 %v8220_v29  ;;  %3546 = vmatpush.msra.mxu2 %v11987_v61  ;;  %v12005_v29 = vld [vmem:[#allocation13_spill] sm:$0xff]  ;;  %v12050_v61 = vld [vmem:[#allocation38_spill] sm:$0xff] }
 0x48c   :  { %1775 = vmatpush.msra.mxu1 %v11988_v34  ;;  %1815 = vmatpush.msra.mxu3 %v11989_v20  ;;  %v12051_v34 = vld [vmem:[#allocation95_spill] sm:$0xff]  ;;  %v12052_v20 = vld [vmem:[#allocation37_spill] sm:$0xff] }
 0x48d   :  { %3507 = vmatpush.msra.mxu0 %v11990_v40  ;;  %3547 = vmatpush.msra.mxu2 %v11991_v43  ;;  %v12053_v40 = vld [vmem:[#allocation36_spill] sm:$0xff]  ;;  %v12054_v43 = vld [vmem:[#allocation45_spill] sm:$0xff] }
 0x48e   :  { %1776 = vmatpush.msra.mxu1 %v11992_v19  ;;  %1816 = vmatpush.msra.mxu3 %v11993_v0  ;;  %v12055_v19 = vld [vmem:[#allocation47_spill] sm:$0xff]  ;;  %v12056_v0 = vld [vmem:[#allocation41_spill] sm:$0xff] }
 0x48f   :  { %3508 = vmatpush.msra.mxu0 %v11994_v6  ;;  %3548 = vmatpush.msra.mxu2 %v11995_v38  ;;  %v12057_v6 = vld [vmem:[#allocation43_spill] sm:$0xff]  ;;  %v12058_v38 = vld [vmem:[#allocation53_spill] sm:$0xff] }
 0x490   :  { %1777 = vmatpush.msra.mxu1 %v11996_v23  ;;  %1817 = vmatpush.msra.mxu3 %v11997_v32  ;;  %v12059_v23 = vld [vmem:[#allocation63_spill] sm:$0xff]  ;;  %v12060_v32 = vld [vmem:[#allocation49_spill] sm:$0xff] }
 0x491   :  { %3509 = vmatpush.msra.mxu0 %v11998_v18  ;;  %3549 = vmatpush.msra.mxu2 %v11999_v5  ;;  %v12061_v18 = vld [vmem:[#allocation51_spill] sm:$0xff] }
 0x492   :  { %1778 = vmatpush.msra.mxu1 %v12000_v14  ;;  %1818 = vmatpush.msra.mxu3 %v12001_v26  ;;  %v12062_v5 = vld [vmem:[#allocation19_spill] sm:$0xff]  ;;  %v12063_v14 = vld [vmem:[#allocation22_spill] sm:$0xff]  ;;  %v12064_v26 = vld [vmem:[#allocation52_spill] sm:$0xff] }
 0x493   :  { %3510 = vmatpush.msra.mxu0 %v12002_v44  ;;  %3550 = vmatpush.msra.mxu2 %v12003_v42  ;;  %v12065_v44 = vld [vmem:[#allocation55_spill] sm:$0xff] }
 0x494   :  { %1779 = vmatpush.msra.mxu1 %v12004_v8  ;;  %1819 = vmatpush.msra.mxu3 %v12005_v29  ;;  %v12066_v42 = vld [vmem:[#allocation27_spill] sm:$0xff]  ;;  %v12067_v8 = vld [vmem:[#allocation30_spill] sm:$0xff] }
 0x495   :  { %3511 = vmatpush.msra.mxu0 %v12006_v45  ;;  %3551 = vmatpush.msra.mxu2 %v12007_v15  ;;  %v12068_v29 = vld [vmem:[#allocation23_spill] sm:$0xff]  ;;  %v12069_v45 = vld [vmem:[#allocation26_spill] sm:$0xff] }
 0x496   :  { %1780 = vmatpush.msra.mxu1 %v12008_v2  ;;  %1820 = vmatpush.msra.mxu3 %v12009_v25  ;;  %v12070_v15 = vld [vmem:[#allocation39_spill] sm:$0xff]  ;;  %v12071_v2 = vld [vmem:[#allocation78_spill] sm:$0xff] }
 0x497   :  { %3512 = vmatpush.msra.mxu0 %v12012_v22  ;;  %3552 = vmatpush.msra.mxu2 %v12013_v53  ;;  %v12072_v25 = vld [vmem:[#allocation31_spill] sm:$0xff]  ;;  %v12075_v22 = vld [vmem:[#allocation50_spill] sm:$0xff]  ;;  %v1535_v53 = vpop.f32.mrf.mxu0 }
 0x498   :  { %1845 = vmatpush.msrb.mxu1 %v12010_v39  ;;  %1885 = vmatpush.msrb.mxu3 %v12011_v27  ;;  %v12073_v39 = vld [vmem:[#allocation35_spill] sm:$0xff] }
 0x499   :  { %3577 = vmatpush.msrb.mxu0 %v12016_v48  ;;  %3617 = vmatpush.msrb.mxu2 %v12017_v35  ;;  %v12074_v27 = vld [vmem:[#allocation79_spill] sm:$0xff]  ;;  %v1575_v48 = vpop.f32.mrf.mxu2 }
 0x49a   :  { %1846 = vmatpush.msrb.mxu1 %v12014_v52  ;;  %1886 = vmatpush.msrb.mxu3 %v12015_v3  ;;  %v12076_v52 = vld [vmem:[#allocation8_spill] sm:$0xff] }
 0x49b   :  { %3578 = vmatpush.msrb.mxu0 %v12020_v16  ;;  %3618 = vmatpush.msrb.mxu2 %v12021_v63  ;;  %v1536_v3 = vadd.f32 %v1535_v53, %v12076_v52  ;;  %v9646_v52 = vld [vmem:[%s10742_s1 + $0x630] sm:$0xff] }
 0x49c   :  { %1847 = vmatpush.msrb.mxu1 %v12018_v54  ;;  %1887 = vmatpush.msrb.mxu3 %v12019_v13  ;;  %v12077_v13 = vld [vmem:[#allocation3_spill] sm:$0xff]  ;;  %12110 = vst [vmem:[#allocation77_spill] sm:$0xff] %v9646_v52 }
 0x49d   :  { %3579 = vmatpush.msrb.mxu0 %v12024_v1  ;;  %3619 = vmatpush.msrb.mxu2 %v12025_v21  ;;  %v1576_v16 = vadd.f32 %v1575_v48, %v12077_v13  ;;  %v9145_v48 = vld [vmem:[%s10742_s1 + $0x7e8] sm:$0xff]  ;;  %v9633_v13 = vld [vmem:[%s10742_s1 + $0x658] sm:$0xff] }
 0x49e   :  { %1848 = vmatpush.msrb.mxu1 %v12022_v37  ;;  %1888 = vmatpush.msrb.mxu3 %v12023_v9  ;;  %12109 = vst [vmem:[#allocation25_spill] sm:$0xff] %v9633_v13 }
 0x49f   :  { %3580 = vmatpush.msrb.mxu0 %v12028_v11  ;;  %3620 = vmatpush.msrb.mxu2 %v12029_v49 }
 0x4a0   :  { %1849 = vmatpush.msrb.mxu1 %v12026_v62  ;;  %1889 = vmatpush.msrb.mxu3 %v12027_v59  ;;  %v12078_v59 = vld [vmem:[#allocation9_spill] sm:$0xff] }
 0x4a1   :  { %3581 = vmatpush.msrb.mxu0 %v12032_v30  ;;  %3621 = vmatpush.msrb.mxu2 %v12033_v47  ;;  %v1655_v21 = vpop.f32.mrf.mxu2 }
 0x4a2   :  { %1850 = vmatpush.msrb.mxu1 %v12030_v24  ;;  %1890 = vmatpush.msrb.mxu3 %v12031_v17  ;;  %v1656_v11 = vadd.f32 %v1655_v21, %v12078_v59  ;;  %v4715_v21 = vld [vmem:[%s10742_s1 + $0x5e8] sm:$0xff]  ;;  %v9628_v59 = vld [vmem:[%s10742_s1 + $0x650] sm:$0xff] }
 0x4a3   :  { %3582 = vmatpush.msrb.mxu0 %v12036_v41  ;;  %3622 = vmatpush.msrb.mxu2 %v12037_v4  ;;  %v1615_v41 = vpop.f32.mrf.mxu0  ;;  %12108 = vst [vmem:[#allocation20_spill] sm:$0xff] %v9628_v59 }
 0x4a4   :  { %1851 = vmatpush.msrb.mxu1 %v12034_v50  ;;  %1891 = vmatpush.msrb.mxu3 %v12035_v46 }
 0x4a5   :  { %3583 = vmatpush.msrb.mxu0 %v12040_v57  ;;  %3623 = vmatpush.msrb.mxu2 %v12041_v33 }
 0x4a6   :  { %1852 = vmatpush.msrb.mxu1 %v12038_v28  ;;  %1892 = vmatpush.msrb.mxu3 %v12039_v60  ;;  %v12079_v28 = vld [vmem:[#allocation10_spill] sm:$0xff] }
 0x4a7   :  { %3584 = vmatpush.msrb.mxu0 %v12044_v36  ;;  %3624 = vmatpush.msrb.mxu2 %v12045_v58  ;;  %v1616_v60 = vadd.f32 %v1615_v41, %v12079_v28  ;;  %v9239_v41 = vld [vmem:[%s10742_s1 + $0x708] sm:$0xff]  ;;  %v9615_v28 = vld [vmem:[%s10742_s1 + $0x678] sm:$0xff] }
 0x4a8   :  { %1853 = vmatpush.msrb.mxu1 %v12042_v7  ;;  %1893 = vmatpush.msrb.mxu3 %v12043_v56  ;;  %12107 = vst [vmem:[#allocation71_spill] sm:$0xff] %v9615_v28 }
 0x4a9   :  { %3585 = vmatpush.msrb.mxu0 %v12048_v10  ;;  %3625 = vmatpush.msrb.mxu2 %v12049_v31 }
 0x4aa   :  { %1854 = vmatpush.msrb.mxu1 %v12046_v55  ;;  %1894 = vmatpush.msrb.mxu3 %v12047_v51 }
 0x4ab   :  { %3586 = vmatpush.msrb.mxu0 %v12052_v20  ;;  %3626 = vmatpush.msrb.mxu2 %v12053_v40 }
 0x4ac   :  { %1855 = vmatpush.msrb.mxu1 %v12050_v61  ;;  %1895 = vmatpush.msrb.mxu3 %v12051_v34 }
 0x4ad   :  { %3587 = vmatpush.msrb.mxu0 %v12056_v0  ;;  %3627 = vmatpush.msrb.mxu2 %v12057_v6 }
 0x4ae   :  { %1856 = vmatpush.msrb.mxu1 %v12054_v43  ;;  %1896 = vmatpush.msrb.mxu3 %v12055_v19 }
 0x4af   :  { %3588 = vmatpush.msrb.mxu0 %v12060_v32  ;;  %3628 = vmatpush.msrb.mxu2 %v12061_v18 }
 0x4b0   :  { %1857 = vmatpush.msrb.mxu1 %v12058_v38  ;;  %1897 = vmatpush.msrb.mxu3 %v12059_v23 }
 0x4b1   :  { %3589 = vmatpush.msrb.mxu0 %v12064_v26  ;;  %3629 = vmatpush.msrb.mxu2 %v12065_v44 }
 0x4b2   :  { %1858 = vmatpush.msrb.mxu1 %v12062_v5  ;;  %1898 = vmatpush.msrb.mxu3 %v12063_v14 }
 0x4b3   :  { %3590 = vmatpush.msrb.mxu0 %v12068_v29  ;;  %3630 = vmatpush.msrb.mxu2 %v12069_v45 }
 0x4b4   :  { %1859 = vmatpush.msrb.mxu1 %v12066_v42  ;;  %1899 = vmatpush.msrb.mxu3 %v12067_v8 }
 0x4b5   :  { %3591 = vmatpush.msrb.mxu0 %v12072_v25  ;;  %3631 = vmatpush.msrb.mxu2 %v12073_v39 }
 0x4b6   :  { %1860 = vmatpush.msrb.mxu1 %v12070_v15  ;;  %1900 = vmatpush.msrb.mxu3 %v12071_v2 }
 0x4b7   :  { %3592 = vmatpush.msrb.mxu0 %v12074_v27  ;;  %3632 = vmatpush.msrb.mxu2 %v12075_v22 }
 0x4f1   :  { %v1555_v35 = vpop.f32.mrf.mxu1 }
 0x4f2   :  { %v1556_v54 = vadd.f32 %v1555_v35, %v1536_v3  ;;  %v9150_v35 = vld [vmem:[%s10742_s1 + $0x7c0] sm:$0xff] }
 0x4f4   :  { %v3987_v63 = vmul.f32 -1.442695, %v1556_v54  ;;  %v9155_v54 = vld [vmem:[%s10742_s1 + $0x7c8] sm:$0xff] }
 0x4f6   :  { %4248 = vpow2.f32 %v3987_v63  ;;  %v9167_v63 = vld [vmem:[%s10742_s1 + $0x7a8] sm:$0xff] }
 0x4f7   :  { %v1595_v37 = vpop.f32.mrf.mxu3 }
 0x4f8   :  { %v1596_v9 = vadd.f32 %v1595_v37, %v1576_v16  ;;  %v9162_v16 = vld [vmem:[%s10742_s1 + $0x7a0] sm:$0xff] }
 0x4f9   :  { %v1635_v33 = vpop.f32.mrf.mxu1  ;;  %v9174_v37 = vld [vmem:[%s10742_s1 + $0x780] sm:$0xff] }
 0x4fa   :  { %v3988_v1 = vmul.f32 -1.442695, %v1596_v9  ;;  %v1636_v58 = vadd.f32 %v1635_v33, %v1616_v60  ;;  %v9179_v9 = vld [vmem:[%s10742_s1 + $0x788] sm:$0xff] }
 0x4fb   :  { %v4719_v60 = vld [vmem:[%s10742_s1 + $0x5a8] sm:$0xff] }
 0x4fc   :  { %v4249_v62 = vpop.eup %4248  ;;  %4250 = vpow2.f32 %v3988_v1  ;;  %v4714_v1 = vld [vmem:[%s10742_s1 + $0x5e0] sm:$0xff]  ;;  %v9257_v33 = vld [vmem:[%s10742_s1 + $0x6e8] sm:$0xff] }
 0x4fd   :  { %v1681_v49 = vadd.f32 1.0, %v4249_v62  ;;  %v9192_v62 = vld [vmem:[%s10742_s1 + $0x760] sm:$0xff] }
 0x4ff   :  { %4252 = vrcp.f32 %v1681_v49  ;;  %v1675_v24 = vpop.f32.mrf.mxu3  ;;  %v1693_v31 = vand.u32 2147483648, %v1681_v49  ;;  %vm1687_vm9 = vweird.f32 %v1681_v49  ;;  %v1691_v34 = vand.u32 2147483647, %v1681_v49 }
 0x500   :  { %v1676_v17 = vadd.f32 %v1675_v24, %v1656_v11  ;;  %v9197_v11 = vld [vmem:[%s10742_s1 + $0x768] sm:$0xff] }
 0x501   :  { %v1694_v0 = vor.u32 1.1754944e-38, %v1693_v31  ;;  %vm1692_vm13 = vcmp.eq.f32.partialorder %v1691_v34, 8.507059e+37  ;;  %v4717_v24 = vld [vmem:[%s10742_s1 + $0x5c8] sm:$0xff] }
 0x502   :  { %v4251_v30 = vpop.eup %4250  ;;  %v3989_v47 = vmul.f32 -1.442695, %v1676_v17  ;;  %v9210_v17 = vld [vmem:[%s10742_s1 + $0x740] sm:$0xff]  ;;  %v9293_v31 = vld [vmem:[%s10742_s1 + $0x6a8] sm:$0xff] }
 0x503   :  { %v1700_v50 = vadd.f32 1.0, %v4251_v30  ;;  %v9215_v30 = vld [vmem:[%s10742_s1 + $0x748] sm:$0xff] }
 0x504   :  { %4254 = vpow2.f32 %v3989_v47  ;;  %v9222_v47 = vld [vmem:[%s10742_s1 + $0x720] sm:$0xff]  ;;  %v4725_v34 = vld [vmem:[%s10742_s1 + $0x548] sm:$0xff] }
 0x505   :  { %v4253_v46 = vpop.eup %4252  ;;  %4256 = vrcp.f32 %v1700_v50  ;;  %v1712_v20 = vand.u32 2147483648, %v1700_v50  ;;  %v1710_v19 = vand.u32 2147483647, %v1700_v50  ;;  %vm1706_vm12 = vweird.f32 %v1700_v50 }
 0x506   :  { %v1683_v4 = vmul.f32 %v4253_v46, %v1681_v49  ;;  %vm1688_vm8 = vweird.f32 %v4253_v46  ;;  %v4716_v49 = vld [vmem:[%s10742_s1 + $0x5c0] sm:$0xff] }
 0x507   :  { %vm1689_vm10 = vmor %vm1687_vm9, %vm1688_vm8  ;;  %v1713_v23 = vor.u32 1.1754944e-38, %v1712_v20  ;;  %vm1711_vm15 = vcmp.eq.f32.partialorder %v1710_v19, 8.507059e+37  ;;  %v9306_v20 = vld [vmem:[%s10742_s1 + $0x680] sm:$0xff]  ;;  %v4727_v19 = vld [vmem:[%s10742_s1 + $0x528] sm:$0xff] }
 0x508   :  { %v1684_v57 = vsub.f32 1.0, %v1683_v4  ;;  %v4718_v4 = vld [vmem:[%s10742_s1 + $0x5a0] sm:$0xff] }
 0x50a   :  { %v4255_v7 = vpop.eup %4254  ;;  %v1685_v56 = vmul.f32 %v4253_v46, %v1684_v57  ;;  %v9252_v57 = vld [vmem:[%s10742_s1 + $0x6e0] sm:$0xff] }
 0x50b   :  { %v4257_v36 = vpop.eup %4256  ;;  %v1720_v55 = vadd.f32 1.0, %v4255_v7  ;;  %v4720_v7 = vld [vmem:[%s10742_s1 + $0x580] sm:$0xff] }
 0x50c   :  { %v1702_v51 = vmul.f32 %v4257_v36, %v1700_v50  ;;  %v1686_v10 = vadd.f32 %v4253_v46, %v1685_v56  ;;  %vm1707_vm11 = vweird.f32 %v4257_v36  ;;  %v9227_v50 = vld [vmem:[%s10742_s1 + $0x728] sm:$0xff] }
 0x50d   :  { %4258 = vrcp.f32 %v1720_v55  ;;  %vm1708_vm14 = vmor %vm1706_vm12, %vm1707_vm11  ;;  %v1732_v2 = vand.u32 2147483648, %v1720_v55  ;;  %vm1726_vm1 = vweird.f32 %v1720_v55  ;;  %v1730_v25 = vand.u32 2147483647, %v1720_v55  ;;  %v4721_v56 = vld [vmem:[%s10742_s1 + $0x588] sm:$0xff] }
 0x50e   :  { %v1703_v61 = vsub.f32 1.0, %v1702_v51  ;;  %4260 = vtanh.f32 %v1636_v58  ;;  %v1690_v43 = vsel %vm1689_vm10, %v4253_v46, %v1686_v10  ;;  %v9234_v46 = vld [vmem:[%s10742_s1 + $0x700] sm:$0xff]  ;;  %v9275_v58 = vld [vmem:[%s10742_s1 + $0x6c8] sm:$0xff] }
 0x50f   :  { %v1695_v32 = vsel %vm1692_vm13, %v1694_v0, %v1690_v43  ;;  %v1733_v27 = vor.u32 1.1754944e-38, %v1732_v2  ;;  %vm1731_vm3 = vcmp.eq.f32.partialorder %v1730_v25, 8.507059e+37  ;;  %v4723_v51 = vld [vmem:[%s10742_s1 + $0x568] sm:$0xff]  ;;  %v9288_v10 = vld [vmem:[%s10742_s1 + $0x6a0] sm:$0xff] }
 0x510   :  { %v1704_v40 = vmul.f32 %v4257_v36, %v1703_v61  ;;  %v4724_v61 = vld [vmem:[%s10742_s1 + $0x540] sm:$0xff]  ;;  %v4735_v25 = vld [vmem:[%s10742_s1 + $0x4a8] sm:$0xff] }
 0x511   :  { %v4726_v43 = vld [vmem:[%s10742_s1 + $0x520] sm:$0xff] }
 0x512   :  { %v1705_v6 = vadd.f32 %v4257_v36, %v1704_v40  ;;  %v9311_v40 = vld [vmem:[%s10742_s1 + $0x688] sm:$0xff]  ;;  %v9324_v0 = vld [vmem:[%s10742_s1 + $0x660] sm:$0xff] }
 0x513   :  { %v4259_v38 = vpop.eup %4258  ;;  %v4734_v2 = vld [vmem:[%s10742_s1 + $0x4a0] sm:$0xff] }
 0x514   :  { %v1709_v18 = vsel %vm1708_vm14, %v4257_v36, %v1705_v6  ;;  %v1722_v5 = vmul.f32 %v4259_v38, %v1720_v55  ;;  %v4261_v14 = vpop.eup %4260  ;;  %vm1727_vm0 = vweird.f32 %v4259_v38  ;;  %v9270_v36 = vld [vmem:[%s10742_s1 + $0x6c0] sm:$0xff]  ;;  %v9329_v6 = vld [vmem:[%s10742_s1 + $0x668] sm:$0xff] }
 0x515   :  { %v1714_v26 = vsel %vm1711_vm15, %v1713_v23, %v1709_v18  ;;  %v1737_v42 = vmul.f32 %v4261_v14, %v1695_v32  ;;  %vm1728_vm2 = vmor %vm1726_vm1, %vm1727_vm0  ;;  %v4722_v55 = vld [vmem:[%s10742_s1 + $0x560] sm:$0xff]  ;;  %v4729_v23 = vld [vmem:[%s10742_s1 + $0x508] sm:$0xff] }
 0x516   :  { %v1736_v44 = vmul.f32 %v1714_v26, %v8998_v12  ;;  %v1723_v8 = vsub.f32 1.0, %v1722_v5  ;;  %v9140_v12 = vld [vmem:[%s10742_s1 + $0x7e0] sm:$0xff]  ;;  %v9347_v18 = vld [vmem:[%s10742_s1 + $0x648] sm:$0xff] }
 0x517   :  { %v9342_v32 = vld [vmem:[%s10742_s1 + $0x640] sm:$0xff]  ;;  %v4731_v14 = vld [vmem:[%s10742_s1 + $0x4e8] sm:$0xff] }
 0x518   :  { %v9134_v29 = vadd.f32 %v1737_v42, %v1736_v44  ;;  %v1724_v45 = vmul.f32 %v4259_v38, %v1723_v8  ;;  %v4730_v5 = vld [vmem:[%s10742_s1 + $0x4e0] sm:$0xff]  ;;  %v9365_v44 = vld [vmem:[%s10742_s1 + $0x628] sm:$0xff] }
 0x519   :  { %v9360_v26 = vld [vmem:[%s10742_s1 + $0x620] sm:$0xff]  ;;  %v4733_v8 = vld [vmem:[%s10742_s1 + $0x4c8] sm:$0xff] }
 0x51a   :  { %12080 = vst [vmem:[#allocation40_spill] sm:$0xff] %v9134_v29  ;;  %4262 = vtanh.f32 %v9134_v29  ;;  %v1725_v15 = vadd.f32 %v4259_v38, %v1724_v45  ;;  %v4732_v42 = vld [vmem:[%s10742_s1 + $0x4c0] sm:$0xff]  ;;  %v9610_v29 = vld [vmem:[%s10742_s1 + $0x670] sm:$0xff] }
 0x51b   :  { %v9378_v45 = vld [vmem:[%s10742_s1 + $0x600] sm:$0xff]  ;;  %12106 = vst [vmem:[#allocation69_spill] sm:$0xff] %v9610_v29 }
 0x51c   :  { %v1729_v39 = vsel %vm1728_vm2, %v4259_v38, %v1725_v15  ;;  %v4728_v38 = vld [vmem:[%s10742_s1 + $0x500] sm:$0xff]  ;;  %v9383_v15 = vld [vmem:[%s10742_s1 + $0x608] sm:$0xff] }
 0x51d   :  { %v1734_v53 = vsel %vm1731_vm3, %v1733_v27, %v1729_v39  ;;  %v9396_v39 = vld [vmem:[%s10742_s1 + $0x7f0] sm:$0xff]  ;;  %v9401_v27 = vld [vmem:[%s10742_s1 + $0x7f8] sm:$0xff] }
 0x51e   :  { %12081 = vst [vmem:[#allocation54_spill] sm:$0xff] %v9401_v27 }
 0x520   :  { %v4263_v22 = vpop.eup %4262 }
 0x521   :  { %v1740_v3 = vmul.f32 %v4263_v22, %v1734_v53  ;;  %v4736_v22 = vld [vmem:[%s10742_s1 + $0x480] sm:$0xff]  ;;  %v4737_v53 = vld [vmem:[%s10742_s1 + $0x488] sm:$0xff] }
 0x523   :  { %1781 = vmatmul.f32.vlgmr.msra.gmra.mxu1 %v1740_v3  ;;  %1821 = vmatmul.f32.vlgmr.msra.gmra.mxu3 %v1740_v3 }
 0x524   :  { %2131 = vmatpush.msra.mxu1 %v9140_v12  ;;  %2171 = vmatpush.msra.mxu3 %v9145_v48 }
 0x525   :  { %3513 = vmatmul.f32.vlgmr.msra.gmra.mxu0 %v1740_v3  ;;  %3553 = vmatmul.f32.vlgmr.msra.gmra.mxu2 %v1740_v3 }
 0x526   :  { %2132 = vmatpush.msra.mxu1 %v9150_v35  ;;  %2172 = vmatpush.msra.mxu3 %v9155_v54 }
 0x527   :  { %3728 = vmatpush.msra.mxu0 %v4714_v1  ;;  %3768 = vmatpush.msra.mxu2 %v4715_v21  ;;  %v9416_v1 = vld [vmem:[%s10742_s1 + $0x7d0] sm:$0xff]  ;;  %v9421_v21 = vld [vmem:[%s10742_s1 + $0x7d8] sm:$0xff] }
 0x528   :  { %2133 = vmatpush.msra.mxu1 %v9162_v16  ;;  %2173 = vmatpush.msra.mxu3 %v9167_v63  ;;  %12083 = vst [vmem:[#allocation58_spill] sm:$0xff] %v9416_v1 }
 0x529   :  { %3729 = vmatpush.msra.mxu0 %v4716_v49  ;;  %3769 = vmatpush.msra.mxu2 %v4717_v24  ;;  %12084 = vst [vmem:[#allocation60_spill] sm:$0xff] %v9421_v21  ;;  %v9426_v49 = vld [vmem:[%s10745_s3] sm:$0xff]  ;;  %v9434_v24 = vld [vmem:[%s10742_s1 + $0x7b0] sm:$0xff] }
 0x52a   :  { %2134 = vmatpush.msra.mxu1 %v9174_v37  ;;  %2174 = vmatpush.msra.mxu3 %v9179_v9  ;;  %12085 = vst [vmem:[#allocation46_spill] sm:$0xff] %v9426_v49  ;;  %vm2334_vm4 = vcmp.eq.s32.totalorder %v9426_v49, 1  ;;  %v9597_v49 = vld [vmem:[%s10742_s1 + $0x698] sm:$0xff] }
 0x52b   :  { %1861 = vmatmul.f32.vlgmr.msrb.gmra.mxu1 %v1740_v3  ;;  %1901 = vmatmul.f32.vlgmr.msrb.gmra.mxu3 %v1740_v3  ;;  %12086 = vst [vmem:[#allocation62_spill] sm:$0xff] %v9434_v24 }
 0x52c   :  { %2135 = vmatpush.msra.mxu1 %v9192_v62  ;;  %2175 = vmatpush.msra.mxu3 %v9197_v11  ;;  %12105 = vst [vmem:[#allocation21_spill] sm:$0xff] %v9597_v49 }
 0x52d   :  { %3593 = vmatmul.f32.vlgmr.msrb.gmra.mxu0 %v1740_v3  ;;  %3633 = vmatmul.f32.vlgmr.msrb.gmra.mxu2 %v1740_v3  ;;  %v12082_v3 = vmov 0.0  }
 0x52e   :  { %2136 = vmatpush.msra.mxu1 %v9210_v17  ;;  %2176 = vmatpush.msra.mxu3 %v9215_v30 }
 0x52f   :  { %3730 = vmatpush.msra.mxu0 %v4718_v4  ;;  %3770 = vmatpush.msra.mxu2 %v4719_v60  ;;  %v9439_v4 = vld [vmem:[%s10742_s1 + $0x7b8] sm:$0xff]  ;;  %v11210_v60 = vmov 0  }
 0x530   :  { %2137 = vmatpush.msra.mxu1 %v9222_v47  ;;  %2177 = vmatpush.msra.mxu3 %v9227_v50  ;;  %12087 = vst [vmem:[#allocation70_spill] sm:$0xff] %v9439_v4 }
 0x531   :  { %3731 = vmatpush.msra.mxu0 %v4720_v7  ;;  %3771 = vmatpush.msra.mxu2 %v4721_v56  ;;  %v2335_v7 = vsel %vm2334_vm4, 1, %v11210_v60  ;;  %v4738_v56 = vld [vmem:[%s10742_s1 + $0x460] sm:$0xff] }
 0x532   :  { %2138 = vmatpush.msra.mxu1 %v9234_v46  ;;  %2178 = vmatpush.msra.mxu3 %v9239_v41 }
 0x533   :  { %3732 = vmatpush.msra.mxu0 %v4722_v55  ;;  %3772 = vmatpush.msra.mxu2 %v4723_v51  ;;  %v9451_v55 = vld [vmem:[%s10742_s1 + $0x790] sm:$0xff]  ;;  %v9456_v51 = vld [vmem:[%s10742_s1 + $0x798] sm:$0xff] }
 0x534   :  { %2139 = vmatpush.msra.mxu1 %v9252_v57  ;;  %2179 = vmatpush.msra.mxu3 %v9257_v33  ;;  %12088 = vst [vmem:[#allocation57_spill] sm:$0xff] %v9451_v55 }
 0x535   :  { %3733 = vmatpush.msra.mxu0 %v4724_v61  ;;  %3773 = vmatpush.msra.mxu2 %v4725_v34  ;;  %12089 = vst [vmem:[#allocation81_spill] sm:$0xff] %v9456_v51  ;;  %v4739_v61 = vld [vmem:[%s10742_s1 + $0x468] sm:$0xff]  ;;  %v9466_v34 = vld [vmem:[%s10742_s1 + $0x770] sm:$0xff] }
 0x536   :  { %2140 = vmatpush.msra.mxu1 %v9270_v36  ;;  %2180 = vmatpush.msra.mxu3 %v9275_v58  ;;  %12090 = vst [vmem:[#allocation73_spill] sm:$0xff] %v9466_v34 }
 0x537   :  { %3734 = vmatpush.msra.mxu0 %v4726_v43  ;;  %3774 = vmatpush.msra.mxu2 %v4727_v19  ;;  %v9471_v43 = vld [vmem:[%s10742_s1 + $0x778] sm:$0xff]  ;;  %v4740_v19 = vld [vmem:[%s10742_s1 + $0x440] sm:$0xff] }
 0x538   :  { %2141 = vmatpush.msra.mxu1 %v9288_v10  ;;  %2181 = vmatpush.msra.mxu3 %v9293_v31  ;;  %12091 = vst [vmem:[#allocation14_spill] sm:$0xff] %v9471_v43 }
 0x539   :  { %3735 = vmatpush.msra.mxu0 %v4728_v38  ;;  %3775 = vmatpush.msra.mxu2 %v4729_v23  ;;  %v4741_v38 = vld [vmem:[%s10742_s1 + $0x448] sm:$0xff]  ;;  %v9484_v23 = vld [vmem:[%s10742_s1 + $0x750] sm:$0xff] }
 0x53a   :  { %2142 = vmatpush.msra.mxu1 %v9306_v20  ;;  %2182 = vmatpush.msra.mxu3 %v9311_v40  ;;  %12092 = vst [vmem:[#allocation76_spill] sm:$0xff] %v9484_v23 }
 0x53b   :  { %3736 = vmatpush.msra.mxu0 %v4730_v5  ;;  %3776 = vmatpush.msra.mxu2 %v4731_v14  ;;  %v9489_v5 = vld [vmem:[%s10742_s1 + $0x758] sm:$0xff]  ;;  %v4742_v14 = vld [vmem:[%s10742_s1 + $0x420] sm:$0xff] }
 0x53c   :  { %2143 = vmatpush.msra.mxu1 %v9324_v0  ;;  %2183 = vmatpush.msra.mxu3 %v9329_v6  ;;  %12093 = vst [vmem:[#allocation74_spill] sm:$0xff] %v9489_v5 }
 0x53d   :  { %3737 = vmatpush.msra.mxu0 %v4732_v42  ;;  %3777 = vmatpush.msra.mxu2 %v4733_v8  ;;  %v4743_v42 = vld [vmem:[%s10742_s1 + $0x428] sm:$0xff]  ;;  %v9502_v8 = vld [vmem:[%s10742_s1 + $0x730] sm:$0xff] }
 0x53e   :  { %2144 = vmatpush.msra.mxu1 %v9342_v32  ;;  %2184 = vmatpush.msra.mxu3 %v9347_v18  ;;  %12094 = vst [vmem:[#allocation75_spill] sm:$0xff] %v9502_v8 }
 0x53f   :  { %3738 = vmatpush.msra.mxu0 %v4734_v2  ;;  %3778 = vmatpush.msra.mxu2 %v4735_v25  ;;  %v9507_v2 = vld [vmem:[%s10742_s1 + $0x738] sm:$0xff]  ;;  %v4744_v25 = vld [vmem:[%s10742_s1 + $0x400] sm:$0xff] }
 0x540   :  { %2145 = vmatpush.msra.mxu1 %v9360_v26  ;;  %2185 = vmatpush.msra.mxu3 %v9365_v44  ;;  %12095 = vst [vmem:[#allocation72_spill] sm:$0xff] %v9507_v2 }
 0x541   :  { %3739 = vmatpush.msra.mxu0 %v4736_v22  ;;  %3779 = vmatpush.msra.mxu2 %v4737_v53  ;;  %v4745_v22 = vld [vmem:[%s10742_s1 + $0x408] sm:$0xff]  ;;  %v9520_v53 = vld [vmem:[%s10742_s1 + $0x710] sm:$0xff] }
 0x542   :  { %2146 = vmatpush.msra.mxu1 %v9378_v45  ;;  %2186 = vmatpush.msra.mxu3 %v9383_v15  ;;  %12096 = vst [vmem:[#allocation64_spill] sm:$0xff] %v9520_v53 }
 0x543   :  { %2147 = vmatmul.f32.vlgmr.msra.gmra.mxu1 %v12082_v3  ;;  %2187 = vmatmul.f32.vlgmr.msra.gmra.mxu3 %v12082_v3 }
 0x544   :  { %2211 = vmatpush.msrb.mxu1 %v9396_v39  ;;  %2251 = vmatpush.msrb.mxu3 %v9401_v27 }
 0x545   :  { %4149 = vset.pattern.permute.xlu0 %v11210_v60  ;;  %3740 = vmatpush.msra.mxu0 %v4738_v56  ;;  %v4746_v56 = vld [vmem:[%s10742_s1 + $0x5f0] sm:$0xff] }
 0x546   :  { %2212 = vmatpush.msrb.mxu1 %v9416_v1  ;;  %2252 = vmatpush.msrb.mxu3 %v9421_v21  ;;  %v9592_v60 = vld [vmem:[%s10742_s1 + $0x690] sm:$0xff] }
 0x547   :  { %2337 = vperm.xlu0 %4149, %v2335_v7   ;;  %3780 = vmatpush.msra.mxu2 %v4739_v61  ;;  %v9525_v7 = vld [vmem:[%s10742_s1 + $0x718] sm:$0xff]  ;;  %12104 = vst [vmem:[#allocation16_spill] sm:$0xff] %v9592_v60 }
 0x548   :  { %2213 = vmatpush.msrb.mxu1 %v9434_v24  ;;  %2253 = vmatpush.msrb.mxu3 %v9439_v4  ;;  %12097 = vst [vmem:[#allocation11_spill] sm:$0xff] %v9525_v7  ;;  %v4747_v61 = vld [vmem:[%s10742_s1 + $0x5f8] sm:$0xff] }
 0x549   :  { %3741 = vmatpush.msra.mxu0 %v4740_v19  ;;  %3781 = vmatpush.msra.mxu2 %v4741_v38  ;;  %v9538_v19 = vld [vmem:[%s10742_s1 + $0x6f0] sm:$0xff]  ;;  %v9543_v38 = vld [vmem:[%s10742_s1 + $0x6f8] sm:$0xff] }
 0x54a   :  { %2214 = vmatpush.msrb.mxu1 %v9451_v55  ;;  %2254 = vmatpush.msrb.mxu3 %v9456_v51  ;;  %12098 = vst [vmem:[#allocation6_spill] sm:$0xff] %v9538_v19 }
 0x54b   :  { %3742 = vmatpush.msra.mxu0 %v4742_v14  ;;  %3782 = vmatpush.msra.mxu2 %v4743_v42  ;;  %12099 = vst [vmem:[#allocation13_spill] sm:$0xff] %v9543_v38  ;;  %v4748_v14 = vld [vmem:[%s10742_s1 + $0x5d0] sm:$0xff]  ;;  %v4749_v42 = vld [vmem:[%s10742_s1 + $0x5d8] sm:$0xff] }
 0x54c   :  { %2215 = vmatpush.msrb.mxu1 %v9466_v34  ;;  %2255 = vmatpush.msrb.mxu3 %v9471_v43 }
 0x54d   :  { %3743 = vmatpush.msra.mxu0 %v4744_v25  ;;  %3783 = vmatpush.msra.mxu2 %v4745_v22  ;;  %v9556_v25 = vld [vmem:[%s10742_s1 + $0x6d0] sm:$0xff]  ;;  %v9561_v22 = vld [vmem:[%s10742_s1 + $0x6d8] sm:$0xff] }
 0x54e   :  { %2216 = vmatpush.msrb.mxu1 %v9484_v23  ;;  %2256 = vmatpush.msrb.mxu3 %v9489_v5  ;;  %12100 = vst [vmem:[#allocation65_spill] sm:$0xff] %v9556_v25 }
 0x54f   :  { %3808 = vmatpush.msrb.mxu0 %v4746_v56  ;;  %3848 = vmatpush.msrb.mxu2 %v4747_v61  ;;  %12101 = vst [vmem:[#allocation67_spill] sm:$0xff] %v9561_v22  ;;  %v4750_v56 = vld [vmem:[%s10742_s1 + $0x5b0] sm:$0xff]  ;;  %v4751_v61 = vld [vmem:[%s10742_s1 + $0x5b8] sm:$0xff] }
 0x550   :  { %2217 = vmatpush.msrb.mxu1 %v9502_v8  ;;  %2257 = vmatpush.msrb.mxu3 %v9507_v2 }
 0x551   :  { %3809 = vmatpush.msrb.mxu0 %v4748_v14  ;;  %3849 = vmatpush.msrb.mxu2 %v4749_v42  ;;  %v9574_v14 = vld [vmem:[%s10742_s1 + $0x6b0] sm:$0xff]  ;;  %v9579_v42 = vld [vmem:[%s10742_s1 + $0x6b8] sm:$0xff] }
 0x552   :  { %2218 = vmatpush.msrb.mxu1 %v9520_v53  ;;  %2258 = vmatpush.msrb.mxu3 %v9525_v7  ;;  %12102 = vst [vmem:[#allocation12_spill] sm:$0xff] %v9574_v14 }
 0x553   :  { %3810 = vmatpush.msrb.mxu0 %v4750_v56  ;;  %3850 = vmatpush.msrb.mxu2 %v4751_v61  ;;  %12103 = vst [vmem:[#allocation17_spill] sm:$0xff] %v9579_v42  ;;  %v4752_v56 = vld [vmem:[%s10742_s1 + $0x590] sm:$0xff]  ;;  %v4753_v61 = vld [vmem:[%s10742_s1 + $0x598] sm:$0xff] }
 0x554   :  { %2219 = vmatpush.msrb.mxu1 %v9538_v19  ;;  %2259 = vmatpush.msrb.mxu3 %v9543_v38 }
 0x555   :  { %3811 = vmatpush.msrb.mxu0 %v4752_v56  ;;  %3851 = vmatpush.msrb.mxu2 %v4753_v61  ;;  %v4754_v56 = vld [vmem:[%s10742_s1 + $0x570] sm:$0xff]  ;;  %v4755_v61 = vld [vmem:[%s10742_s1 + $0x578] sm:$0xff] }
 0x556   :  { %2220 = vmatpush.msrb.mxu1 %v9556_v25  ;;  %2260 = vmatpush.msrb.mxu3 %v9561_v22 }
 0x557   :  { %3812 = vmatpush.msrb.mxu0 %v4754_v56  ;;  %3852 = vmatpush.msrb.mxu2 %v4755_v61  ;;  %v4756_v56 = vld [vmem:[%s10742_s1 + $0x550] sm:$0xff]  ;;  %v4757_v61 = vld [vmem:[%s10742_s1 + $0x558] sm:$0xff] }
 0x558   :  { %2221 = vmatpush.msrb.mxu1 %v9574_v14  ;;  %2261 = vmatpush.msrb.mxu3 %v9579_v42 }
 0x559   :  { %3813 = vmatpush.msrb.mxu0 %v4756_v56  ;;  %3853 = vmatpush.msrb.mxu2 %v4757_v61  ;;  %v4758_v56 = vld [vmem:[%s10742_s1 + $0x530] sm:$0xff]  ;;  %v4759_v61 = vld [vmem:[%s10742_s1 + $0x538] sm:$0xff] }
 0x55a   :  { %2222 = vmatpush.msrb.mxu1 %v9592_v60  ;;  %2262 = vmatpush.msrb.mxu3 %v9597_v49  ;;  %v9651_v49 = vld [vmem:[%s10742_s1 + $0x638] sm:$0xff] }
 0x55b   :  { %3814 = vmatpush.msrb.mxu0 %v4758_v56  ;;  %3854 = vmatpush.msrb.mxu2 %v4759_v61  ;;  %12111 = vst [vmem:[#allocation15_spill] sm:$0xff] %v9651_v49  ;;  %v4760_v56 = vld [vmem:[%s10742_s1 + $0x510] sm:$0xff]  ;;  %v4761_v61 = vld [vmem:[%s10742_s1 + $0x518] sm:$0xff] }
 0x55c   :  { %2223 = vmatpush.msrb.mxu1 %v9610_v29  ;;  %2263 = vmatpush.msrb.mxu3 %v9615_v28  ;;  %v9664_v28 = vld [vmem:[%s10742_s1 + $0x610] sm:$0xff]  ;;  %v9669_v29 = vld [vmem:[%s10742_s1 + $0x618] sm:$0xff] }
 0x55d   :  { %3815 = vmatpush.msrb.mxu0 %v4760_v56  ;;  %3855 = vmatpush.msrb.mxu2 %v4761_v61  ;;  %12112 = vst [vmem:[#allocation24_spill] sm:$0xff] %v9664_v28  ;;  %v4762_v56 = vld [vmem:[%s10742_s1 + $0x4f0] sm:$0xff]  ;;  %v4763_v61 = vld [vmem:[%s10742_s1 + $0x4f8] sm:$0xff] }
 0x55e   :  { %2224 = vmatpush.msrb.mxu1 %v9628_v59  ;;  %2264 = vmatpush.msrb.mxu3 %v9633_v13  ;;  %12113 = vst [vmem:[#allocation29_spill] sm:$0xff] %v9669_v29  ;;  %v4764_v13 = vld [vmem:[%s10742_s1 + $0x4d0] sm:$0xff]  ;;  %v4765_v59 = vld [vmem:[%s10742_s1 + $0x4d8] sm:$0xff] }
 0x55f   :  { %3816 = vmatpush.msrb.mxu0 %v4762_v56  ;;  %3856 = vmatpush.msrb.mxu2 %v4763_v61  ;;  %v4769_v56 = vld [vmem:[%s10742_s1 + $0x498] sm:$0xff]  ;;  %v4770_v61 = vld [vmem:[%s10742_s1 + $0x470] sm:$0xff] }
 0x560   :  { %2225 = vmatpush.msrb.mxu1 %v9646_v52  ;;  %2265 = vmatpush.msrb.mxu3 %v9651_v49 }
 0x561   :  { %3817 = vmatpush.msrb.mxu0 %v4764_v13  ;;  %3857 = vmatpush.msrb.mxu2 %v4765_v59  ;;  %v4766_v13 = vld [vmem:[%s10742_s1 + $0x4b0] sm:$0xff]  ;;  %v4767_v59 = vld [vmem:[%s10742_s1 + $0x4b8] sm:$0xff] }
 0x562   :  { %2226 = vmatpush.msrb.mxu1 %v9664_v28  ;;  %2266 = vmatpush.msrb.mxu3 %v9669_v29 }
 0x563   :  { %2227 = vmatmul.f32.vlgmr.msrb.gmra.mxu1 %v12082_v3  ;;  %2267 = vmatmul.f32.vlgmr.msrb.gmra.mxu3 %v12082_v3  ;;  %v4768_v3 = vld [vmem:[%s10742_s1 + $0x490] sm:$0xff] }
 0x564   :  { %2362 = vmatpush.msra.mxu1 %v9140_v12  ;;  %2402 = vmatpush.msra.mxu3 %v9145_v48 }
 0x565   :  { %3818 = vmatpush.msrb.mxu0 %v4766_v13  ;;  %3858 = vmatpush.msrb.mxu2 %v4767_v59  ;;  %v4771_v13 = vld [vmem:[%s10742_s1 + $0x478] sm:$0xff]  ;;  %v4772_v59 = vld [vmem:[%s10742_s1 + $0x450] sm:$0xff] }
 0x566   :  { %2363 = vmatpush.msra.mxu1 %v9150_v35  ;;  %2403 = vmatpush.msra.mxu3 %v9155_v54 }
 0x567   :  { %3819 = vmatpush.msrb.mxu0 %v4768_v3  ;;  %3859 = vmatpush.msrb.mxu2 %v4769_v56  ;;  %v4773_v3 = vld [vmem:[%s10742_s1 + $0x458] sm:$0xff]  ;;  %v4774_v56 = vld [vmem:[%s10742_s1 + $0x430] sm:$0xff] }
 0x568   :  { %2364 = vmatpush.msra.mxu1 %v9162_v16  ;;  %2404 = vmatpush.msra.mxu3 %v9167_v63 }
 0x569   :  { %3820 = vmatpush.msrb.mxu0 %v4770_v61  ;;  %3860 = vmatpush.msrb.mxu2 %v4771_v13  ;;  %v4775_v61 = vld [vmem:[%s10742_s1 + $0x438] sm:$0xff]  ;;  %v4776_v13 = vld [vmem:[%s10742_s1 + $0x410] sm:$0xff] }
 0x56a   :  { %2365 = vmatpush.msra.mxu1 %v9174_v37  ;;  %2405 = vmatpush.msra.mxu3 %v9179_v9 }
 0x56b   :  { %3821 = vmatpush.msrb.mxu0 %v4772_v59  ;;  %3861 = vmatpush.msrb.mxu2 %v4773_v3  ;;  %v4777_v59 = vld [vmem:[%s10742_s1 + $0x418] sm:$0xff]  ;;  %v12114_v3 = vmov 0  }
 0x56c   :  { %2366 = vmatpush.msra.mxu1 %v9192_v62  ;;  %2406 = vmatpush.msra.mxu3 %v9197_v11 }
 0x56d   :  { %3822 = vmatpush.msrb.mxu0 %v4774_v56  ;;  %3862 = vmatpush.msrb.mxu2 %v4775_v61  ;;  %v12115_v56 = vld [vmem:[#allocation21_spill] sm:$0xff] }
 0x56e   :  { %2367 = vmatpush.msra.mxu1 %v9210_v17  ;;  %2407 = vmatpush.msra.mxu3 %v9215_v30  ;;  %v12116_v61 = vld [vmem:[#allocation69_spill] sm:$0xff] }
 0x56f   :  { %3823 = vmatpush.msrb.mxu0 %v4776_v13  ;;  %3863 = vmatpush.msrb.mxu2 %v4777_v59  ;;  %v12117_v13 = vld [vmem:[#allocation71_spill] sm:$0xff]  ;;  %v1762_v59 = vpop.f32.mrf.mxu0 }
 0x570   :  { %2368 = vmatpush.msra.mxu1 %v9222_v47  ;;  %2408 = vmatpush.msra.mxu3 %v9227_v50 }
 0x571   :  { %4150 = vset.pattern.permute.xlu1 %v12114_v3  ;;  %4151 = vset.pattern.permute.xlu2 %v12114_v3 }
 0x572   :  { %2369 = vmatpush.msra.mxu1 %v9234_v46  ;;  %2409 = vmatpush.msra.mxu3 %v9239_v41 }
 0x574   :  { %2370 = vmatpush.msra.mxu1 %v9252_v57  ;;  %2410 = vmatpush.msra.mxu3 %v9257_v33 }
 0x576   :  { %2371 = vmatpush.msra.mxu1 %v9270_v36  ;;  %2411 = vmatpush.msra.mxu3 %v9275_v58 }
 0x578   :  { %2372 = vmatpush.msra.mxu1 %v9288_v10  ;;  %2412 = vmatpush.msra.mxu3 %v9293_v31 }
 0x57a   :  { %2373 = vmatpush.msra.mxu1 %v9306_v20  ;;  %2413 = vmatpush.msra.mxu3 %v9311_v40 }
 0x57c   :  { %2374 = vmatpush.msra.mxu1 %v9324_v0  ;;  %2414 = vmatpush.msra.mxu3 %v9329_v6 }
 0x57e   :  { %2375 = vmatpush.msra.mxu1 %v9342_v32  ;;  %2415 = vmatpush.msra.mxu3 %v9347_v18 }
 0x580   :  { %2376 = vmatpush.msra.mxu1 %v9360_v26  ;;  %2416 = vmatpush.msra.mxu3 %v9365_v44 }
 0x582   :  { %2377 = vmatpush.msra.mxu1 %v9378_v45  ;;  %2417 = vmatpush.msra.mxu3 %v9383_v15 }
 0x584   :  { %2442 = vmatpush.msrb.mxu1 %v9396_v39  ;;  %2482 = vmatpush.msrb.mxu3 %v9401_v27 }
 0x586   :  { %2443 = vmatpush.msrb.mxu1 %v9416_v1  ;;  %2483 = vmatpush.msrb.mxu3 %v9421_v21 }
 0x588   :  { %2444 = vmatpush.msrb.mxu1 %v9434_v24  ;;  %2484 = vmatpush.msrb.mxu3 %v9439_v4 }
 0x58a   :  { %2445 = vmatpush.msrb.mxu1 %v9451_v55  ;;  %2485 = vmatpush.msrb.mxu3 %v9456_v51 }
 0x58c   :  { %2446 = vmatpush.msrb.mxu1 %v9466_v34  ;;  %2486 = vmatpush.msrb.mxu3 %v9471_v43 }
 0x58e   :  { %2447 = vmatpush.msrb.mxu1 %v9484_v23  ;;  %2487 = vmatpush.msrb.mxu3 %v9489_v5 }
 0x590   :  { %2448 = vmatpush.msrb.mxu1 %v9502_v8  ;;  %2488 = vmatpush.msrb.mxu3 %v9507_v2 }
 0x592   :  { %2449 = vmatpush.msrb.mxu1 %v9520_v53  ;;  %2489 = vmatpush.msrb.mxu3 %v9525_v7  ;;  %v12122_v53 = vld [vmem:[#allocation9_spill] sm:$0xff] }
 0x594   :  { %2450 = vmatpush.msrb.mxu1 %v9538_v19  ;;  %2490 = vmatpush.msrb.mxu3 %v9543_v38  ;;  %v12118_v19 = vld [vmem:[#allocation8_spill] sm:$0xff] }
 0x595   :  { %v1763_v7 = vadd.f32 %v1762_v59, %v12118_v19  ;;  %v12119_v38 = vld [vmem:[#allocation20_spill] sm:$0xff] }
 0x596   :  { %2451 = vmatpush.msrb.mxu1 %v9556_v25  ;;  %2491 = vmatpush.msrb.mxu3 %v9561_v22  ;;  %v12120_v25 = vld [vmem:[#allocation25_spill] sm:$0xff] }
 0x598   :  { %2452 = vmatpush.msrb.mxu1 %v9574_v14  ;;  %2492 = vmatpush.msrb.mxu3 %v9579_v42  ;;  %v1802_v42 = vpop.f32.mrf.mxu2 }
 0x59a   :  { %2453 = vmatpush.msrb.mxu1 %v9592_v60  ;;  %2493 = vmatpush.msrb.mxu3 %v12115_v56 }
 0x59c   :  { %2454 = vmatpush.msrb.mxu1 %v12116_v61  ;;  %2494 = vmatpush.msrb.mxu3 %v12117_v13  ;;  %v12121_v61 = vld [vmem:[#allocation3_spill] sm:$0xff] }
 0x59d   :  { %v1803_v13 = vadd.f32 %v1802_v42, %v12121_v61  ;;  %v1842_v42 = vpop.f32.mrf.mxu0 }
 0x59e   :  { %2455 = vmatpush.msrb.mxu1 %v12119_v38  ;;  %2495 = vmatpush.msrb.mxu3 %v12120_v25 }
 0x5a0   :  { %2456 = vmatpush.msrb.mxu1 %v9646_v52  ;;  %2496 = vmatpush.msrb.mxu3 %v9651_v49  ;;  %v1782_v14 = vpop.f32.mrf.mxu1  ;;  %v1882_v22 = vpop.f32.mrf.mxu2 }
 0x5a1   :  { %v1783_v60 = vadd.f32 %v1782_v14, %v1763_v7  ;;  %v1883_v52 = vadd.f32 %v1882_v22, %v12122_v53 }
 0x5a2   :  { %2457 = vmatpush.msrb.mxu1 %v9664_v28  ;;  %2497 = vmatpush.msrb.mxu3 %v9669_v29 }
 0x5a3   :  { %v3991_v56 = vmul.f32 -1.442695, %v1783_v60 }
 0x5a5   :  { %4264 = vpow2.f32 %v3991_v56  ;;  %v12123_v56 = vld [vmem:[#allocation10_spill] sm:$0xff] }
 0x5a6   :  { %v1822_v19 = vpop.f32.mrf.mxu3  ;;  %v1843_v61 = vadd.f32 %v1842_v42, %v12123_v56 }
 0x5a7   :  { %v1823_v59 = vadd.f32 %v1822_v19, %v1803_v13 }
 0x5a8   :  { %v1862_v19 = vpop.f32.mrf.mxu1  ;;  %v2168_v51 = vpop.f32.mrf.mxu2 }
 0x5a9   :  { %v3992_v38 = vmul.f32 -1.442695, %v1823_v59 }
 0x5ab   :  { %v4265_v25 = vpop.eup %4264  ;;  %4266 = vpow2.f32 %v3992_v38  ;;  %v9798_v38 = vld [vmem:[%s10744_s2 + $0x4] sm:$0xf] }
 0x5ac   :  { %v1908_v49 = vadd.f32 1.0, %v4265_v25 }
 0x5ae   :  { %4268 = vrcp.f32 %v1908_v49  ;;  %v1902_v2 = vpop.f32.mrf.mxu3  ;;  %v1920_v22 = vand.u32 2147483648, %v1908_v49  ;;  %vm1914_vm6 = vweird.f32 %v1908_v49  ;;  %v1918_v42 = vand.u32 2147483647, %v1908_v49 }
 0x5af   :  { %v1903_v7 = vadd.f32 %v1902_v2, %v1883_v52  ;;  %v1863_v52 = vadd.f32 %v1862_v19, %v1843_v61 }
 0x5b0   :  { %v1921_v23 = vor.u32 1.1754944e-38, %v1920_v22  ;;  %vm1919_vm10 = vcmp.eq.f32.partialorder %v1918_v42, 8.507059e+37  ;;  %v12128_v22 = vld [vmem:[#allocation40_spill] sm:$0xff] }
 0x5b1   :  { %v4267_v14 = vpop.eup %4266  ;;  %v3993_v28 = vmul.f32 -1.442695, %v1903_v7  ;;  %v9801_v7 = vperm.slane %v9798_v38, 0 }
 0x5b2   :  { %v1927_v8 = vadd.f32 1.0, %v4267_v14 }
 0x5b3   :  { %4270 = vpow2.f32 %v3993_v28  ;;  %12124 = vst [vmem:[#allocation5_spill] sm:$0xff] %v9801_v7 }
 0x5b4   :  { %v4269_v29 = vpop.eup %4268  ;;  %4272 = vrcp.f32 %v1927_v8  ;;  %v1939_v56 = vand.u32 2147483648, %v1927_v8  ;;  %v1937_v19 = vand.u32 2147483647, %v1927_v8  ;;  %vm1933_vm9 = vweird.f32 %v1927_v8 }
 0x5b5   :  { %v1910_v60 = vmul.f32 %v4269_v29, %v1908_v49  ;;  %vm1915_vm5 = vweird.f32 %v4269_v29 }
 0x5b6   :  { %vm9803_vm7 = vmor %vm1914_vm6, %vm1915_vm5  ;;  %vm1938_vm12 = vcmp.eq.f32.partialorder %v1937_v19, 8.507059e+37 }
 0x5b7   :  { %v1911_v13 = vsub.f32 1.0, %v1910_v60  ;;  %v2128_v60 = vpop.f32.mrf.mxu0 }
 0x5b8   :  { %v2129_v49 = vadd.f32 %v2128_v60, %v9801_v7 }
 0x5b9   :  { %v4271_v59 = vpop.eup %4270  ;;  %v1912_v5 = vmul.f32 %v4269_v29, %v1911_v13 }
 0x5ba   :  { %v4273_v53 = vpop.eup %4272  ;;  %v1947_v2 = vadd.f32 1.0, %v4271_v59  ;;  %v9810_v59 = vperm.slane %v9798_v38, 1 }
 0x5bb   :  { %v1929_v25 = vmul.f32 %v4273_v53, %v1927_v8  ;;  %v1913_v28 = vadd.f32 %v4269_v29, %v1912_v5  ;;  %vm1934_vm8 = vweird.f32 %v4273_v53 }
 0x5bc   :  { %4274 = vrcp.f32 %v1947_v2  ;;  %12127 = vst [vmem:[#allocation4_spill] sm:$0xff] %v9810_v59  ;;  %vm1935_vm11 = vmor %vm1933_vm9, %vm1934_vm8  ;;  %v2169_v24 = vadd.f32 %v2168_v51, %v9810_v59  ;;  %vm1953_vm14 = vweird.f32 %v1947_v2 }
 0x5bd   :  { %v1930_v14 = vsub.f32 1.0, %v1929_v25  ;;  %4276 = vtanh.f32 %v1863_v52  ;;  %v1917_v5 = vsel %vm9803_vm7, %v4269_v29, %v1913_v28  ;;  %v1940_v52 = vor.u32 1.1754944e-38, %v1939_v56 }
 0x5be   :  { %v1957_v56 = vand.u32 2147483647, %v1947_v2 }
 0x5bf   :  { %v1931_v61 = vmul.f32 %v4273_v53, %v1930_v14  ;;  %v1922_v14 = vsel %vm1919_vm10, %v1921_v23, %v1917_v5  ;;  %v1959_v23 = vand.u32 2147483648, %v1947_v2 }
 0x5c0   :  { %v2148_v25 = vpop.f32.mrf.mxu1  ;;  %vm1958_vm0 = vcmp.eq.f32.partialorder %v1957_v56, 8.507059e+37 }
 0x5c1   :  { %v1932_v43 = vadd.f32 %v4273_v53, %v1931_v61  ;;  %v2149_v29 = vadd.f32 %v2148_v25, %v2129_v49  ;;  %v1960_v51 = vor.u32 1.1754944e-38, %v1959_v23 }
 0x5c2   :  { %v4275_v34 = vpop.eup %4274 }
 0x5c3   :  { %v1936_v55 = vsel %vm1935_vm11, %v4273_v53, %v1932_v43  ;;  %v1949_v13 = vmul.f32 %v4275_v34, %v1947_v2  ;;  %v4277_v28 = vpop.eup %4276  ;;  %v4123_v7 = vmul.f32 -1.442695, %v2149_v29  ;;  %vm1954_vm13 = vweird.f32 %v4275_v34 }
 0x5c4   :  { %v1941_v4 = vsel %vm1938_vm12, %v1940_v52, %v1936_v55  ;;  %v1964_v1 = vmul.f32 %v4277_v28, %v1922_v14  ;;  %vm1955_vm15 = vmor %vm1953_vm14, %vm1954_vm13  ;;  %v9819_v14 = vperm.slane %v9798_v38, 2 }
 0x5c5   :  { %v1963_v21 = vmul.f32 %v1941_v4, %v12128_v22  ;;  %v1950_v60 = vsub.f32 1.0, %v1949_v13  ;;  %v2208_v13 = vpop.f32.mrf.mxu0 }
 0x5c6   :  { %v2188_v8 = vpop.f32.mrf.mxu3  ;;  %12130 = vst [vmem:[#allocation85_spill] sm:$0xff] %v9819_v14 }
 0x5c7   :  { %v1965_v42 = vadd.f32 %v1964_v1, %v1963_v21  ;;  %v1951_v61 = vmul.f32 %v4275_v34, %v1950_v60  ;;  %v2189_v27 = vadd.f32 %v2188_v8, %v2169_v24 }
 0x5c9   :  { %4278 = vtanh.f32 %v1965_v42  ;;  %v4124_v43 = vmul.f32 -1.442695, %v2189_v27  ;;  %v1952_v53 = vadd.f32 %v4275_v34, %v1951_v61  ;;  %v2209_v42 = vadd.f32 %v2208_v13, %v9819_v14 }
 0x5ca   :  { %4280 = vpow2.f32 %v4123_v7  ;;  %v9816_v7 = vperm.slane %v9798_v38, 3 }
 0x5cb   :  { %4282 = vpow2.f32 %v4124_v43  ;;  %v1956_v55 = vsel %vm1955_vm15, %v4275_v34, %v1952_v53  ;;  %v2248_v34 = vpop.f32.mrf.mxu2 }
 0x5cc   :  { %v1961_v5 = vsel %vm1958_vm0, %v1960_v51, %v1956_v55  ;;  %12129 = vst [vmem:[#allocation84_spill] sm:$0xff] %v9816_v7  ;;  %v2249_v29 = vadd.f32 %v2248_v34, %v9816_v7 }
 0x5cf   :  { %v4279_v4 = vpop.eup %4278 }
 0x5d0   :  { %v1967_v19 = vmul.f32 %v4279_v4, %v1961_v5  ;;  %v4281_v1 = vpop.eup %4280  ;;  %v12131_v5 = vld [vmem:[#allocation46_spill] sm:$0xff] }
 0x5d1   :  { %v4283_v21 = vpop.eup %4282  ;;  %v2274_v24 = vadd.f32 1.0, %v4281_v1  ;;  %vm2565_vm4 = vcmp.eq.s32.totalorder %v12131_v5, 2  ;;  %vm2796_vm14 = vcmp.eq.s32.totalorder %v12131_v5, 3 }
 0x5d2   :  { %3744 = vmatmul.f32.vlgmr.msra.gmra.mxu0 %v1967_v19  ;;  %3784 = vmatmul.f32.vlgmr.msra.gmra.mxu2 %v1967_v19  ;;  %v2293_v25 = vadd.f32 1.0, %v4283_v21  ;;  %v2566_v34 = vsel %vm2565_vm4, 1, %v12114_v3 }
 0x5d3   :  { %4284 = vrcp.f32 %v2274_v24  ;;  %vm2280_vm3 = vweird.f32 %v2274_v24  ;;  %v2286_v4 = vand.u32 2147483648, %v2274_v24  ;;  %v2284_v1 = vand.u32 2147483647, %v2274_v24  ;;  %2568 = vperm.xlu0 %4149, %v2566_v34  }
 0x5d4   :  { %4286 = vrcp.f32 %v2293_v25  ;;  %v2305_v51 = vand.u32 2147483648, %v2293_v25  ;;  %vm2299_vm5 = vweird.f32 %v2293_v25  ;;  %v2303_v21 = vand.u32 2147483647, %v2293_v25 }
 0x5d5   :  { %vm2285_vm8 = vcmp.eq.f32.partialorder %v2284_v1, 8.507059e+37 }
 0x5d6   :  { %vm2304_vm9 = vcmp.eq.f32.partialorder %v2303_v21, 8.507059e+37 }
 0x5d9   :  { %v4285_v27 = vpop.eup %4284 }
 0x5da   :  { %3824 = vmatmul.f32.vlgmr.msrb.gmra.mxu0 %v1967_v19  ;;  %3864 = vmatmul.f32.vlgmr.msrb.gmra.mxu2 %v1967_v19  ;;  %v4287_v2 = vpop.eup %4286  ;;  %v2276_v49 = vmul.f32 %v4285_v27, %v2274_v24  ;;  %vm2281_vm1 = vweird.f32 %v4285_v27 }
 0x5db   :  { %v2295_v52 = vmul.f32 %v4287_v2, %v2293_v25  ;;  %vm2300_vm2 = vweird.f32 %v4287_v2  ;;  %vm9824_vm6 = vmor %vm2280_vm3, %vm2281_vm1 }
 0x5dc   :  { %v2277_v28 = vsub.f32 1.0, %v2276_v49  ;;  %vm2301_vm7 = vmor %vm2299_vm5, %vm2300_vm2 }
 0x5dd   :  { %v2296_v22 = vsub.f32 1.0, %v2295_v52 }
 0x5de   :  { %v2278_v56 = vmul.f32 %v4285_v27, %v2277_v28 }
 0x5df   :  { %v2297_v53 = vmul.f32 %v4287_v2, %v2296_v22  ;;  %v2306_v22 = vor.u32 1.1754944e-38, %v2305_v51 }
 0x5e0   :  { %v2228_v60 = vpop.f32.mrf.mxu1  ;;  %v2279_v55 = vadd.f32 %v4285_v27, %v2278_v56 }
 0x5e1   :  { %v2229_v23 = vadd.f32 %v2228_v60, %v2209_v42  ;;  %v2298_v38 = vadd.f32 %v4287_v2, %v2297_v53  ;;  %v2287_v60 = vor.u32 1.1754944e-38, %v2286_v4 }
 0x5e2   :  { %v2283_v52 = vsel %vm9824_vm6, %v4285_v27, %v2279_v55 }
 0x5e3   :  { %v2302_v13 = vsel %vm2301_vm7, %v4287_v2, %v2298_v38 }
 0x5e4   :  { %v2307_v42 = vsel %vm2304_vm9, %v2306_v22, %v2302_v13 }
 0x5e5   :  { %v2329_v25 = vmul.f32 0.0, %v2307_v42 }
 0x5e6   :  { %v2268_v8 = vpop.f32.mrf.mxu3 }
 0x5e7   :  { %v2269_v61 = vadd.f32 %v2268_v8, %v2249_v29  ;;  %v2288_v8 = vsel %vm2285_vm8, %v2287_v60, %v2283_v52  ;;  %v2399_v52 = vpop.f32.mrf.mxu2 }
 0x5e9   :  { %v4125_v43 = vmul.f32 -1.442695, %v2269_v61 }
 0x5eb   :  { %4288 = vpow2.f32 %v4125_v43 }
 0x5ec   :  { %4290 = vtanh.f32 %v2229_v23 }
 0x5f1   :  { %v4289_v49 = vpop.eup %4288 }
 0x5f2   :  { %v2313_v29 = vadd.f32 1.0, %v4289_v49  ;;  %v4291_v28 = vpop.eup %4290 }
 0x5f3   :  { %v2330_v24 = vmul.f32 %v4291_v28, %v2288_v8  ;;  %v2479_v8 = vpop.f32.mrf.mxu2 }
 0x5f4   :  { %4292 = vrcp.f32 %v2313_v29  ;;  %v2325_v27 = vand.u32 2147483648, %v2313_v29  ;;  %v2323_v56 = vand.u32 2147483647, %v2313_v29  ;;  %vm2319_vm11 = vweird.f32 %v2313_v29 }
 0x5f5   :  { %v9831_v23 = vadd.f32 %v2330_v24, %v2329_v25  ;;  %v2480_v25 = vadd.f32 %v2479_v8, %v9816_v7 }
 0x5f6   :  { %v2326_v38 = vor.u32 1.1754944e-38, %v2325_v27  ;;  %vm2324_vm13 = vcmp.eq.f32.partialorder %v2323_v56, 8.507059e+37 }
 0x5f7   :  { %4294 = vtanh.f32 %v9831_v23 }
 0x5fa   :  { %v4293_v61 = vpop.eup %4292 }
 0x5fb   :  { %v2315_v43 = vmul.f32 %v4293_v61, %v2313_v29  ;;  %vm2320_vm10 = vweird.f32 %v4293_v61  ;;  %v2400_v29 = vadd.f32 %v2399_v52, %v9810_v59 }
 0x5fc   :  { %vm2321_vm12 = vmor %vm2319_vm11, %vm2320_vm10 }
 0x5fd   :  { %v2316_v53 = vsub.f32 1.0, %v2315_v43  ;;  %v4295_v4 = vpop.eup %4294 }
 0x5ff   :  { %v2317_v2 = vmul.f32 %v4293_v61, %v2316_v53 }
 0x601   :  { %v2318_v55 = vadd.f32 %v4293_v61, %v2317_v2 }
 0x603   :  { %v2322_v51 = vsel %vm2321_vm12, %v4293_v61, %v2318_v55 }
 0x604   :  { %v2327_v19 = vsel %vm2324_vm13, %v2326_v38, %v2322_v51 }
 0x605   :  { %v9834_v1 = vmul.f32 %v4295_v4, %v2327_v19 }
 0x607   :  { %2378 = vmatmul.f32.vlgmr.msra.gmra.mxu1 %v9834_v1  ;;  %2418 = vmatmul.f32.vlgmr.msra.gmra.mxu3 %v9834_v1 }
 0x608   :  { %2593 = vmatpush.msra.mxu1 %v9140_v12  ;;  %2633 = vmatpush.msra.mxu3 %v9145_v48  ;;  %v12134_v12 = vld [vmem:[#allocation54_spill] sm:$0xff] }
 0x609   :  { %v12135_v48 = vld [vmem:[#allocation58_spill] sm:$0xff] }
 0x60a   :  { %2594 = vmatpush.msra.mxu1 %v9150_v35  ;;  %2634 = vmatpush.msra.mxu3 %v9155_v54  ;;  %v12136_v35 = vld [vmem:[#allocation60_spill] sm:$0xff]  ;;  %v12137_v54 = vld [vmem:[#allocation62_spill] sm:$0xff] }
 0x60c   :  { %2595 = vmatpush.msra.mxu1 %v9162_v16  ;;  %2635 = vmatpush.msra.mxu3 %v9167_v63  ;;  %v12138_v16 = vld [vmem:[#allocation70_spill] sm:$0xff]  ;;  %v12139_v63 = vld [vmem:[#allocation57_spill] sm:$0xff] }
 0x60e   :  { %2596 = vmatpush.msra.mxu1 %v9174_v37  ;;  %2636 = vmatpush.msra.mxu3 %v9179_v9  ;;  %v12140_v37 = vld [vmem:[#allocation81_spill] sm:$0xff] }
 0x60f   :  { %2458 = vmatmul.f32.vlgmr.msrb.gmra.mxu1 %v9834_v1  ;;  %2498 = vmatmul.f32.vlgmr.msrb.gmra.mxu3 %v9834_v1  ;;  %v12141_v9 = vld [vmem:[#allocation73_spill] sm:$0xff] }
 0x610   :  { %2597 = vmatpush.msra.mxu1 %v9192_v62  ;;  %2637 = vmatpush.msra.mxu3 %v9197_v11  ;;  %v12142_v62 = vld [vmem:[#allocation14_spill] sm:$0xff]  ;;  %v12143_v11 = vld [vmem:[#allocation76_spill] sm:$0xff] }
 0x612   :  { %2598 = vmatpush.msra.mxu1 %v9210_v17  ;;  %2638 = vmatpush.msra.mxu3 %v9215_v30  ;;  %v12144_v17 = vld [vmem:[#allocation74_spill] sm:$0xff]  ;;  %v12145_v30 = vld [vmem:[#allocation75_spill] sm:$0xff] }
 0x614   :  { %2599 = vmatpush.msra.mxu1 %v9222_v47  ;;  %2639 = vmatpush.msra.mxu3 %v9227_v50  ;;  %v12146_v47 = vld [vmem:[#allocation72_spill] sm:$0xff] }
 0x615   :  { %v12147_v50 = vld [vmem:[#allocation64_spill] sm:$0xff] }
 0x616   :  { %2600 = vmatpush.msra.mxu1 %v9234_v46  ;;  %2640 = vmatpush.msra.mxu3 %v9239_v41  ;;  %v12148_v46 = vld [vmem:[#allocation11_spill] sm:$0xff]  ;;  %v12149_v41 = vld [vmem:[#allocation6_spill] sm:$0xff] }
 0x618   :  { %2601 = vmatpush.msra.mxu1 %v9252_v57  ;;  %2641 = vmatpush.msra.mxu3 %v9257_v33  ;;  %v12150_v57 = vld [vmem:[#allocation13_spill] sm:$0xff] }
 0x619   :  { %v12151_v33 = vld [vmem:[#allocation65_spill] sm:$0xff] }
 0x61a   :  { %2602 = vmatpush.msra.mxu1 %v9270_v36  ;;  %2642 = vmatpush.msra.mxu3 %v9275_v58  ;;  %v12152_v36 = vld [vmem:[#allocation67_spill] sm:$0xff]  ;;  %v12153_v58 = vld [vmem:[#allocation12_spill] sm:$0xff] }
 0x61c   :  { %2603 = vmatpush.msra.mxu1 %v9288_v10  ;;  %2643 = vmatpush.msra.mxu3 %v9293_v31  ;;  %v12154_v10 = vld [vmem:[#allocation17_spill] sm:$0xff]  ;;  %v12155_v31 = vld [vmem:[#allocation16_spill] sm:$0xff] }
 0x61e   :  { %2604 = vmatpush.msra.mxu1 %v9306_v20  ;;  %2644 = vmatpush.msra.mxu3 %v9311_v40  ;;  %v12156_v20 = vld [vmem:[#allocation21_spill] sm:$0xff] }
 0x61f   :  { %v12157_v40 = vld [vmem:[#allocation69_spill] sm:$0xff] }
 0x620   :  { %2605 = vmatpush.msra.mxu1 %v9324_v0  ;;  %2645 = vmatpush.msra.mxu3 %v9329_v6  ;;  %v12158_v0 = vld [vmem:[#allocation71_spill] sm:$0xff]  ;;  %v12159_v6 = vld [vmem:[#allocation20_spill] sm:$0xff] }
 0x622   :  { %2606 = vmatpush.msra.mxu1 %v9342_v32  ;;  %2646 = vmatpush.msra.mxu3 %v9347_v18  ;;  %v12160_v32 = vld [vmem:[#allocation25_spill] sm:$0xff] }
 0x623   :  { %v12161_v18 = vld [vmem:[#allocation77_spill] sm:$0xff] }
 0x624   :  { %2607 = vmatpush.msra.mxu1 %v9360_v26  ;;  %2647 = vmatpush.msra.mxu3 %v9365_v44  ;;  %v12162_v26 = vld [vmem:[#allocation15_spill] sm:$0xff]  ;;  %v12163_v44 = vld [vmem:[#allocation24_spill] sm:$0xff] }
 0x626   :  { %2608 = vmatpush.msra.mxu1 %v9378_v45  ;;  %2648 = vmatpush.msra.mxu3 %v9383_v15  ;;  %v12164_v45 = vld [vmem:[#allocation29_spill] sm:$0xff]  ;;  %v2359_v15 = vpop.f32.mrf.mxu0 }
 0x628   :  { %2673 = vmatpush.msrb.mxu1 %v9396_v39  ;;  %2713 = vmatpush.msrb.mxu3 %v12134_v12  ;;  %v12165_v39 = vld [vmem:[#allocation5_spill] sm:$0xff] }
 0x629   :  { %v2360_v21 = vadd.f32 %v2359_v15, %v12165_v39 }
 0x62a   :  { %2674 = vmatpush.msrb.mxu1 %v12135_v48  ;;  %2714 = vmatpush.msrb.mxu3 %v12136_v35 }
 0x62c   :  { %2675 = vmatpush.msrb.mxu1 %v12137_v54  ;;  %2715 = vmatpush.msrb.mxu3 %v12138_v16 }
 0x62e   :  { %2676 = vmatpush.msrb.mxu1 %v12139_v63  ;;  %2716 = vmatpush.msrb.mxu3 %v12140_v37  ;;  %v2439_v55 = vpop.f32.mrf.mxu0 }
 0x62f   :  { %v2440_v19 = vadd.f32 %v2439_v55, %v9819_v14  ;;  %v9920_v55 = vld [vmem:[%s10742_s1 + $0x7e0] sm:$0xff] }
 0x630   :  { %2677 = vmatpush.msrb.mxu1 %v12141_v9  ;;  %2717 = vmatpush.msrb.mxu3 %v12142_v62  ;;  %v2797_v9 = vsel %vm2796_vm14, 1, %v12114_v3 }
 0x631   :  { %2799 = vperm.xlu1 %4150, %v2797_v9   ;;  %v9998_v9 = vld [vmem:[%s10742_s1 + $0x728] sm:$0xff] }
 0x632   :  { %2678 = vmatpush.msrb.mxu1 %v12143_v11  ;;  %2718 = vmatpush.msrb.mxu3 %v12144_v17 }
 0x634   :  { %2679 = vmatpush.msrb.mxu1 %v12145_v30  ;;  %2719 = vmatpush.msrb.mxu3 %v12146_v47 }
 0x636   :  { %2680 = vmatpush.msrb.mxu1 %v12147_v50  ;;  %2720 = vmatpush.msrb.mxu3 %v12148_v46 }
 0x638   :  { %2681 = vmatpush.msrb.mxu1 %v12149_v41  ;;  %2721 = vmatpush.msrb.mxu3 %v12150_v57 }
 0x63a   :  { %2682 = vmatpush.msrb.mxu1 %v12151_v33  ;;  %2722 = vmatpush.msrb.mxu3 %v12152_v36 }
 0x63c   :  { %2683 = vmatpush.msrb.mxu1 %v12153_v58  ;;  %2723 = vmatpush.msrb.mxu3 %v12154_v10 }
 0x63e   :  { %2684 = vmatpush.msrb.mxu1 %v12155_v31  ;;  %2724 = vmatpush.msrb.mxu3 %v12156_v20 }
 0x640   :  { %2685 = vmatpush.msrb.mxu1 %v12157_v40  ;;  %2725 = vmatpush.msrb.mxu3 %v12158_v0 }
 0x642   :  { %2686 = vmatpush.msrb.mxu1 %v12159_v6  ;;  %2726 = vmatpush.msrb.mxu3 %v12160_v32 }
 0x644   :  { %2687 = vmatpush.msrb.mxu1 %v12161_v18  ;;  %2727 = vmatpush.msrb.mxu3 %v12162_v26 }
 0x646   :  { %2688 = vmatpush.msrb.mxu1 %v12163_v44  ;;  %2728 = vmatpush.msrb.mxu3 %v12164_v45 }
 0x684   :  { %v2379_v34 = vpop.f32.mrf.mxu1 }
 0x685   :  { %v2380_v49 = vadd.f32 %v2379_v34, %v2360_v21 }
 0x687   :  { %v4126_v13 = vmul.f32 -1.442695, %v2380_v49  ;;  %v2338_v49 = vpop.permute.xlu0 %2337 }
 0x688   :  { %vm2339_vm10 = vcmp.eq.s32.totalorder %v2338_v49, 1  ;;  %v10094_v49 = vld [vmem:[%s10742_s1 + $0x628] sm:$0xff] }
 0x689   :  { %4296 = vpow2.f32 %v4126_v13 }
 0x68a   :  { %v2419_v28 = vpop.f32.mrf.mxu3 }
 0x68b   :  { %v2420_v22 = vadd.f32 %v2419_v28, %v2400_v29 }
 0x68c   :  { %v2459_v4 = vpop.f32.mrf.mxu1 }
 0x68d   :  { %v4127_v60 = vmul.f32 -1.442695, %v2420_v22  ;;  %v2460_v54 = vadd.f32 %v2459_v4, %v2440_v19  ;;  %v9944_v4 = vld [vmem:[%s10742_s1 + $0x7a0] sm:$0xff]  ;;  %v9950_v19 = vld [vmem:[%s10742_s1 + $0x7a8] sm:$0xff] }
 0x68f   :  { %v4297_v42 = vpop.eup %4296  ;;  %4298 = vpow2.f32 %v4127_v60 }
 0x690   :  { %v2505_v24 = vadd.f32 1.0, %v4297_v42 }
 0x692   :  { %4300 = vrcp.f32 %v2505_v24  ;;  %v2499_v61 = vpop.f32.mrf.mxu3  ;;  %v2517_v62 = vand.u32 2147483648, %v2505_v24  ;;  %vm2511_vm0 = vweird.f32 %v2505_v24  ;;  %v2515_v17 = vand.u32 2147483647, %v2505_v24 }
 0x693   :  { %v2500_v43 = vadd.f32 %v2499_v61, %v2480_v25  ;;  %v2569_v25 = vpop.permute.xlu0 %2568 }
 0x694   :  { %v2518_v41 = vor.u32 1.1754944e-38, %v2517_v62  ;;  %vm2516_vm4 = vcmp.eq.f32.partialorder %v2515_v17, 8.507059e+37  ;;  %vm2570_vm12 = vcmp.eq.s32.totalorder %v2569_v25, 1  ;;  %v10004_v62 = vld [vmem:[%s10742_s1 + $0x700] sm:$0xff]  ;;  %v10148_v25 = vld [vmem:[%s10742_s1 + $0x790] sm:$0xff] }
 0x695   :  { %v4299_v53 = vpop.eup %4298  ;;  %v4128_v27 = vmul.f32 -1.442695, %v2500_v43  ;;  %v10016_v17 = vld [vmem:[%s10742_s1 + $0x6e0] sm:$0xff]  ;;  %12166 = vst [vmem:[#allocation18_spill] sm:$0xff] %v10148_v25 }
 0x696   :  { %v2524_v2 = vadd.f32 1.0, %v4299_v53 }
 0x697   :  { %4302 = vpow2.f32 %v4128_v27 }
 0x698   :  { %v4301_v56 = vpop.eup %4300  ;;  %4304 = vrcp.f32 %v2524_v2  ;;  %v2536_v30 = vand.u32 2147483648, %v2524_v2  ;;  %v2534_v46 = vand.u32 2147483647, %v2524_v2  ;;  %vm2530_vm3 = vweird.f32 %v2524_v2 }
 0x699   :  { %v2507_v38 = vmul.f32 %v4301_v56, %v2505_v24  ;;  %vm2512_vm15 = vweird.f32 %v4301_v56 }
 0x69a   :  { %vm2513_vm1 = vmor %vm2511_vm0, %vm2512_vm15  ;;  %v2537_v33 = vor.u32 1.1754944e-38, %v2536_v30  ;;  %vm2535_vm6 = vcmp.eq.f32.partialorder %v2534_v46, 8.507059e+37  ;;  %v10022_v30 = vld [vmem:[%s10742_s1 + $0x6e8] sm:$0xff]  ;;  %v10040_v46 = vld [vmem:[%s10742_s1 + $0x6a0] sm:$0xff] }
 0x69b   :  { %v2508_v51 = vsub.f32 1.0, %v2507_v38  ;;  %v9926_v38 = vld [vmem:[%s10742_s1 + $0x7e8] sm:$0xff] }
 0x69d   :  { %v4303_v12 = vpop.eup %4302  ;;  %v2509_v48 = vmul.f32 %v4301_v56, %v2508_v51  ;;  %v9938_v51 = vld [vmem:[%s10742_s1 + $0x7c8] sm:$0xff] }
 0x69e   :  { %v4305_v35 = vpop.eup %4304  ;;  %v2544_v16 = vadd.f32 1.0, %v4303_v12  ;;  %v9956_v12 = vld [vmem:[%s10742_s1 + $0x780] sm:$0xff] }
 0x69f   :  { %v2526_v63 = vmul.f32 %v4305_v35, %v2524_v2  ;;  %v2510_v37 = vadd.f32 %v4301_v56, %v2509_v48  ;;  %vm2531_vm2 = vweird.f32 %v4305_v35  ;;  %v2340_v2 = vsel %vm2339_vm10, %v9834_v1, 0.0  ;;  %v9932_v1 = vld [vmem:[%s10742_s1 + $0x7c0] sm:$0xff]  ;;  %v9962_v48 = vld [vmem:[%s10742_s1 + $0x788] sm:$0xff] }
 0x6a0   :  { %4306 = vrcp.f32 %v2544_v16  ;;  %vm2532_vm5 = vmor %vm2530_vm3, %vm2531_vm2  ;;  %v2556_v42 = vand.u32 2147483648, %v2544_v16  ;;  %vm2550_vm8 = vweird.f32 %v2544_v16  ;;  %v2554_v24 = vand.u32 2147483647, %v2544_v16 }
 0x6a1   :  { %v2527_v11 = vsub.f32 1.0, %v2526_v63  ;;  %4308 = vtanh.f32 %v2460_v54  ;;  %v2514_v50 = vsel %vm2513_vm1, %v4301_v56, %v2510_v37  ;;  %v9974_v54 = vld [vmem:[%s10742_s1 + $0x768] sm:$0xff]  ;;  %v9992_v37 = vld [vmem:[%s10742_s1 + $0x720] sm:$0xff] }
 0x6a2   :  { %v2519_v36 = vsel %vm2516_vm4, %v2518_v41, %v2514_v50  ;;  %v2557_v43 = vor.u32 1.1754944e-38, %v2556_v42  ;;  %vm2555_vm11 = vcmp.eq.f32.partialorder %v2554_v24, 8.507059e+37  ;;  %v9986_v63 = vld [vmem:[%s10742_s1 + $0x748] sm:$0xff]  ;;  %v10136_v42 = vld [vmem:[%s10742_s1 + $0x7b0] sm:$0xff]  ;;  %v10142_v24 = vld [vmem:[%s10742_s1 + $0x7b8] sm:$0xff] }
 0x6a3   :  { %v2528_v47 = vmul.f32 %v4305_v35, %v2527_v11  ;;  %v10010_v11 = vld [vmem:[%s10742_s1 + $0x708] sm:$0xff] }
 0x6a4   :  { %v10034_v50 = vld [vmem:[%s10742_s1 + $0x6c8] sm:$0xff] }
 0x6a5   :  { %v2529_v5 = vadd.f32 %v4305_v35, %v2528_v47  ;;  %v10028_v47 = vld [vmem:[%s10742_s1 + $0x6c0] sm:$0xff]  ;;  %v10046_v41 = vld [vmem:[%s10742_s1 + $0x6a8] sm:$0xff] }
 0x6a6   :  { %v4307_v57 = vpop.eup %4306 }
 0x6a7   :  { %v2533_v15 = vsel %vm2532_vm5, %v4305_v35, %v2529_v5  ;;  %v2546_v21 = vmul.f32 %v4307_v57, %v2544_v16  ;;  %v4309_v34 = vpop.eup %4308  ;;  %vm2551_vm7 = vweird.f32 %v4307_v57  ;;  %v9968_v35 = vld [vmem:[%s10742_s1 + $0x760] sm:$0xff] }
 0x6a8   :  { %v2538_v52 = vsel %vm2535_vm6, %v2537_v33, %v2533_v15  ;;  %v2561_v29 = vmul.f32 %v4309_v34, %v2519_v36  ;;  %vm2552_vm9 = vmor %vm2550_vm8, %vm2551_vm7  ;;  %v9980_v16 = vld [vmem:[%s10742_s1 + $0x740] sm:$0xff]  ;;  %v10070_v36 = vld [vmem:[%s10742_s1 + $0x668] sm:$0xff] }
 0x6a9   :  { %v2560_v13 = vmul.f32 %v2538_v52, %v9831_v23  ;;  %v2547_v28 = vsub.f32 1.0, %v2546_v21  ;;  %v10052_v5 = vld [vmem:[%s10742_s1 + $0x680] sm:$0xff]  ;;  %v10082_v21 = vld [vmem:[%s10742_s1 + $0x648] sm:$0xff] }
 0x6aa   :  { %v10064_v33 = vld [vmem:[%s10742_s1 + $0x660] sm:$0xff] }
 0x6ab   :  { %v9911_v22 = vadd.f32 %v2561_v29, %v2560_v13  ;;  %v2548_v60 = vmul.f32 %v4307_v57, %v2547_v28  ;;  %v10076_v15 = vld [vmem:[%s10742_s1 + $0x640] sm:$0xff]  ;;  %v10106_v13 = vld [vmem:[%s10742_s1 + $0x608] sm:$0xff]  ;;  %v10112_v29 = vld [vmem:[%s10742_s1 + $0x7f0] sm:$0xff] }
 0x6ac   :  { %v10088_v34 = vld [vmem:[%s10742_s1 + $0x620] sm:$0xff]  ;;  %v10118_v28 = vld [vmem:[%s10742_s1 + $0x7f8] sm:$0xff] }
 0x6ad   :  { %4310 = vtanh.f32 %v9911_v22  ;;  %v2549_v8 = vadd.f32 %v4307_v57, %v2548_v60  ;;  %v10100_v52 = vld [vmem:[%s10742_s1 + $0x600] sm:$0xff]  ;;  %v10124_v60 = vld [vmem:[%s10742_s1 + $0x7d0] sm:$0xff] }
 0x6af   :  { %v2553_v61 = vsel %vm2552_vm9, %v4307_v57, %v2549_v8  ;;  %v10058_v57 = vld [vmem:[%s10742_s1 + $0x688] sm:$0xff]  ;;  %v10130_v8 = vld [vmem:[%s10742_s1 + $0x7d8] sm:$0xff] }
 0x6b0   :  { %v2558_v23 = vsel %vm2555_vm11, %v2557_v43, %v2553_v61  ;;  %v10154_v61 = vld [vmem:[%s10742_s1 + $0x798] sm:$0xff]  ;;  %v10160_v43 = vld [vmem:[%s10742_s1 + $0x770] sm:$0xff] }
 0x6b1   :  { %12167 = vst [vmem:[#allocation80_spill] sm:$0xff] %v10154_v61 }
 0x6b2   :  { %12168 = vst [vmem:[#allocation86_spill] sm:$0xff] %v10160_v43 }
 0x6b3   :  { %v4311_v53 = vpop.eup %4310 }
 0x6b4   :  { %v2564_v27 = vmul.f32 %v4311_v53, %v2558_v23  ;;  %v10166_v53 = vld [vmem:[%s10742_s1 + $0x778] sm:$0xff]  ;;  %v10172_v23 = vld [vmem:[%s10742_s1 + $0x750] sm:$0xff] }
 0x6b5   :  { %12169 = vst [vmem:[#allocation87_spill] sm:$0xff] %v10166_v53 }
 0x6b6   :  { %v9915_v56 = vsel %vm2570_vm12, %v2564_v27, %v2340_v2  ;;  %2609 = vmatmul.f32.vlgmr.msra.gmra.mxu1 %v2564_v27  ;;  %2649 = vmatmul.f32.vlgmr.msra.gmra.mxu3 %v2564_v27  ;;  %12170 = vst [vmem:[#allocation28_spill] sm:$0xff] %v10172_v23  ;;  %v10184_v2 = vld [vmem:[%s10742_s1 + $0x730] sm:$0xff] }
 0x6b7   :  { %2824 = vmatpush.msra.mxu1 %v9920_v55  ;;  %2864 = vmatpush.msra.mxu3 %v9926_v38  ;;  %12172 = vst [vmem:[#allocation88_spill] sm:$0xff] %v10184_v2 }
 0x6b9   :  { %2825 = vmatpush.msra.mxu1 %v9932_v1  ;;  %2865 = vmatpush.msra.mxu3 %v9938_v51 }
 0x6bb   :  { %2826 = vmatpush.msra.mxu1 %v9944_v4  ;;  %2866 = vmatpush.msra.mxu3 %v9950_v19 }
 0x6bd   :  { %2827 = vmatpush.msra.mxu1 %v9956_v12  ;;  %2867 = vmatpush.msra.mxu3 %v9962_v48 }
 0x6be   :  { %2689 = vmatmul.f32.vlgmr.msrb.gmra.mxu1 %v2564_v27  ;;  %2729 = vmatmul.f32.vlgmr.msrb.gmra.mxu3 %v2564_v27  ;;  %v10178_v27 = vld [vmem:[%s10742_s1 + $0x758] sm:$0xff] }
 0x6bf   :  { %2828 = vmatpush.msra.mxu1 %v9968_v35  ;;  %2868 = vmatpush.msra.mxu3 %v9974_v54  ;;  %12171 = vst [vmem:[#allocation42_spill] sm:$0xff] %v10178_v27 }
 0x6c1   :  { %2829 = vmatpush.msra.mxu1 %v9980_v16  ;;  %2869 = vmatpush.msra.mxu3 %v9986_v63 }
 0x6c3   :  { %2830 = vmatpush.msra.mxu1 %v9992_v37  ;;  %2870 = vmatpush.msra.mxu3 %v9998_v9 }
 0x6c5   :  { %2831 = vmatpush.msra.mxu1 %v10004_v62  ;;  %2871 = vmatpush.msra.mxu3 %v10010_v11 }
 0x6c7   :  { %2832 = vmatpush.msra.mxu1 %v10016_v17  ;;  %2872 = vmatpush.msra.mxu3 %v10022_v30 }
 0x6c9   :  { %2833 = vmatpush.msra.mxu1 %v10028_v47  ;;  %2873 = vmatpush.msra.mxu3 %v10034_v50 }
 0x6cb   :  { %2834 = vmatpush.msra.mxu1 %v10040_v46  ;;  %2874 = vmatpush.msra.mxu3 %v10046_v41 }
 0x6cd   :  { %2835 = vmatpush.msra.mxu1 %v10052_v5  ;;  %2875 = vmatpush.msra.mxu3 %v10058_v57 }
 0x6cf   :  { %2836 = vmatpush.msra.mxu1 %v10064_v33  ;;  %2876 = vmatpush.msra.mxu3 %v10070_v36 }
 0x6d1   :  { %2837 = vmatpush.msra.mxu1 %v10076_v15  ;;  %2877 = vmatpush.msra.mxu3 %v10082_v21 }
 0x6d3   :  { %2838 = vmatpush.msra.mxu1 %v10088_v34  ;;  %2878 = vmatpush.msra.mxu3 %v10094_v49 }
 0x6d5   :  { %2839 = vmatpush.msra.mxu1 %v10100_v52  ;;  %2879 = vmatpush.msra.mxu3 %v10106_v13 }
 0x6d7   :  { %2904 = vmatpush.msrb.mxu1 %v10112_v29  ;;  %2944 = vmatpush.msrb.mxu3 %v10118_v28 }
 0x6d9   :  { %2905 = vmatpush.msrb.mxu1 %v10124_v60  ;;  %2945 = vmatpush.msrb.mxu3 %v10130_v8 }
 0x6db   :  { %2906 = vmatpush.msrb.mxu1 %v10136_v42  ;;  %2946 = vmatpush.msrb.mxu3 %v10142_v24 }
 0x6dd   :  { %2907 = vmatpush.msrb.mxu1 %v10148_v25  ;;  %2947 = vmatpush.msrb.mxu3 %v10154_v61 }
 0x6df   :  { %2908 = vmatpush.msrb.mxu1 %v10160_v43  ;;  %2948 = vmatpush.msrb.mxu3 %v10166_v53  ;;  %v10190_v53 = vld [vmem:[%s10742_s1 + $0x738] sm:$0xff] }
 0x6e0   :  { %12173 = vst [vmem:[#allocation89_spill] sm:$0xff] %v10190_v53 }
 0x6e1   :  { %2909 = vmatpush.msrb.mxu1 %v10172_v23  ;;  %2949 = vmatpush.msrb.mxu3 %v10178_v27  ;;  %v10196_v23 = vld [vmem:[%s10742_s1 + $0x710] sm:$0xff]  ;;  %v10202_v27 = vld [vmem:[%s10742_s1 + $0x718] sm:$0xff] }
 0x6e2   :  { %12174 = vst [vmem:[#allocation66_spill] sm:$0xff] %v10196_v23 }
 0x6e3   :  { %2910 = vmatpush.msrb.mxu1 %v10184_v2  ;;  %2950 = vmatpush.msrb.mxu3 %v10190_v53  ;;  %12175 = vst [vmem:[#allocation44_spill] sm:$0xff] %v10202_v27  ;;  %v10208_v2 = vld [vmem:[%s10742_s1 + $0x6f0] sm:$0xff]  ;;  %v10214_v53 = vld [vmem:[%s10742_s1 + $0x6f8] sm:$0xff] }
 0x6e4   :  { %12176 = vst [vmem:[#allocation90_spill] sm:$0xff] %v10208_v2 }
 0x6e5   :  { %2911 = vmatpush.msrb.mxu1 %v10196_v23  ;;  %2951 = vmatpush.msrb.mxu3 %v10202_v27  ;;  %12177 = vst [vmem:[#allocation91_spill] sm:$0xff] %v10214_v53  ;;  %v10220_v23 = vld [vmem:[%s10742_s1 + $0x6d0] sm:$0xff]  ;;  %v10226_v27 = vld [vmem:[%s10742_s1 + $0x6d8] sm:$0xff] }
 0x6e6   :  { %12178 = vst [vmem:[#allocation82_spill] sm:$0xff] %v10220_v23 }
 0x6e7   :  { %2912 = vmatpush.msrb.mxu1 %v10208_v2  ;;  %2952 = vmatpush.msrb.mxu3 %v10214_v53  ;;  %12179 = vst [vmem:[#allocation83_spill] sm:$0xff] %v10226_v27 }
 0x6e9   :  { %2913 = vmatpush.msrb.mxu1 %v10220_v23  ;;  %2953 = vmatpush.msrb.mxu3 %v10226_v27 }
 0x6eb   :  { %2914 = vmatpush.msrb.mxu1 %v12153_v58  ;;  %2954 = vmatpush.msrb.mxu3 %v12154_v10  ;;  %v2590_v58 = vpop.f32.mrf.mxu0 }
 0x6ec   :  { %v2591_v10 = vadd.f32 %v2590_v58, %v12165_v39 }
 0x6ed   :  { %2915 = vmatpush.msrb.mxu1 %v12155_v31  ;;  %2955 = vmatpush.msrb.mxu3 %v12156_v20 }
 0x6ef   :  { %2916 = vmatpush.msrb.mxu1 %v12157_v40  ;;  %2956 = vmatpush.msrb.mxu3 %v12158_v0  ;;  %v2630_v40 = vpop.f32.mrf.mxu2 }
 0x6f0   :  { %v2631_v0 = vadd.f32 %v2630_v40, %v9810_v59 }
 0x6f1   :  { %2917 = vmatpush.msrb.mxu1 %v12159_v6  ;;  %2957 = vmatpush.msrb.mxu3 %v12160_v32 }
 0x6f3   :  { %2918 = vmatpush.msrb.mxu1 %v12161_v18  ;;  %2958 = vmatpush.msrb.mxu3 %v12162_v26 }
 0x6f5   :  { %2919 = vmatpush.msrb.mxu1 %v12163_v44  ;;  %2959 = vmatpush.msrb.mxu3 %v12164_v45 }
 0x6f7   :  { %v2710_v18 = vpop.f32.mrf.mxu2 }
 0x6f8   :  { %v2711_v44 = vadd.f32 %v2710_v18, %v9816_v7 }
 0x733   :  { %v2610_v31 = vpop.f32.mrf.mxu1 }
 0x734   :  { %v2611_v20 = vadd.f32 %v2610_v31, %v2591_v10 }
 0x736   :  { %v4129_v27 = vmul.f32 -1.442695, %v2611_v20  ;;  %v2670_v20 = vpop.f32.mrf.mxu0 }
 0x738   :  { %4312 = vpow2.f32 %v4129_v27 }
 0x739   :  { %v2650_v6 = vpop.f32.mrf.mxu3 }
 0x73a   :  { %v2651_v32 = vadd.f32 %v2650_v6, %v2631_v0  ;;  %v2671_v6 = vadd.f32 %v2670_v20, %v9819_v14 }
 0x73b   :  { %v2690_v0 = vpop.f32.mrf.mxu1 }
 0x73c   :  { %v4130_v23 = vmul.f32 -1.442695, %v2651_v32  ;;  %v2691_v59 = vadd.f32 %v2690_v0, %v2671_v6 }
 0x73e   :  { %v4313_v53 = vpop.eup %4312  ;;  %4314 = vpow2.f32 %v4130_v23 }
 0x73f   :  { %v2736_v26 = vadd.f32 1.0, %v4313_v53 }
 0x741   :  { %4316 = vrcp.f32 %v2736_v26  ;;  %v2730_v45 = vpop.f32.mrf.mxu3  ;;  %vm2742_vm15 = vweird.f32 %v2736_v26 }
 0x742   :  { %v2731_v2 = vadd.f32 %v2730_v45, %v2711_v44  ;;  %v10248_v44 = vld [vmem:[%s10745_s3] sm:$0xff] }
 0x743   :  { %12180 = vst [vmem:[#allocation48_spill] sm:$0xff] %v10248_v44  ;;  %vm3027_vm13 = vcmp.eq.s32.totalorder %v10248_v44, 4 }
 0x744   :  { %v4315_v58 = vpop.eup %4314  ;;  %v4131_v39 = vmul.f32 -1.442695, %v2731_v2  ;;  %v3028_v45 = vsel %vm3027_vm13, 1, %v12114_v3 }
 0x745   :  { %v2755_v10 = vadd.f32 1.0, %v4315_v58  ;;  %v2748_v58 = vand.u32 2147483648, %v2736_v26  ;;  %3030 = vperm.xlu1 %4150, %v3028_v45  }
 0x746   :  { %4318 = vpow2.f32 %v4131_v39 }
 0x747   :  { %v4317_v31 = vpop.eup %4316  ;;  %4320 = vrcp.f32 %v2755_v10  ;;  %v2749_v14 = vor.u32 1.1754944e-38, %v2748_v58  ;;  %vm2761_vm2 = vweird.f32 %v2755_v10 }
 0x748   :  { %v2738_v27 = vmul.f32 %v4317_v31, %v2736_v26  ;;  %vm2743_vm14 = vweird.f32 %v4317_v31 }
 0x749   :  { %vm2744_vm0 = vmor %vm2742_vm15, %vm2743_vm14 }
 0x74a   :  { %v2739_v40 = vsub.f32 1.0, %v2738_v27  ;;  %v2746_v27 = vand.u32 2147483647, %v2736_v26 }
 0x74c   :  { %v4319_v32 = vpop.eup %4318  ;;  %v2740_v23 = vmul.f32 %v4317_v31, %v2739_v40  ;;  %v2767_v40 = vand.u32 2147483648, %v2755_v10  ;;  %vm2747_vm3 = vcmp.eq.f32.partialorder %v2746_v27, 8.507059e+37 }
 0x74d   :  { %v4321_v53 = vpop.eup %4320  ;;  %v2775_v18 = vadd.f32 1.0, %v4319_v32  ;;  %v2765_v32 = vand.u32 2147483647, %v2755_v10 }
 0x74e   :  { %v2757_v39 = vmul.f32 %v4321_v53, %v2755_v10  ;;  %v2741_v2 = vadd.f32 %v4317_v31, %v2740_v23  ;;  %vm2762_vm1 = vweird.f32 %v4321_v53  ;;  %v2768_v3 = vor.u32 1.1754944e-38, %v2767_v40  ;;  %v12185_v40 = vld [vmem:[#allocation28_spill] sm:$0xff] }
 0x74f   :  { %4322 = vrcp.f32 %v2775_v18  ;;  %vm2763_vm4 = vmor %vm2761_vm2, %vm2762_vm1  ;;  %vm2766_vm5 = vcmp.eq.f32.partialorder %v2765_v32, 8.507059e+37  ;;  %vm2781_vm7 = vweird.f32 %v2775_v18  ;;  %v2785_v58 = vand.u32 2147483647, %v2775_v18  ;;  %v12188_v32 = vld [vmem:[#allocation89_spill] sm:$0xff] }
 0x750   :  { %v2758_v20 = vsub.f32 1.0, %v2757_v39  ;;  %4324 = vtanh.f32 %v2691_v59  ;;  %v2745_v6 = vsel %vm2744_vm0, %v4317_v31, %v2741_v2  ;;  %v2787_v2 = vand.u32 2147483648, %v2775_v18 }
 0x751   :  { %v2750_v7 = vsel %vm2747_vm3, %v2749_v14, %v2745_v6  ;;  %v2800_v14 = vpop.permute.xlu1 %2799  ;;  %vm2786_vm9 = vcmp.eq.f32.partialorder %v2785_v58, 8.507059e+37  ;;  %v12187_v6 = vld [vmem:[#allocation88_spill] sm:$0xff]  ;;  %v10332_v58 = vld [vmem:[%s10742_s1 + $0x698] sm:$0xff] }
 0x752   :  { %v2759_v0 = vmul.f32 %v4321_v53, %v2758_v20  ;;  %v2788_v27 = vor.u32 1.1754944e-38, %v2787_v2  ;;  %vm2801_vm10 = vcmp.eq.s32.totalorder %v2800_v14, 1  ;;  %v10326_v2 = vld [vmem:[%s10742_s1 + $0x690] sm:$0xff]  ;;  %12198 = vst [vmem:[#allocation34_spill] sm:$0xff] %v10332_v58 }
 0x753   :  { %12197 = vst [vmem:[#allocation59_spill] sm:$0xff] %v10326_v2  ;;  %v10338_v14 = vld [vmem:[%s10742_s1 + $0x670] sm:$0xff] }
 0x754   :  { %v2760_v23 = vadd.f32 %v4321_v53, %v2759_v0  ;;  %v12186_v0 = vld [vmem:[#allocation42_spill] sm:$0xff]  ;;  %12199 = vst [vmem:[#allocation93_spill] sm:$0xff] %v10338_v14 }
 0x755   :  { %v4323_v44 = vpop.eup %4322 }
 0x756   :  { %v2764_v43 = vsel %vm2763_vm4, %v4321_v53, %v2760_v23  ;;  %v2777_v39 = vmul.f32 %v4323_v44, %v2775_v18  ;;  %v4325_v45 = vpop.eup %4324  ;;  %vm2782_vm6 = vweird.f32 %v4323_v44  ;;  %v12183_v18 = vld [vmem:[#allocation86_spill] sm:$0xff] }
 0x757   :  { %v2769_v26 = vsel %vm2766_vm5, %v2768_v3, %v2764_v43  ;;  %v2792_v59 = vmul.f32 %v4325_v45, %v2750_v7  ;;  %vm2783_vm8 = vmor %vm2781_vm7, %vm2782_vm6  ;;  %v12189_v23 = vld [vmem:[#allocation66_spill] sm:$0xff] }
 0x758   :  { %v2791_v61 = vmul.f32 %v2769_v26, %v9911_v22  ;;  %v2778_v20 = vsub.f32 1.0, %v2777_v39  ;;  %v12190_v39 = vld [vmem:[#allocation44_spill] sm:$0xff]  ;;  %v12191_v45 = vld [vmem:[#allocation90_spill] sm:$0xff]  ;;  %v12192_v26 = vld [vmem:[#allocation91_spill] sm:$0xff] }
 0x75a   :  { %v10253_v25 = vadd.f32 %v2792_v59, %v2791_v61  ;;  %v2779_v31 = vmul.f32 %v4323_v44, %v2778_v20  ;;  %v12182_v61 = vld [vmem:[#allocation80_spill] sm:$0xff]  ;;  %v12193_v59 = vld [vmem:[#allocation82_spill] sm:$0xff]  ;;  %v12194_v20 = vld [vmem:[#allocation83_spill] sm:$0xff] }
 0x75c   :  { %4326 = vtanh.f32 %v10253_v25  ;;  %v2780_v10 = vadd.f32 %v4323_v44, %v2779_v31  ;;  %v10314_v31 = vld [vmem:[%s10742_s1 + $0x6b0] sm:$0xff] }
 0x75d   :  { %12195 = vst [vmem:[#allocation92_spill] sm:$0xff] %v10314_v31 }
 0x75e   :  { %v2784_v53 = vsel %vm2783_vm8, %v4323_v44, %v2780_v10  ;;  %v12184_v44 = vld [vmem:[#allocation87_spill] sm:$0xff]  ;;  %v10320_v10 = vld [vmem:[%s10742_s1 + $0x6b8] sm:$0xff] }
 0x75f   :  { %v2789_v43 = vsel %vm2786_vm9, %v2788_v27, %v2784_v53  ;;  %12196 = vst [vmem:[#allocation7_spill] sm:$0xff] %v10320_v10  ;;  %v10344_v53 = vld [vmem:[%s10742_s1 + $0x678] sm:$0xff]  ;;  %v10350_v27 = vld [vmem:[%s10742_s1 + $0x650] sm:$0xff] }
 0x760   :  { %12200 = vst [vmem:[#allocation61_spill] sm:$0xff] %v10344_v53 }
 0x761   :  { %12201 = vst [vmem:[#allocation56_spill] sm:$0xff] %v10350_v27 }
 0x762   :  { %v4327_v3 = vpop.eup %4326 }
 0x763   :  { %v2795_v7 = vmul.f32 %v4327_v3, %v2789_v43  ;;  %v10356_v3 = vld [vmem:[%s10742_s1 + $0x658] sm:$0xff]  ;;  %v10362_v43 = vld [vmem:[%s10742_s1 + $0x630] sm:$0xff] }
 0x764   :  { %12202 = vst [vmem:[#allocation32_spill] sm:$0xff] %v10356_v3 }
 0x765   :  { %v10257_v22 = vsel %vm2801_vm10, %v2795_v7, %v9915_v56  ;;  %2840 = vmatmul.f32.vlgmr.msra.gmra.mxu1 %v2795_v7  ;;  %2880 = vmatmul.f32.vlgmr.msra.gmra.mxu3 %v2795_v7  ;;  %v12181_v56 = vld [vmem:[#allocation18_spill] sm:$0xff]  ;;  %12203 = vst [vmem:[#allocation94_spill] sm:$0xff] %v10362_v43 }
 0x766   :  { %3055 = vmatpush.msra.mxu1 %v9920_v55  ;;  %3095 = vmatpush.msra.mxu3 %v9926_v38 }
 0x768   :  { %3056 = vmatpush.msra.mxu1 %v9932_v1  ;;  %3096 = vmatpush.msra.mxu3 %v9938_v51 }
 0x76a   :  { %3057 = vmatpush.msra.mxu1 %v9944_v4  ;;  %3097 = vmatpush.msra.mxu3 %v9950_v19 }
 0x76c   :  { %3058 = vmatpush.msra.mxu1 %v9956_v12  ;;  %3098 = vmatpush.msra.mxu3 %v9962_v48 }
 0x76d   :  { %2920 = vmatmul.f32.vlgmr.msrb.gmra.mxu1 %v2795_v7  ;;  %2960 = vmatmul.f32.vlgmr.msrb.gmra.mxu3 %v2795_v7  ;;  %v10368_v7 = vld [vmem:[%s10742_s1 + $0x638] sm:$0xff] }
 0x76e   :  { %3059 = vmatpush.msra.mxu1 %v9968_v35  ;;  %3099 = vmatpush.msra.mxu3 %v9974_v54  ;;  %12204 = vst [vmem:[#allocation68_spill] sm:$0xff] %v10368_v7 }
 0x770   :  { %3060 = vmatpush.msra.mxu1 %v9980_v16  ;;  %3100 = vmatpush.msra.mxu3 %v9986_v63 }
 0x772   :  { %3061 = vmatpush.msra.mxu1 %v9992_v37  ;;  %3101 = vmatpush.msra.mxu3 %v9998_v9 }
 0x774   :  { %3062 = vmatpush.msra.mxu1 %v10004_v62  ;;  %3102 = vmatpush.msra.mxu3 %v10010_v11 }
 0x776   :  { %3063 = vmatpush.msra.mxu1 %v10016_v17  ;;  %3103 = vmatpush.msra.mxu3 %v10022_v30 }
 0x778   :  { %3064 = vmatpush.msra.mxu1 %v10028_v47  ;;  %3104 = vmatpush.msra.mxu3 %v10034_v50 }
 0x77a   :  { %3065 = vmatpush.msra.mxu1 %v10040_v46  ;;  %3105 = vmatpush.msra.mxu3 %v10046_v41 }
 0x77c   :  { %3066 = vmatpush.msra.mxu1 %v10052_v5  ;;  %3106 = vmatpush.msra.mxu3 %v10058_v57 }
 0x77e   :  { %3067 = vmatpush.msra.mxu1 %v10064_v33  ;;  %3107 = vmatpush.msra.mxu3 %v10070_v36 }
 0x780   :  { %3068 = vmatpush.msra.mxu1 %v10076_v15  ;;  %3108 = vmatpush.msra.mxu3 %v10082_v21 }
 0x782   :  { %3069 = vmatpush.msra.mxu1 %v10088_v34  ;;  %3109 = vmatpush.msra.mxu3 %v10094_v49 }
 0x784   :  { %3070 = vmatpush.msra.mxu1 %v10100_v52  ;;  %3110 = vmatpush.msra.mxu3 %v10106_v13 }
 0x786   :  { %3135 = vmatpush.msrb.mxu1 %v10112_v29  ;;  %3175 = vmatpush.msrb.mxu3 %v10118_v28 }
 0x788   :  { %3136 = vmatpush.msrb.mxu1 %v10124_v60  ;;  %3176 = vmatpush.msrb.mxu3 %v10130_v8 }
 0x78a   :  { %3137 = vmatpush.msrb.mxu1 %v10136_v42  ;;  %3177 = vmatpush.msrb.mxu3 %v10142_v24 }
 0x78c   :  { %3138 = vmatpush.msrb.mxu1 %v12181_v56  ;;  %3178 = vmatpush.msrb.mxu3 %v12182_v61 }
 0x78e   :  { %3139 = vmatpush.msrb.mxu1 %v12183_v18  ;;  %3179 = vmatpush.msrb.mxu3 %v12184_v44 }
 0x790   :  { %3140 = vmatpush.msrb.mxu1 %v12185_v40  ;;  %3180 = vmatpush.msrb.mxu3 %v12186_v0 }
 0x792   :  { %3141 = vmatpush.msrb.mxu1 %v12187_v6  ;;  %3181 = vmatpush.msrb.mxu3 %v12188_v32  ;;  %v12209_v32 = vld [vmem:[#allocation84_spill] sm:$0xff] }
 0x794   :  { %3142 = vmatpush.msrb.mxu1 %v12189_v23  ;;  %3182 = vmatpush.msrb.mxu3 %v12190_v39 }
 0x796   :  { %3143 = vmatpush.msrb.mxu1 %v12191_v45  ;;  %3183 = vmatpush.msrb.mxu3 %v12192_v26 }
 0x798   :  { %3144 = vmatpush.msrb.mxu1 %v12193_v59  ;;  %3184 = vmatpush.msrb.mxu3 %v12194_v20 }
 0x79a   :  { %3145 = vmatpush.msrb.mxu1 %v10314_v31  ;;  %3185 = vmatpush.msrb.mxu3 %v10320_v10  ;;  %v12208_v31 = vld [vmem:[#allocation4_spill] sm:$0xff] }
 0x79c   :  { %3146 = vmatpush.msrb.mxu1 %v10326_v2  ;;  %3186 = vmatpush.msrb.mxu3 %v10332_v58  ;;  %v2861_v58 = vpop.f32.mrf.mxu2 }
 0x79d   :  { %v2862_v20 = vadd.f32 %v2861_v58, %v12208_v31 }
 0x79e   :  { %3147 = vmatpush.msrb.mxu1 %v10338_v14  ;;  %3187 = vmatpush.msrb.mxu3 %v10344_v53  ;;  %v12207_v53 = vld [vmem:[#allocation5_spill] sm:$0xff] }
 0x7a0   :  { %3148 = vmatpush.msrb.mxu1 %v10350_v27  ;;  %3188 = vmatpush.msrb.mxu3 %v10356_v3  ;;  %v10374_v27 = vld [vmem:[%s10742_s1 + $0x610] sm:$0xff]  ;;  %v10380_v3 = vld [vmem:[%s10742_s1 + $0x618] sm:$0xff] }
 0x7a1   :  { %12205 = vst [vmem:[#allocation33_spill] sm:$0xff] %v10374_v27 }
 0x7a2   :  { %3149 = vmatpush.msrb.mxu1 %v10362_v43  ;;  %3189 = vmatpush.msrb.mxu3 %v10368_v7  ;;  %12206 = vst [vmem:[#allocation38_spill] sm:$0xff] %v10380_v3  ;;  %v2821_v43 = vpop.f32.mrf.mxu0 }
 0x7a3   :  { %v2822_v14 = vadd.f32 %v2821_v43, %v12207_v53 }
 0x7a4   :  { %3150 = vmatpush.msrb.mxu1 %v10374_v27  ;;  %3190 = vmatpush.msrb.mxu3 %v10380_v3  ;;  %v2941_v45 = vpop.f32.mrf.mxu2 }
 0x7a5   :  { %v2942_v6 = vadd.f32 %v2941_v45, %v12209_v32  ;;  %v12211_v32 = vld [vmem:[#allocation48_spill] sm:$0xff] }
 0x7a6   :  { %vm3258_vm11 = vcmp.eq.s32.totalorder %v12211_v32, 5 }
 0x7aa   :  { %v2901_v58 = vpop.f32.mrf.mxu0 }
 0x7e2   :  { %v2841_v2 = vpop.f32.mrf.mxu1 }
 0x7e3   :  { %v2842_v7 = vadd.f32 %v2841_v2, %v2822_v14 }
 0x7e5   :  { %v4132_v10 = vmul.f32 -1.442695, %v2842_v7 }
 0x7e7   :  { %4328 = vpow2.f32 %v4132_v10 }
 0x7e8   :  { %v2881_v59 = vpop.f32.mrf.mxu3 }
 0x7e9   :  { %v2882_v26 = vadd.f32 %v2881_v59, %v2862_v20 }
 0x7ea   :  { %v2921_v59 = vpop.f32.mrf.mxu1 }
 0x7eb   :  { %v4133_v27 = vmul.f32 -1.442695, %v2882_v26  ;;  %v12210_v26 = vld [vmem:[#allocation85_spill] sm:$0xff] }
 0x7ec   :  { %v2902_v20 = vadd.f32 %v2901_v58, %v12210_v26 }
 0x7ed   :  { %v4329_v39 = vpop.eup %4328  ;;  %4330 = vpow2.f32 %v4133_v27 }
 0x7ee   :  { %v2967_v23 = vadd.f32 1.0, %v4329_v39  ;;  %v2922_v31 = vadd.f32 %v2921_v59, %v2902_v20 }
 0x7f0   :  { %4332 = vrcp.f32 %v2967_v23  ;;  %v2961_v3 = vpop.f32.mrf.mxu3  ;;  %vm2973_vm13 = vweird.f32 %v2967_v23 }
 0x7f1   :  { %v2962_v0 = vadd.f32 %v2961_v3, %v2942_v6 }
 0x7f3   :  { %v4331_v43 = vpop.eup %4330  ;;  %v4134_v53 = vmul.f32 -1.442695, %v2962_v0  ;;  %v12212_v0 = vmov 0  }
 0x7f4   :  { %v2986_v40 = vadd.f32 1.0, %v4331_v43  ;;  %v2979_v43 = vand.u32 2147483648, %v2967_v23 }
 0x7f5   :  { %4334 = vpow2.f32 %v4134_v53  ;;  %v3259_v53 = vsel %vm3258_vm11, 1, %v12212_v0 }
 0x7f6   :  { %v4333_v2 = vpop.eup %4332  ;;  %4336 = vrcp.f32 %v2986_v40  ;;  %3261 = vperm.xlu2 %4151, %v3259_v53   ;;  %v2998_v18 = vand.u32 2147483648, %v2986_v40  ;;  %v2996_v59 = vand.u32 2147483647, %v2986_v40  ;;  %v2980_v20 = vor.u32 1.1754944e-38, %v2979_v43 }
 0x7f7   :  { %v2969_v10 = vmul.f32 %v4333_v2, %v2967_v23  ;;  %vm2974_vm12 = vweird.f32 %v4333_v2  ;;  %vm2992_vm0 = vweird.f32 %v2986_v40 }
 0x7f8   :  { %vm2975_vm14 = vmor %vm2973_vm13, %vm2974_vm12  ;;  %v2999_v0 = vor.u32 1.1754944e-38, %v2998_v18  ;;  %vm2997_vm3 = vcmp.eq.f32.partialorder %v2996_v59, 8.507059e+37  ;;  %v12218_v59 = vld [vmem:[#allocation42_spill] sm:$0xff] }
 0x7f9   :  { %v2970_v14 = vsub.f32 1.0, %v2969_v10  ;;  %v2977_v10 = vand.u32 2147483647, %v2967_v23 }
 0x7fb   :  { %v4335_v7 = vpop.eup %4334  ;;  %v2971_v27 = vmul.f32 %v4333_v2, %v2970_v14  ;;  %vm2978_vm1 = vcmp.eq.f32.partialorder %v2977_v10, 8.507059e+37 }
 0x7fc   :  { %v4337_v39 = vpop.eup %4336  ;;  %v3006_v45 = vadd.f32 1.0, %v4335_v7 }
 0x7fd   :  { %v2988_v6 = vmul.f32 %v4337_v39, %v2986_v40  ;;  %v2972_v3 = vadd.f32 %v4333_v2, %v2971_v27  ;;  %vm2993_vm15 = vweird.f32 %v4337_v39 }
 0x7fe   :  { %4338 = vrcp.f32 %v3006_v45  ;;  %vm2994_vm2 = vmor %vm2992_vm0, %vm2993_vm15  ;;  %vm3012_vm5 = vweird.f32 %v3006_v45  ;;  %v3016_v18 = vand.u32 2147483647, %v3006_v45 }
 0x7ff   :  { %v2989_v44 = vsub.f32 1.0, %v2988_v6  ;;  %4340 = vtanh.f32 %v2922_v31  ;;  %v2976_v14 = vsel %vm2975_vm14, %v4333_v2, %v2972_v3  ;;  %v3018_v3 = vand.u32 2147483648, %v3006_v45 }
 0x800   :  { %v2981_v32 = vsel %vm2978_vm1, %v2980_v20, %v2976_v14  ;;  %vm3017_vm7 = vcmp.eq.f32.partialorder %v3016_v18, 8.507059e+37  ;;  %v12217_v14 = vld [vmem:[#allocation28_spill] sm:$0xff]  ;;  %v12230_v18 = vld [vmem:[#allocation34_spill] sm:$0xff] }
 0x801   :  { %v2990_v58 = vmul.f32 %v4337_v39, %v2989_v44  ;;  %v3019_v10 = vor.u32 1.1754944e-38, %v3018_v3  ;;  %v12219_v20 = vld [vmem:[#allocation88_spill] sm:$0xff]  ;;  %v12229_v3 = vld [vmem:[#allocation59_spill] sm:$0xff] }
 0x803   :  { %v2991_v7 = vadd.f32 %v4337_v39, %v2990_v58  ;;  %v12216_v58 = vld [vmem:[#allocation87_spill] sm:$0xff] }
 0x804   :  { %v4339_v27 = vpop.eup %4338 }
 0x805   :  { %v2995_v26 = vsel %vm2994_vm2, %v4337_v39, %v2991_v7  ;;  %v3008_v6 = vmul.f32 %v4339_v27, %v3006_v45  ;;  %v4341_v53 = vpop.eup %4340  ;;  %vm3013_vm4 = vweird.f32 %v4339_v27  ;;  %v3031_v39 = vpop.permute.xlu1 %3030  ;;  %v12215_v45 = vld [vmem:[#allocation86_spill] sm:$0xff]  ;;  %v12220_v7 = vld [vmem:[#allocation89_spill] sm:$0xff] }
 0x806   :  { %v3000_v23 = vsel %vm2997_vm3, %v2999_v0, %v2995_v26  ;;  %v3023_v31 = vmul.f32 %v4341_v53, %v2981_v32  ;;  %vm3014_vm6 = vmor %vm3012_vm5, %vm3013_vm4  ;;  %vm3032_vm8 = vcmp.eq.s32.totalorder %v3031_v39, 1  ;;  %v12214_v32 = vld [vmem:[#allocation80_spill] sm:$0xff]  ;;  %v12223_v53 = vld [vmem:[#allocation90_spill] sm:$0xff] }
 0x807   :  { %v3022_v61 = vmul.f32 %v3000_v23, %v10253_v25  ;;  %v3009_v44 = vsub.f32 1.0, %v3008_v6  ;;  %v12222_v6 = vld [vmem:[#allocation44_spill] sm:$0xff]  ;;  %v12224_v23 = vld [vmem:[#allocation91_spill] sm:$0xff]  ;;  %v12231_v39 = vld [vmem:[#allocation93_spill] sm:$0xff] }
 0x809   :  { %v10390_v56 = vadd.f32 %v3023_v31, %v3022_v61  ;;  %v3010_v2 = vmul.f32 %v4339_v27, %v3009_v44  ;;  %v12225_v31 = vld [vmem:[#allocation82_spill] sm:$0xff]  ;;  %v12226_v44 = vld [vmem:[#allocation83_spill] sm:$0xff] }
 0x80b   :  { %4342 = vtanh.f32 %v10390_v56  ;;  %v3011_v40 = vadd.f32 %v4339_v27, %v3010_v2  ;;  %v12227_v2 = vld [vmem:[#allocation92_spill] sm:$0xff] }
 0x80d   :  { %v3015_v43 = vsel %vm3014_vm6, %v4339_v27, %v3011_v40  ;;  %v12221_v27 = vld [vmem:[#allocation66_spill] sm:$0xff]  ;;  %v12228_v40 = vld [vmem:[#allocation7_spill] sm:$0xff] }
 0x80e   :  { %v3020_v0 = vsel %vm3017_vm7, %v3019_v10, %v3015_v43  ;;  %v12232_v43 = vld [vmem:[#allocation61_spill] sm:$0xff]  ;;  %v12233_v10 = vld [vmem:[#allocation56_spill] sm:$0xff] }
 0x811   :  { %v4343_v26 = vpop.eup %4342 }
 0x812   :  { %v3026_v25 = vmul.f32 %v4343_v26, %v3020_v0  ;;  %v12234_v26 = vld [vmem:[#allocation32_spill] sm:$0xff]  ;;  %v12235_v0 = vld [vmem:[#allocation94_spill] sm:$0xff] }
 0x814   :  { %v10394_v61 = vsel %vm3032_vm8, %v3026_v25, %v10257_v22  ;;  %3071 = vmatmul.f32.vlgmr.msra.gmra.mxu1 %v3026_v25  ;;  %3111 = vmatmul.f32.vlgmr.msra.gmra.mxu3 %v3026_v25  ;;  %v12213_v22 = vld [vmem:[#allocation18_spill] sm:$0xff] }
 0x815   :  { %3286 = vmatpush.msra.mxu1 %v9920_v55  ;;  %3326 = vmatpush.msra.mxu3 %v9926_v38 }
 0x817   :  { %3287 = vmatpush.msra.mxu1 %v9932_v1  ;;  %3327 = vmatpush.msra.mxu3 %v9938_v51 }
 0x819   :  { %3288 = vmatpush.msra.mxu1 %v9944_v4  ;;  %3328 = vmatpush.msra.mxu3 %v9950_v19 }
 0x81b   :  { %3289 = vmatpush.msra.mxu1 %v9956_v12  ;;  %3329 = vmatpush.msra.mxu3 %v9962_v48 }
 0x81c   :  { %3151 = vmatmul.f32.vlgmr.msrb.gmra.mxu1 %v3026_v25  ;;  %3191 = vmatmul.f32.vlgmr.msrb.gmra.mxu3 %v3026_v25  ;;  %v12236_v25 = vld [vmem:[#allocation68_spill] sm:$0xff] }
 0x81d   :  { %3290 = vmatpush.msra.mxu1 %v9968_v35  ;;  %3330 = vmatpush.msra.mxu3 %v9974_v54 }
 0x81f   :  { %3291 = vmatpush.msra.mxu1 %v9980_v16  ;;  %3331 = vmatpush.msra.mxu3 %v9986_v63 }
 0x821   :  { %3292 = vmatpush.msra.mxu1 %v9992_v37  ;;  %3332 = vmatpush.msra.mxu3 %v9998_v9 }
 0x823   :  { %3293 = vmatpush.msra.mxu1 %v10004_v62  ;;  %3333 = vmatpush.msra.mxu3 %v10010_v11 }
 0x825   :  { %3294 = vmatpush.msra.mxu1 %v10016_v17  ;;  %3334 = vmatpush.msra.mxu3 %v10022_v30 }
 0x827   :  { %3295 = vmatpush.msra.mxu1 %v10028_v47  ;;  %3335 = vmatpush.msra.mxu3 %v10034_v50 }
 0x829   :  { %3296 = vmatpush.msra.mxu1 %v10040_v46  ;;  %3336 = vmatpush.msra.mxu3 %v10046_v41 }
 0x82b   :  { %3297 = vmatpush.msra.mxu1 %v10052_v5  ;;  %3337 = vmatpush.msra.mxu3 %v10058_v57 }
 0x82d   :  { %3298 = vmatpush.msra.mxu1 %v10064_v33  ;;  %3338 = vmatpush.msra.mxu3 %v10070_v36 }
 0x82f   :  { %3299 = vmatpush.msra.mxu1 %v10076_v15  ;;  %3339 = vmatpush.msra.mxu3 %v10082_v21 }
 0x831   :  { %3300 = vmatpush.msra.mxu1 %v10088_v34  ;;  %3340 = vmatpush.msra.mxu3 %v10094_v49 }
 0x833   :  { %3301 = vmatpush.msra.mxu1 %v10100_v52  ;;  %3341 = vmatpush.msra.mxu3 %v10106_v13 }
 0x835   :  { %3366 = vmatpush.msrb.mxu1 %v10112_v29  ;;  %3406 = vmatpush.msrb.mxu3 %v10118_v28 }
 0x837   :  { %3367 = vmatpush.msrb.mxu1 %v10124_v60  ;;  %3407 = vmatpush.msrb.mxu3 %v10130_v8 }
 0x839   :  { %3368 = vmatpush.msrb.mxu1 %v10136_v42  ;;  %3408 = vmatpush.msrb.mxu3 %v10142_v24 }
 0x83b   :  { %3369 = vmatpush.msrb.mxu1 %v12213_v22  ;;  %3409 = vmatpush.msrb.mxu3 %v12214_v32 }
 0x83d   :  { %3370 = vmatpush.msrb.mxu1 %v12215_v45  ;;  %3410 = vmatpush.msrb.mxu3 %v12216_v58 }
 0x83f   :  { %3371 = vmatpush.msrb.mxu1 %v12217_v14  ;;  %3411 = vmatpush.msrb.mxu3 %v12218_v59 }
 0x841   :  { %3372 = vmatpush.msrb.mxu1 %v12219_v20  ;;  %3412 = vmatpush.msrb.mxu3 %v12220_v7 }
 0x843   :  { %3373 = vmatpush.msrb.mxu1 %v12221_v27  ;;  %3413 = vmatpush.msrb.mxu3 %v12222_v6 }
 0x845   :  { %3374 = vmatpush.msrb.mxu1 %v12223_v53  ;;  %3414 = vmatpush.msrb.mxu3 %v12224_v23 }
 0x847   :  { %3375 = vmatpush.msrb.mxu1 %v12225_v31  ;;  %3415 = vmatpush.msrb.mxu3 %v12226_v44  ;;  %v12237_v44 = vld [vmem:[#allocation33_spill] sm:$0xff] }
 0x849   :  { %3376 = vmatpush.msrb.mxu1 %v12227_v2  ;;  %3416 = vmatpush.msrb.mxu3 %v12228_v40  ;;  %v12238_v2 = vld [vmem:[#allocation38_spill] sm:$0xff]  ;;  %v3052_v40 = vpop.f32.mrf.mxu0 }
 0x84b   :  { %3377 = vmatpush.msrb.mxu1 %v12229_v3  ;;  %3417 = vmatpush.msrb.mxu3 %v12230_v18  ;;  %v12239_v3 = vld [vmem:[#allocation5_spill] sm:$0xff]  ;;  %v3092_v18 = vpop.f32.mrf.mxu2 }
 0x84c   :  { %v3053_v31 = vadd.f32 %v3052_v40, %v12239_v3 }
 0x84d   :  { %3378 = vmatpush.msrb.mxu1 %v12231_v39  ;;  %3418 = vmatpush.msrb.mxu3 %v12232_v43  ;;  %v12240_v43 = vld [vmem:[#allocation4_spill] sm:$0xff] }
 0x84e   :  { %v3093_v6 = vadd.f32 %v3092_v18, %v12240_v43 }
 0x84f   :  { %3379 = vmatpush.msrb.mxu1 %v12233_v10  ;;  %3419 = vmatpush.msrb.mxu3 %v12234_v26 }
 0x851   :  { %3380 = vmatpush.msrb.mxu1 %v12235_v0  ;;  %3420 = vmatpush.msrb.mxu3 %v12236_v25 }
 0x853   :  { %3381 = vmatpush.msrb.mxu1 %v12237_v44  ;;  %3421 = vmatpush.msrb.mxu3 %v12238_v2  ;;  %v3172_v0 = vpop.f32.mrf.mxu2  ;;  %v12241_v44 = vld [vmem:[#allocation84_spill] sm:$0xff] }
 0x854   :  { %v3173_v20 = vadd.f32 %v3172_v0, %v12241_v44  ;;  %v12243_v44 = vld [vmem:[#allocation48_spill] sm:$0xff] }
 0x855   :  { %vm3489_vm9 = vcmp.eq.s32.totalorder %v12243_v44, 6 }
 0x891   :  { %v3072_v23 = vpop.f32.mrf.mxu1 }
 0x892   :  { %v3073_v39 = vadd.f32 %v3072_v23, %v3053_v31  ;;  %v3132_v31 = vpop.f32.mrf.mxu0 }
 0x894   :  { %v4135_v53 = vmul.f32 -1.442695, %v3073_v39  ;;  %v12242_v39 = vld [vmem:[#allocation85_spill] sm:$0xff] }
 0x896   :  { %4344 = vpow2.f32 %v4135_v53 }
 0x897   :  { %v3112_v10 = vpop.f32.mrf.mxu3 }
 0x898   :  { %v3113_v26 = vadd.f32 %v3112_v10, %v3093_v6  ;;  %v3133_v10 = vadd.f32 %v3132_v31, %v12242_v39 }
 0x899   :  { %v3152_v6 = vpop.f32.mrf.mxu1 }
 0x89a   :  { %v4136_v27 = vmul.f32 -1.442695, %v3113_v26  ;;  %v3153_v43 = vadd.f32 %v3152_v6, %v3133_v10 }
 0x89c   :  { %v4345_v7 = vpop.eup %4344  ;;  %4346 = vpow2.f32 %v4136_v27 }
 0x89d   :  { %v3198_v25 = vadd.f32 1.0, %v4345_v7 }
 0x89f   :  { %4348 = vrcp.f32 %v3198_v25  ;;  %v3192_v2 = vpop.f32.mrf.mxu3  ;;  %vm3204_vm11 = vweird.f32 %v3198_v25 }
 0x8a0   :  { %v3193_v59 = vadd.f32 %v3192_v2, %v3173_v20 }
 0x8a2   :  { %v4347_v40 = vpop.eup %4346  ;;  %v4137_v3 = vmul.f32 -1.442695, %v3193_v59  ;;  %v12244_v59 = vmov 0  }
 0x8a3   :  { %v3217_v14 = vadd.f32 1.0, %v4347_v40  ;;  %v3210_v40 = vand.u32 2147483648, %v3198_v25 }
 0x8a4   :  { %4350 = vpow2.f32 %v4137_v3  ;;  %v3490_v3 = vsel %vm3489_vm9, 1, %v12244_v59 }
 0x8a5   :  { %v4349_v23 = vpop.eup %4348  ;;  %4352 = vrcp.f32 %v3217_v14  ;;  %3492 = vperm.xlu2 %4151, %v3490_v3   ;;  %v3229_v45 = vand.u32 2147483648, %v3217_v14  ;;  %v3227_v6 = vand.u32 2147483647, %v3217_v14  ;;  %v3211_v10 = vor.u32 1.1754944e-38, %v3210_v40 }
 0x8a6   :  { %v3200_v53 = vmul.f32 %v4349_v23, %v3198_v25  ;;  %vm3205_vm10 = vweird.f32 %v4349_v23  ;;  %vm3223_vm14 = vweird.f32 %v3217_v14 }
 0x8a7   :  { %vm3206_vm12 = vmor %vm3204_vm11, %vm3205_vm10  ;;  %v3230_v59 = vor.u32 1.1754944e-38, %v3229_v45  ;;  %vm3228_vm1 = vcmp.eq.f32.partialorder %v3227_v6, 8.507059e+37 }
 0x8a8   :  { %v3201_v18 = vsub.f32 1.0, %v3200_v53  ;;  %v3208_v53 = vand.u32 2147483647, %v3198_v25 }
 0x8aa   :  { %v4351_v26 = vpop.eup %4350  ;;  %v3202_v27 = vmul.f32 %v4349_v23, %v3201_v18  ;;  %vm3209_vm15 = vcmp.eq.f32.partialorder %v3208_v53, 8.507059e+37 }
 0x8ab   :  { %v4353_v7 = vpop.eup %4352  ;;  %v3237_v0 = vadd.f32 1.0, %v4351_v26 }
 0x8ac   :  { %v3219_v20 = vmul.f32 %v4353_v7, %v3217_v14  ;;  %v3203_v2 = vadd.f32 %v4349_v23, %v3202_v27  ;;  %vm3224_vm13 = vweird.f32 %v4353_v7 }
 0x8ad   :  { %4354 = vrcp.f32 %v3237_v0  ;;  %vm3225_vm0 = vmor %vm3223_vm14, %vm3224_vm13  ;;  %vm3243_vm3 = vweird.f32 %v3237_v0  ;;  %v3247_v45 = vand.u32 2147483647, %v3237_v0 }
 0x8ae   :  { %v3220_v58 = vsub.f32 1.0, %v3219_v20  ;;  %4356 = vtanh.f32 %v3153_v43  ;;  %v3207_v18 = vsel %vm3206_vm12, %v4349_v23, %v3203_v2  ;;  %v3249_v2 = vand.u32 2147483648, %v3237_v0 }
 0x8af   :  { %v3212_v44 = vsel %vm3209_vm15, %v3211_v10, %v3207_v18  ;;  %vm3248_vm5 = vcmp.eq.f32.partialorder %v3247_v45, 8.507059e+37 }
 0x8b0   :  { %v3221_v31 = vmul.f32 %v4353_v7, %v3220_v58  ;;  %v3250_v53 = vor.u32 1.1754944e-38, %v3249_v2 }
 0x8b2   :  { %v3222_v26 = vadd.f32 %v4353_v7, %v3221_v31  ;;  %v12273_v31 = vld [vmem:[#allocation84_spill] sm:$0xff] }
 0x8b3   :  { %v4355_v27 = vpop.eup %4354 }
 0x8b4   :  { %v3226_v39 = vsel %vm3225_vm0, %v4353_v7, %v3222_v26  ;;  %v3239_v20 = vmul.f32 %v4355_v27, %v3237_v0  ;;  %v4357_v3 = vpop.eup %4356  ;;  %vm3244_vm2 = vweird.f32 %v4355_v27  ;;  %v3262_v7 = vpop.permute.xlu2 %3261 }
 0x8b5   :  { %v3231_v25 = vsel %vm3228_vm1, %v3230_v59, %v3226_v39  ;;  %v3254_v43 = vmul.f32 %v4357_v3, %v3212_v44  ;;  %vm3245_vm4 = vmor %vm3243_vm3, %vm3244_vm2  ;;  %vm3263_vm6 = vcmp.eq.s32.totalorder %v3262_v7, 1 }
 0x8b6   :  { %v3253_v32 = vmul.f32 %v3231_v25, %v10390_v56  ;;  %v3240_v58 = vsub.f32 1.0, %v3239_v20 }
 0x8b8   :  { %v10467_v22 = vadd.f32 %v3254_v43, %v3253_v32  ;;  %v3241_v23 = vmul.f32 %v4355_v27, %v3240_v58 }
 0x8ba   :  { %4358 = vtanh.f32 %v10467_v22  ;;  %v3242_v14 = vadd.f32 %v4355_v27, %v3241_v23 }
 0x8bc   :  { %v3246_v40 = vsel %vm3245_vm4, %v4355_v27, %v3242_v14  ;;  %v12274_v14 = vld [vmem:[#allocation85_spill] sm:$0xff] }
 0x8bd   :  { %v3251_v59 = vsel %vm3248_vm5, %v3250_v53, %v3246_v40 }
 0x8c0   :  { %v4359_v39 = vpop.eup %4358 }
 0x8c1   :  { %v3257_v56 = vmul.f32 %v4359_v39, %v3251_v59  ;;  %v12275_v59 = vld [vmem:[#allocation48_spill] sm:$0xff] }
 0x8c2   :  { %vm3720_vm7 = vcmp.eq.s32.totalorder %v12275_v59, 7  ;;  %v4855_v59 = vld [vmem:[%s10742_s1 + $0x720] sm:$0xff] }
 0x8c3   :  { %v10471_v32 = vsel %vm3263_vm6, %v3257_v56, %v10394_v61  ;;  %3302 = vmatmul.f32.vlgmr.msra.gmra.mxu1 %v3257_v56  ;;  %3342 = vmatmul.f32.vlgmr.msra.gmra.mxu3 %v3257_v56 }
 0x8c4   :  { %3517 = vmatpush.msra.mxu1 %v9920_v55  ;;  %3557 = vmatpush.msra.mxu3 %v9926_v38  ;;  %v12245_v55 = vld [vmem:[#allocation18_spill] sm:$0xff]  ;;  %v12246_v38 = vld [vmem:[#allocation80_spill] sm:$0xff] }
 0x8c6   :  { %3518 = vmatpush.msra.mxu1 %v9932_v1  ;;  %3558 = vmatpush.msra.mxu3 %v9938_v51  ;;  %v12247_v1 = vld [vmem:[#allocation86_spill] sm:$0xff]  ;;  %v12248_v51 = vld [vmem:[#allocation87_spill] sm:$0xff] }
 0x8c8   :  { %3519 = vmatpush.msra.mxu1 %v9944_v4  ;;  %3559 = vmatpush.msra.mxu3 %v9950_v19  ;;  %v12249_v4 = vld [vmem:[#allocation28_spill] sm:$0xff]  ;;  %v12250_v19 = vld [vmem:[#allocation42_spill] sm:$0xff] }
 0x8ca   :  { %3520 = vmatpush.msra.mxu1 %v9956_v12  ;;  %3560 = vmatpush.msra.mxu3 %v9962_v48  ;;  %v12251_v12 = vld [vmem:[#allocation88_spill] sm:$0xff]  ;;  %v12252_v48 = vld [vmem:[#allocation89_spill] sm:$0xff] }
 0x8cb   :  { %3382 = vmatmul.f32.vlgmr.msrb.gmra.mxu1 %v3257_v56  ;;  %3422 = vmatmul.f32.vlgmr.msrb.gmra.mxu3 %v3257_v56 }
 0x8cc   :  { %3521 = vmatpush.msra.mxu1 %v9968_v35  ;;  %3561 = vmatpush.msra.mxu3 %v9974_v54  ;;  %v12253_v35 = vld [vmem:[#allocation66_spill] sm:$0xff]  ;;  %v12254_v54 = vld [vmem:[#allocation44_spill] sm:$0xff] }
 0x8ce   :  { %3522 = vmatpush.msra.mxu1 %v9980_v16  ;;  %3562 = vmatpush.msra.mxu3 %v9986_v63  ;;  %v12255_v16 = vld [vmem:[#allocation90_spill] sm:$0xff]  ;;  %v12256_v63 = vld [vmem:[#allocation91_spill] sm:$0xff] }
 0x8d0   :  { %3523 = vmatpush.msra.mxu1 %v9992_v37  ;;  %3563 = vmatpush.msra.mxu3 %v9998_v9  ;;  %v12257_v37 = vld [vmem:[#allocation82_spill] sm:$0xff]  ;;  %v12258_v9 = vld [vmem:[#allocation83_spill] sm:$0xff] }
 0x8d2   :  { %3524 = vmatpush.msra.mxu1 %v10004_v62  ;;  %3564 = vmatpush.msra.mxu3 %v10010_v11  ;;  %v12259_v62 = vld [vmem:[#allocation92_spill] sm:$0xff]  ;;  %v12260_v11 = vld [vmem:[#allocation7_spill] sm:$0xff] }
 0x8d4   :  { %3525 = vmatpush.msra.mxu1 %v10016_v17  ;;  %3565 = vmatpush.msra.mxu3 %v10022_v30  ;;  %v12261_v17 = vld [vmem:[#allocation59_spill] sm:$0xff]  ;;  %v12262_v30 = vld [vmem:[#allocation34_spill] sm:$0xff] }
 0x8d6   :  { %3526 = vmatpush.msra.mxu1 %v10028_v47  ;;  %3566 = vmatpush.msra.mxu3 %v10034_v50  ;;  %v12263_v47 = vld [vmem:[#allocation93_spill] sm:$0xff] }
 0x8d7   :  { %v12264_v50 = vld [vmem:[#allocation61_spill] sm:$0xff] }
 0x8d8   :  { %3527 = vmatpush.msra.mxu1 %v10040_v46  ;;  %3567 = vmatpush.msra.mxu3 %v10046_v41  ;;  %v12265_v46 = vld [vmem:[#allocation56_spill] sm:$0xff] }
 0x8d9   :  { %v12266_v41 = vld [vmem:[#allocation32_spill] sm:$0xff] }
 0x8da   :  { %3528 = vmatpush.msra.mxu1 %v10052_v5  ;;  %3568 = vmatpush.msra.mxu3 %v10058_v57  ;;  %v12267_v5 = vld [vmem:[#allocation94_spill] sm:$0xff]  ;;  %v12268_v57 = vld [vmem:[#allocation68_spill] sm:$0xff] }
 0x8dc   :  { %3529 = vmatpush.msra.mxu1 %v10064_v33  ;;  %3569 = vmatpush.msra.mxu3 %v10070_v36  ;;  %v12269_v33 = vld [vmem:[#allocation33_spill] sm:$0xff]  ;;  %v12270_v36 = vld [vmem:[#allocation38_spill] sm:$0xff] }
 0x8de   :  { %3530 = vmatpush.msra.mxu1 %v10076_v15  ;;  %3570 = vmatpush.msra.mxu3 %v10082_v21  ;;  %v3283_v15 = vpop.f32.mrf.mxu0  ;;  %v12271_v21 = vld [vmem:[#allocation5_spill] sm:$0xff] }
 0x8e0   :  { %3531 = vmatpush.msra.mxu1 %v10088_v34  ;;  %3571 = vmatpush.msra.mxu3 %v10094_v49  ;;  %v3284_v34 = vadd.f32 %v3283_v15, %v12271_v21  ;;  %v3323_v49 = vpop.f32.mrf.mxu2 }
 0x8e2   :  { %3532 = vmatpush.msra.mxu1 %v10100_v52  ;;  %3572 = vmatpush.msra.mxu3 %v10106_v13 }
 0x8e4   :  { %3597 = vmatpush.msrb.mxu1 %v10112_v29  ;;  %3637 = vmatpush.msrb.mxu3 %v10118_v28  ;;  %v12272_v28 = vld [vmem:[#allocation4_spill] sm:$0xff] }
 0x8e6   :  { %3598 = vmatpush.msrb.mxu1 %v10124_v60  ;;  %3638 = vmatpush.msrb.mxu3 %v10130_v8  ;;  %v3324_v60 = vadd.f32 %v3323_v49, %v12272_v28  ;;  %v3363_v25 = vpop.f32.mrf.mxu0 }
 0x8e7   :  { %v3364_v2 = vadd.f32 %v3363_v25, %v12274_v14  ;;  %v4844_v25 = vld [vmem:[%s10742_s1 + $0x7e8] sm:$0xff] }
 0x8e8   :  { %3599 = vmatpush.msrb.mxu1 %v10136_v42  ;;  %3639 = vmatpush.msrb.mxu3 %v10142_v24  ;;  %v3403_v61 = vpop.f32.mrf.mxu2 }
 0x8e9   :  { %v3404_v18 = vadd.f32 %v3403_v61, %v12273_v31 }
 0x8ea   :  { %3600 = vmatpush.msrb.mxu1 %v12245_v55  ;;  %3640 = vmatpush.msrb.mxu3 %v12246_v38  ;;  %v12276_v38 = vmov 0  }
 0x8ec   :  { %3601 = vmatpush.msrb.mxu1 %v12247_v1  ;;  %3641 = vmatpush.msrb.mxu3 %v12248_v51  ;;  %v3721_v1 = vsel %vm3720_vm7, 1, %v12276_v38 }
 0x8ed   :  { %3723 = vperm.xlu0 %4149, %v3721_v1   ;;  %v4858_v1 = vld [vmem:[%s10742_s1 + $0x708] sm:$0xff] }
 0x8ee   :  { %3602 = vmatpush.msrb.mxu1 %v12249_v4  ;;  %3642 = vmatpush.msrb.mxu3 %v12250_v19 }
 0x8f0   :  { %3603 = vmatpush.msrb.mxu1 %v12251_v12  ;;  %3643 = vmatpush.msrb.mxu3 %v12252_v48 }
 0x8f2   :  { %3604 = vmatpush.msrb.mxu1 %v12253_v35  ;;  %3644 = vmatpush.msrb.mxu3 %v12254_v54 }
 0x8f4   :  { %3605 = vmatpush.msrb.mxu1 %v12255_v16  ;;  %3645 = vmatpush.msrb.mxu3 %v12256_v63 }
 0x8f6   :  { %3606 = vmatpush.msrb.mxu1 %v12257_v37  ;;  %3646 = vmatpush.msrb.mxu3 %v12258_v9 }
 0x8f8   :  { %3607 = vmatpush.msrb.mxu1 %v12259_v62  ;;  %3647 = vmatpush.msrb.mxu3 %v12260_v11 }
 0x8fa   :  { %3608 = vmatpush.msrb.mxu1 %v12261_v17  ;;  %3648 = vmatpush.msrb.mxu3 %v12262_v30 }
 0x8fc   :  { %3609 = vmatpush.msrb.mxu1 %v12263_v47  ;;  %3649 = vmatpush.msrb.mxu3 %v12264_v50 }
 0x8fe   :  { %3610 = vmatpush.msrb.mxu1 %v12265_v46  ;;  %3650 = vmatpush.msrb.mxu3 %v12266_v41 }
 0x900   :  { %3611 = vmatpush.msrb.mxu1 %v12267_v5  ;;  %3651 = vmatpush.msrb.mxu3 %v12268_v57 }
 0x902   :  { %3612 = vmatpush.msrb.mxu1 %v12269_v33  ;;  %3652 = vmatpush.msrb.mxu3 %v12270_v36 }
 0x940   :  { %v3303_v52 = vpop.f32.mrf.mxu1 }
 0x941   :  { %v3304_v13 = vadd.f32 %v3303_v52, %v3284_v34 }
 0x943   :  { %v4138_v29 = vmul.f32 -1.442695, %v3304_v13 }
 0x945   :  { %4360 = vpow2.f32 %v4138_v29 }
 0x946   :  { %v3343_v8 = vpop.f32.mrf.mxu3 }
 0x947   :  { %v3344_v42 = vadd.f32 %v3343_v8, %v3324_v60 }
 0x948   :  { %v3383_v23 = vpop.f32.mrf.mxu1 }
 0x949   :  { %v4139_v24 = vmul.f32 -1.442695, %v3344_v42  ;;  %v3384_v53 = vadd.f32 %v3383_v23, %v3364_v2  ;;  %v4848_v23 = vld [vmem:[%s10742_s1 + $0x7a8] sm:$0xff]  ;;  %v4849_v2 = vld [vmem:[%s10742_s1 + $0x780] sm:$0xff] }
 0x94b   :  { %v4361_v44 = vpop.eup %4360  ;;  %4362 = vpow2.f32 %v4139_v24 }
 0x94c   :  { %v3429_v0 = vadd.f32 1.0, %v4361_v44 }
 0x94e   :  { %4364 = vrcp.f32 %v3429_v0  ;;  %v3423_v6 = vpop.f32.mrf.mxu3  ;;  %v3441_v51 = vand.u32 2147483648, %v3429_v0  ;;  %vm3435_vm9 = vweird.f32 %v3429_v0  ;;  %v3439_v19 = vand.u32 2147483647, %v3429_v0 }
 0x94f   :  { %v3424_v10 = vadd.f32 %v3423_v6, %v3404_v18  ;;  %v3493_v18 = vpop.permute.xlu2 %3492 }
 0x950   :  { %v3442_v16 = vor.u32 1.1754944e-38, %v3441_v51  ;;  %vm3440_vm13 = vcmp.eq.f32.partialorder %v3439_v19, 8.507059e+37  ;;  %vm3494_vm4 = vcmp.eq.s32.totalorder %v3493_v18, 1  ;;  %v4859_v51 = vld [vmem:[%s10742_s1 + $0x6e0] sm:$0xff]  ;;  %v4882_v18 = vld [vmem:[%s10742_s1 + $0x798] sm:$0xff] }
 0x951   :  { %v4363_v26 = vpop.eup %4362  ;;  %v4140_v27 = vmul.f32 -1.442695, %v3424_v10  ;;  %v4861_v19 = vld [vmem:[%s10742_s1 + $0x6c0] sm:$0xff] }
 0x952   :  { %v3448_v20 = vadd.f32 1.0, %v4363_v26 }
 0x953   :  { %4366 = vpow2.f32 %v4140_v27 }
 0x954   :  { %v4365_v3 = vpop.eup %4364  ;;  %4368 = vrcp.f32 %v3448_v20  ;;  %v3460_v12 = vand.u32 2147483648, %v3448_v20  ;;  %v3458_v54 = vand.u32 2147483647, %v3448_v20  ;;  %vm3454_vm12 = vweird.f32 %v3448_v20 }
 0x955   :  { %v3431_v43 = vmul.f32 %v4365_v3, %v3429_v0  ;;  %vm3436_vm8 = vweird.f32 %v4365_v3 }
 0x956   :  { %vm3437_vm10 = vmor %vm3435_vm9, %vm3436_vm8  ;;  %v3461_v9 = vor.u32 1.1754944e-38, %v3460_v12  ;;  %vm3459_vm15 = vcmp.eq.f32.partialorder %v3458_v54, 8.507059e+37  ;;  %v4862_v12 = vld [vmem:[%s10742_s1 + $0x6c8] sm:$0xff]  ;;  %v4865_v54 = vld [vmem:[%s10742_s1 + $0x680] sm:$0xff] }
 0x957   :  { %v3432_v58 = vsub.f32 1.0, %v3431_v43  ;;  %v4845_v43 = vld [vmem:[%s10742_s1 + $0x7c0] sm:$0xff] }
 0x959   :  { %v4367_v45 = vpop.eup %4366  ;;  %v3433_v7 = vmul.f32 %v4365_v3, %v3432_v58  ;;  %v4847_v58 = vld [vmem:[%s10742_s1 + $0x7a0] sm:$0xff] }
 0x95a   :  { %v4369_v40 = vpop.eup %4368  ;;  %v3468_v39 = vadd.f32 1.0, %v4367_v45  ;;  %v4850_v45 = vld [vmem:[%s10742_s1 + $0x788] sm:$0xff] }
 0x95b   :  { %v3450_v56 = vmul.f32 %v4369_v40, %v3448_v20  ;;  %v3434_v55 = vadd.f32 %v4365_v3, %v3433_v7  ;;  %vm3455_vm11 = vweird.f32 %v4369_v40  ;;  %v4851_v7 = vld [vmem:[%s10742_s1 + $0x760] sm:$0xff] }
 0x95c   :  { %4370 = vrcp.f32 %v3468_v39  ;;  %vm3456_vm14 = vmor %vm3454_vm12, %vm3455_vm11  ;;  %v3480_v44 = vand.u32 2147483648, %v3468_v39  ;;  %vm3474_vm1 = vweird.f32 %v3468_v39  ;;  %v3478_v0 = vand.u32 2147483647, %v3468_v39 }
 0x95d   :  { %v3451_v4 = vsub.f32 1.0, %v3450_v56  ;;  %4372 = vtanh.f32 %v3384_v53  ;;  %v3438_v35 = vsel %vm3437_vm10, %v4365_v3, %v3434_v55  ;;  %v4843_v3 = vld [vmem:[%s10742_s1 + $0x7e0] sm:$0xff]  ;;  %v4856_v56 = vld [vmem:[%s10742_s1 + $0x728] sm:$0xff] }
 0x95e   :  { %v3443_v15 = vsel %vm3440_vm13, %v3442_v16, %v3438_v35  ;;  %v3481_v10 = vor.u32 1.1754944e-38, %v3480_v44  ;;  %vm3479_vm3 = vcmp.eq.f32.partialorder %v3478_v0, 8.507059e+37  ;;  %v4853_v53 = vld [vmem:[%s10742_s1 + $0x740] sm:$0xff]  ;;  %v4864_v35 = vld [vmem:[%s10742_s1 + $0x6a8] sm:$0xff]  ;;  %v4880_v44 = vld [vmem:[%s10742_s1 + $0x7b8] sm:$0xff] }
 0x95f   :  { %v3452_v48 = vmul.f32 %v4369_v40, %v3451_v4  ;;  %v4857_v55 = vld [vmem:[%s10742_s1 + $0x700] sm:$0xff]  ;;  %v4860_v4 = vld [vmem:[%s10742_s1 + $0x6e8] sm:$0xff]  ;;  %v4881_v0 = vld [vmem:[%s10742_s1 + $0x790] sm:$0xff] }
 0x960   :  { %v4866_v16 = vld [vmem:[%s10742_s1 + $0x688] sm:$0xff] }
 0x961   :  { %v3453_v63 = vadd.f32 %v4369_v40, %v3452_v48  ;;  %v4863_v48 = vld [vmem:[%s10742_s1 + $0x6a0] sm:$0xff] }
 0x962   :  { %v4371_v37 = vpop.eup %4370 }
 0x963   :  { %v3457_v34 = vsel %vm3456_vm14, %v4369_v40, %v3453_v63  ;;  %v3470_v49 = vmul.f32 %v4371_v37, %v3468_v39  ;;  %v4373_v52 = vpop.eup %4372  ;;  %vm3475_vm0 = vweird.f32 %v4371_v37  ;;  %v4852_v40 = vld [vmem:[%s10742_s1 + $0x768] sm:$0xff]  ;;  %v4867_v63 = vld [vmem:[%s10742_s1 + $0x660] sm:$0xff] }
 0x964   :  { %v3462_v13 = vsel %vm3459_vm15, %v3461_v9, %v3457_v34  ;;  %v3485_v60 = vmul.f32 %v4373_v52, %v3443_v15  ;;  %vm3476_vm2 = vmor %vm3474_vm1, %vm3475_vm0  ;;  %v4854_v39 = vld [vmem:[%s10742_s1 + $0x748] sm:$0xff]  ;;  %v4869_v9 = vld [vmem:[%s10742_s1 + $0x640] sm:$0xff] }
 0x965   :  { %v3484_v29 = vmul.f32 %v3462_v13, %v10467_v22  ;;  %v3471_v8 = vsub.f32 1.0, %v3470_v49  ;;  %v4870_v15 = vld [vmem:[%s10742_s1 + $0x648] sm:$0xff]  ;;  %v4871_v34 = vld [vmem:[%s10742_s1 + $0x620] sm:$0xff] }
 0x966   :  { %v4872_v49 = vld [vmem:[%s10742_s1 + $0x628] sm:$0xff]  ;;  %v4873_v52 = vld [vmem:[%s10742_s1 + $0x600] sm:$0xff] }
 0x967   :  { %v10544_v42 = vadd.f32 %v3485_v60, %v3484_v29  ;;  %v3472_v24 = vmul.f32 %v4371_v37, %v3471_v8  ;;  %v4874_v13 = vld [vmem:[%s10742_s1 + $0x608] sm:$0xff]  ;;  %v4875_v29 = vld [vmem:[%s10742_s1 + $0x7f0] sm:$0xff]  ;;  %v4876_v60 = vld [vmem:[%s10742_s1 + $0x7f8] sm:$0xff] }
 0x968   :  { %v4877_v8 = vld [vmem:[%s10742_s1 + $0x7d0] sm:$0xff] }
 0x969   :  { %4374 = vtanh.f32 %v10544_v42  ;;  %v3473_v61 = vadd.f32 %v4371_v37, %v3472_v24  ;;  %v4878_v24 = vld [vmem:[%s10742_s1 + $0x7d8] sm:$0xff] }
 0x96b   :  { %v3477_v6 = vsel %vm3476_vm2, %v4371_v37, %v3473_v61  ;;  %v4868_v37 = vld [vmem:[%s10742_s1 + $0x668] sm:$0xff]  ;;  %v4879_v61 = vld [vmem:[%s10742_s1 + $0x7b0] sm:$0xff] }
 0x96c   :  { %v3482_v27 = vsel %vm3479_vm3, %v3481_v10, %v3477_v6  ;;  %v4883_v6 = vld [vmem:[%s10742_s1 + $0x770] sm:$0xff]  ;;  %v4884_v10 = vld [vmem:[%s10742_s1 + $0x778] sm:$0xff] }
 0x96f   :  { %v4375_v26 = vpop.eup %4374 }
 0x970   :  { %v3488_v22 = vmul.f32 %v4375_v26, %v3482_v27  ;;  %v4885_v26 = vld [vmem:[%s10742_s1 + $0x750] sm:$0xff]  ;;  %v4886_v27 = vld [vmem:[%s10742_s1 + $0x758] sm:$0xff] }
 0x972   :  { %v10548_v20 = vsel %vm3494_vm4, %v3488_v22, %v10471_v32  ;;  %3533 = vmatmul.f32.vlgmr.msra.gmra.mxu1 %v3488_v22  ;;  %3573 = vmatmul.f32.vlgmr.msra.gmra.mxu3 %v3488_v22  ;;  %v4846_v32 = vld [vmem:[%s10742_s1 + $0x7c8] sm:$0xff] }
 0x973   :  { %3748 = vmatpush.msra.mxu1 %v4843_v3  ;;  %3788 = vmatpush.msra.mxu3 %v4844_v25  ;;  %v4888_v3 = vld [vmem:[%s10742_s1 + $0x738] sm:$0xff]  ;;  %v4889_v25 = vld [vmem:[%s10742_s1 + $0x710] sm:$0xff] }
 0x975   :  { %3749 = vmatpush.msra.mxu1 %v4845_v43  ;;  %3789 = vmatpush.msra.mxu3 %v4846_v32  ;;  %v4890_v43 = vld [vmem:[%s10742_s1 + $0x718] sm:$0xff]  ;;  %v4891_v32 = vld [vmem:[%s10742_s1 + $0x6f0] sm:$0xff] }
 0x977   :  { %3750 = vmatpush.msra.mxu1 %v4847_v58  ;;  %3790 = vmatpush.msra.mxu3 %v4848_v23  ;;  %v4892_v58 = vld [vmem:[%s10742_s1 + $0x6f8] sm:$0xff]  ;;  %v4893_v23 = vld [vmem:[%s10742_s1 + $0x6d0] sm:$0xff] }
 0x979   :  { %3751 = vmatpush.msra.mxu1 %v4849_v2  ;;  %3791 = vmatpush.msra.mxu3 %v4850_v45  ;;  %v4894_v2 = vld [vmem:[%s10742_s1 + $0x6d8] sm:$0xff] }
 0x97a   :  { %3613 = vmatmul.f32.vlgmr.msrb.gmra.mxu1 %v3488_v22  ;;  %3653 = vmatmul.f32.vlgmr.msrb.gmra.mxu3 %v3488_v22  ;;  %v4887_v22 = vld [vmem:[%s10742_s1 + $0x730] sm:$0xff] }
 0x97b   :  { %3752 = vmatpush.msra.mxu1 %v4851_v7  ;;  %3792 = vmatpush.msra.mxu3 %v4852_v40 }
 0x97d   :  { %3753 = vmatpush.msra.mxu1 %v4853_v53  ;;  %3793 = vmatpush.msra.mxu3 %v4854_v39 }
 0x97f   :  { %3754 = vmatpush.msra.mxu1 %v4855_v59  ;;  %3794 = vmatpush.msra.mxu3 %v4856_v56 }
 0x981   :  { %3755 = vmatpush.msra.mxu1 %v4857_v55  ;;  %3795 = vmatpush.msra.mxu3 %v4858_v1 }
 0x983   :  { %3756 = vmatpush.msra.mxu1 %v4859_v51  ;;  %3796 = vmatpush.msra.mxu3 %v4860_v4 }
 0x985   :  { %3757 = vmatpush.msra.mxu1 %v4861_v19  ;;  %3797 = vmatpush.msra.mxu3 %v4862_v12 }
 0x987   :  { %3758 = vmatpush.msra.mxu1 %v4863_v48  ;;  %3798 = vmatpush.msra.mxu3 %v4864_v35 }
 0x989   :  { %3759 = vmatpush.msra.mxu1 %v4865_v54  ;;  %3799 = vmatpush.msra.mxu3 %v4866_v16 }
 0x98b   :  { %3760 = vmatpush.msra.mxu1 %v4867_v63  ;;  %3800 = vmatpush.msra.mxu3 %v4868_v37  ;;  %v4895_v37 = vld [vmem:[%s10745_s3] sm:$0xff] }
 0x98c   :  { %vm3951_vm5 = vcmp.eq.s32.totalorder %v4895_v37, 8 }
 0x98d   :  { %3761 = vmatpush.msra.mxu1 %v4869_v9  ;;  %3801 = vmatpush.msra.mxu3 %v4870_v15 }
 0x98f   :  { %3762 = vmatpush.msra.mxu1 %v4871_v34  ;;  %3802 = vmatpush.msra.mxu3 %v4872_v49  ;;  %v3952_v34 = vsel %vm3951_vm5, 1, %v12276_v38 }
 0x990   :  { %3954 = vperm.xlu1 %4150, %v3952_v34  }
 0x991   :  { %3763 = vmatpush.msra.mxu1 %v4873_v52  ;;  %3803 = vmatpush.msra.mxu3 %v4874_v13 }
 0x993   :  { %3828 = vmatpush.msrb.mxu1 %v4875_v29  ;;  %3868 = vmatpush.msrb.mxu3 %v4876_v60 }
 0x995   :  { %3829 = vmatpush.msrb.mxu1 %v4877_v8  ;;  %3869 = vmatpush.msrb.mxu3 %v4878_v24 }
 0x997   :  { %3830 = vmatpush.msrb.mxu1 %v4879_v61  ;;  %3870 = vmatpush.msrb.mxu3 %v4880_v44 }
 0x999   :  { %3831 = vmatpush.msrb.mxu1 %v4881_v0  ;;  %3871 = vmatpush.msrb.mxu3 %v4882_v18 }
 0x99b   :  { %3832 = vmatpush.msrb.mxu1 %v4883_v6  ;;  %3872 = vmatpush.msrb.mxu3 %v4884_v10 }
 0x99d   :  { %3833 = vmatpush.msrb.mxu1 %v4885_v26  ;;  %3873 = vmatpush.msrb.mxu3 %v4886_v27 }
 0x99f   :  { %3834 = vmatpush.msrb.mxu1 %v4887_v22  ;;  %3874 = vmatpush.msrb.mxu3 %v4888_v3 }
 0x9a1   :  { %3835 = vmatpush.msrb.mxu1 %v4889_v25  ;;  %3875 = vmatpush.msrb.mxu3 %v4890_v43 }
 0x9a3   :  { %3836 = vmatpush.msrb.mxu1 %v4891_v32  ;;  %3876 = vmatpush.msrb.mxu3 %v4892_v58 }
 0x9a5   :  { %3837 = vmatpush.msrb.mxu1 %v4893_v23  ;;  %3877 = vmatpush.msrb.mxu3 %v4894_v2 }
 0x9a7   :  { %3838 = vmatpush.msrb.mxu1 %v12259_v62  ;;  %3878 = vmatpush.msrb.mxu3 %v12260_v11  ;;  %v3514_v62 = vpop.f32.mrf.mxu0 }
 0x9a8   :  { %v3515_v11 = vadd.f32 %v3514_v62, %v12271_v21  ;;  %v3724_v62 = vpop.permute.xlu0 %3723 }
 0x9a9   :  { %3839 = vmatpush.msrb.mxu1 %v12261_v17  ;;  %3879 = vmatpush.msrb.mxu3 %v12262_v30  ;;  %v3554_v17 = vpop.f32.mrf.mxu2  ;;  %vm3725_vm2 = vcmp.eq.s32.totalorder %v3724_v62, 1 }
 0x9ab   :  { %3840 = vmatpush.msrb.mxu1 %v12263_v47  ;;  %3880 = vmatpush.msrb.mxu3 %v12264_v50  ;;  %v3555_v50 = vadd.f32 %v3554_v17, %v12272_v28 }
 0x9ad   :  { %3841 = vmatpush.msrb.mxu1 %v12265_v46  ;;  %3881 = vmatpush.msrb.mxu3 %v12266_v41 }
 0x9af   :  { %3842 = vmatpush.msrb.mxu1 %v12267_v5  ;;  %3882 = vmatpush.msrb.mxu3 %v12268_v57  ;;  %v3594_v1 = vpop.f32.mrf.mxu0 }
 0x9b0   :  { %v3595_v12 = vadd.f32 %v3594_v1, %v12274_v14 }
 0x9b1   :  { %3843 = vmatpush.msrb.mxu1 %v12269_v33  ;;  %3883 = vmatpush.msrb.mxu3 %v12270_v36  ;;  %v3634_v5 = vpop.f32.mrf.mxu2 }
 0x9b2   :  { %v3635_v33 = vadd.f32 %v3634_v5, %v12273_v31 }
 0x9ef   :  { %v3534_v30 = vpop.f32.mrf.mxu1 }
 0x9f0   :  { %v3535_v47 = vadd.f32 %v3534_v30, %v3515_v11 }
 0x9f2   :  { %v4141_v45 = vmul.f32 -1.442695, %v3535_v47 }
 0x9f4   :  { %4376 = vpow2.f32 %v4141_v45 }
 0x9f5   :  { %v3574_v46 = vpop.f32.mrf.mxu3 }
 0x9f6   :  { %v3575_v41 = vadd.f32 %v3574_v46, %v3555_v50  ;;  %v3745_v50 = vpop.f32.mrf.mxu0 }
 0x9f7   :  { %v3614_v19 = vpop.f32.mrf.mxu1  ;;  %v3746_v46 = vadd.f32 %v3745_v50, %v12271_v21 }
 0x9f8   :  { %v4142_v7 = vmul.f32 -1.442695, %v3575_v41  ;;  %v3615_v16 = vadd.f32 %v3614_v19, %v3595_v12  ;;  %v3785_v41 = vpop.f32.mrf.mxu2 }
 0x9fa   :  { %v4377_v40 = vpop.eup %4376  ;;  %4378 = vpow2.f32 %v4142_v7 }
 0x9fb   :  { %v3660_v57 = vadd.f32 1.0, %v4377_v40 }
 0x9fd   :  { %4380 = vrcp.f32 %v3660_v57  ;;  %v3654_v36 = vpop.f32.mrf.mxu3  ;;  %v3672_v49 = vand.u32 2147483648, %v3660_v57  ;;  %vm3666_vm7 = vweird.f32 %v3660_v57  ;;  %v3670_v13 = vand.u32 2147483647, %v3660_v57 }
 0x9fe   :  { %v3655_v53 = vadd.f32 %v3654_v36, %v3635_v33 }
 0x9ff   :  { %v3673_v61 = vor.u32 1.1754944e-38, %v3672_v49  ;;  %vm3671_vm11 = vcmp.eq.f32.partialorder %v3670_v13, 8.507059e+37 }
 0xa00   :  { %v4379_v39 = vpop.eup %4378  ;;  %v4143_v59 = vmul.f32 -1.442695, %v3655_v53 }
 0xa01   :  { %v3679_v56 = vadd.f32 1.0, %v4379_v39  ;;  %v3865_v39 = vpop.f32.mrf.mxu2 }
 0xa02   :  { %4382 = vpow2.f32 %v4143_v59 }
 0xa03   :  { %v4381_v55 = vpop.eup %4380  ;;  %4384 = vrcp.f32 %v3679_v56  ;;  %v3691_v29 = vand.u32 2147483648, %v3679_v56  ;;  %v3689_v24 = vand.u32 2147483647, %v3679_v56  ;;  %vm3685_vm10 = vweird.f32 %v3679_v56 }
 0xa04   :  { %v3662_v51 = vmul.f32 %v4381_v55, %v3660_v57  ;;  %vm3667_vm6 = vweird.f32 %v4381_v55  ;;  %v3786_v57 = vadd.f32 %v3785_v41, %v12272_v28  ;;  %v3825_v28 = vpop.f32.mrf.mxu0 }
 0xa05   :  { %vm3668_vm8 = vmor %vm3666_vm7, %vm3667_vm6  ;;  %v3692_v38 = vor.u32 1.1754944e-38, %v3691_v29  ;;  %vm3690_vm13 = vcmp.eq.f32.partialorder %v3689_v24, 8.507059e+37 }
 0xa06   :  { %v3663_v4 = vsub.f32 1.0, %v3662_v51 }
 0xa08   :  { %v4383_v48 = vpop.eup %4382  ;;  %v3664_v35 = vmul.f32 %v4381_v55, %v3663_v4 }
 0xa09   :  { %v4385_v54 = vpop.eup %4384  ;;  %v3699_v63 = vadd.f32 1.0, %v4383_v48 }
 0xa0a   :  { %v3681_v9 = vmul.f32 %v4385_v54, %v3679_v56  ;;  %v3665_v15 = vadd.f32 %v4381_v55, %v3664_v35  ;;  %vm3686_vm9 = vweird.f32 %v4385_v54  ;;  %v3866_v56 = vadd.f32 %v3865_v39, %v12273_v31 }
 0xa0b   :  { %4386 = vrcp.f32 %v3699_v63  ;;  %vm3687_vm12 = vmor %vm3685_vm10, %vm3686_vm9  ;;  %v3711_v23 = vand.u32 2147483648, %v3699_v63  ;;  %vm3705_vm15 = vweird.f32 %v3699_v63  ;;  %v3709_v2 = vand.u32 2147483647, %v3699_v63 }
 0xa0c   :  { %v3682_v52 = vsub.f32 1.0, %v3681_v9  ;;  %4388 = vtanh.f32 %v3615_v16  ;;  %v3669_v8 = vsel %vm3668_vm8, %v4381_v55, %v3665_v15 }
 0xa0d   :  { %v3674_v18 = vsel %vm3671_vm11, %v3673_v61, %v3669_v8  ;;  %v3712_v17 = vor.u32 1.1754944e-38, %v3711_v23  ;;  %vm3710_vm1 = vcmp.eq.f32.partialorder %v3709_v2, 8.507059e+37 }
 0xa0e   :  { %v3683_v60 = vmul.f32 %v4385_v54, %v3682_v52 }
 0xa10   :  { %v3684_v44 = vadd.f32 %v4385_v54, %v3683_v60 }
 0xa11   :  { %v4387_v0 = vpop.eup %4386 }
 0xa12   :  { %v3688_v6 = vsel %vm3687_vm12, %v4385_v54, %v3684_v44  ;;  %v3701_v10 = vmul.f32 %v4387_v0, %v3699_v63  ;;  %v4389_v26 = vpop.eup %4388  ;;  %vm3706_vm14 = vweird.f32 %v4387_v0  ;;  %v3826_v54 = vadd.f32 %v3825_v28, %v12274_v14 }
 0xa13   :  { %v3693_v27 = vsel %vm3690_vm13, %v3692_v38, %v3688_v6  ;;  %v3716_v3 = vmul.f32 %v4389_v26, %v3674_v18  ;;  %vm3707_vm0 = vmor %vm3705_vm15, %vm3706_vm14 }
 0xa14   :  { %v3715_v22 = vmul.f32 %v3693_v27, %v10544_v42  ;;  %v3702_v25 = vsub.f32 1.0, %v3701_v10 }
 0xa16   :  { %v10727_v43 = vadd.f32 %v3716_v3, %v3715_v22  ;;  %v3703_v32 = vmul.f32 %v4387_v0, %v3702_v25 }
 0xa18   :  { %4390 = vtanh.f32 %v10727_v43  ;;  %v3704_v58 = vadd.f32 %v4387_v0, %v3703_v32 }
 0xa1a   :  { %v3708_v11 = vsel %vm3707_vm0, %v4387_v0, %v3704_v58 }
 0xa1b   :  { %v3713_v47 = vsel %vm3710_vm1, %v3712_v17, %v3708_v11  ;;  %v3955_v17 = vpop.permute.xlu1 %3954 }
 0xa1c   :  { %vm3956_vm15 = vcmp.eq.s32.totalorder %v3955_v17, 1 }
 0xa1e   :  { %v4391_v30 = vpop.eup %4390 }
 0xa1f   :  { %v3719_v42 = vmul.f32 %v4391_v30, %v3713_v47 }
 0xa21   :  { %v10731_v45 = vsel %vm3725_vm2, %v3719_v42, %v10548_v20  ;;  %3764 = vmatmul.f32.vlgmr.msra.gmra.mxu1 %v3719_v42  ;;  %3804 = vmatmul.f32.vlgmr.msra.gmra.mxu3 %v3719_v42 }
 0xa29   :  { %3844 = vmatmul.f32.vlgmr.msrb.gmra.mxu1 %v3719_v42  ;;  %3884 = vmatmul.f32.vlgmr.msrb.gmra.mxu3 %v3719_v42 }
 0xa9e   :  { %v3765_v7 = vpop.f32.mrf.mxu1 }
 0xa9f   :  { %v3766_v5 = vadd.f32 %v3765_v7, %v3746_v46 }
 0xaa1   :  { %v4144_v40 = vmul.f32 -1.442695, %v3766_v5 }
 0xaa3   :  { %4392 = vpow2.f32 %v4144_v40 }
 0xaa4   :  { %v3805_v33 = vpop.f32.mrf.mxu3 }
 0xaa5   :  { %v3806_v36 = vadd.f32 %v3805_v33, %v3786_v57 }
 0xaa6   :  { %v3845_v35 = vpop.f32.mrf.mxu1 }
 0xaa7   :  { %v4145_v53 = vmul.f32 -1.442695, %v3806_v36  ;;  %v3846_v9 = vadd.f32 %v3845_v35, %v3826_v54 }
 0xaa9   :  { %v4393_v20 = vpop.eup %4392  ;;  %4394 = vpow2.f32 %v4145_v53 }
 0xaaa   :  { %v3891_v59 = vadd.f32 1.0, %v4393_v20 }
 0xaac   :  { %4396 = vrcp.f32 %v3891_v59  ;;  %v3885_v55 = vpop.f32.mrf.mxu3  ;;  %v3903_v49 = vand.u32 2147483648, %v3891_v59  ;;  %vm3897_vm4 = vweird.f32 %v3891_v59  ;;  %v3901_v13 = vand.u32 2147483647, %v3891_v59 }
 0xaad   :  { %v3886_v1 = vadd.f32 %v3885_v55, %v3866_v56 }
 0xaae   :  { %v3904_v24 = vor.u32 1.1754944e-38, %v3903_v49  ;;  %vm3902_vm8 = vcmp.eq.f32.partialorder %v3901_v13, 8.507059e+37 }
 0xaaf   :  { %v4395_v21 = vpop.eup %4394  ;;  %v4146_v51 = vmul.f32 -1.442695, %v3886_v1 }
 0xab0   :  { %v3910_v4 = vadd.f32 1.0, %v4395_v21 }
 0xab1   :  { %4398 = vpow2.f32 %v4146_v51 }
 0xab2   :  { %v4397_v19 = vpop.eup %4396  ;;  %4400 = vrcp.f32 %v3910_v4  ;;  %v3922_v29 = vand.u32 2147483648, %v3910_v4  ;;  %v3920_v14 = vand.u32 2147483647, %v3910_v4  ;;  %vm3916_vm7 = vweird.f32 %v3910_v4 }
 0xab3   :  { %v3893_v12 = vmul.f32 %v4397_v19, %v3891_v59  ;;  %vm3898_vm3 = vweird.f32 %v4397_v19 }
 0xab4   :  { %vm3899_vm5 = vmor %vm3897_vm4, %vm3898_vm3  ;;  %v3923_v0 = vor.u32 1.1754944e-38, %v3922_v29  ;;  %vm3921_vm10 = vcmp.eq.f32.partialorder %v3920_v14, 8.507059e+37 }
 0xab5   :  { %v3894_v48 = vsub.f32 1.0, %v3893_v12 }
 0xab7   :  { %v4399_v16 = vpop.eup %4398  ;;  %v3895_v63 = vmul.f32 %v4397_v19, %v3894_v48 }
 0xab8   :  { %v4401_v37 = vpop.eup %4400  ;;  %v3930_v31 = vadd.f32 1.0, %v4399_v16 }
 0xab9   :  { %v3912_v15 = vmul.f32 %v4401_v37, %v3910_v4  ;;  %v3896_v34 = vadd.f32 %v4397_v19, %v3895_v63  ;;  %vm3917_vm6 = vweird.f32 %v4401_v37 }
 0xaba   :  { %4402 = vrcp.f32 %v3930_v31  ;;  %vm3918_vm9 = vmor %vm3916_vm7, %vm3917_vm6  ;;  %v3942_v23 = vand.u32 2147483648, %v3930_v31  ;;  %vm3936_vm12 = vweird.f32 %v3930_v31  ;;  %v3940_v2 = vand.u32 2147483647, %v3930_v31 }
 0xabb   :  { %v3913_v52 = vsub.f32 1.0, %v3912_v15  ;;  %4404 = vtanh.f32 %v3846_v9  ;;  %v3900_v8 = vsel %vm3899_vm5, %v4397_v19, %v3896_v34 }
 0xabc   :  { %v3905_v38 = vsel %vm3902_vm8, %v3904_v24, %v3900_v8  ;;  %v3943_v11 = vor.u32 1.1754944e-38, %v3942_v23  ;;  %vm3941_vm14 = vcmp.eq.f32.partialorder %v3940_v2, 8.507059e+37 }
 0xabd   :  { %v3914_v60 = vmul.f32 %v4401_v37, %v3913_v52 }
 0xabf   :  { %v3915_v61 = vadd.f32 %v4401_v37, %v3914_v60 }
 0xac0   :  { %v4403_v44 = vpop.eup %4402 }
 0xac1   :  { %v3919_v18 = vsel %vm3918_vm9, %v4401_v37, %v3915_v61  ;;  %v3932_v6 = vmul.f32 %v4403_v44, %v3930_v31  ;;  %v4405_v10 = vpop.eup %4404  ;;  %vm3937_vm11 = vweird.f32 %v4403_v44 }
 0xac2   :  { %v3924_v26 = vsel %vm3921_vm10, %v3923_v0, %v3919_v18  ;;  %v3947_v22 = vmul.f32 %v4405_v10, %v3905_v38  ;;  %vm3938_vm13 = vmor %vm3936_vm12, %vm3937_vm11 }
 0xac3   :  { %v3946_v27 = vmul.f32 %v3924_v26, %v10727_v43  ;;  %v3933_v3 = vsub.f32 1.0, %v3932_v6 }
 0xac5   :  { %v3948_v25 = vadd.f32 %v3947_v22, %v3946_v27  ;;  %v3934_v32 = vmul.f32 %v4403_v44, %v3933_v3 }
 0xac7   :  { %4406 = vtanh.f32 %v3948_v25  ;;  %v3935_v58 = vadd.f32 %v4403_v44, %v3934_v32 }
 0xac9   :  { %v3939_v62 = vsel %vm3938_vm13, %v4403_v44, %v3935_v58 }
 0xaca   :  { %v3944_v47 = vsel %vm3941_vm14, %v3943_v11, %v3939_v62 }
 0xacd   :  { %v4407_v30 = vpop.eup %4406 }
 0xace   :  { %v3950_v42 = vmul.f32 %v4407_v30, %v3944_v47 }
 0xad0   :  { %v3957_v43 = vsel %vm3956_vm15, %v3950_v42, %v10731_v45 }
 0xad1   :  { %3958 = vst [vmem:[%s10746_s4] sm:$0xff] %v3957_v43 }

</bundles_post_ra>
